<compile_context>
chip_gen: v6e
topology: v6e:2x2x1
jax: 0.10.0
libtpu: 0.0.40
codegen_flags: <defaults>
</compile_context>

<pallas_src>
import functools

import jax
import jax.numpy as jnp
from jax import lax
from jax.experimental import pallas as pl
from jax.experimental.pallas import tpu as pltpu


def mha_kernel(x_ref, wqkv_ref, wout_ref, bout_ref, o_ref, *, n_head, mxu_dtype):
    # x_ref:    (Bblk, T, C)  activations (f32)
    # wqkv_ref: (C, 3*D)      fused q/k/v weights, query part pre-scaled, MXU dtype
    # wout_ref: (D, C)        output projection, MXU dtype
    # bout_ref: (1, C)        output bias, MXU dtype
    # o_ref:    (Bblk, T, C)
    bblk, t, c = x_ref.shape
    d = wout_ref.shape[0]
    hs = d // n_head

    # --- fused q/k/v projection for all heads: one lane-dense MXU matmul ----
    x2 = x_ref[...].reshape(bblk * t, c).astype(mxu_dtype)
    qkv = jnp.dot(x2, wqkv_ref[...], preferred_element_type=jnp.float32)  # (M, 3D) f32
    qkv = qkv.reshape(bblk, t, 3 * d)
    q = qkv[:, :, 0:d]            # 1/sqrt(head_size) already folded into weights
    k = qkv[:, :, d:2 * d]
    v = qkv[:, :, 2 * d:3 * d]

    # --- causal mask: built once per grid step, reused by every head --------
    row = lax.broadcasted_iota(jnp.int32, (t, t), 0)
    col = lax.broadcasted_iota(jnp.int32, (t, t), 1)
    causal = jnp.broadcast_to((col <= row)[None, :, :], (bblk, t, t))
    neg_big = jnp.float32(-1e30)  # finite: no exp(-inf - -inf) NaN if a row were
                                  # ever fully masked (diagonal is never masked here)

    # --- per-head attention, accumulated straight into the output proj ------
    y = jnp.zeros((bblk * t, c), jnp.float32)
    for h in range(n_head):
        q_h = q[:, :, h * hs:(h + 1) * hs].astype(mxu_dtype)
        k_h = k[:, :, h * hs:(h + 1) * hs].astype(mxu_dtype)
        v_h = v[:, :, h * hs:(h + 1) * hs].astype(mxu_dtype)
        # contract last axes directly (no explicit k.T)
        s = jnp.einsum("bqd,bkd->bqk", q_h, k_h,
                       preferred_element_type=jnp.float32)         # (Bblk, T, T)
        s = jnp.where(causal, s, neg_big)
        # TODO(synk): the original calls F.softmax with no dim (implicit-dim
        # deprecation path); we implement the intended last-(key-)dim softmax.
        s = s - jnp.max(s, axis=-1, keepdims=True)
        e = jnp.exp(s)
        p = e * pl.reciprocal(jnp.sum(e, axis=-1, keepdims=True), approx=False)
        # TODO(synk): nn.Dropout(p=0.1) on attention weights modeled in eval
        # mode (identity); stochastic dropout omitted for determinism.
        o_h = jnp.einsum("bqk,bkd->bqd", p.astype(mxu_dtype), v_h,
                         preferred_element_type=jnp.float32)       # (Bblk, T, Hs)
        # accumulate this head's contribution to the output projection
        y = y + jnp.dot(o_h.reshape(bblk * t, hs).astype(mxu_dtype),
                        wout_ref[pl.ds(h * hs, hs), :],
                        preferred_element_type=jnp.float32)        # (M, C)

    y = y + bout_ref[...]
    # TODO(synk): output nn.Dropout(p=0.1) modeled in eval mode (identity).
    o_ref[...] = y.reshape(bblk, t, c).astype(o_ref.dtype)


def _is_v7x():
    try:
        kind = jax.devices()[0].device_kind.lower()
    except Exception:
        return False
    return ("v7" in kind) or ("tpu7" in kind)


def _default_block_b(batch, t, c, d, weight_itemsize):
    """Grid = number of TensorCores: 1 block on v5e/v6e, 2 'parallel' blocks on
    v7x.  Shrink further only if one block would blow the 32 MiB scoped-VMEM
    default (only relevant if T/C are scaled up; v7x has 64 MiB physical)."""
    n_blocks = 2 if _is_v7x() else 1
    if n_blocks > 1 and batch >= n_blocks and batch % n_blocks == 0:
        block_b = batch // n_blocks
    else:
        block_b = batch

    def vmem_bytes(bb):
        io = 2 * 2 * bb * t * c * 4                      # x + out, double-buffered f32
        w = (c * 3 * d + d * c + c) * weight_itemsize    # weights, ~single-buffered
        inter = bb * t * (3 * d + c) * 4                 # qkv + accumulator (f32)
        return io + w + inter

    while (block_b > 1 and vmem_bytes(block_b) > 24 * 1024 * 1024
           and batch % (block_b // 2) == 0):
        block_b //= 2
    return block_b


def _build_mha_call(kernel, *, b, t, c, d, block_b, out_dtype, weight_buffering):
    # Grid-invariant weights (constant index_map) can be single-buffered.
    wkw = {} if weight_buffering is None else {"pipeline_mode": pl.Buffered(weight_buffering)}
    return pl.pallas_call(
        kernel,
        out_shape=jax.ShapeDtypeStruct((b, t, c), out_dtype),
        grid_spec=pltpu.PrefetchScalarGridSpec(
            num_scalar_prefetch=0,
            grid=(b // block_b,),
            in_specs=[
                pl.BlockSpec((block_b, t, c), lambda i: (i, 0, 0)),      # x block
                pl.BlockSpec((c, 3 * d), lambda i: (0, 0), **wkw),       # fused qkv W
                pl.BlockSpec((d, c), lambda i: (0, 0), **wkw),           # output W
                pl.BlockSpec((1, c), lambda i: (0, 0), **wkw),           # output bias
            ],
            out_specs=pl.BlockSpec((block_b, t, c), lambda i: (i, 0, 0)),
        ),
        compiler_params=pltpu.CompilerParams(
            dimension_semantics=("parallel",)),
    )


def mha_forward(x, w_qkv, w_out, b_out, *, n_head, block_b=None,
                mxu_dtype=jnp.bfloat16):
    """w_qkv/w_out/b_out should already be in the MXU dtype (see prepare_weights);
    x stays f32 and is cast to mxu_dtype inside the kernel (cheap: activations
    are tiny compared to the weight DMA)."""
    b, t, c = x.shape
    d = w_out.shape[0]
    assert w_qkv.shape == (c, 3 * d) and d % n_head == 0
    if block_b is None:
        block_b = _default_block_b(b, t, c, d, jnp.dtype(w_qkv.dtype).itemsize)
    assert b % block_b == 0

    kernel = functools.partial(mha_kernel, n_head=n_head, mxu_dtype=mxu_dtype)
    args = (x, w_qkv, w_out, b_out)
    try:
        call = _build_mha_call(kernel, b=b, t=t, c=c, d=d, block_b=block_b,
                               out_dtype=x.dtype, weight_buffering=1)
        return call(*args)
    except Exception:
        # Fallback: some jax versions reject pl.Buffered(1) on pipelined inputs;
        # double-buffered weights are still correct (just a bit more VMEM).
        call = _build_mha_call(kernel, b=b, t=t, c=c, d=d, block_b=block_b,
                               out_dtype=x.dtype, weight_buffering=None)
        return call(*args)


def prepare_weights(w_q, w_k, w_v, w_out, b_out, *, head_size,
                    mxu_dtype=jnp.bfloat16):
    """Host-side fusion: fold 1/sqrt(head_size) into the query weights, fuse
    q/k/v of all heads into one wide (C, 3*D) operand, and pre-cast everything
    to the MXU dtype so the kernel does no per-step weight casts and the HBM
    weight DMA is halved (bf16)."""
    scale = head_size ** (-0.5)
    w_qkv = jnp.concatenate([w_q * scale, w_k, w_v], axis=1)
    return (w_qkv.astype(mxu_dtype),
            w_out.astype(mxu_dtype),
            b_out.astype(mxu_dtype))


def mha_reference(x, w_q, w_k, w_v, w_out, b_out, *, n_head):
    b, t, c = x.shape
    d = w_q.shape[1]
    hs = d // n_head
    q = (x @ w_q).reshape(b, t, n_head, hs)
    k = (x @ w_k).reshape(b, t, n_head, hs)
    v = (x @ w_v).reshape(b, t, n_head, hs)
    s = jnp.einsum("bqhd,bkhd->bhqk", q, k) * (hs ** -0.5)
    mask = jnp.tril(jnp.ones((t, t), dtype=bool))
    s = jnp.where(mask, s, -jnp.inf)
    p = jax.nn.softmax(s, axis=-1)
    attn = jnp.einsum("bhqk,bkhd->bqhd", p, v).reshape(b, t, d)
    return attn @ w_out + b_out


if __name__ == "__main__":
    # Shapes implied by the module: block_size=8, embed_size=384, n_head=6,
    # head_size = embed_size // n_head = 64.
    B, T = 8, 8
    n_head, head_size = 6, 64
    C = 384
    D = n_head * head_size

    key = jax.random.PRNGKey(0)
    kx, kq, kk, kv, kwo, kbo = jax.random.split(key, 6)
    x = jax.random.normal(kx, (B, T, C), dtype=jnp.float32)

    # Per-head nn.Linear(embed, head, bias=False) weights (stored transposed,
    # heads concatenated along the output dim), plus the output projection.
    lim_in = 1.0 / (C ** 0.5)
    w_q = jax.random.uniform(kq, (C, D), jnp.float32, -lim_in, lim_in)
    w_k = jax.random.uniform(kk, (C, D), jnp.float32, -lim_in, lim_in)
    w_v = jax.random.uniform(kv, (C, D), jnp.float32, -lim_in, lim_in)
    lim_o = 1.0 / (D ** 0.5)
    w_out = jax.random.uniform(kwo, (D, C), jnp.float32, -lim_o, lim_o)
    b_out = jax.random.uniform(kbo, (1, C), jnp.float32, -lim_o, lim_o)

    ref = mha_reference(x, w_q, w_k, w_v, w_out, b_out, n_head=n_head)

    # ---- default optimized path: bf16 weights / MXU operands, f32 softmax ----
    w_qkv_bf, w_out_bf, b_out_bf = prepare_weights(
        w_q, w_k, w_v, w_out, b_out, head_size=head_size, mxu_dtype=jnp.bfloat16)
    out = jax.block_until_ready(
        mha_forward(x, w_qkv_bf, w_out_bf, b_out_bf, n_head=n_head,
                    mxu_dtype=jnp.bfloat16))
    assert out.shape == (B, T, C) and out.dtype == jnp.float32
    err_bf16 = float(jnp.max(jnp.abs(out - ref)))
    assert jnp.allclose(out, ref, atol=1e-1, rtol=1e-1), err_bf16

    # ---- f32 path (exact-precision check of the kernel structure) ----
    w_qkv_f32, w_out_f32, b_out_f32 = prepare_weights(
        w_q, w_k, w_v, w_out, b_out, head_size=head_size, mxu_dtype=jnp.float32)
    out_f32 = jax.block_until_ready(
        mha_forward(x, w_qkv_f32, w_out_f32, b_out_f32, n_head=n_head,
                    mxu_dtype=jnp.float32))
    err_f32 = float(jnp.max(jnp.abs(out_f32 - ref)))
    assert jnp.allclose(out_f32, ref, atol=2e-3, rtol=2e-3), err_f32

    print("KERNEL_OK")
</pallas_src>

<mosaic_0001>
module attributes {stable_mosaic.version = 11 : i64} {
  func.func @mha_kernel(%arg0: i32, %arg1: memref<8x8x384xf32, #tpu.memory_space<vmem>>, %arg2: memref<384x1152xbf16, #tpu.memory_space<vmem>>, %arg3: memref<384x384xbf16, #tpu.memory_space<vmem>>, %arg4: memref<1x384xbf16, #tpu.memory_space<vmem>>, %arg5: memref<8x8x384xf32, #tpu.memory_space<vmem>>) attributes {dimension_semantics = [#tpu.dimension_semantics<parallel>], iteration_bounds = array<i64: 1>, scalar_prefetch = 0 : i64, scratch_operands = 0 : i64, tpu.core_type = #tpu.core_type<tc>, window_params = [{transform_indices = @transform_0, window_bounds = array<i64: 8, 8, 384>}, {pipeline_mode = #tpu.pipeline_mode<synchronous>, transform_indices = @transform_1, window_bounds = array<i64: 384, 1152>}, {pipeline_mode = #tpu.pipeline_mode<synchronous>, transform_indices = @transform_2, window_bounds = array<i64: 384, 384>}, {pipeline_mode = #tpu.pipeline_mode<synchronous>, transform_indices = @transform_3, window_bounds = array<i64: 1, 384>}, {transform_indices = @transform_4, window_bounds = array<i64: 8, 8, 384>}]} {
    %c0 = arith.constant 0 : index
    %c0_0 = arith.constant 0 : index
    %c0_1 = arith.constant 0 : index
    %0 = vector.load %arg1[%c0, %c0_0, %c0_1] : memref<8x8x384xf32, #tpu.memory_space<vmem>>, vector<8x8x384xf32>
    %1 = vector.shape_cast %0 : vector<8x8x384xf32> to vector<64x384xf32>
    %2 = arith.truncf %1 : vector<64x384xf32> to vector<64x384xbf16>
    %c0_2 = arith.constant 0 : index
    %c0_3 = arith.constant 0 : index
    %3 = vector.load %arg2[%c0_2, %c0_3] : memref<384x1152xbf16, #tpu.memory_space<vmem>>, vector<384x1152xbf16>
    %cst = arith.constant dense<0.000000e+00> : vector<64x1152xf32>
    %4 = tpu.matmul %2, %3, %cst {dimension_numbers = #tpu.dot_dimension_numbers<[1], [0], [0], [1], [0, 0, 1, 1], [], []>} : vector<64x384xbf16>, vector<384x1152xbf16>, vector<64x1152xf32> -> vector<64x1152xf32>
    %5 = vector.shape_cast %4 : vector<64x1152xf32> to vector<8x8x1152xf32>
    %6 = vector.extract_strided_slice %5 {offsets = [0, 0, 0], sizes = [8, 8, 384], strides = [1, 1, 1]} : vector<8x8x1152xf32> to vector<8x8x384xf32>
    %7 = vector.extract_strided_slice %5 {offsets = [0, 0, 384], sizes = [8, 8, 384], strides = [1, 1, 1]} : vector<8x8x1152xf32> to vector<8x8x384xf32>
    %8 = vector.extract_strided_slice %5 {offsets = [0, 0, 768], sizes = [8, 8, 384], strides = [1, 1, 1]} : vector<8x8x1152xf32> to vector<8x8x384xf32>
    %9 = tpu.iota {dimensions = array<i32: 0>} : vector<8x8xi32>
    %10 = tpu.iota {dimensions = array<i32: 1>} : vector<8x8xi32>
    %11 = arith.cmpi sle, %10, %9 : vector<8x8xi32>
    %12 = vector.shape_cast %11 : vector<8x8xi1> to vector<1x8x8xi1>
    %13 = vector.shape_cast %12 : vector<1x8x8xi1> to vector<1x8x8xi1>
    %14 = vector.broadcast %13 : vector<1x8x8xi1> to vector<8x8x8xi1>
    %cst_4 = arith.constant 0.000000e+00 : f32
    %15 = vector.broadcast %cst_4 : f32 to vector<64x384xf32>
    %16 = vector.extract_strided_slice %6 {offsets = [0, 0, 0], sizes = [8, 8, 64], strides = [1, 1, 1]} : vector<8x8x384xf32> to vector<8x8x64xf32>
    %17 = arith.truncf %16 : vector<8x8x64xf32> to vector<8x8x64xbf16>
    %18 = vector.extract_strided_slice %7 {offsets = [0, 0, 0], sizes = [8, 8, 64], strides = [1, 1, 1]} : vector<8x8x384xf32> to vector<8x8x64xf32>
    %19 = arith.truncf %18 : vector<8x8x64xf32> to vector<8x8x64xbf16>
    %20 = vector.extract_strided_slice %8 {offsets = [0, 0, 0], sizes = [8, 8, 64], strides = [1, 1, 1]} : vector<8x8x384xf32> to vector<8x8x64xf32>
    %21 = arith.truncf %20 : vector<8x8x64xf32> to vector<8x8x64xbf16>
    "tpu.trace_start"() <{level = 10 : i32, message = "bqd,bkd->bqk"}> : () -> ()
    %cst_5 = arith.constant dense<0.000000e+00> : vector<8x8x8xf32>
    %22 = tpu.matmul %17, %19, %cst_5 {dimension_numbers = #tpu.dot_dimension_numbers<[2], [2], [1], [1], [0, 0, 0, 1, 1, 1], [0], [0]>} : vector<8x8x64xbf16>, vector<8x8x64xbf16>, vector<8x8x8xf32> -> vector<8x8x8xf32>
    %cst_6 = arith.constant -1.000000e+30 : f32
    "tpu.trace_stop"() : () -> ()
    %23 = vector.broadcast %cst_6 : f32 to vector<8x8x8xf32>
    %24 = arith.select %14, %22, %23 : vector<8x8x8xi1>, vector<8x8x8xf32>
    %cst_7 = arith.constant dense<0xFF800000> : vector<8x8xf32>
    %25 = vector.multi_reduction <maximumf>, %24, %cst_7 [2] : vector<8x8x8xf32> to vector<8x8xf32>
    %26 = vector.shape_cast %25 : vector<8x8xf32> to vector<8x8x1xf32>
    %27 = vector.broadcast %26 : vector<8x8x1xf32> to vector<8x8x8xf32>
    %28 = arith.subf %24, %27 : vector<8x8x8xf32>
    %29 = math.exp %28 : vector<8x8x8xf32>
    %cst_8 = arith.constant dense<0.000000e+00> : vector<8x8xf32>
    %30 = vector.multi_reduction <add>, %29, %cst_8 [2] : vector<8x8x8xf32> to vector<8x8xf32>
    %31 = vector.shape_cast %30 : vector<8x8xf32> to vector<8x8x1xf32>
    %32 = tpu.reciprocal %31 : vector<8x8x1xf32> -> vector<8x8x1xf32>
    %33 = vector.broadcast %32 : vector<8x8x1xf32> to vector<8x8x8xf32>
    %34 = arith.mulf %29, %33 : vector<8x8x8xf32>
    %35 = arith.truncf %34 : vector<8x8x8xf32> to vector<8x8x8xbf16>
    "tpu.trace_start"() <{level = 10 : i32, message = "bqk,bkd->bqd"}> : () -> ()
    %cst_9 = arith.constant dense<0.000000e+00> : vector<8x8x64xf32>
    %36 = tpu.matmul %35, %21, %cst_9 {dimension_numbers = #tpu.dot_dimension_numbers<[2], [1], [1], [2], [0, 0, 0, 1, 1, 2], [0], [0]>} : vector<8x8x8xbf16>, vector<8x8x64xbf16>, vector<8x8x64xf32> -> vector<8x8x64xf32>
    "tpu.trace_stop"() : () -> ()
    %37 = vector.shape_cast %36 : vector<8x8x64xf32> to vector<64x64xf32>
    %38 = arith.truncf %37 : vector<64x64xf32> to vector<64x64xbf16>
    %c0_10 = arith.constant 0 : index
    %c0_11 = arith.constant 0 : index
    %39 = vector.load %arg3[%c0_10, %c0_11] : memref<384x384xbf16, #tpu.memory_space<vmem>>, vector<64x384xbf16>
    %cst_12 = arith.constant dense<0.000000e+00> : vector<64x384xf32>
    %40 = tpu.matmul %38, %39, %cst_12 {dimension_numbers = #tpu.dot_dimension_numbers<[1], [0], [0], [1], [0, 0, 1, 1], [], []>} : vector<64x64xbf16>, vector<64x384xbf16>, vector<64x384xf32> -> vector<64x384xf32>
    %41 = arith.addf %15, %40 : vector<64x384xf32>
    %42 = vector.extract_strided_slice %6 {offsets = [0, 0, 64], sizes = [8, 8, 64], strides = [1, 1, 1]} : vector<8x8x384xf32> to vector<8x8x64xf32>
    %43 = arith.truncf %42 : vector<8x8x64xf32> to vector<8x8x64xbf16>
    %44 = vector.extract_strided_slice %7 {offsets = [0, 0, 64], sizes = [8, 8, 64], strides = [1, 1, 1]} : vector<8x8x384xf32> to vector<8x8x64xf32>
    %45 = arith.truncf %44 : vector<8x8x64xf32> to vector<8x8x64xbf16>
    %46 = vector.extract_strided_slice %8 {offsets = [0, 0, 64], sizes = [8, 8, 64], strides = [1, 1, 1]} : vector<8x8x384xf32> to vector<8x8x64xf32>
    %47 = arith.truncf %46 : vector<8x8x64xf32> to vector<8x8x64xbf16>
    "tpu.trace_start"() <{level = 10 : i32, message = "bqd,bkd->bqk"}> : () -> ()
    %cst_13 = arith.constant dense<0.000000e+00> : vector<8x8x8xf32>
    %48 = tpu.matmul %43, %45, %cst_13 {dimension_numbers = #tpu.dot_dimension_numbers<[2], [2], [1], [1], [0, 0, 0, 1, 1, 1], [0], [0]>} : vector<8x8x64xbf16>, vector<8x8x64xbf16>, vector<8x8x8xf32> -> vector<8x8x8xf32>
    %cst_14 = arith.constant -1.000000e+30 : f32
    "tpu.trace_stop"() : () -> ()
    %49 = vector.broadcast %cst_14 : f32 to vector<8x8x8xf32>
    %50 = arith.select %14, %48, %49 : vector<8x8x8xi1>, vector<8x8x8xf32>
    %cst_15 = arith.constant dense<0xFF800000> : vector<8x8xf32>
    %51 = vector.multi_reduction <maximumf>, %50, %cst_15 [2] : vector<8x8x8xf32> to vector<8x8xf32>
    %52 = vector.shape_cast %51 : vector<8x8xf32> to vector<8x8x1xf32>
    %53 = vector.broadcast %52 : vector<8x8x1xf32> to vector<8x8x8xf32>
    %54 = arith.subf %50, %53 : vector<8x8x8xf32>
    %55 = math.exp %54 : vector<8x8x8xf32>
    %cst_16 = arith.constant dense<0.000000e+00> : vector<8x8xf32>
    %56 = vector.multi_reduction <add>, %55, %cst_16 [2] : vector<8x8x8xf32> to vector<8x8xf32>
    %57 = vector.shape_cast %56 : vector<8x8xf32> to vector<8x8x1xf32>
    %58 = tpu.reciprocal %57 : vector<8x8x1xf32> -> vector<8x8x1xf32>
    %59 = vector.broadcast %58 : vector<8x8x1xf32> to vector<8x8x8xf32>
    %60 = arith.mulf %55, %59 : vector<8x8x8xf32>
    %61 = arith.truncf %60 : vector<8x8x8xf32> to vector<8x8x8xbf16>
    "tpu.trace_start"() <{level = 10 : i32, message = "bqk,bkd->bqd"}> : () -> ()
    %cst_17 = arith.constant dense<0.000000e+00> : vector<8x8x64xf32>
    %62 = tpu.matmul %61, %47, %cst_17 {dimension_numbers = #tpu.dot_dimension_numbers<[2], [1], [1], [2], [0, 0, 0, 1, 1, 2], [0], [0]>} : vector<8x8x8xbf16>, vector<8x8x64xbf16>, vector<8x8x64xf32> -> vector<8x8x64xf32>
    "tpu.trace_stop"() : () -> ()
    %63 = vector.shape_cast %62 : vector<8x8x64xf32> to vector<64x64xf32>
    %64 = arith.truncf %63 : vector<64x64xf32> to vector<64x64xbf16>
    %c64 = arith.constant 64 : index
    %c0_18 = arith.constant 0 : index
    %65 = vector.load %arg3[%c64, %c0_18] : memref<384x384xbf16, #tpu.memory_space<vmem>>, vector<64x384xbf16>
    %cst_19 = arith.constant dense<0.000000e+00> : vector<64x384xf32>
    %66 = tpu.matmul %64, %65, %cst_19 {dimension_numbers = #tpu.dot_dimension_numbers<[1], [0], [0], [1], [0, 0, 1, 1], [], []>} : vector<64x64xbf16>, vector<64x384xbf16>, vector<64x384xf32> -> vector<64x384xf32>
    %67 = arith.addf %41, %66 : vector<64x384xf32>
    %68 = vector.extract_strided_slice %6 {offsets = [0, 0, 128], sizes = [8, 8, 64], strides = [1, 1, 1]} : vector<8x8x384xf32> to vector<8x8x64xf32>
    %69 = arith.truncf %68 : vector<8x8x64xf32> to vector<8x8x64xbf16>
    %70 = vector.extract_strided_slice %7 {offsets = [0, 0, 128], sizes = [8, 8, 64], strides = [1, 1, 1]} : vector<8x8x384xf32> to vector<8x8x64xf32>
    %71 = arith.truncf %70 : vector<8x8x64xf32> to vector<8x8x64xbf16>
    %72 = vector.extract_strided_slice %8 {offsets = [0, 0, 128], sizes = [8, 8, 64], strides = [1, 1, 1]} : vector<8x8x384xf32> to vector<8x8x64xf32>
    %73 = arith.truncf %72 : vector<8x8x64xf32> to vector<8x8x64xbf16>
    "tpu.trace_start"() <{level = 10 : i32, message = "bqd,bkd->bqk"}> : () -> ()
    %cst_20 = arith.constant dense<0.000000e+00> : vector<8x8x8xf32>
    %74 = tpu.matmul %69, %71, %cst_20 {dimension_numbers = #tpu.dot_dimension_numbers<[2], [2], [1], [1], [0, 0, 0, 1, 1, 1], [0], [0]>} : vector<8x8x64xbf16>, vector<8x8x64xbf16>, vector<8x8x8xf32> -> vector<8x8x8xf32>
    %cst_21 = arith.constant -1.000000e+30 : f32
    "tpu.trace_stop"() : () -> ()
    %75 = vector.broadcast %cst_21 : f32 to vector<8x8x8xf32>
    %76 = arith.select %14, %74, %75 : vector<8x8x8xi1>, vector<8x8x8xf32>
    %cst_22 = arith.constant dense<0xFF800000> : vector<8x8xf32>
    %77 = vector.multi_reduction <maximumf>, %76, %cst_22 [2] : vector<8x8x8xf32> to vector<8x8xf32>
    %78 = vector.shape_cast %77 : vector<8x8xf32> to vector<8x8x1xf32>
    %79 = vector.broadcast %78 : vector<8x8x1xf32> to vector<8x8x8xf32>
    %80 = arith.subf %76, %79 : vector<8x8x8xf32>
    %81 = math.exp %80 : vector<8x8x8xf32>
    %cst_23 = arith.constant dense<0.000000e+00> : vector<8x8xf32>
    %82 = vector.multi_reduction <add>, %81, %cst_23 [2] : vector<8x8x8xf32> to vector<8x8xf32>
    %83 = vector.shape_cast %82 : vector<8x8xf32> to vector<8x8x1xf32>
    %84 = tpu.reciprocal %83 : vector<8x8x1xf32> -> vector<8x8x1xf32>
    %85 = vector.broadcast %84 : vector<8x8x1xf32> to vector<8x8x8xf32>
    %86 = arith.mulf %81, %85 : vector<8x8x8xf32>
    %87 = arith.truncf %86 : vector<8x8x8xf32> to vector<8x8x8xbf16>
    "tpu.trace_start"() <{level = 10 : i32, message = "bqk,bkd->bqd"}> : () -> ()
    %cst_24 = arith.constant dense<0.000000e+00> : vector<8x8x64xf32>
    %88 = tpu.matmul %87, %73, %cst_24 {dimension_numbers = #tpu.dot_dimension_numbers<[2], [1], [1], [2], [0, 0, 0, 1, 1, 2], [0], [0]>} : vector<8x8x8xbf16>, vector<8x8x64xbf16>, vector<8x8x64xf32> -> vector<8x8x64xf32>
    "tpu.trace_stop"() : () -> ()
    %89 = vector.shape_cast %88 : vector<8x8x64xf32> to vector<64x64xf32>
    %90 = arith.truncf %89 : vector<64x64xf32> to vector<64x64xbf16>
    %c128 = arith.constant 128 : index
    %c0_25 = arith.constant 0 : index
    %91 = vector.load %arg3[%c128, %c0_25] : memref<384x384xbf16, #tpu.memory_space<vmem>>, vector<64x384xbf16>
    %cst_26 = arith.constant dense<0.000000e+00> : vector<64x384xf32>
    %92 = tpu.matmul %90, %91, %cst_26 {dimension_numbers = #tpu.dot_dimension_numbers<[1], [0], [0], [1], [0, 0, 1, 1], [], []>} : vector<64x64xbf16>, vector<64x384xbf16>, vector<64x384xf32> -> vector<64x384xf32>
    %93 = arith.addf %67, %92 : vector<64x384xf32>
    %94 = vector.extract_strided_slice %6 {offsets = [0, 0, 192], sizes = [8, 8, 64], strides = [1, 1, 1]} : vector<8x8x384xf32> to vector<8x8x64xf32>
    %95 = arith.truncf %94 : vector<8x8x64xf32> to vector<8x8x64xbf16>
    %96 = vector.extract_strided_slice %7 {offsets = [0, 0, 192], sizes = [8, 8, 64], strides = [1, 1, 1]} : vector<8x8x384xf32> to vector<8x8x64xf32>
    %97 = arith.truncf %96 : vector<8x8x64xf32> to vector<8x8x64xbf16>
    %98 = vector.extract_strided_slice %8 {offsets = [0, 0, 192], sizes = [8, 8, 64], strides = [1, 1, 1]} : vector<8x8x384xf32> to vector<8x8x64xf32>
    %99 = arith.truncf %98 : vector<8x8x64xf32> to vector<8x8x64xbf16>
    "tpu.trace_start"() <{level = 10 : i32, message = "bqd,bkd->bqk"}> : () -> ()
    %cst_27 = arith.constant dense<0.000000e+00> : vector<8x8x8xf32>
    %100 = tpu.matmul %95, %97, %cst_27 {dimension_numbers = #tpu.dot_dimension_numbers<[2], [2], [1], [1], [0, 0, 0, 1, 1, 1], [0], [0]>} : vector<8x8x64xbf16>, vector<8x8x64xbf16>, vector<8x8x8xf32> -> vector<8x8x8xf32>
    %cst_28 = arith.constant -1.000000e+30 : f32
    "tpu.trace_stop"() : () -> ()
    %101 = vector.broadcast %cst_28 : f32 to vector<8x8x8xf32>
    %102 = arith.select %14, %100, %101 : vector<8x8x8xi1>, vector<8x8x8xf32>
    %cst_29 = arith.constant dense<0xFF800000> : vector<8x8xf32>
    %103 = vector.multi_reduction <maximumf>, %102, %cst_29 [2] : vector<8x8x8xf32> to vector<8x8xf32>
    %104 = vector.shape_cast %103 : vector<8x8xf32> to vector<8x8x1xf32>
    %105 = vector.broadcast %104 : vector<8x8x1xf32> to vector<8x8x8xf32>
    %106 = arith.subf %102, %105 : vector<8x8x8xf32>
    %107 = math.exp %106 : vector<8x8x8xf32>
    %cst_30 = arith.constant dense<0.000000e+00> : vector<8x8xf32>
    %108 = vector.multi_reduction <add>, %107, %cst_30 [2] : vector<8x8x8xf32> to vector<8x8xf32>
    %109 = vector.shape_cast %108 : vector<8x8xf32> to vector<8x8x1xf32>
    %110 = tpu.reciprocal %109 : vector<8x8x1xf32> -> vector<8x8x1xf32>
    %111 = vector.broadcast %110 : vector<8x8x1xf32> to vector<8x8x8xf32>
    %112 = arith.mulf %107, %111 : vector<8x8x8xf32>
    %113 = arith.truncf %112 : vector<8x8x8xf32> to vector<8x8x8xbf16>
    "tpu.trace_start"() <{level = 10 : i32, message = "bqk,bkd->bqd"}> : () -> ()
    %cst_31 = arith.constant dense<0.000000e+00> : vector<8x8x64xf32>
    %114 = tpu.matmul %113, %99, %cst_31 {dimension_numbers = #tpu.dot_dimension_numbers<[2], [1], [1], [2], [0, 0, 0, 1, 1, 2], [0], [0]>} : vector<8x8x8xbf16>, vector<8x8x64xbf16>, vector<8x8x64xf32> -> vector<8x8x64xf32>
    "tpu.trace_stop"() : () -> ()
    %115 = vector.shape_cast %114 : vector<8x8x64xf32> to vector<64x64xf32>
    %116 = arith.truncf %115 : vector<64x64xf32> to vector<64x64xbf16>
    %c192 = arith.constant 192 : index
    %c0_32 = arith.constant 0 : index
    %117 = vector.load %arg3[%c192, %c0_32] : memref<384x384xbf16, #tpu.memory_space<vmem>>, vector<64x384xbf16>
    %cst_33 = arith.constant dense<0.000000e+00> : vector<64x384xf32>
    %118 = tpu.matmul %116, %117, %cst_33 {dimension_numbers = #tpu.dot_dimension_numbers<[1], [0], [0], [1], [0, 0, 1, 1], [], []>} : vector<64x64xbf16>, vector<64x384xbf16>, vector<64x384xf32> -> vector<64x384xf32>
    %119 = arith.addf %93, %118 : vector<64x384xf32>
    %120 = vector.extract_strided_slice %6 {offsets = [0, 0, 256], sizes = [8, 8, 64], strides = [1, 1, 1]} : vector<8x8x384xf32> to vector<8x8x64xf32>
    %121 = arith.truncf %120 : vector<8x8x64xf32> to vector<8x8x64xbf16>
    %122 = vector.extract_strided_slice %7 {offsets = [0, 0, 256], sizes = [8, 8, 64], strides = [1, 1, 1]} : vector<8x8x384xf32> to vector<8x8x64xf32>
    %123 = arith.truncf %122 : vector<8x8x64xf32> to vector<8x8x64xbf16>
    %124 = vector.extract_strided_slice %8 {offsets = [0, 0, 256], sizes = [8, 8, 64], strides = [1, 1, 1]} : vector<8x8x384xf32> to vector<8x8x64xf32>
    %125 = arith.truncf %124 : vector<8x8x64xf32> to vector<8x8x64xbf16>
    "tpu.trace_start"() <{level = 10 : i32, message = "bqd,bkd->bqk"}> : () -> ()
    %cst_34 = arith.constant dense<0.000000e+00> : vector<8x8x8xf32>
    %126 = tpu.matmul %121, %123, %cst_34 {dimension_numbers = #tpu.dot_dimension_numbers<[2], [2], [1], [1], [0, 0, 0, 1, 1, 1], [0], [0]>} : vector<8x8x64xbf16>, vector<8x8x64xbf16>, vector<8x8x8xf32> -> vector<8x8x8xf32>
    %cst_35 = arith.constant -1.000000e+30 : f32
    "tpu.trace_stop"() : () -> ()
    %127 = vector.broadcast %cst_35 : f32 to vector<8x8x8xf32>
    %128 = arith.select %14, %126, %127 : vector<8x8x8xi1>, vector<8x8x8xf32>
    %cst_36 = arith.constant dense<0xFF800000> : vector<8x8xf32>
    %129 = vector.multi_reduction <maximumf>, %128, %cst_36 [2] : vector<8x8x8xf32> to vector<8x8xf32>
    %130 = vector.shape_cast %129 : vector<8x8xf32> to vector<8x8x1xf32>
    %131 = vector.broadcast %130 : vector<8x8x1xf32> to vector<8x8x8xf32>
    %132 = arith.subf %128, %131 : vector<8x8x8xf32>
    %133 = math.exp %132 : vector<8x8x8xf32>
    %cst_37 = arith.constant dense<0.000000e+00> : vector<8x8xf32>
    %134 = vector.multi_reduction <add>, %133, %cst_37 [2] : vector<8x8x8xf32> to vector<8x8xf32>
    %135 = vector.shape_cast %134 : vector<8x8xf32> to vector<8x8x1xf32>
    %136 = tpu.reciprocal %135 : vector<8x8x1xf32> -> vector<8x8x1xf32>
    %137 = vector.broadcast %136 : vector<8x8x1xf32> to vector<8x8x8xf32>
    %138 = arith.mulf %133, %137 : vector<8x8x8xf32>
    %139 = arith.truncf %138 : vector<8x8x8xf32> to vector<8x8x8xbf16>
    "tpu.trace_start"() <{level = 10 : i32, message = "bqk,bkd->bqd"}> : () -> ()
    %cst_38 = arith.constant dense<0.000000e+00> : vector<8x8x64xf32>
    %140 = tpu.matmul %139, %125, %cst_38 {dimension_numbers = #tpu.dot_dimension_numbers<[2], [1], [1], [2], [0, 0, 0, 1, 1, 2], [0], [0]>} : vector<8x8x8xbf16>, vector<8x8x64xbf16>, vector<8x8x64xf32> -> vector<8x8x64xf32>
    "tpu.trace_stop"() : () -> ()
    %141 = vector.shape_cast %140 : vector<8x8x64xf32> to vector<64x64xf32>
    %142 = arith.truncf %141 : vector<64x64xf32> to vector<64x64xbf16>
    %c256 = arith.constant 256 : index
    %c0_39 = arith.constant 0 : index
    %143 = vector.load %arg3[%c256, %c0_39] : memref<384x384xbf16, #tpu.memory_space<vmem>>, vector<64x384xbf16>
    %cst_40 = arith.constant dense<0.000000e+00> : vector<64x384xf32>
    %144 = tpu.matmul %142, %143, %cst_40 {dimension_numbers = #tpu.dot_dimension_numbers<[1], [0], [0], [1], [0, 0, 1, 1], [], []>} : vector<64x64xbf16>, vector<64x384xbf16>, vector<64x384xf32> -> vector<64x384xf32>
    %145 = arith.addf %119, %144 : vector<64x384xf32>
    %146 = vector.extract_strided_slice %6 {offsets = [0, 0, 320], sizes = [8, 8, 64], strides = [1, 1, 1]} : vector<8x8x384xf32> to vector<8x8x64xf32>
    %147 = arith.truncf %146 : vector<8x8x64xf32> to vector<8x8x64xbf16>
    %148 = vector.extract_strided_slice %7 {offsets = [0, 0, 320], sizes = [8, 8, 64], strides = [1, 1, 1]} : vector<8x8x384xf32> to vector<8x8x64xf32>
    %149 = arith.truncf %148 : vector<8x8x64xf32> to vector<8x8x64xbf16>
    %150 = vector.extract_strided_slice %8 {offsets = [0, 0, 320], sizes = [8, 8, 64], strides = [1, 1, 1]} : vector<8x8x384xf32> to vector<8x8x64xf32>
    %151 = arith.truncf %150 : vector<8x8x64xf32> to vector<8x8x64xbf16>
    "tpu.trace_start"() <{level = 10 : i32, message = "bqd,bkd->bqk"}> : () -> ()
    %cst_41 = arith.constant dense<0.000000e+00> : vector<8x8x8xf32>
    %152 = tpu.matmul %147, %149, %cst_41 {dimension_numbers = #tpu.dot_dimension_numbers<[2], [2], [1], [1], [0, 0, 0, 1, 1, 1], [0], [0]>} : vector<8x8x64xbf16>, vector<8x8x64xbf16>, vector<8x8x8xf32> -> vector<8x8x8xf32>
    %cst_42 = arith.constant -1.000000e+30 : f32
    "tpu.trace_stop"() : () -> ()
    %153 = vector.broadcast %cst_42 : f32 to vector<8x8x8xf32>
    %154 = arith.select %14, %152, %153 : vector<8x8x8xi1>, vector<8x8x8xf32>
    %cst_43 = arith.constant dense<0xFF800000> : vector<8x8xf32>
    %155 = vector.multi_reduction <maximumf>, %154, %cst_43 [2] : vector<8x8x8xf32> to vector<8x8xf32>
    %156 = vector.shape_cast %155 : vector<8x8xf32> to vector<8x8x1xf32>
    %157 = vector.broadcast %156 : vector<8x8x1xf32> to vector<8x8x8xf32>
    %158 = arith.subf %154, %157 : vector<8x8x8xf32>
    %159 = math.exp %158 : vector<8x8x8xf32>
    %cst_44 = arith.constant dense<0.000000e+00> : vector<8x8xf32>
    %160 = vector.multi_reduction <add>, %159, %cst_44 [2] : vector<8x8x8xf32> to vector<8x8xf32>
    %161 = vector.shape_cast %160 : vector<8x8xf32> to vector<8x8x1xf32>
    %162 = tpu.reciprocal %161 : vector<8x8x1xf32> -> vector<8x8x1xf32>
    %163 = vector.broadcast %162 : vector<8x8x1xf32> to vector<8x8x8xf32>
    %164 = arith.mulf %159, %163 : vector<8x8x8xf32>
    %165 = arith.truncf %164 : vector<8x8x8xf32> to vector<8x8x8xbf16>
    "tpu.trace_start"() <{level = 10 : i32, message = "bqk,bkd->bqd"}> : () -> ()
    %cst_45 = arith.constant dense<0.000000e+00> : vector<8x8x64xf32>
    %166 = tpu.matmul %165, %151, %cst_45 {dimension_numbers = #tpu.dot_dimension_numbers<[2], [1], [1], [2], [0, 0, 0, 1, 1, 2], [0], [0]>} : vector<8x8x8xbf16>, vector<8x8x64xbf16>, vector<8x8x64xf32> -> vector<8x8x64xf32>
    "tpu.trace_stop"() : () -> ()
    %167 = vector.shape_cast %166 : vector<8x8x64xf32> to vector<64x64xf32>
    %168 = arith.truncf %167 : vector<64x64xf32> to vector<64x64xbf16>
    %c320 = arith.constant 320 : index
    %c0_46 = arith.constant 0 : index
    %169 = vector.load %arg3[%c320, %c0_46] : memref<384x384xbf16, #tpu.memory_space<vmem>>, vector<64x384xbf16>
    %cst_47 = arith.constant dense<0.000000e+00> : vector<64x384xf32>
    %170 = tpu.matmul %168, %169, %cst_47 {dimension_numbers = #tpu.dot_dimension_numbers<[1], [0], [0], [1], [0, 0, 1, 1], [], []>} : vector<64x64xbf16>, vector<64x384xbf16>, vector<64x384xf32> -> vector<64x384xf32>
    %171 = arith.addf %145, %170 : vector<64x384xf32>
    %c0_48 = arith.constant 0 : index
    %c0_49 = arith.constant 0 : index
    %172 = vector.load %arg4[%c0_48, %c0_49] : memref<1x384xbf16, #tpu.memory_space<vmem>>, vector<1x384xbf16>
    %173 = arith.extf %172 : vector<1x384xbf16> to vector<1x384xf32>
    %174 = vector.broadcast %173 : vector<1x384xf32> to vector<64x384xf32>
    %175 = arith.addf %171, %174 : vector<64x384xf32>
    %176 = vector.shape_cast %175 : vector<64x384xf32> to vector<8x8x384xf32>
    %c0_50 = arith.constant 0 : index
    %c0_51 = arith.constant 0 : index
    %c0_52 = arith.constant 0 : index
    %177 = vector.load %arg5[%c0_50, %c0_51, %c0_52] : memref<8x8x384xf32, #tpu.memory_space<vmem>>, vector<8x8x384xf32>
    tpu.vector_store %arg5[%c0_50, %c0_51, %c0_52], %176 {strides = array<i32>} : memref<8x8x384xf32, #tpu.memory_space<vmem>>, vector<8x8x384xf32>,
    return
  }
  func.func @transform_0(%arg0: i32) -> (i32, i32, i32) {
    %c0_i32 = arith.constant 0 : i32
    %c0_i32_0 = arith.constant 0 : i32
    %c0_i32_1 = arith.constant 0 : i32
    return %arg0, %c0_i32, %c0_i32_0 : i32, i32, i32
  }
  func.func @transform_1(%arg0: i32) -> (i32, i32) {
    %c0_i32 = arith.constant 0 : i32
    %c0_i32_0 = arith.constant 0 : i32
    %c0_i32_1 = arith.constant 0 : i32
    return %c0_i32, %c0_i32_0 : i32, i32
  }
  func.func @transform_2(%arg0: i32) -> (i32, i32) {
    %c0_i32 = arith.constant 0 : i32
    %c0_i32_0 = arith.constant 0 : i32
    %c0_i32_1 = arith.constant 0 : i32
    return %c0_i32, %c0_i32_0 : i32, i32
  }
  func.func @transform_3(%arg0: i32) -> (i32, i32) {
    %c0_i32 = arith.constant 0 : i32
    %c0_i32_0 = arith.constant 0 : i32
    %c0_i32_1 = arith.constant 0 : i32
    return %c0_i32, %c0_i32_0 : i32, i32
  }
  func.func @transform_4(%arg0: i32) -> (i32, i32, i32) {
    %c0_i32 = arith.constant 0 : i32
    %c0_i32_0 = arith.constant 0 : i32
    %c0_i32_1 = arith.constant 0 : i32
    return %arg0, %c0_i32, %c0_i32_0 : i32, i32, i32
  }
}

module attributes {stable_mosaic.version = 11 : i64} {
  func.func @mha_kernel(%arg0: i32, %arg1: memref<8x8x384xf32, #tpu.memory_space<vmem>>, %arg2: memref<384x1152xbf16, #tpu.memory_space<vmem>>, %arg3: memref<384x384xbf16, #tpu.memory_space<vmem>>, %arg4: memref<1x384xbf16, #tpu.memory_space<vmem>>, %arg5: memref<8x8x384xf32, #tpu.memory_space<vmem>>) attributes {dimension_semantics = [#tpu.dimension_semantics<parallel>], iteration_bounds = array<i64: 1>, scalar_prefetch = 0 : i64, scratch_operands = 0 : i64, tpu.core_type = #tpu.core_type<tc>, window_params = [{transform_indices = @transform_0, window_bounds = array<i64: 8, 8, 384>}, {pipeline_mode = #tpu.pipeline_mode<synchronous>, transform_indices = @transform_1, window_bounds = array<i64: 384, 1152>}, {pipeline_mode = #tpu.pipeline_mode<synchronous>, transform_indices = @transform_2, window_bounds = array<i64: 384, 384>}, {pipeline_mode = #tpu.pipeline_mode<synchronous>, transform_indices = @transform_3, window_bounds = array<i64: 1, 384>}, {transform_indices = @transform_4, window_bounds = array<i64: 8, 8, 384>}]} {
    %c0 = arith.constant 0 : index
    %c0_0 = arith.constant 0 : index
    %c0_1 = arith.constant 0 : index
    %0 = vector.load %arg1[%c0, %c0_0, %c0_1] : memref<8x8x384xf32, #tpu.memory_space<vmem>>, vector<8x8x384xf32>
    %1 = vector.shape_cast %0 : vector<8x8x384xf32> to vector<64x384xf32>
    %2 = arith.truncf %1 : vector<64x384xf32> to vector<64x384xbf16>
    %c0_2 = arith.constant 0 : index
    %c0_3 = arith.constant 0 : index
    %3 = vector.load %arg2[%c0_2, %c0_3] : memref<384x1152xbf16, #tpu.memory_space<vmem>>, vector<384x1152xbf16>
    %cst = arith.constant dense<0.000000e+00> : vector<64x1152xf32>
    %4 = tpu.matmul %2, %3, %cst {dimension_numbers = #tpu.dot_dimension_numbers<[1], [0], [0], [1], [0, 0, 1, 1], [], []>} : vector<64x384xbf16>, vector<384x1152xbf16>, vector<64x1152xf32> -> vector<64x1152xf32>
    %5 = vector.shape_cast %4 : vector<64x1152xf32> to vector<8x8x1152xf32>
    %6 = vector.extract_strided_slice %5 {offsets = [0, 0, 0], sizes = [8, 8, 384], strides = [1, 1, 1]} : vector<8x8x1152xf32> to vector<8x8x384xf32>
    %7 = vector.extract_strided_slice %5 {offsets = [0, 0, 384], sizes = [8, 8, 384], strides = [1, 1, 1]} : vector<8x8x1152xf32> to vector<8x8x384xf32>
    %8 = vector.extract_strided_slice %5 {offsets = [0, 0, 768], sizes = [8, 8, 384], strides = [1, 1, 1]} : vector<8x8x1152xf32> to vector<8x8x384xf32>
    %9 = tpu.iota {dimensions = array<i32: 0>} : vector<8x8xi32>
    %10 = tpu.iota {dimensions = array<i32: 1>} : vector<8x8xi32>
    %11 = arith.cmpi sle, %10, %9 : vector<8x8xi32>
    %12 = vector.shape_cast %11 : vector<8x8xi1> to vector<1x8x8xi1>
    %13 = vector.shape_cast %12 : vector<1x8x8xi1> to vector<1x8x8xi1>
    %14 = vector.broadcast %13 : vector<1x8x8xi1> to vector<8x8x8xi1>
    %cst_4 = arith.constant 0.000000e+00 : f32
    %15 = vector.broadcast %cst_4 : f32 to vector<64x384xf32>
    %16 = vector.extract_strided_slice %6 {offsets = [0, 0, 0], sizes = [8, 8, 64], strides = [1, 1, 1]} : vector<8x8x384xf32> to vector<8x8x64xf32>
    %17 = arith.truncf %16 : vector<8x8x64xf32> to vector<8x8x64xbf16>
    %18 = vector.extract_strided_slice %7 {offsets = [0, 0, 0], sizes = [8, 8, 64], strides = [1, 1, 1]} : vector<8x8x384xf32> to vector<8x8x64xf32>
    %19 = arith.truncf %18 : vector<8x8x64xf32> to vector<8x8x64xbf16>
    %20 = vector.extract_strided_slice %8 {offsets = [0, 0, 0], sizes = [8, 8, 64], strides = [1, 1, 1]} : vector<8x8x384xf32> to vector<8x8x64xf32>
    %21 = arith.truncf %20 : vector<8x8x64xf32> to vector<8x8x64xbf16>
    "tpu.trace_start"() <{level = 10 : i32, message = "bqd,bkd->bqk"}> : () -> ()
    %cst_5 = arith.constant dense<0.000000e+00> : vector<8x8x8xf32>
    %22 = tpu.matmul %17, %19, %cst_5 {dimension_numbers = #tpu.dot_dimension_numbers<[2], [2], [1], [1], [0, 0, 0, 1, 1, 1], [0], [0]>} : vector<8x8x64xbf16>, vector<8x8x64xbf16>, vector<8x8x8xf32> -> vector<8x8x8xf32>
    %cst_6 = arith.constant -1.000000e+30 : f32
    "tpu.trace_stop"() : () -> ()
    %23 = vector.broadcast %cst_6 : f32 to vector<8x8x8xf32>
    %24 = arith.select %14, %22, %23 : vector<8x8x8xi1>, vector<8x8x8xf32>
    %cst_7 = arith.constant dense<0xFF800000> : vector<8x8xf32>
    %25 = vector.multi_reduction <maximumf>, %24, %cst_7 [2] : vector<8x8x8xf32> to vector<8x8xf32>
    %26 = vector.shape_cast %25 : vector<8x8xf32> to vector<8x8x1xf32>
    %27 = vector.broadcast %26 : vector<8x8x1xf32> to vector<8x8x8xf32>
    %28 = arith.subf %24, %27 : vector<8x8x8xf32>
    %29 = math.exp %28 : vector<8x8x8xf32>
    %cst_8 = arith.constant dense<0.000000e+00> : vector<8x8xf32>
    %30 = vector.multi_reduction <add>, %29, %cst_8 [2] : vector<8x8x8xf32> to vector<8x8xf32>
    %31 = vector.shape_cast %30 : vector<8x8xf32> to vector<8x8x1xf32>
    %32 = tpu.reciprocal %31 : vector<8x8x1xf32> -> vector<8x8x1xf32>
    %33 = vector.broadcast %32 : vector<8x8x1xf32> to vector<8x8x8xf32>
    %34 = arith.mulf %29, %33 : vector<8x8x8xf32>
    %35 = arith.truncf %34 : vector<8x8x8xf32> to vector<8x8x8xbf16>
    "tpu.trace_start"() <{level = 10 : i32, message = "bqk,bkd->bqd"}> : () -> ()
    %cst_9 = arith.constant dense<0.000000e+00> : vector<8x8x64xf32>
    %36 = tpu.matmul %35, %21, %cst_9 {dimension_numbers = #tpu.dot_dimension_numbers<[2], [1], [1], [2], [0, 0, 0, 1, 1, 2], [0], [0]>} : vector<8x8x8xbf16>, vector<8x8x64xbf16>, vector<8x8x64xf32> -> vector<8x8x64xf32>
    "tpu.trace_stop"() : () -> ()
    %37 = vector.shape_cast %36 : vector<8x8x64xf32> to vector<64x64xf32>
    %38 = arith.truncf %37 : vector<64x64xf32> to vector<64x64xbf16>
    %c0_10 = arith.constant 0 : index
    %c0_11 = arith.constant 0 : index
    %39 = vector.load %arg3[%c0_10, %c0_11] : memref<384x384xbf16, #tpu.memory_space<vmem>>, vector<64x384xbf16>
    %cst_12 = arith.constant dense<0.000000e+00> : vector<64x384xf32>
    %40 = tpu.matmul %38, %39, %cst_12 {dimension_numbers = #tpu.dot_dimension_numbers<[1], [0], [0], [1], [0, 0, 1, 1], [], []>} : vector<64x64xbf16>, vector<64x384xbf16>, vector<64x384xf32> -> vector<64x384xf32>
    %41 = arith.addf %15, %40 : vector<64x384xf32>
    %42 = vector.extract_strided_slice %6 {offsets = [0, 0, 64], sizes = [8, 8, 64], strides = [1, 1, 1]} : vector<8x8x384xf32> to vector<8x8x64xf32>
    %43 = arith.truncf %42 : vector<8x8x64xf32> to vector<8x8x64xbf16>
    %44 = vector.extract_strided_slice %7 {offsets = [0, 0, 64], sizes = [8, 8, 64], strides = [1, 1, 1]} : vector<8x8x384xf32> to vector<8x8x64xf32>
    %45 = arith.truncf %44 : vector<8x8x64xf32> to vector<8x8x64xbf16>
    %46 = vector.extract_strided_slice %8 {offsets = [0, 0, 64], sizes = [8, 8, 64], strides = [1, 1, 1]} : vector<8x8x384xf32> to vector<8x8x64xf32>
    %47 = arith.truncf %46 : vector<8x8x64xf32> to vector<8x8x64xbf16>
    "tpu.trace_start"() <{level = 10 : i32, message = "bqd,bkd->bqk"}> : () -> ()
    %cst_13 = arith.constant dense<0.000000e+00> : vector<8x8x8xf32>
    %48 = tpu.matmul %43, %45, %cst_13 {dimension_numbers = #tpu.dot_dimension_numbers<[2], [2], [1], [1], [0, 0, 0, 1, 1, 1], [0], [0]>} : vector<8x8x64xbf16>, vector<8x8x64xbf16>, vector<8x8x8xf32> -> vector<8x8x8xf32>
    %cst_14 = arith.constant -1.000000e+30 : f32
    "tpu.trace_stop"() : () -> ()
    %49 = vector.broadcast %cst_14 : f32 to vector<8x8x8xf32>
    %50 = arith.select %14, %48, %49 : vector<8x8x8xi1>, vector<8x8x8xf32>
    %cst_15 = arith.constant dense<0xFF800000> : vector<8x8xf32>
    %51 = vector.multi_reduction <maximumf>, %50, %cst_15 [2] : vector<8x8x8xf32> to vector<8x8xf32>
    %52 = vector.shape_cast %51 : vector<8x8xf32> to vector<8x8x1xf32>
    %53 = vector.broadcast %52 : vector<8x8x1xf32> to vector<8x8x8xf32>
    %54 = arith.subf %50, %53 : vector<8x8x8xf32>
    %55 = math.exp %54 : vector<8x8x8xf32>
    %cst_16 = arith.constant dense<0.000000e+00> : vector<8x8xf32>
    %56 = vector.multi_reduction <add>, %55, %cst_16 [2] : vector<8x8x8xf32> to vector<8x8xf32>
    %57 = vector.shape_cast %56 : vector<8x8xf32> to vector<8x8x1xf32>
    %58 = tpu.reciprocal %57 : vector<8x8x1xf32> -> vector<8x8x1xf32>
    %59 = vector.broadcast %58 : vector<8x8x1xf32> to vector<8x8x8xf32>
    %60 = arith.mulf %55, %59 : vector<8x8x8xf32>
    %61 = arith.truncf %60 : vector<8x8x8xf32> to vector<8x8x8xbf16>
    "tpu.trace_start"() <{level = 10 : i32, message = "bqk,bkd->bqd"}> : () -> ()
    %cst_17 = arith.constant dense<0.000000e+00> : vector<8x8x64xf32>
    %62 = tpu.matmul %61, %47, %cst_17 {dimension_numbers = #tpu.dot_dimension_numbers<[2], [1], [1], [2], [0, 0, 0, 1, 1, 2], [0], [0]>} : vector<8x8x8xbf16>, vector<8x8x64xbf16>, vector<8x8x64xf32> -> vector<8x8x64xf32>
    "tpu.trace_stop"() : () -> ()
    %63 = vector.shape_cast %62 : vector<8x8x64xf32> to vector<64x64xf32>
    %64 = arith.truncf %63 : vector<64x64xf32> to vector<64x64xbf16>
    %c64 = arith.constant 64 : index
    %c0_18 = arith.constant 0 : index
    %65 = vector.load %arg3[%c64, %c0_18] : memref<384x384xbf16, #tpu.memory_space<vmem>>, vector<64x384xbf16>
    %cst_19 = arith.constant dense<0.000000e+00> : vector<64x384xf32>
    %66 = tpu.matmul %64, %65, %cst_19 {dimension_numbers = #tpu.dot_dimension_numbers<[1], [0], [0], [1], [0, 0, 1, 1], [], []>} : vector<64x64xbf16>, vector<64x384xbf16>, vector<64x384xf32> -> vector<64x384xf32>
    %67 = arith.addf %41, %66 : vector<64x384xf32>
    %68 = vector.extract_strided_slice %6 {offsets = [0, 0, 128], sizes = [8, 8, 64], strides = [1, 1, 1]} : vector<8x8x384xf32> to vector<8x8x64xf32>
    %69 = arith.truncf %68 : vector<8x8x64xf32> to vector<8x8x64xbf16>
    %70 = vector.extract_strided_slice %7 {offsets = [0, 0, 128], sizes = [8, 8, 64], strides = [1, 1, 1]} : vector<8x8x384xf32> to vector<8x8x64xf32>
    %71 = arith.truncf %70 : vector<8x8x64xf32> to vector<8x8x64xbf16>
    %72 = vector.extract_strided_slice %8 {offsets = [0, 0, 128], sizes = [8, 8, 64], strides = [1, 1, 1]} : vector<8x8x384xf32> to vector<8x8x64xf32>
    %73 = arith.truncf %72 : vector<8x8x64xf32> to vector<8x8x64xbf16>
    "tpu.trace_start"() <{level = 10 : i32, message = "bqd,bkd->bqk"}> : () -> ()
    %cst_20 = arith.constant dense<0.000000e+00> : vector<8x8x8xf32>
    %74 = tpu.matmul %69, %71, %cst_20 {dimension_numbers = #tpu.dot_dimension_numbers<[2], [2], [1], [1], [0, 0, 0, 1, 1, 1], [0], [0]>} : vector<8x8x64xbf16>, vector<8x8x64xbf16>, vector<8x8x8xf32> -> vector<8x8x8xf32>
    %cst_21 = arith.constant -1.000000e+30 : f32
    "tpu.trace_stop"() : () -> ()
    %75 = vector.broadcast %cst_21 : f32 to vector<8x8x8xf32>
    %76 = arith.select %14, %74, %75 : vector<8x8x8xi1>, vector<8x8x8xf32>
    %cst_22 = arith.constant dense<0xFF800000> : vector<8x8xf32>
    %77 = vector.multi_reduction <maximumf>, %76, %cst_22 [2] : vector<8x8x8xf32> to vector<8x8xf32>
    %78 = vector.shape_cast %77 : vector<8x8xf32> to vector<8x8x1xf32>
    %79 = vector.broadcast %78 : vector<8x8x1xf32> to vector<8x8x8xf32>
    %80 = arith.subf %76, %79 : vector<8x8x8xf32>
    %81 = math.exp %80 : vector<8x8x8xf32>
    %cst_23 = arith.constant dense<0.000000e+00> : vector<8x8xf32>
    %82 = vector.multi_reduction <add>, %81, %cst_23 [2] : vector<8x8x8xf32> to vector<8x8xf32>
    %83 = vector.shape_cast %82 : vector<8x8xf32> to vector<8x8x1xf32>
    %84 = tpu.reciprocal %83 : vector<8x8x1xf32> -> vector<8x8x1xf32>
    %85 = vector.broadcast %84 : vector<8x8x1xf32> to vector<8x8x8xf32>
    %86 = arith.mulf %81, %85 : vector<8x8x8xf32>
    %87 = arith.truncf %86 : vector<8x8x8xf32> to vector<8x8x8xbf16>
    "tpu.trace_start"() <{level = 10 : i32, message = "bqk,bkd->bqd"}> : () -> ()
    %cst_24 = arith.constant dense<0.000000e+00> : vector<8x8x64xf32>
    %88 = tpu.matmul %87, %73, %cst_24 {dimension_numbers = #tpu.dot_dimension_numbers<[2], [1], [1], [2], [0, 0, 0, 1, 1, 2], [0], [0]>} : vector<8x8x8xbf16>, vector<8x8x64xbf16>, vector<8x8x64xf32> -> vector<8x8x64xf32>
    "tpu.trace_stop"() : () -> ()
    %89 = vector.shape_cast %88 : vector<8x8x64xf32> to vector<64x64xf32>
    %90 = arith.truncf %89 : vector<64x64xf32> to vector<64x64xbf16>
    %c128 = arith.constant 128 : index
    %c0_25 = arith.constant 0 : index
    %91 = vector.load %arg3[%c128, %c0_25] : memref<384x384xbf16, #tpu.memory_space<vmem>>, vector<64x384xbf16>
    %cst_26 = arith.constant dense<0.000000e+00> : vector<64x384xf32>
    %92 = tpu.matmul %90, %91, %cst_26 {dimension_numbers = #tpu.dot_dimension_numbers<[1], [0], [0], [1], [0, 0, 1, 1], [], []>} : vector<64x64xbf16>, vector<64x384xbf16>, vector<64x384xf32> -> vector<64x384xf32>
    %93 = arith.addf %67, %92 : vector<64x384xf32>
    %94 = vector.extract_strided_slice %6 {offsets = [0, 0, 192], sizes = [8, 8, 64], strides = [1, 1, 1]} : vector<8x8x384xf32> to vector<8x8x64xf32>
    %95 = arith.truncf %94 : vector<8x8x64xf32> to vector<8x8x64xbf16>
    %96 = vector.extract_strided_slice %7 {offsets = [0, 0, 192], sizes = [8, 8, 64], strides = [1, 1, 1]} : vector<8x8x384xf32> to vector<8x8x64xf32>
    %97 = arith.truncf %96 : vector<8x8x64xf32> to vector<8x8x64xbf16>
    %98 = vector.extract_strided_slice %8 {offsets = [0, 0, 192], sizes = [8, 8, 64], strides = [1, 1, 1]} : vector<8x8x384xf32> to vector<8x8x64xf32>
    %99 = arith.truncf %98 : vector<8x8x64xf32> to vector<8x8x64xbf16>
    "tpu.trace_start"() <{level = 10 : i32, message = "bqd,bkd->bqk"}> : () -> ()
    %cst_27 = arith.constant dense<0.000000e+00> : vector<8x8x8xf32>
    %100 = tpu.matmul %95, %97, %cst_27 {dimension_numbers = #tpu.dot_dimension_numbers<[2], [2], [1], [1], [0, 0, 0, 1, 1, 1], [0], [0]>} : vector<8x8x64xbf16>, vector<8x8x64xbf16>, vector<8x8x8xf32> -> vector<8x8x8xf32>
    %cst_28 = arith.constant -1.000000e+30 : f32
    "tpu.trace_stop"() : () -> ()
    %101 = vector.broadcast %cst_28 : f32 to vector<8x8x8xf32>
    %102 = arith.select %14, %100, %101 : vector<8x8x8xi1>, vector<8x8x8xf32>
    %cst_29 = arith.constant dense<0xFF800000> : vector<8x8xf32>
    %103 = vector.multi_reduction <maximumf>, %102, %cst_29 [2] : vector<8x8x8xf32> to vector<8x8xf32>
    %104 = vector.shape_cast %103 : vector<8x8xf32> to vector<8x8x1xf32>
    %105 = vector.broadcast %104 : vector<8x8x1xf32> to vector<8x8x8xf32>
    %106 = arith.subf %102, %105 : vector<8x8x8xf32>
    %107 = math.exp %106 : vector<8x8x8xf32>
    %cst_30 = arith.constant dense<0.000000e+00> : vector<8x8xf32>
    %108 = vector.multi_reduction <add>, %107, %cst_30 [2] : vector<8x8x8xf32> to vector<8x8xf32>
    %109 = vector.shape_cast %108 : vector<8x8xf32> to vector<8x8x1xf32>
    %110 = tpu.reciprocal %109 : vector<8x8x1xf32> -> vector<8x8x1xf32>
    %111 = vector.broadcast %110 : vector<8x8x1xf32> to vector<8x8x8xf32>
    %112 = arith.mulf %107, %111 : vector<8x8x8xf32>
    %113 = arith.truncf %112 : vector<8x8x8xf32> to vector<8x8x8xbf16>
    "tpu.trace_start"() <{level = 10 : i32, message = "bqk,bkd->bqd"}> : () -> ()
    %cst_31 = arith.constant dense<0.000000e+00> : vector<8x8x64xf32>
    %114 = tpu.matmul %113, %99, %cst_31 {dimension_numbers = #tpu.dot_dimension_numbers<[2], [1], [1], [2], [0, 0, 0, 1, 1, 2], [0], [0]>} : vector<8x8x8xbf16>, vector<8x8x64xbf16>, vector<8x8x64xf32> -> vector<8x8x64xf32>
    "tpu.trace_stop"() : () -> ()
    %115 = vector.shape_cast %114 : vector<8x8x64xf32> to vector<64x64xf32>
    %116 = arith.truncf %115 : vector<64x64xf32> to vector<64x64xbf16>
    %c192 = arith.constant 192 : index
    %c0_32 = arith.constant 0 : index
    %117 = vector.load %arg3[%c192, %c0_32] : memref<384x384xbf16, #tpu.memory_space<vmem>>, vector<64x384xbf16>
    %cst_33 = arith.constant dense<0.000000e+00> : vector<64x384xf32>
    %118 = tpu.matmul %116, %117, %cst_33 {dimension_numbers = #tpu.dot_dimension_numbers<[1], [0], [0], [1], [0, 0, 1, 1], [], []>} : vector<64x64xbf16>, vector<64x384xbf16>, vector<64x384xf32> -> vector<64x384xf32>
    %119 = arith.addf %93, %118 : vector<64x384xf32>
    %120 = vector.extract_strided_slice %6 {offsets = [0, 0, 256], sizes = [8, 8, 64], strides = [1, 1, 1]} : vector<8x8x384xf32> to vector<8x8x64xf32>
    %121 = arith.truncf %120 : vector<8x8x64xf32> to vector<8x8x64xbf16>
    %122 = vector.extract_strided_slice %7 {offsets = [0, 0, 256], sizes = [8, 8, 64], strides = [1, 1, 1]} : vector<8x8x384xf32> to vector<8x8x64xf32>
    %123 = arith.truncf %122 : vector<8x8x64xf32> to vector<8x8x64xbf16>
    %124 = vector.extract_strided_slice %8 {offsets = [0, 0, 256], sizes = [8, 8, 64], strides = [1, 1, 1]} : vector<8x8x384xf32> to vector<8x8x64xf32>
    %125 = arith.truncf %124 : vector<8x8x64xf32> to vector<8x8x64xbf16>
    "tpu.trace_start"() <{level = 10 : i32, message = "bqd,bkd->bqk"}> : () -> ()
    %cst_34 = arith.constant dense<0.000000e+00> : vector<8x8x8xf32>
    %126 = tpu.matmul %121, %123, %cst_34 {dimension_numbers = #tpu.dot_dimension_numbers<[2], [2], [1], [1], [0, 0, 0, 1, 1, 1], [0], [0]>} : vector<8x8x64xbf16>, vector<8x8x64xbf16>, vector<8x8x8xf32> -> vector<8x8x8xf32>
    %cst_35 = arith.constant -1.000000e+30 : f32
    "tpu.trace_stop"() : () -> ()
    %127 = vector.broadcast %cst_35 : f32 to vector<8x8x8xf32>
    %128 = arith.select %14, %126, %127 : vector<8x8x8xi1>, vector<8x8x8xf32>
    %cst_36 = arith.constant dense<0xFF800000> : vector<8x8xf32>
    %129 = vector.multi_reduction <maximumf>, %128, %cst_36 [2] : vector<8x8x8xf32> to vector<8x8xf32>
    %130 = vector.shape_cast %129 : vector<8x8xf32> to vector<8x8x1xf32>
    %131 = vector.broadcast %130 : vector<8x8x1xf32> to vector<8x8x8xf32>
    %132 = arith.subf %128, %131 : vector<8x8x8xf32>
    %133 = math.exp %132 : vector<8x8x8xf32>
    %cst_37 = arith.constant dense<0.000000e+00> : vector<8x8xf32>
    %134 = vector.multi_reduction <add>, %133, %cst_37 [2] : vector<8x8x8xf32> to vector<8x8xf32>
    %135 = vector.shape_cast %134 : vector<8x8xf32> to vector<8x8x1xf32>
    %136 = tpu.reciprocal %135 : vector<8x8x1xf32> -> vector<8x8x1xf32>
    %137 = vector.broadcast %136 : vector<8x8x1xf32> to vector<8x8x8xf32>
    %138 = arith.mulf %133, %137 : vector<8x8x8xf32>
    %139 = arith.truncf %138 : vector<8x8x8xf32> to vector<8x8x8xbf16>
    "tpu.trace_start"() <{level = 10 : i32, message = "bqk,bkd->bqd"}> : () -> ()
    %cst_38 = arith.constant dense<0.000000e+00> : vector<8x8x64xf32>
    %140 = tpu.matmul %139, %125, %cst_38 {dimension_numbers = #tpu.dot_dimension_numbers<[2], [1], [1], [2], [0, 0, 0, 1, 1, 2], [0], [0]>} : vector<8x8x8xbf16>, vector<8x8x64xbf16>, vector<8x8x64xf32> -> vector<8x8x64xf32>
    "tpu.trace_stop"() : () -> ()
    %141 = vector.shape_cast %140 : vector<8x8x64xf32> to vector<64x64xf32>
    %142 = arith.truncf %141 : vector<64x64xf32> to vector<64x64xbf16>
    %c256 = arith.constant 256 : index
    %c0_39 = arith.constant 0 : index
    %143 = vector.load %arg3[%c256, %c0_39] : memref<384x384xbf16, #tpu.memory_space<vmem>>, vector<64x384xbf16>
    %cst_40 = arith.constant dense<0.000000e+00> : vector<64x384xf32>
    %144 = tpu.matmul %142, %143, %cst_40 {dimension_numbers = #tpu.dot_dimension_numbers<[1], [0], [0], [1], [0, 0, 1, 1], [], []>} : vector<64x64xbf16>, vector<64x384xbf16>, vector<64x384xf32> -> vector<64x384xf32>
    %145 = arith.addf %119, %144 : vector<64x384xf32>
    %146 = vector.extract_strided_slice %6 {offsets = [0, 0, 320], sizes = [8, 8, 64], strides = [1, 1, 1]} : vector<8x8x384xf32> to vector<8x8x64xf32>
    %147 = arith.truncf %146 : vector<8x8x64xf32> to vector<8x8x64xbf16>
    %148 = vector.extract_strided_slice %7 {offsets = [0, 0, 320], sizes = [8, 8, 64], strides = [1, 1, 1]} : vector<8x8x384xf32> to vector<8x8x64xf32>
    %149 = arith.truncf %148 : vector<8x8x64xf32> to vector<8x8x64xbf16>
    %150 = vector.extract_strided_slice %8 {offsets = [0, 0, 320], sizes = [8, 8, 64], strides = [1, 1, 1]} : vector<8x8x384xf32> to vector<8x8x64xf32>
    %151 = arith.truncf %150 : vector<8x8x64xf32> to vector<8x8x64xbf16>
    "tpu.trace_start"() <{level = 10 : i32, message = "bqd,bkd->bqk"}> : () -> ()
    %cst_41 = arith.constant dense<0.000000e+00> : vector<8x8x8xf32>
    %152 = tpu.matmul %147, %149, %cst_41 {dimension_numbers = #tpu.dot_dimension_numbers<[2], [2], [1], [1], [0, 0, 0, 1, 1, 1], [0], [0]>} : vector<8x8x64xbf16>, vector<8x8x64xbf16>, vector<8x8x8xf32> -> vector<8x8x8xf32>
    %cst_42 = arith.constant -1.000000e+30 : f32
    "tpu.trace_stop"() : () -> ()
    %153 = vector.broadcast %cst_42 : f32 to vector<8x8x8xf32>
    %154 = arith.select %14, %152, %153 : vector<8x8x8xi1>, vector<8x8x8xf32>
    %cst_43 = arith.constant dense<0xFF800000> : vector<8x8xf32>
    %155 = vector.multi_reduction <maximumf>, %154, %cst_43 [2] : vector<8x8x8xf32> to vector<8x8xf32>
    %156 = vector.shape_cast %155 : vector<8x8xf32> to vector<8x8x1xf32>
    %157 = vector.broadcast %156 : vector<8x8x1xf32> to vector<8x8x8xf32>
    %158 = arith.subf %154, %157 : vector<8x8x8xf32>
    %159 = math.exp %158 : vector<8x8x8xf32>
    %cst_44 = arith.constant dense<0.000000e+00> : vector<8x8xf32>
    %160 = vector.multi_reduction <add>, %159, %cst_44 [2] : vector<8x8x8xf32> to vector<8x8xf32>
    %161 = vector.shape_cast %160 : vector<8x8xf32> to vector<8x8x1xf32>
    %162 = tpu.reciprocal %161 : vector<8x8x1xf32> -> vector<8x8x1xf32>
    %163 = vector.broadcast %162 : vector<8x8x1xf32> to vector<8x8x8xf32>
    %164 = arith.mulf %159, %163 : vector<8x8x8xf32>
    %165 = arith.truncf %164 : vector<8x8x8xf32> to vector<8x8x8xbf16>
    "tpu.trace_start"() <{level = 10 : i32, message = "bqk,bkd->bqd"}> : () -> ()
    %cst_45 = arith.constant dense<0.000000e+00> : vector<8x8x64xf32>
    %166 = tpu.matmul %165, %151, %cst_45 {dimension_numbers = #tpu.dot_dimension_numbers<[2], [1], [1], [2], [0, 0, 0, 1, 1, 2], [0], [0]>} : vector<8x8x8xbf16>, vector<8x8x64xbf16>, vector<8x8x64xf32> -> vector<8x8x64xf32>
    "tpu.trace_stop"() : () -> ()
    %167 = vector.shape_cast %166 : vector<8x8x64xf32> to vector<64x64xf32>
    %168 = arith.truncf %167 : vector<64x64xf32> to vector<64x64xbf16>
    %c320 = arith.constant 320 : index
    %c0_46 = arith.constant 0 : index
    %169 = vector.load %arg3[%c320, %c0_46] : memref<384x384xbf16, #tpu.memory_space<vmem>>, vector<64x384xbf16>
    %cst_47 = arith.constant dense<0.000000e+00> : vector<64x384xf32>
    %170 = tpu.matmul %168, %169, %cst_47 {dimension_numbers = #tpu.dot_dimension_numbers<[1], [0], [0], [1], [0, 0, 1, 1], [], []>} : vector<64x64xbf16>, vector<64x384xbf16>, vector<64x384xf32> -> vector<64x384xf32>
    %171 = arith.addf %145, %170 : vector<64x384xf32>
    %c0_48 = arith.constant 0 : index
    %c0_49 = arith.constant 0 : index
    %172 = vector.load %arg4[%c0_48, %c0_49] : memref<1x384xbf16, #tpu.memory_space<vmem>>, vector<1x384xbf16>
    %173 = arith.extf %172 : vector<1x384xbf16> to vector<1x384xf32>
    %174 = vector.broadcast %173 : vector<1x384xf32> to vector<64x384xf32>
    %175 = arith.addf %171, %174 : vector<64x384xf32>
    %176 = vector.shape_cast %175 : vector<64x384xf32> to vector<8x8x384xf32>
    %c0_50 = arith.constant 0 : index
    %c0_51 = arith.constant 0 : index
    %c0_52 = arith.constant 0 : index
    %177 = vector.load %arg5[%c0_50, %c0_51, %c0_52] : memref<8x8x384xf32, #tpu.memory_space<vmem>>, vector<8x8x384xf32>
    tpu.vector_store %arg5[%c0_50, %c0_51, %c0_52], %176 {strides = array<i32>} : memref<8x8x384xf32, #tpu.memory_space<vmem>>, vector<8x8x384xf32>,
    return
  }
  func.func @transform_0(%arg0: i32) -> (i32, i32, i32) {
    %c0_i32 = arith.constant 0 : i32
    %c0_i32_0 = arith.constant 0 : i32
    %c0_i32_1 = arith.constant 0 : i32
    return %arg0, %c0_i32, %c0_i32_0 : i32, i32, i32
  }
  func.func @transform_1(%arg0: i32) -> (i32, i32) {
    %c0_i32 = arith.constant 0 : i32
    %c0_i32_0 = arith.constant 0 : i32
    %c0_i32_1 = arith.constant 0 : i32
    return %c0_i32, %c0_i32_0 : i32, i32
  }
  func.func @transform_2(%arg0: i32) -> (i32, i32) {
    %c0_i32 = arith.constant 0 : i32
    %c0_i32_0 = arith.constant 0 : i32
    %c0_i32_1 = arith.constant 0 : i32
    return %c0_i32, %c0_i32_0 : i32, i32
  }
  func.func @transform_3(%arg0: i32) -> (i32, i32) {
    %c0_i32 = arith.constant 0 : i32
    %c0_i32_0 = arith.constant 0 : i32
    %c0_i32_1 = arith.constant 0 : i32
    return %c0_i32, %c0_i32_0 : i32, i32
  }
  func.func @transform_4(%arg0: i32) -> (i32, i32, i32) {
    %c0_i32 = arith.constant 0 : i32
    %c0_i32_0 = arith.constant 0 : i32
    %c0_i32_1 = arith.constant 0 : i32
    return %arg0, %c0_i32, %c0_i32_0 : i32, i32, i32
  }
}

</mosaic_0001>

<bundles_post_ra>
// kernel: tpu_custom_call.1
= control target key start
LH: loop header
LB: loop body
LE: loop exit
PB: predicated region body
PF: predicated region fallthrough
CT: control target
= control target key end

     0   :  { %9 = vsyncpa [#allocation3], 0  ;;  %s13341_s0 = inlined_call_operand.hbm [shape: f32[8,8,384], index: 0, kind: input, shape index: {}]   ;;  %s13342_s1 = inlined_call_operand.hbm [shape: bf16[384,1152], index: 1, kind: input, shape index: {}]   ;;  %s13343_s2 = inlined_call_operand.hbm [shape: bf16[384,384], index: 2, kind: input, shape index: {}]   ;;  %s13344_s3 = inlined_call_operand.vmem [shape: bf16[1,384], index: 3, kind: input, shape index: {}]   ;;  %s13345_s4 = inlined_call_operand.hbm [shape: f32[8,8,384], index: 4, kind: output, shape index: {}]  }
   0x1   :  { %10 = vsyncpa [#allocation6], 0 }
   0x2   :  { %11 = vsyncpa [#allocation4], 0  ;;  %s11208_s15 = smov [#allocation5]  }
   0x3   :  { %s29_s16 = sshll.u32 %s11208_s15, 4  ;;  %s30_s16 = int_to_ptr.vmem [resolvable:$true] %s29_s16 }
   0x4   :  { %s11130_s17 = scalar_lea.vmem %s30_s16, 27648  ;;  %p11135_p1 = scmp.lt.s32.totalorder %s30_s16, %s30_s16 }
   0x5   :  { %p11131_p0 = scmp.ne.s32.totalorder %s30_s16, %s11130_s17  ;;  %p11136_p2 = scmp.lt.s32.totalorder %s11130_s17, %s11130_s17 }
   0x7   :  { %p11137_p3 = por %p11136_p2, %p11135_p1 }
   0x9   :  { %p11138_p4 = pnand %p11137_p3, %p11131_p0 }
   0xb   :  { %11141 = shalt.err (!%p11138_p4)
}
   0xc   :  { %s11209_s18 = smov 576   ;;  %s11210_s19 = smov 36  }
   0xd   :  { %35 = dma.hbm_to_vmem [thread:$0]  %s13342_s1, 27648, %s30_s16, [#allocation6], %s11209_s18, %s11209_s18, %s11210_s19  }
   0xe   :  { %s11211_s22 = smov [#allocation2]  }
   0xf   :  { %s17_s23 = sshll.u32 %s11211_s22, 4  ;;  %s18_s23 = int_to_ptr.vmem [resolvable:$true] %s17_s23 }
  0x10   :  { %s11150_s24 = scalar_lea.vmem %s18_s23, 3072  ;;  %p11155_p6 = scmp.lt.s32.totalorder %s18_s23, %s18_s23 }
  0x11   :  { %p11151_p5 = scmp.ne.s32.totalorder %s18_s23, %s11150_s24  ;;  %p11156_p7 = scmp.lt.s32.totalorder %s11150_s24, %s11150_s24 }
  0x13   :  { %p11157_p8 = por %p11156_p7, %p11155_p6 }
  0x15   :  { %p11158_p9 = pnand %p11157_p8, %p11151_p5 }
  0x17   :  { %11161 = shalt.err (!%p11158_p9)
}
  0x18   :  { %s11212_s25 = smov 384   ;;  %s11213_s26 = smov 24  }
  0x19   :  { %23 = dma.hbm_to_vmem [thread:$0]  %s13341_s0, 3072, %s18_s23, [#allocation3], %s11212_s25, %s11212_s25, %s11213_s26  }
  0x1a   :  { %s11214_s1 = smov [#allocation7]  }
  0x1b   :  { %s41_s29 = sshll.u32 %s11214_s1, 4  ;;  %s42_s29 = int_to_ptr.vmem [resolvable:$true] %s41_s29 }
  0x1c   :  { %s11170_s30 = scalar_lea.vmem %s42_s29, 9216  ;;  %p11175_p11 = scmp.lt.s32.totalorder %s42_s29, %s42_s29 }
  0x1d   :  { %p11171_p10 = scmp.ne.s32.totalorder %s42_s29, %s11170_s30  ;;  %p11176_p12 = scmp.lt.s32.totalorder %s11170_s30, %s11170_s30 }
  0x1f   :  { %p11177_p13 = por %p11176_p12, %p11175_p11 }
  0x21   :  { %p11178_p0 = pnand %p11177_p13, %p11171_p10 }
  0x23   :  { %11181 = shalt.err (!%p11178_p0)
}
  0x24   :  { %s11215_s5 = smov 192   ;;  %s11216_s6 = smov 12  }
  0x25   :  { %47 = dma.hbm_to_vmem [thread:$0]  %s13343_s2, 9216, %s42_s29, [#allocation6], %s11215_s5, %s11215_s5, %s11216_s6  }
  0x26   :  { %11202 = dma.done.wait [#allocation3], 3072  }
  0x27   :  { %11203 = vsyncadd [#allocation3], 4294964224 }
  0x28   :  { %11204 = dma.done.wait [#allocation6], 36864  }
  0x29   :  { %11205 = vsyncadd [#allocation6], 4294930432  ;;  %v13346_v0 = vmov 0   ;;  %v10522_v1 = vld [vmem:[#allocation5 + $0x1fc] ss:$36 sps:$4 sm:$0xff]   ;;  %v62_v33 = vld [vmem:[#allocation2 + $0x10] sm:$0xff] }
  0x2a   :  { %1545 = vmatprep.mubr.bf16.mxu1 %v13346_v0  ;;  %v10524_v2 = vld [vmem:[#allocation5 + $0x67c] ss:$36 sps:$4 sm:$0xff]   ;;  %1440 = vmatprep.subr.bf16.mxu0 %v10522_v1  ;;  %v10528_v5 = vld [vmem:[#allocation5 + $0x1b4] ss:$36 sps:$4 sm:$0xff]   ;;  %v10534_v9 = vld [vmem:[#allocation5 + $0x16c] ss:$36 sps:$4 sm:$0xff]  }
  0x2b   :  { %v10526_v3 = vld [vmem:[#allocation5 + $0x1f8] ss:$36 sps:$4 sm:$0xff]   ;;  %1513 = vmatprep.subr.bf16.mxu1 %v10524_v2  ;;  %v10532_v7 = vld [vmem:[#allocation5 + $0x1b0] ss:$36 sps:$4 sm:$0xff]   ;;  %v10538_v11 = vld [vmem:[#allocation5 + $0x168] ss:$36 sps:$4 sm:$0xff]  }
  0x2c   :  { %v10527_v4 = vld [vmem:[#allocation5 + $0x678] ss:$36 sps:$4 sm:$0xff]   ;;  %1441 = vmatpush1.bf16.msra.mxu0 %v10526_v3  ;;  %v10533_v8 = vld [vmem:[#allocation5 + $0x630] ss:$36 sps:$4 sm:$0xff]   ;;  %v10539_v12 = vld [vmem:[#allocation5 + $0x5e8] ss:$36 sps:$4 sm:$0xff]  }
  0x2d   :  { %1514 = vmatpush1.bf16.msra.mxu1 %v10527_v4  ;;  %v10530_v6 = vld [vmem:[#allocation5 + $0x634] ss:$36 sps:$4 sm:$0xff]   ;;  %1442 = vmatprep.subr.bf16.mxu0 %v10528_v5  ;;  %v10536_v10 = vld [vmem:[#allocation5 + $0x5ec] ss:$36 sps:$4 sm:$0xff]   ;;  %v10540_v13 = vld [vmem:[#allocation5 + $0x124] ss:$36 sps:$4 sm:$0xff]  }
  0x2e   :  { %1515 = vmatprep.subr.bf16.mxu1 %v10530_v6  ;;  %v10542_v14 = vld [vmem:[#allocation5 + $0x5a4] ss:$36 sps:$4 sm:$0xff]   ;;  %v10546_v17 = vld [vmem:[#allocation5 + $0xdc] ss:$36 sps:$4 sm:$0xff]   ;;  %v10552_v21 = vld [vmem:[#allocation5 + $0x94] ss:$36 sps:$4 sm:$0xff]  }
  0x2f   :  { %v10544_v15 = vld [vmem:[#allocation5 + $0x120] ss:$36 sps:$4 sm:$0xff]   ;;  %v10550_v19 = vld [vmem:[#allocation5 + $0xd8] ss:$36 sps:$4 sm:$0xff]   ;;  %v10556_v23 = vld [vmem:[#allocation5 + $0x90] ss:$36 sps:$4 sm:$0xff]  }
  0x30   :  { %1443 = vmatpush1.bf16.msra.mxu0 %v10532_v7  ;;  %v10545_v16 = vld [vmem:[#allocation5 + $0x5a0] ss:$36 sps:$4 sm:$0xff]   ;;  %v10551_v20 = vld [vmem:[#allocation5 + $0x558] ss:$36 sps:$4 sm:$0xff]   ;;  %v10557_v24 = vld [vmem:[#allocation5 + $0x510] ss:$36 sps:$4 sm:$0xff]  }
  0x31   :  { %1516 = vmatpush1.bf16.msra.mxu1 %v10533_v8  ;;  %1444 = vmatprep.subr.bf16.mxu0 %v10534_v9  ;;  %v10548_v18 = vld [vmem:[#allocation5 + $0x55c] ss:$36 sps:$4 sm:$0xff]   ;;  %v10554_v22 = vld [vmem:[#allocation5 + $0x514] ss:$36 sps:$4 sm:$0xff]   ;;  %v10558_v25 = vld [vmem:[#allocation5 + $0x4c] ss:$36 sps:$4 sm:$0xff]  }
  0x32   :  { %1517 = vmatprep.subr.bf16.mxu1 %v10536_v10  ;;  %v10560_v26 = vld [vmem:[#allocation5 + $0x4cc] ss:$36 sps:$4 sm:$0xff]   ;;  %v10564_v29 = vld [vmem:[#allocation5 + $0x4] ss:$36 sps:$4 sm:$0xff]   ;;  %v10570_v35 = vld [vmem:[#allocation5 + $0x43c] ss:$36 sps:$4 sm:$0xff]  }
  0x33   :  { %v10562_v27 = vld [vmem:[#allocation5 + $0x48] ss:$36 sps:$4 sm:$0xff]   ;;  %v10568_v31 = vld [vmem:[#allocation5] ss:$36 sps:$4 sm:$0xff]   ;;  %v10575_v39 = vld [vmem:[#allocation5 + $0x438] ss:$36 sps:$4 sm:$0xff]  }
  0x34   :  { %1445 = vmatpush1.bf16.msra.mxu0 %v10538_v11  ;;  %v10563_v28 = vld [vmem:[#allocation5 + $0x4c8] ss:$36 sps:$4 sm:$0xff]   ;;  %v10569_v32 = vld [vmem:[#allocation5 + $0x480] ss:$36 sps:$4 sm:$0xff]   ;;  %v10576_v40 = vld [vmem:[#allocation5 + $0x3f4] ss:$36 sps:$4 sm:$0xff]  }
  0x35   :  { %1518 = vmatpush1.bf16.msra.mxu1 %v10539_v12  ;;  %1446 = vmatprep.subr.bf16.mxu0 %v10540_v13  ;;  %v10566_v30 = vld [vmem:[#allocation5 + $0x484] ss:$36 sps:$4 sm:$0xff]   ;;  %v10580_v41 = vld [vmem:[#allocation5 + $0x1bc] ss:$36 sps:$4 sm:$0xff]   ;;  %v10581_v43 = vld [vmem:[#allocation5 + $0x3f0] ss:$36 sps:$4 sm:$0xff]  }
  0x36   :  { %1519 = vmatprep.subr.bf16.mxu1 %v10542_v14  ;;  %v65_v34 = vld [vmem:[#allocation2 + $0x28] sm:$0xff]  ;;  %v10572_v38 = vld [vmem:[#allocation5 + $0x200] ss:$36 sps:$4 sm:$0xff]   ;;  %v10578_v42 = vld [vmem:[#allocation5 + $0x1b8] ss:$36 sps:$4 sm:$0xff]   ;;  %vm11219_vm0 = vmmov 0  }
  0x37   :  { %v10574_v36 = vld [vmem:[#allocation5 + $0x204] ss:$36 sps:$4 sm:$0xff]   ;;  %v11260_v37 = vpack.c.bf16 %v65_v34, %v62_v33  ;;  %v10582_v44 = vld [vmem:[#allocation5 + $0x3ac] ss:$36 sps:$4 sm:$0xff]   ;;  %v10586_v45 = vld [vmem:[#allocation5 + $0x174] ss:$36 sps:$4 sm:$0xff]  }
  0x38   :  { %1447 = vmatpush1.bf16.msra.mxu0 %v10544_v15  ;;  %v10584_v46 = vld [vmem:[#allocation5 + $0x170] ss:$36 sps:$4 sm:$0xff]   ;;  %v10587_v47 = vld [vmem:[#allocation5 + $0x3a8] ss:$36 sps:$4 sm:$0xff]   ;;  %v64_v51 = vld [vmem:[#allocation2 + $0x20] sm:$0xff]  ;;  %vm2185_vm1 = vcmask 523264  }
  0x39   :  { %1520 = vmatpush1.bf16.msra.mxu1 %v10545_v16  ;;  %1448 = vmatprep.subr.bf16.mxu0 %v10546_v17  ;;  %v10588_v48 = vld [vmem:[#allocation5 + $0x364] ss:$36 sps:$4 sm:$0xff]   ;;  %v10592_v49 = vld [vmem:[#allocation5 + $0x12c] ss:$36 sps:$4 sm:$0xff]   ;;  %v10594_v55 = vld [vmem:[#allocation5 + $0x31c] ss:$36 sps:$4 sm:$0xff]  }
  0x3a   :  { %1521 = vmatprep.subr.bf16.mxu1 %v10548_v18  ;;  %v61_v50 = vld [vmem:[#allocation2 + $0x8] sm:$0xff]  ;;  %v10593_v53 = vld [vmem:[#allocation5 + $0x360] ss:$36 sps:$4 sm:$0xff]   ;;  %v10599_v58 = vld [vmem:[#allocation5 + $0x318] ss:$36 sps:$4 sm:$0xff]   ;;  %vm2662_vm2 = vcmask 1043456  }
  0x3b   :  { %v10590_v52 = vld [vmem:[#allocation5 + $0x128] ss:$36 sps:$4 sm:$0xff]   ;;  %v11264_v54 = vpack.c.bf16 %v64_v51, %v61_v50  ;;  %v10596_v57 = vld [vmem:[#allocation5 + $0xe0] ss:$36 sps:$4 sm:$0xff]   ;;  %v71_v60 = vld [vmem:[#allocation2 + $0x58] sm:$0xff]  ;;  %vm2562_vm4 = vcmask 64512  }
  0x3c   :  { %1449 = vmatpush1.bf16.msra.mxu0 %v10550_v19  ;;  %v10598_v56 = vld [vmem:[#allocation5 + $0xe4] ss:$36 sps:$4 sm:$0xff]   ;;  %v10600_v61 = vld [vmem:[#allocation5 + $0x2d4] ss:$36 sps:$4 sm:$0xff]   ;;  %v10604_v63 = vld [vmem:[#allocation5 + $0x9c] ss:$36 sps:$4 sm:$0xff]  }
  0x3d   :  { %1522 = vmatpush1.bf16.msra.mxu1 %v10551_v20  ;;  %1450 = vmatprep.subr.bf16.mxu0 %v10552_v21  ;;  %v68_v59 = vld [vmem:[#allocation2 + $0x40] sm:$0xff]  ;;  %v10602_v1 = vld [vmem:[#allocation5 + $0x98] ss:$36 sps:$4 sm:$0xff]   ;;  %v10605_v2 = vld [vmem:[#allocation5 + $0x2d0] ss:$36 sps:$4 sm:$0xff]   ;;  %s11220_s0 = smov 64  }
  0x3e   :  { %1523 = vmatprep.subr.bf16.mxu1 %v10554_v22  ;;  %1472 = vmatprep.mubr.bf16.mxu0 %v11264_v54  ;;  %v11267_v62 = vpack.c.bf16 %v71_v60, %v68_v59  ;;  %v10606_v3 = vld [vmem:[#allocation5 + $0x28c] ss:$36 sps:$4 sm:$0xff]   ;;  %v10610_v4 = vld [vmem:[#allocation5 + $0x54] ss:$36 sps:$4 sm:$0xff]   ;;  %v10612_v10 = vld [vmem:[#allocation5 + $0x244] ss:$36 sps:$4 sm:$0xff]  }
  0x3f   :  { %v74_v5 = vld [vmem:[#allocation2 + $0x70] sm:$0xff]  ;;  %v77_v6 = vld [vmem:[#allocation2 + $0x88] sm:$0xff]  ;;  %v10617_v13 = vld [vmem:[#allocation5 + $0x240] ss:$36 sps:$4 sm:$0xff]  }
  0x40   :  { %1451 = vmatpush1.bf16.msra.mxu0 %v10556_v23  ;;  %v10608_v7 = vld [vmem:[#allocation5 + $0x50] ss:$36 sps:$4 sm:$0xff]   ;;  %v10611_v8 = vld [vmem:[#allocation5 + $0x288] ss:$36 sps:$4 sm:$0xff]   ;;  %v11271_v9 = vpack.c.bf16 %v77_v6, %v74_v5  ;;  %v60_v14 = vld [vmem:[#allocation2] sm:$0xff] }
  0x41   :  { %1524 = vmatpush1.bf16.msra.mxu1 %v10557_v24  ;;  %1452 = vmatprep.subr.bf16.mxu0 %v10558_v25  ;;  %v10616_v11 = vld [vmem:[#allocation5 + $0xc] ss:$36 sps:$4 sm:$0xff]   ;;  %v63_v15 = vld [vmem:[#allocation2 + $0x18] sm:$0xff]  ;;  %v10620_v16 = vld [vmem:[#allocation5 + $0x444] ss:$36 sps:$4 sm:$0xff]  }
  0x42   :  { %1525 = vmatprep.subr.bf16.mxu1 %v10560_v26  ;;  %v10614_v12 = vld [vmem:[#allocation5 + $0x8] ss:$36 sps:$4 sm:$0xff]   ;;  %v10618_v18 = vld [vmem:[#allocation5 + $0x440] ss:$36 sps:$4 sm:$0xff]   ;;  %v83_v20 = vld [vmem:[#allocation2 + $0xb8] sm:$0xff]  ;;  %v11275_v21 = vpack.c.bf16 %v63_v15, %v60_v14 }
  0x43   :  { %v10623_v17 = vld [vmem:[#allocation5 + $0x684] ss:$36 sps:$4 sm:$0xff]   ;;  %v67_v22 = vld [vmem:[#allocation2 + $0x38] sm:$0xff]  ;;  %v70_v23 = vld [vmem:[#allocation2 + $0x50] sm:$0xff] }
  0x44   :  { %1453 = vmatpush1.bf16.msra.mxu0 %v10562_v27  ;;  %v80_v19 = vld [vmem:[#allocation2 + $0xa0] sm:$0xff]  ;;  %v10632_v33 = vld [vmem:[#allocation5 + $0x3b4] ss:$36 sps:$4 sm:$0xff]   ;;  %v10662_v6 = vld [vmem:[#allocation5 + $0x24c] ss:$36 sps:$4 sm:$0xff]  }
  0x45   :  { %1526 = vmatpush1.bf16.msra.mxu1 %v10563_v28  ;;  %1454 = vmatprep.subr.bf16.mxu0 %v10564_v29  ;;  %v11277_v24 = vpack.c.bf16 %v83_v20, %v80_v19  ;;  %v10621_v25 = vld [vmem:[#allocation5 + $0x680] ss:$36 sps:$4 sm:$0xff]   ;;  %v10624_v28 = vld [vmem:[#allocation5 + $0x3f8] ss:$36 sps:$4 sm:$0xff]   ;;  %v10657_v5 = vld [vmem:[#allocation5 + $0x4d0] ss:$36 sps:$4 sm:$0xff]  }
  0x46   :  { %1527 = vmatprep.subr.bf16.mxu1 %v10566_v30  ;;  %v10626_v26 = vld [vmem:[#allocation5 + $0x3fc] ss:$36 sps:$4 sm:$0xff]   ;;  %v11279_v30 = vpack.c.bf16 %v70_v23, %v67_v22  ;;  %v10635_v34 = vld [vmem:[#allocation5 + $0x5f4] ss:$36 sps:$4 sm:$0xff]   ;;  %v10690_v14 = vld [vmem:[#allocation5 + $0x688] ss:$36 sps:$4 sm:$0xff]  }
  0x47   :  { %v10629_v27 = vld [vmem:[#allocation5 + $0x63c] ss:$36 sps:$4 sm:$0xff]   ;;  %v10671_v15 = vld [vmem:[#allocation5 + $0x1c4] ss:$36 sps:$4 sm:$0xff]  }
  0x48   :  { %1455 = vmatpush1.bf16.msra.mxu0 %v10568_v31  ;;  %v10627_v29 = vld [vmem:[#allocation5 + $0x638] ss:$36 sps:$4 sm:$0xff]   ;;  %v66_v31 = vld [vmem:[#allocation2 + $0x30] sm:$0xff]  ;;  %v10642_v50 = vld [vmem:[#allocation5 + $0x320] ss:$36 sps:$4 sm:$0xff]  }
  0x49   :  { %1528 = vmatpush1.bf16.msra.mxu1 %v10569_v32  ;;  %1456 = vmatprep.subr.bf16.mxu0 %v10570_v35  ;;  %v69_v32 = vld [vmem:[#allocation2 + $0x48] sm:$0xff]  ;;  %v10630_v35 = vld [vmem:[#allocation5 + $0x3b0] ss:$36 sps:$4 sm:$0xff]   ;;  %v10645_v51 = vld [vmem:[#allocation5 + $0x560] ss:$36 sps:$4 sm:$0xff]  }
  0x4a   :  { %1586 = vmatprep.subr.bf16.mxu1 %v10574_v36  ;;  %v10633_v36 = vld [vmem:[#allocation5 + $0x5f0] ss:$36 sps:$4 sm:$0xff]   ;;  %v10651_v59 = vld [vmem:[#allocation5 + $0x518] ss:$36 sps:$4 sm:$0xff]  }
  0x4b   :  { %v10674_v19 = vld [vmem:[#allocation5 + $0x17c] ss:$36 sps:$4 sm:$0xff]  }
  0x4c   :  { %1546 = vmatmul.mubr.bf16.vlgmr.msra.gmra.mxu1 %v11260_v37  ;;  %1457 = vmatpush2.bf16.msra.mxu0 %v10575_v39  ;;  %v73_v39 = vld [vmem:[#allocation2 + $0x68] sm:$0xff]  ;;  %v10704_v20 = vld [vmem:[#allocation5 + $0x5fc] ss:$36 sps:$4 sm:$0xff]  }
  0x4d   :  { %1587 = vmatpush1.bf16.msra.mxu1 %v10572_v38  ;;  %1458 = vmatprep.subr.bf16.mxu0 %v10576_v40  ;;  %v11285_v38 = vpack.c.bf16 %v69_v32, %v66_v31  ;;  %v76_v40 = vld [vmem:[#allocation2 + $0x80] sm:$0xff]  ;;  %v10672_v22 = vld [vmem:[#allocation5 + $0x178] ss:$36 sps:$4 sm:$0xff]   ;;  %v10716_v31 = vld [vmem:[#allocation5 + $0x56c] ss:$36 sps:$4 sm:$0xff]  }
  0x4e   :  { %1588 = vmatprep.subr.bf16.mxu1 %v10580_v41  ;;  %1555 = vmatprep.mubr.bf16.mxu1 %v13346_v0  ;;  %v10638_v41 = vld [vmem:[#allocation5 + $0x36c] ss:$36 sps:$4 sm:$0xff]   ;;  %v10702_v23 = vld [vmem:[#allocation5 + $0x5f8] ss:$36 sps:$4 sm:$0xff]  }
  0x4f   :  { %v10678_v32 = vld [vmem:[#allocation5 + $0xe8] ss:$36 sps:$4 sm:$0xff]  }
  0x50   :  { %1459 = vmatpush2.bf16.msra.mxu0 %v10581_v43  ;;  %v10636_v43 = vld [vmem:[#allocation5 + $0x368] ss:$36 sps:$4 sm:$0xff]  }
  0x51   :  { %1589 = vmatpush1.bf16.msra.mxu1 %v10578_v42  ;;  %1460 = vmatprep.subr.bf16.mxu0 %v10582_v44  ;;  %v10641_v42 = vld [vmem:[#allocation5 + $0x5ac] ss:$36 sps:$4 sm:$0xff]  }
  0x52   :  { %1590 = vmatprep.subr.bf16.mxu1 %v10586_v45  ;;  %v10639_v44 = vld [vmem:[#allocation5 + $0x5a8] ss:$36 sps:$4 sm:$0xff]   ;;  %v11287_v45 = vpack.c.bf16 %v76_v40, %v73_v39  ;;  %v10720_v39 = vld [vmem:[#allocation5 + $0x520] ss:$36 sps:$4 sm:$0xff]  }
  0x53   :  { %v10686_v40 = vld [vmem:[#allocation5 + $0x5c] ss:$36 sps:$4 sm:$0xff]  }
  0x54   :  { %1461 = vmatpush2.bf16.msra.mxu0 %v10587_v47  ;;  %1556 = vmatmul.mubr.bf16.gmra.mxu1 %v11267_v62  ;;  %v75_v47 = vld [vmem:[#allocation2 + $0x78] sm:$0xff] }
  0x55   :  { %1591 = vmatpush1.bf16.msra.mxu1 %v10584_v46  ;;  %1462 = vmatprep.subr.bf16.mxu0 %v10588_v48  ;;  %v72_v46 = vld [vmem:[#allocation2 + $0x60] sm:$0xff] }
  0x56   :  { %1592 = vmatprep.subr.bf16.mxu1 %v10592_v49  ;;  %1565 = vmatprep.mubr.bf16.mxu1 %v13346_v0  ;;  %v10644_v48 = vld [vmem:[#allocation5 + $0x324] ss:$36 sps:$4 sm:$0xff]  }
  0x57   :  { %v10647_v49 = vld [vmem:[#allocation5 + $0x564] ss:$36 sps:$4 sm:$0xff]  }
  0x58   :  { %1463 = vmatpush2.bf16.msra.mxu0 %v10593_v53  ;;  %v79_v53 = vld [vmem:[#allocation2 + $0x98] sm:$0xff] }
  0x59   :  { %1593 = vmatpush1.bf16.msra.mxu1 %v10590_v52  ;;  %1464 = vmatprep.subr.bf16.mxu0 %v10594_v55  ;;  %v11291_v52 = vpack.c.bf16 %v75_v47, %v72_v46  ;;  %v82_v55 = vld [vmem:[#allocation2 + $0xb0] sm:$0xff] }
  0x5a   :  { %1594 = vmatprep.subr.bf16.mxu1 %v10598_v56  ;;  %v10650_v56 = vld [vmem:[#allocation5 + $0x2dc] ss:$36 sps:$4 sm:$0xff]   ;;  %v11293_v60 = vpack.c.bf16 %v82_v55, %v79_v53  ;;  %v10734_v46 = vld [vmem:[#allocation5 + $0x494] ss:$36 sps:$4 sm:$0xff]   ;;  %v10701_v55 = vld [vmem:[#allocation5 + $0x404] ss:$36 sps:$4 sm:$0xff]  }
  0x5b   :  { %v10687_v47 = vld [vmem:[#allocation5 + $0x10] ss:$36 sps:$4 sm:$0xff]  }
  0x5c   :  { %1465 = vmatpush2.bf16.msra.mxu0 %v10599_v58  ;;  %1566 = vmatmul.mubr.bf16.gmra.mxu1 %v11271_v9  ;;  %v10648_v58 = vld [vmem:[#allocation5 + $0x2d8] ss:$36 sps:$4 sm:$0xff]   ;;  %v10738_v53 = vld [vmem:[#allocation5 + $0x210] ss:$36 sps:$4 sm:$0xff]  }
  0x5d   :  { %1595 = vmatpush1.bf16.msra.mxu1 %v10596_v57  ;;  %1466 = vmatprep.subr.bf16.mxu0 %v10600_v61  ;;  %v10653_v57 = vld [vmem:[#allocation5 + $0x51c] ss:$36 sps:$4 sm:$0xff]   ;;  %v78_v61 = vld [vmem:[#allocation2 + $0x90] sm:$0xff] }
  0x5e   :  { %1596 = vmatprep.subr.bf16.mxu1 %v10604_v63  ;;  %1575 = vmatprep.mubr.bf16.mxu1 %v13346_v0  ;;  %v81_v63 = vld [vmem:[#allocation2 + $0xa8] sm:$0xff] }
  0x60   :  { %1467 = vmatpush2.bf16.msra.mxu0 %v10605_v2  ;;  %v10659_v2 = vld [vmem:[#allocation5 + $0x4d4] ss:$36 sps:$4 sm:$0xff]  }
  0x61   :  { %1597 = vmatpush1.bf16.msra.mxu1 %v10602_v1  ;;  %1468 = vmatprep.subr.bf16.mxu0 %v10606_v3  ;;  %v10656_v1 = vld [vmem:[#allocation5 + $0x294] ss:$36 sps:$4 sm:$0xff]   ;;  %v11297_v3 = vpack.c.bf16 %v81_v63, %v78_v61  ;;  %v10746_v61 = vld [vmem:[#allocation5 + $0x184] ss:$36 sps:$4 sm:$0xff]  }
  0x62   :  { %1598 = vmatprep.subr.bf16.mxu1 %v10610_v4  ;;  %v10654_v4 = vld [vmem:[#allocation5 + $0x290] ss:$36 sps:$4 sm:$0xff]   ;;  %v10705_v63 = vld [vmem:[#allocation5 + $0x3b8] ss:$36 sps:$4 sm:$0xff]  }
  0x64   :  { %1469 = vmatpush2.bf16.msra.mxu0 %v10611_v8  ;;  %1576 = vmatmul.mubr.bf16.gmra.mxu1 %v11277_v24  ;;  %v10660_v8 = vld [vmem:[#allocation5 + $0x248] ss:$36 sps:$4 sm:$0xff]  }
  0x65   :  { %1599 = vmatpush1.bf16.msra.mxu1 %v10608_v7  ;;  %1470 = vmatprep.subr.bf16.mxu0 %v10612_v10  ;;  %v10665_v7 = vld [vmem:[#allocation5 + $0x48c] ss:$36 sps:$4 sm:$0xff]  }
  0x66   :  { %1600 = vmatprep.subr.bf16.mxu1 %v10616_v11  ;;  %1618 = vmatprep.mubr.bf16.mxu1 %v11264_v54  ;;  %v10663_v10 = vld [vmem:[#allocation5 + $0x488] ss:$36 sps:$4 sm:$0xff]  }
  0x67   :  { %v10668_v11 = vld [vmem:[#allocation5 + $0x20c] ss:$36 sps:$4 sm:$0xff]  }
  0x68   :  { %1471 = vmatpush2.bf16.msra.mxu0 %v10617_v13  ;;  %v10666_v13 = vld [vmem:[#allocation5 + $0x208] ss:$36 sps:$4 sm:$0xff]  }
  0x69   :  { %1601 = vmatpush1.bf16.msra.mxu1 %v10614_v12  ;;  %1659 = vmatprep.subr.bf16.mxu0 %v10623_v17  ;;  %v10692_v12 = vld [vmem:[#allocation5 + $0x68c] ss:$36 sps:$4 sm:$0xff]   ;;  %v10669_v17 = vld [vmem:[#allocation5 + $0x1c0] ss:$36 sps:$4 sm:$0xff]  }
  0x6a   :  { %1602 = vmatprep.subr.bf16.mxu1 %v10620_v16  ;;  %v10698_v16 = vld [vmem:[#allocation5 + $0x644] ss:$36 sps:$4 sm:$0xff]  }
  0x6b   :  { %1473 = vmatmul.mubr.bf16.vlgmr.msra.gmra.mxu0 %v11275_v21 }
  0x6c   :  { %1660 = vmatpush1.bf16.msra.mxu0 %v10621_v25  ;;  %1482 = vmatprep.mubr.bf16.mxu0 %v11279_v30  ;;  %v10677_v25 = vld [vmem:[#allocation5 + $0x134] ss:$36 sps:$4 sm:$0xff]  }
  0x6d   :  { %1603 = vmatpush2.bf16.msra.mxu1 %v10618_v18  ;;  %1661 = vmatprep.subr.bf16.mxu0 %v10629_v27  ;;  %v10696_v18 = vld [vmem:[#allocation5 + $0x640] ss:$36 sps:$4 sm:$0xff]   ;;  %v10675_v27 = vld [vmem:[#allocation5 + $0x130] ss:$36 sps:$4 sm:$0xff]  }
  0x6e   :  { %1604 = vmatprep.subr.bf16.mxu1 %v10626_v26  ;;  %v10710_v26 = vld [vmem:[#allocation5 + $0x5b4] ss:$36 sps:$4 sm:$0xff]  }
  0x70   :  { %1662 = vmatpush1.bf16.msra.mxu0 %v10627_v29  ;;  %v10680_v29 = vld [vmem:[#allocation5 + $0xec] ss:$36 sps:$4 sm:$0xff]  }
  0x71   :  { %1605 = vmatpush2.bf16.msra.mxu1 %v10624_v28  ;;  %1663 = vmatprep.subr.bf16.mxu0 %v10635_v34  ;;  %v10708_v28 = vld [vmem:[#allocation5 + $0x5b0] ss:$36 sps:$4 sm:$0xff]   ;;  %v10683_v34 = vld [vmem:[#allocation5 + $0xa4] ss:$36 sps:$4 sm:$0xff]  }
  0x72   :  { %1606 = vmatprep.subr.bf16.mxu1 %v10632_v33  ;;  %v10714_v33 = vld [vmem:[#allocation5 + $0x568] ss:$36 sps:$4 sm:$0xff]  }
  0x73   :  { %1483 = vmatmul.mubr.bf16.gmra.mxu0 %v11285_v38 }
  0x74   :  { %1664 = vmatpush1.bf16.msra.mxu0 %v10633_v36  ;;  %1492 = vmatprep.mubr.bf16.mxu0 %v11287_v45  ;;  %v10681_v36 = vld [vmem:[#allocation5 + $0xa0] ss:$36 sps:$4 sm:$0xff]  }
  0x75   :  { %1607 = vmatpush2.bf16.msra.mxu1 %v10630_v35  ;;  %1665 = vmatprep.subr.bf16.mxu0 %v10641_v42  ;;  %v10722_v35 = vld [vmem:[#allocation5 + $0x524] ss:$36 sps:$4 sm:$0xff]   ;;  %v10684_v42 = vld [vmem:[#allocation5 + $0x58] ss:$36 sps:$4 sm:$0xff]  }
  0x76   :  { %1608 = vmatprep.subr.bf16.mxu1 %v10638_v41  ;;  %v10728_v41 = vld [vmem:[#allocation5 + $0x4dc] ss:$36 sps:$4 sm:$0xff]  }
  0x78   :  { %1666 = vmatpush1.bf16.msra.mxu0 %v10639_v44  ;;  %v10689_v44 = vld [vmem:[#allocation5 + $0x14] ss:$36 sps:$4 sm:$0xff]  }
  0x79   :  { %1609 = vmatpush2.bf16.msra.mxu1 %v10636_v43  ;;  %1667 = vmatprep.subr.bf16.mxu0 %v10647_v49  ;;  %v10726_v43 = vld [vmem:[#allocation5 + $0x4d8] ss:$36 sps:$4 sm:$0xff]   ;;  %v10695_v49 = vld [vmem:[#allocation5 + $0x44c] ss:$36 sps:$4 sm:$0xff]  }
  0x7a   :  { %1610 = vmatprep.subr.bf16.mxu1 %v10644_v48  ;;  %v10732_v48 = vld [vmem:[#allocation5 + $0x490] ss:$36 sps:$4 sm:$0xff]  }
  0x7b   :  { %1493 = vmatmul.mubr.bf16.gmra.mxu0 %v11291_v52 }
  0x7c   :  { %1668 = vmatpush1.bf16.msra.mxu0 %v10645_v51  ;;  %1502 = vmatprep.mubr.bf16.mxu0 %v11293_v60  ;;  %v10693_v51 = vld [vmem:[#allocation5 + $0x448] ss:$36 sps:$4 sm:$0xff]  }
  0x7d   :  { %1611 = vmatpush2.bf16.msra.mxu1 %v10642_v50  ;;  %1669 = vmatprep.subr.bf16.mxu0 %v10653_v57  ;;  %v10740_v50 = vld [vmem:[#allocation5 + $0x214] ss:$36 sps:$4 sm:$0xff]   ;;  %v10699_v57 = vld [vmem:[#allocation5 + $0x400] ss:$36 sps:$4 sm:$0xff]  }
  0x7e   :  { %1612 = vmatprep.subr.bf16.mxu1 %v10650_v56  ;;  %v10743_v56 = vld [vmem:[#allocation5 + $0x1cc] ss:$36 sps:$4 sm:$0xff]  }
  0x80   :  { %1670 = vmatpush1.bf16.msra.mxu0 %v10651_v59  ;;  %v10741_v59 = vld [vmem:[#allocation5 + $0x1c8] ss:$36 sps:$4 sm:$0xff]  }
  0x81   :  { %1613 = vmatpush2.bf16.msra.mxu1 %v10648_v58  ;;  %1671 = vmatprep.subr.bf16.mxu0 %v10659_v2  ;;  %v10707_v58 = vld [vmem:[#allocation5 + $0x3bc] ss:$36 sps:$4 sm:$0xff]   ;;  %v10713_v2 = vld [vmem:[#allocation5 + $0x374] ss:$36 sps:$4 sm:$0xff]  }
  0x82   :  { %1614 = vmatprep.subr.bf16.mxu1 %v10656_v1  ;;  %v10744_v1 = vld [vmem:[#allocation5 + $0x180] ss:$36 sps:$4 sm:$0xff]  }
  0x83   :  { %1503 = vmatmul.mubr.bf16.gmra.mxu0 %v11297_v3 }
  0x84   :  { %1672 = vmatpush1.bf16.msra.mxu0 %v10657_v5  ;;  %1691 = vmatprep.mubr.bf16.mxu0 %v13346_v0  ;;  %v10711_v5 = vld [vmem:[#allocation5 + $0x370] ss:$36 sps:$4 sm:$0xff]  }
  0x85   :  { %1615 = vmatpush2.bf16.msra.mxu1 %v10654_v4  ;;  %1673 = vmatprep.subr.bf16.mxu0 %v10665_v7  ;;  %v10749_v4 = vld [vmem:[#allocation5 + $0x13c] ss:$36 sps:$4 sm:$0xff]  }
  0x86   :  { %1616 = vmatprep.subr.bf16.mxu1 %v10662_v6  ;;  %v10719_v6 = vld [vmem:[#allocation5 + $0x32c] ss:$36 sps:$4 sm:$0xff]   ;;  %v10747_v7 = vld [vmem:[#allocation5 + $0x138] ss:$36 sps:$4 sm:$0xff]  }
  0x88   :  { %1674 = vmatpush1.bf16.msra.mxu0 %v10663_v10  ;;  %v10717_v10 = vld [vmem:[#allocation5 + $0x328] ss:$36 sps:$4 sm:$0xff]  }
  0x89   :  { %1617 = vmatpush2.bf16.msra.mxu1 %v10660_v8  ;;  %1732 = vmatprep.subr.bf16.mxu0 %v10668_v11  ;;  %v10752_v8 = vld [vmem:[#allocation5 + $0xf4] ss:$36 sps:$4 sm:$0xff]   ;;  %v10725_v11 = vld [vmem:[#allocation5 + $0x2e4] ss:$36 sps:$4 sm:$0xff]  }
  0x8a   :  { %1805 = vmatprep.subr.bf16.mxu1 %v10692_v12  ;;  %v10750_v12 = vld [vmem:[#allocation5 + $0xf0] ss:$36 sps:$4 sm:$0xff]  }
  0x8b   :  { %1692 = vmatmul.mubr.bf16.vlgmr.msra.gmra.mxu0 %v11260_v37 }
  0x8c   :  { %1619 = vmatmul.mubr.bf16.vlgmr.msra.gmra.mxu1 %v11275_v21  ;;  %1701 = vmatprep.mubr.bf16.mxu0 %v13346_v0 }
  0x8d   :  { %1628 = vmatprep.mubr.bf16.mxu1 %v11279_v30  ;;  %1733 = vmatpush1.bf16.msra.mxu0 %v10666_v13  ;;  %v10758_v13 = vld [vmem:[#allocation5 + $0xac] ss:$36 sps:$4 sm:$0xff]  }
  0x8e   :  { %1806 = vmatpush1.bf16.msra.mxu1 %v10690_v14  ;;  %1734 = vmatprep.subr.bf16.mxu0 %v10671_v15  ;;  %v10723_v14 = vld [vmem:[#allocation5 + $0x2e0] ss:$36 sps:$4 sm:$0xff]  }
  0x8f   :  { %1807 = vmatprep.subr.bf16.mxu1 %v10698_v16  ;;  %v10731_v15 = vld [vmem:[#allocation5 + $0x29c] ss:$36 sps:$4 sm:$0xff]   ;;  %v10756_v16 = vld [vmem:[#allocation5 + $0xa8] ss:$36 sps:$4 sm:$0xff]  }
  0x91   :  { %1735 = vmatpush1.bf16.msra.mxu0 %v10669_v17  ;;  %v10764_v17 = vld [vmem:[#allocation5 + $0x64] ss:$36 sps:$4 sm:$0xff]  }
  0x92   :  { %1808 = vmatpush1.bf16.msra.mxu1 %v10696_v18  ;;  %1736 = vmatprep.subr.bf16.mxu0 %v10674_v19  ;;  %v10729_v18 = vld [vmem:[#allocation5 + $0x298] ss:$36 sps:$4 sm:$0xff]  }
  0x93   :  { %1809 = vmatprep.subr.bf16.mxu1 %v10704_v20  ;;  %1702 = vmatmul.mubr.bf16.gmra.mxu0 %v11267_v62  ;;  %v10737_v19 = vld [vmem:[#allocation5 + $0x254] ss:$36 sps:$4 sm:$0xff]   ;;  %v10762_v20 = vld [vmem:[#allocation5 + $0x60] ss:$36 sps:$4 sm:$0xff]  }
  0x94   :  { %1629 = vmatmul.mubr.bf16.gmra.mxu1 %v11285_v38  ;;  %1711 = vmatprep.mubr.bf16.mxu0 %v13346_v0 }
  0x95   :  { %1638 = vmatprep.mubr.bf16.mxu1 %v11287_v45  ;;  %1737 = vmatpush1.bf16.msra.mxu0 %v10672_v22  ;;  %v10770_v22 = vld [vmem:[#allocation5 + $0x1c] ss:$36 sps:$4 sm:$0xff]  }
  0x96   :  { %1810 = vmatpush1.bf16.msra.mxu1 %v10702_v23  ;;  %1738 = vmatprep.subr.bf16.mxu0 %v10677_v25  ;;  %v10735_v23 = vld [vmem:[#allocation5 + $0x250] ss:$36 sps:$4 sm:$0xff]  }
  0x97   :  { %1811 = vmatprep.subr.bf16.mxu1 %v10710_v26  ;;  %v10755_v25 = vld [vmem:[#allocation5 + $0x694] ss:$36 sps:$4 sm:$0xff]  }
  0x98   :  { %v10768_v26 = vld [vmem:[#allocation5 + $0x18] ss:$36 sps:$4 sm:$0xff]  }
  0x99   :  { %1739 = vmatpush1.bf16.msra.mxu0 %v10675_v27  ;;  %v10776_v27 = vld [vmem:[#allocation5 + $0x454] ss:$36 sps:$4 sm:$0xff]  }
  0x9a   :  { %1812 = vmatpush1.bf16.msra.mxu1 %v10708_v28  ;;  %1740 = vmatprep.subr.bf16.mxu0 %v10680_v29  ;;  %v10753_v28 = vld [vmem:[#allocation5 + $0x690] ss:$36 sps:$4 sm:$0xff]  }
  0x9b   :  { %1813 = vmatprep.subr.bf16.mxu1 %v10716_v31  ;;  %1712 = vmatmul.mubr.bf16.gmra.mxu0 %v11271_v9  ;;  %v10761_v29 = vld [vmem:[#allocation5 + $0x64c] ss:$36 sps:$4 sm:$0xff]  }
  0x9c   :  { %1639 = vmatmul.mubr.bf16.gmra.mxu1 %v11291_v52  ;;  %1721 = vmatprep.mubr.bf16.mxu0 %v13346_v0  ;;  %v10774_v31 = vld [vmem:[#allocation5 + $0x450] ss:$36 sps:$4 sm:$0xff]  }
  0x9d   :  { %1648 = vmatprep.mubr.bf16.mxu1 %v11293_v60  ;;  %1741 = vmatpush1.bf16.msra.mxu0 %v10678_v32  ;;  %v10782_v32 = vld [vmem:[#allocation5 + $0x40c] ss:$36 sps:$4 sm:$0xff]  }
  0x9e   :  { %1814 = vmatpush1.bf16.msra.mxu1 %v10714_v33  ;;  %1742 = vmatprep.subr.bf16.mxu0 %v10683_v34  ;;  %v10759_v33 = vld [vmem:[#allocation5 + $0x648] ss:$36 sps:$4 sm:$0xff]  }
  0x9f   :  { %1815 = vmatprep.subr.bf16.mxu1 %v10722_v35  ;;  %v10767_v34 = vld [vmem:[#allocation5 + $0x604] ss:$36 sps:$4 sm:$0xff]  }
  0xa0   :  { %v10780_v35 = vld [vmem:[#allocation5 + $0x408] ss:$36 sps:$4 sm:$0xff]  }
  0xa1   :  { %1743 = vmatpush1.bf16.msra.mxu0 %v10681_v36  ;;  %v10788_v36 = vld [vmem:[#allocation5 + $0x3c4] ss:$36 sps:$4 sm:$0xff]  }
  0xa2   :  { %1816 = vmatpush1.bf16.msra.mxu1 %v10720_v39  ;;  %1744 = vmatprep.subr.bf16.mxu0 %v10686_v40  ;;  %v10765_v39 = vld [vmem:[#allocation5 + $0x600] ss:$36 sps:$4 sm:$0xff]  }
  0xa3   :  { %1817 = vmatprep.subr.bf16.mxu1 %v10728_v41  ;;  %1722 = vmatmul.mubr.bf16.gmra.mxu0 %v11277_v24  ;;  %v10773_v40 = vld [vmem:[#allocation5 + $0x5bc] ss:$36 sps:$4 sm:$0xff]  }
  0xa4   :  { %1649 = vmatmul.mubr.bf16.gmra.mxu1 %v11297_v3  ;;  %1764 = vmatprep.mubr.bf16.mxu0 %v11264_v54  ;;  %v10786_v41 = vld [vmem:[#allocation5 + $0x3c0] ss:$36 sps:$4 sm:$0xff]  }
  0xa5   :  { %1837 = vmatprep.mubr.bf16.mxu1 %v13346_v0  ;;  %1745 = vmatpush1.bf16.msra.mxu0 %v10684_v42  ;;  %v10794_v42 = vld [vmem:[#allocation5 + $0x37c] ss:$36 sps:$4 sm:$0xff]  }
  0xa6   :  { %1818 = vmatpush1.bf16.msra.mxu1 %v10726_v43  ;;  %1746 = vmatprep.subr.bf16.mxu0 %v10689_v44  ;;  %v10771_v43 = vld [vmem:[#allocation5 + $0x5b8] ss:$36 sps:$4 sm:$0xff]  }
  0xa7   :  { %1819 = vmatprep.subr.bf16.mxu1 %v10734_v46  ;;  %v10779_v44 = vld [vmem:[#allocation5 + $0x574] ss:$36 sps:$4 sm:$0xff]  }
  0xa8   :  { %v10792_v46 = vld [vmem:[#allocation5 + $0x378] ss:$36 sps:$4 sm:$0xff]  }
  0xa9   :  { %1747 = vmatpush1.bf16.msra.mxu0 %v10687_v47  ;;  %v10800_v47 = vld [vmem:[#allocation5 + $0x334] ss:$36 sps:$4 sm:$0xff]  }
  0xaa   :  { %1820 = vmatpush1.bf16.msra.mxu1 %v10732_v48  ;;  %1748 = vmatprep.subr.bf16.mxu0 %v10695_v49  ;;  %v10777_v48 = vld [vmem:[#allocation5 + $0x570] ss:$36 sps:$4 sm:$0xff]  }
  0xab   :  { %1878 = vmatprep.subr.bf16.mxu1 %v10740_v50  ;;  %v10785_v49 = vld [vmem:[#allocation5 + $0x52c] ss:$36 sps:$4 sm:$0xff]  }
  0xac   :  { %v10798_v50 = vld [vmem:[#allocation5 + $0x330] ss:$36 sps:$4 sm:$0xff]  }
  0xad   :  { %1838 = vmatmul.mubr.bf16.vlgmr.msra.gmra.mxu1 %v11260_v37  ;;  %1749 = vmatpush2.bf16.msra.mxu0 %v10693_v51  ;;  %v10805_v51 = vld [vmem:[#allocation5 + $0x2ec] ss:$36 sps:$4 sm:$0xff]  }
  0xae   :  { %1879 = vmatpush1.bf16.msra.mxu1 %v10738_v53  ;;  %1750 = vmatprep.subr.bf16.mxu0 %v10701_v55  ;;  %v10783_v53 = vld [vmem:[#allocation5 + $0x528] ss:$36 sps:$4 sm:$0xff]  }
  0xaf   :  { %1880 = vmatprep.subr.bf16.mxu1 %v10743_v56  ;;  %1847 = vmatprep.mubr.bf16.mxu1 %v13346_v0  ;;  %v10791_v55 = vld [vmem:[#allocation5 + $0x4e4] ss:$36 sps:$4 sm:$0xff]  }
  0xb0   :  { %v10803_v56 = vld [vmem:[#allocation5 + $0x2e8] ss:$36 sps:$4 sm:$0xff]  }
  0xb1   :  { %1751 = vmatpush2.bf16.msra.mxu0 %v10699_v57  ;;  %v10810_v57 = vld [vmem:[#allocation5 + $0x2a4] ss:$36 sps:$4 sm:$0xff]  }
  0xb2   :  { %1881 = vmatpush1.bf16.msra.mxu1 %v10741_v59  ;;  %1752 = vmatprep.subr.bf16.mxu0 %v10707_v58  ;;  %v10789_v58 = vld [vmem:[#allocation5 + $0x4e0] ss:$36 sps:$4 sm:$0xff]  }
  0xb3   :  { %1882 = vmatprep.subr.bf16.mxu1 %v10746_v61  ;;  %v10797_v59 = vld [vmem:[#allocation5 + $0x49c] ss:$36 sps:$4 sm:$0xff]  }
  0xb4   :  { %v10808_v61 = vld [vmem:[#allocation5 + $0x2a0] ss:$36 sps:$4 sm:$0xff]  }
  0xb5   :  { %1848 = vmatmul.mubr.bf16.gmra.mxu1 %v11267_v62  ;;  %1753 = vmatpush2.bf16.msra.mxu0 %v10705_v63  ;;  %v10815_v63 = vld [vmem:[#allocation5 + $0x25c] ss:$36 sps:$4 sm:$0xff]  }
  0xb6   :  { %1883 = vmatpush1.bf16.msra.mxu1 %v10744_v1  ;;  %1754 = vmatprep.subr.bf16.mxu0 %v10713_v2  ;;  %v10795_v1 = vld [vmem:[#allocation5 + $0x498] ss:$36 sps:$4 sm:$0xff]  }
  0xb7   :  { %1884 = vmatprep.subr.bf16.mxu1 %v10749_v4  ;;  %1857 = vmatprep.mubr.bf16.mxu1 %v13346_v0  ;;  %v10801_v2 = vld [vmem:[#allocation5 + $0x458] ss:$36 sps:$4 sm:$0xff]  }
  0xb8   :  { %v10813_v4 = vld [vmem:[#allocation5 + $0x258] ss:$36 sps:$4 sm:$0xff]  }
  0xb9   :  { %1755 = vmatpush2.bf16.msra.mxu0 %v10711_v5  ;;  %v10818_v5 = vld [vmem:[#allocation5 + $0x698] ss:$36 sps:$4 sm:$0xff]  }
  0xba   :  { %1885 = vmatpush1.bf16.msra.mxu1 %v10747_v7  ;;  %1756 = vmatprep.subr.bf16.mxu0 %v10719_v6  ;;  %v10802_v6 = vld [vmem:[#allocation5 + $0x218] ss:$36 sps:$4 sm:$0xff]   ;;  %v10806_v7 = vld [vmem:[#allocation5 + $0x410] ss:$36 sps:$4 sm:$0xff]  }
  0xbb   :  { %1886 = vmatprep.subr.bf16.mxu1 %v10752_v8  ;;  %v10821_v8 = vld [vmem:[#allocation5 + $0x650] ss:$36 sps:$4 sm:$0xff]  }
  0xbd   :  { %1858 = vmatmul.mubr.bf16.gmra.mxu1 %v11271_v9  ;;  %1757 = vmatpush2.bf16.msra.mxu0 %v10717_v10  ;;  %v10807_v10 = vld [vmem:[#allocation5 + $0x1d0] ss:$36 sps:$4 sm:$0xff]  }
  0xbe   :  { %1887 = vmatpush1.bf16.msra.mxu1 %v10750_v12  ;;  %1758 = vmatprep.subr.bf16.mxu0 %v10725_v11  ;;  %v10811_v11 = vld [vmem:[#allocation5 + $0x3c8] ss:$36 sps:$4 sm:$0xff]  }
  0xbf   :  { %1888 = vmatprep.subr.bf16.mxu1 %v10758_v13  ;;  %1867 = vmatprep.mubr.bf16.mxu1 %v13346_v0  ;;  %v10824_v12 = vld [vmem:[#allocation5 + $0x608] ss:$36 sps:$4 sm:$0xff]  }
  0xc0   :  { %v10812_v13 = vld [vmem:[#allocation5 + $0x188] ss:$36 sps:$4 sm:$0xff]  }
  0xc1   :  { %1759 = vmatpush2.bf16.msra.mxu0 %v10723_v14  ;;  %v10816_v14 = vld [vmem:[#allocation5 + $0x380] ss:$36 sps:$4 sm:$0xff]  }
  0xc2   :  { %1889 = vmatpush1.bf16.msra.mxu1 %v10756_v16  ;;  %1760 = vmatprep.subr.bf16.mxu0 %v10731_v15  ;;  %v10827_v15 = vld [vmem:[#allocation5 + $0x5c0] ss:$36 sps:$4 sm:$0xff]  }
  0xc3   :  { %1890 = vmatprep.subr.bf16.mxu1 %v10764_v17  ;;  %v10817_v16 = vld [vmem:[#allocation5 + $0x140] ss:$36 sps:$4 sm:$0xff]   ;;  %v10819_v17 = vld [vmem:[#allocation5 + $0x338] ss:$36 sps:$4 sm:$0xff]  }
  0xc5   :  { %1868 = vmatmul.mubr.bf16.gmra.mxu1 %v11277_v24  ;;  %1761 = vmatpush2.bf16.msra.mxu0 %v10729_v18  ;;  %v10830_v18 = vld [vmem:[#allocation5 + $0x578] ss:$36 sps:$4 sm:$0xff]  }
  0xc6   :  { %1891 = vmatpush1.bf16.msra.mxu1 %v10762_v20  ;;  %1762 = vmatprep.subr.bf16.mxu0 %v10737_v19  ;;  %v10820_v19 = vld [vmem:[#allocation5 + $0xf8] ss:$36 sps:$4 sm:$0xff]   ;;  %v10822_v20 = vld [vmem:[#allocation5 + $0x2f0] ss:$36 sps:$4 sm:$0xff]  }
  0xc7   :  { %1892 = vmatprep.subr.bf16.mxu1 %v10770_v22  ;;  %1910 = vmatprep.mubr.bf16.mxu1 %v11264_v54  ;;  %v10831_v22 = vld [vmem:[#allocation5 + $0x530] ss:$36 sps:$4 sm:$0xff]  }
  0xc9   :  { %1763 = vmatpush2.bf16.msra.mxu0 %v10735_v23  ;;  %v10823_v23 = vld [vmem:[#allocation5 + $0xb0] ss:$36 sps:$4 sm:$0xff]  }
  0xca   :  { %1893 = vmatpush1.bf16.msra.mxu1 %v10768_v26  ;;  %1951 = vmatprep.subr.bf16.mxu0 %v10755_v25  ;;  %v10825_v25 = vld [vmem:[#allocation5 + $0x2a8] ss:$36 sps:$4 sm:$0xff]  }
  0xcb   :  { %1894 = vmatprep.subr.bf16.mxu1 %v10776_v27  ;;  %v10832_v26 = vld [vmem:[#allocation5 + $0x4e8] ss:$36 sps:$4 sm:$0xff]  }
  0xcc   :  { %1765 = vmatmul.mubr.bf16.vlgmr.msra.gmra.mxu0 %v11275_v21  ;;  %v10826_v27 = vld [vmem:[#allocation5 + $0x68] ss:$36 sps:$4 sm:$0xff]  }
  0xcd   :  { %1952 = vmatpush1.bf16.msra.mxu0 %v10753_v28  ;;  %1774 = vmatprep.mubr.bf16.mxu0 %v11279_v30  ;;  %v10828_v28 = vld [vmem:[#allocation5 + $0x260] ss:$36 sps:$4 sm:$0xff]  }
  0xce   :  { %1953 = vmatprep.subr.bf16.mxu0 %v10761_v29  ;;  %1895 = vmatpush2.bf16.msra.mxu1 %v10774_v31  ;;  %v10833_v29 = vld [vmem:[#allocation5 + $0x4a0] ss:$36 sps:$4 sm:$0xff]  }
  0xcf   :  { %1896 = vmatprep.subr.bf16.mxu1 %v10782_v32  ;;  %v10829_v31 = vld [vmem:[#allocation5 + $0x20] ss:$36 sps:$4 sm:$0xff]   ;;  %v13348_v32 = vmov 0.0  }
  0xd1   :  { %1954 = vmatpush1.bf16.msra.mxu0 %v10759_v33 }
  0xd2   :  { %1955 = vmatprep.subr.bf16.mxu0 %v10767_v34  ;;  %1897 = vmatpush2.bf16.msra.mxu1 %v10780_v35 }
  0xd3   :  { %1898 = vmatprep.subr.bf16.mxu1 %v10788_v36 }
  0xd4   :  { %1775 = vmatmul.mubr.bf16.gmra.mxu0 %v11285_v38 }
  0xd5   :  { %1956 = vmatpush1.bf16.msra.mxu0 %v10765_v39  ;;  %1784 = vmatprep.mubr.bf16.mxu0 %v11287_v45 }
  0xd6   :  { %1957 = vmatprep.subr.bf16.mxu0 %v10773_v40  ;;  %1899 = vmatpush2.bf16.msra.mxu1 %v10786_v41 }
  0xd7   :  { %1900 = vmatprep.subr.bf16.mxu1 %v10794_v42 }
  0xd9   :  { %1958 = vmatpush1.bf16.msra.mxu0 %v10771_v43 }
  0xda   :  { %1959 = vmatprep.subr.bf16.mxu0 %v10779_v44  ;;  %1901 = vmatpush2.bf16.msra.mxu1 %v10792_v46 }
  0xdb   :  { %1902 = vmatprep.subr.bf16.mxu1 %v10800_v47 }
  0xdc   :  { %1785 = vmatmul.mubr.bf16.gmra.mxu0 %v11291_v52 }
  0xdd   :  { %1960 = vmatpush1.bf16.msra.mxu0 %v10777_v48  ;;  %1794 = vmatprep.mubr.bf16.mxu0 %v11293_v60 }
  0xde   :  { %1961 = vmatprep.subr.bf16.mxu0 %v10785_v49  ;;  %1903 = vmatpush2.bf16.msra.mxu1 %v10798_v50 }
  0xdf   :  { %1904 = vmatprep.subr.bf16.mxu1 %v10805_v51 }
  0xe1   :  { %1962 = vmatpush1.bf16.msra.mxu0 %v10783_v53 }
  0xe2   :  { %1963 = vmatprep.subr.bf16.mxu0 %v10791_v55  ;;  %1905 = vmatpush2.bf16.msra.mxu1 %v10803_v56 }
  0xe3   :  { %1906 = vmatprep.subr.bf16.mxu1 %v10810_v57 }
  0xe4   :  { %1795 = vmatmul.mubr.bf16.gmra.mxu0 %v11297_v3 }
  0xe5   :  { %1964 = vmatpush1.bf16.msra.mxu0 %v10789_v58  ;;  %1983 = vmatprep.mubr.bf16.mxu0 %v13346_v0 }
  0xe6   :  { %1965 = vmatprep.subr.bf16.mxu0 %v10797_v59  ;;  %1907 = vmatpush2.bf16.msra.mxu1 %v10808_v61 }
  0xe7   :  { %1908 = vmatprep.subr.bf16.mxu1 %v10815_v63 }
  0xe9   :  { %1966 = vmatpush1.bf16.msra.mxu0 %v10795_v1 }
  0xea   :  { %9520 = vmatprep.subr.bf16.mxu0 %v10801_v2  ;;  %1909 = vmatpush2.bf16.msra.mxu1 %v10813_v4 }
  0xeb   :  { %9812 = vmatprep.subr.bf16.mxu1 %v10818_v5 }
  0xec   :  { %1984 = vmatmul.mubr.bf16.vlgmr.msra.gmra.mxu0 %v11260_v37 }
  0xed   :  { %9521 = vmatpush3.bf16.msra.mxu0 %v10802_v6  ;;  %1993 = vmatprep.mubr.bf16.mxu0 %v13346_v0 }
  0xee   :  { %9522 = vmatprep.subr.bf16.mxu0 %v10806_v7  ;;  %1911 = vmatmul.mubr.bf16.vlgmr.msra.gmra.mxu1 %v11275_v21 }
  0xef   :  { %9813 = vmatpush3.bf16.msra.mxu1 %v10818_v5  ;;  %1920 = vmatprep.mubr.bf16.mxu1 %v11279_v30 }
  0xf0   :  { %9814 = vmatprep.subr.bf16.mxu1 %v10821_v8 }
  0xf1   :  { %9523 = vmatpush3.bf16.msra.mxu0 %v10807_v10 }
  0xf2   :  { %9524 = vmatprep.subr.bf16.mxu0 %v10811_v11 }
  0xf3   :  { %9815 = vmatpush3.bf16.msra.mxu1 %v10821_v8 }
  0xf4   :  { %1994 = vmatmul.mubr.bf16.gmra.mxu0 %v11267_v62  ;;  %9816 = vmatprep.subr.bf16.mxu1 %v10824_v12 }
  0xf5   :  { %9525 = vmatpush3.bf16.msra.mxu0 %v10812_v13  ;;  %2003 = vmatprep.mubr.bf16.mxu0 %v13346_v0 }
  0xf6   :  { %9526 = vmatprep.subr.bf16.mxu0 %v10816_v14  ;;  %1921 = vmatmul.mubr.bf16.gmra.mxu1 %v11285_v38 }
  0xf7   :  { %9817 = vmatpush3.bf16.msra.mxu1 %v10824_v12  ;;  %1930 = vmatprep.mubr.bf16.mxu1 %v11287_v45 }
  0xf8   :  { %9818 = vmatprep.subr.bf16.mxu1 %v10827_v15 }
  0xf9   :  { %9527 = vmatpush3.bf16.msra.mxu0 %v10817_v16 }
  0xfa   :  { %9528 = vmatprep.subr.bf16.mxu0 %v10819_v17 }
  0xfb   :  { %9819 = vmatpush3.bf16.msra.mxu1 %v10827_v15 }
  0xfc   :  { %2004 = vmatmul.mubr.bf16.gmra.mxu0 %v11271_v9  ;;  %9820 = vmatprep.subr.bf16.mxu1 %v10830_v18 }
  0xfd   :  { %9529 = vmatpush3.bf16.msra.mxu0 %v10820_v19  ;;  %2013 = vmatprep.mubr.bf16.mxu0 %v13346_v0 }
  0xfe   :  { %9530 = vmatprep.subr.bf16.mxu0 %v10822_v20  ;;  %1931 = vmatmul.mubr.bf16.gmra.mxu1 %v11291_v52 }
  0xff   :  { %9821 = vmatpush3.bf16.msra.mxu1 %v10830_v18  ;;  %1940 = vmatprep.mubr.bf16.mxu1 %v11293_v60 }
 0x100   :  { %9822 = vmatprep.subr.bf16.mxu1 %v10831_v22 }
 0x101   :  { %9531 = vmatpush3.bf16.msra.mxu0 %v10823_v23 }
 0x102   :  { %9532 = vmatprep.subr.bf16.mxu0 %v10825_v25 }
 0x103   :  { %9823 = vmatpush3.bf16.msra.mxu1 %v10831_v22 }
 0x104   :  { %2014 = vmatmul.mubr.bf16.gmra.mxu0 %v11277_v24  ;;  %9824 = vmatprep.subr.bf16.mxu1 %v10832_v26 }
 0x105   :  { %9533 = vmatpush3.bf16.msra.mxu0 %v10826_v27  ;;  %2056 = vmatprep.mubr.bf16.mxu0 %v11264_v54 }
 0x106   :  { %9534 = vmatprep.subr.bf16.mxu0 %v10828_v28  ;;  %1941 = vmatmul.mubr.bf16.gmra.mxu1 %v11297_v3 }
 0x107   :  { %9825 = vmatpush3.bf16.msra.mxu1 %v10832_v26  ;;  %9828 = vmatprep.mubr.bf16.mxu1 %v11260_v37 }
 0x108   :  { %9826 = vmatprep.subr.bf16.mxu1 %v10833_v29 }
 0x109   :  { %9535 = vmatpush3.bf16.msra.mxu0 %v10829_v31 }
 0x10a   :  { %9860 = vmatprep.subr.bf16.mxu0 %v13348_v32 }
 0x10b   :  { %9827 = vmatpush3.bf16.msra.mxu1 %v10833_v29 }
 0x10c   :  { %2057 = vmatmul.mubr.bf16.vlgmr.msra.gmra.mxu0 %v11275_v21  ;;  %9836 = vmatprep.subr.bf16.mxu1 %v13348_v32  ;;  %v11354_v54 = vpop.f32.mrf.mxu1 }
 0x10d   :  { %2064 = vmatprep.mubr.bf16.mxu0 %v11279_v30 }
 0x10e   :  { %9829 = vmatmul.mubr.bf16.vlgmr.msra.gmra.mxu1 %v11267_v62  ;;  %v1549_v33 = vpop.f32.mrf.mxu1 }
 0x10f   :  { %9832 = vmatprep.mubr.bf16.mxu1 %v11271_v9 }
 0x110   :  { %v11360_v37 = vpop.f32.mrf.mxu1 }
 0x112   :  { %v11364_v21 = vpop.f32.mrf.mxu1 }
 0x114   :  { %2065 = vmatmul.mubr.bf16.gmra.mxu0 %v11285_v38  ;;  %v11367_v62 = vpop.f32.mrf.mxu1 }
 0x115   :  { %2072 = vmatprep.mubr.bf16.mxu0 %v11287_v45 }
 0x116   :  { %9833 = vmatmul.mubr.bf16.gmra.mxu1 %v11277_v24  ;;  %v1559_v9 = vpop.f32.mrf.mxu1 }
 0x117   :  { %9838 = vmatprep.mubr.msk.bf16.mxu1 %vm11219_vm0, %v13348_v32 }
 0x118   :  { %v11371_v30 = vpop.f32.mrf.mxu1 }
 0x11a   :  { %v11375_v24 = vpop.f32.mrf.mxu1 }
 0x11c   :  { %2073 = vmatmul.mubr.bf16.gmra.mxu0 %v11291_v52  ;;  %v11377_v34 = vpop.f32.mrf.mxu1 }
 0x11d   :  { %2080 = vmatprep.mubr.bf16.mxu0 %v11293_v60 }
 0x11e   :  { %v1569_v60 = vpop.f32.mrf.mxu1 }
 0x120   :  { %v11385_v40 = vpop.f32.mrf.mxu1 }
 0x122   :  { %v11393_v44 = vpop.f32.mrf.mxu1 }
 0x123   :  { %13356 = vst [vmem:[#allocation12_spill] sm:$0xff] %v11393_v44 }
 0x124   :  { %2081 = vmatmul.mubr.bf16.gmra.mxu0 %v11297_v3  ;;  %v11397_v48 = vpop.f32.mrf.mxu1 }
 0x125   :  { %9862 = vmatprep.mubr.msk.bf16.mxu0 %vm11219_vm0, %v13348_v32 }
 0x126   :  { %v1579_v51 = vpop.f32.mrf.mxu1 }
 0x128   :  { %v11407_v56 = vpop.f32.mrf.mxu1 }
 0x12a   :  { %v11413_v61 = vpop.f32.mrf.mxu1 }
 0x12b   :  { %v1474_v38 = vpop.f32.mrf.mxu0  ;;  %13359 = vst [vmem:[#allocation15_spill] sm:$0xff] %v11413_v61 }
 0x12c   :  { %v1548_v19 = vadd.f32 %v11354_v54, %v1474_v38 }
 0x12d   :  { %v1476_v45 = vpop.f32.mrf.mxu0 }
 0x12e   :  { %v11379_v35 = vadd.f32 %v1549_v33, %v1476_v45  ;;  %v11431_v28 = vpack.c.bf16 %v1548_v19, %v1548_v19 }
 0x12f   :  { %v1478_v52 = vpop.f32.mrf.mxu0 }
 0x131   :  { %v11381_v36 = vpop.f32.mrf.mxu0 }
 0x133   :  { %v11383_v39 = vpop.f32.mrf.mxu0 }
 0x135   :  { %v1486_v3 = vpop.f32.mrf.mxu0 }
 0x136   :  { %v11387_v41 = vadd.f32 %v1559_v9, %v1486_v3 }
 0x137   :  { %v11389_v42 = vpop.f32.mrf.mxu0 }
 0x139   :  { %v11391_v43 = vpop.f32.mrf.mxu0 }
 0x13b   :  { %v11395_v46 = vpop.f32.mrf.mxu0 }
 0x13d   :  { %v1496_v47 = vpop.f32.mrf.mxu0 }
 0x13e   :  { %v11399_v49 = vadd.f32 %v1569_v60, %v1496_v47  ;;  %v1552_v60 = vadd.f32 %v11360_v37, %v1478_v52 }
 0x13f   :  { %v11401_v50 = vpop.f32.mrf.mxu0 }
 0x141   :  { %v11403_v53 = vpop.f32.mrf.mxu0 }
 0x142   :  { %13357 = vst [vmem:[#allocation13_spill] sm:$0xff] %v11403_v53 }
 0x143   :  { %v11405_v55 = vpop.f32.mrf.mxu0 }
 0x145   :  { %v1506_v57 = vpop.f32.mrf.mxu0 }
 0x146   :  { %v11409_v58 = vadd.f32 %v1579_v51, %v1506_v57 }
 0x147   :  { %v11411_v59 = vpop.f32.mrf.mxu0 }
 0x148   :  { %13358 = vst [vmem:[#allocation14_spill] sm:$0xff] %v11409_v58 }
 0x149   :  { %v11415_v63 = vpop.f32.mrf.mxu0 }
 0x14a   :  { %13360 = vst [vmem:[#allocation16_spill] sm:$0xff] %v11415_v63 }
 0x14b   :  { %v1693_v2 = vpop.f32.mrf.mxu0 }
 0x14c   :  { %v1620_v1 = vpop.f32.mrf.mxu1 }
 0x14d   :  { %v11417_v4 = vadd.f32 %v1693_v2, %v1620_v1  ;;  %v1695_v6 = vpop.f32.mrf.mxu0 }
 0x14e   :  { %v1622_v5 = vpop.f32.mrf.mxu1 }
 0x14f   :  { %13361 = vst [vmem:[#allocation17_spill] sm:$0xff] %v11417_v4  ;;  %v1696_v7 = vadd.f32 %v1695_v6, %v1622_v5  ;;  %v1697_v10 = vpop.f32.mrf.mxu0  ;;  %v11447_v6 = vpack.c.bf16 %v1552_v60, %v1552_v60  ;;  %v1578_v60 = vadd.f32 %v11397_v48, %v11405_v55 }
 0x150   :  { %v1624_v8 = vpop.f32.mrf.mxu1 }
 0x151   :  { %v11419_v11 = vpack.c.bf16 %v1696_v7, %v1696_v7  ;;  %v11421_v12 = vadd.f32 %v1697_v10, %v1624_v8  ;;  %v1699_v14 = vpop.f32.mrf.mxu0 }
 0x152   :  { %v1626_v13 = vpop.f32.mrf.mxu1 }
 0x153   :  { %13362 = vst [vmem:[#allocation18_spill] sm:$0xff] %v11421_v12  ;;  %v2190_v15 = vsel %vm2185_vm1, %v11419_v11, 0  ;;  %v1700_v16 = vadd.f32 %v1699_v14, %v1626_v13  ;;  %v1703_v18 = vpop.f32.mrf.mxu0 }
 0x154   :  { %v1630_v17 = vpop.f32.mrf.mxu1  ;;  %9837 = vmatpush3.bf16.xpose.msra.mxu1 %v2190_v15  ;;  %v1558_v15 = vadd.f32 %v11367_v62, %v11383_v39 }
 0x155   :  { %v11426_v20 = vadd.f32 %v1703_v18, %v1630_v17  ;;  %9842 = vmatprep.subr.bf16.mxu1 %v13348_v32  ;;  %v1705_v23 = vpop.f32.mrf.mxu0  ;;  %v11429_v25 = vpack.c.bf16 %v1700_v16, %v1700_v16  ;;  %v1568_v18 = vadd.f32 %v11377_v34, %v11395_v46 }
 0x156   :  { %v1632_v22 = vpop.f32.mrf.mxu1  ;;  %v11471_v39 = vpack.c.bf16 %v1558_v15, %v1558_v15 }
 0x157   :  { %13363 = vst [vmem:[#allocation19_spill] sm:$0xff] %v11426_v20  ;;  %v1707_v27 = vpop.f32.mrf.mxu0  ;;  %v1706_v9 = vadd.f32 %v1705_v23, %v1632_v22  ;;  %v2236_v54 = vsel %vm2185_vm1, %v11429_v25, 0 }
 0x158   :  { %v1634_v26 = vpop.f32.mrf.mxu1 }
 0x159   :  { %v11433_v29 = vadd.f32 %v1707_v27, %v1634_v26  ;;  %v1709_v33 = vpop.f32.mrf.mxu0  ;;  %v11445_v57 = vpack.c.bf16 %v1706_v9, %v1706_v9 }
 0x15a   :  { %v1636_v31 = vpop.f32.mrf.mxu1 }
 0x15b   :  { %13364 = vst [vmem:[#allocation20_spill] sm:$0xff] %v11433_v29  ;;  %9839 = vmatmul.mubr.msk.bf16.vlgmr.msra.gmra.mxu1 %vm2185_vm1, %v11431_v28  ;;  %v1713_v45 = vpop.f32.mrf.mxu0  ;;  %v2282_v37 = vsel %vm2185_vm1, %v11445_v57, 0  ;;  %v1710_v52 = vadd.f32 %v1709_v33, %v1636_v31  ;;  %v11473_v33 = vpack.c.bf16 %v1568_v18, %v1568_v18 }
 0x15c   :  { %v1640_v38 = vpop.f32.mrf.mxu1  ;;  %9843 = vmatpush3.bf16.xpose.msra.mxu1 %v2236_v54  ;;  %9844 = vmatprep.mubr.msk.bf16.mxu1 %vm11219_vm0, %v13348_v32 }
 0x15d   :  { %v11442_v3 = vadd.f32 %v1713_v45, %v1640_v38  ;;  %9848 = vmatprep.subr.bf16.mxu1 %v13348_v32  ;;  %v1715_v51 = vpop.f32.mrf.mxu0  ;;  %v11469_v26 = vpack.c.bf16 %v1710_v52, %v1710_v52  ;;  %v1562_v45 = vadd.f32 %v11371_v30, %v11389_v42  ;;  %v11501_v30 = vpack.c.bf16 %v1578_v60, %v1578_v60 }
 0x15e   :  { %v1642_v47 = vpop.f32.mrf.mxu1 }
 0x15f   :  { %13365 = vst [vmem:[#allocation21_spill] sm:$0xff] %v11442_v3  ;;  %v1716_v1 = vadd.f32 %v1715_v51, %v1642_v47  ;;  %v1717_v5 = vpop.f32.mrf.mxu0  ;;  %v2328_v38 = vsel %vm2185_vm1, %v11469_v26, 0 }
 0x160   :  { %v1644_v2 = vpop.f32.mrf.mxu1 }
 0x161   :  { %v11449_v7 = vpack.c.bf16 %v1716_v1, %v1716_v1  ;;  %v11451_v8 = vadd.f32 %v1717_v5, %v1644_v2  ;;  %v1719_v13 = vpop.f32.mrf.mxu0  ;;  %v11499_v2 = vpack.c.bf16 %v1562_v45, %v1562_v45  ;;  %v1572_v5 = vadd.f32 %v11385_v40, %v11401_v50 }
 0x162   :  { %v1646_v10 = vpop.f32.mrf.mxu1  ;;  %v1582_v40 = vadd.f32 %v11407_v56, %v11411_v59 }
 0x163   :  { %13366 = vst [vmem:[#allocation22_spill] sm:$0xff] %v11451_v8  ;;  %v2374_v14 = vsel %vm2185_vm1, %v11449_v7, 0  ;;  %9845 = vmatmul.mubr.msk.bf16.vlgmr.msra.gmra.mxu1 %vm2185_vm1, %v11447_v6  ;;  %v1723_v17 = vpop.f32.mrf.mxu0  ;;  %v1720_v34 = vadd.f32 %v1719_v13, %v1646_v10 }
 0x164   :  { %v1650_v16 = vpop.f32.mrf.mxu1  ;;  %9849 = vmatpush3.bf16.xpose.msra.mxu1 %v2282_v37  ;;  %9861 = vmatpush3.bf16.xpose.msra.mxu0 %v2374_v14  ;;  %v11518_v37 = vpack.c.bf16 %v1572_v5, %v1572_v5 }
 0x165   :  { %v11463_v19 = vadd.f32 %v1723_v17, %v1650_v16  ;;  %9850 = vmatprep.mubr.msk.bf16.mxu1 %vm11219_vm0, %v13348_v32  ;;  %9854 = vmatprep.subr.bf16.mxu1 %v13348_v32  ;;  %v1725_v23 = vpop.f32.mrf.mxu0  ;;  %v11491_v47 = vpack.c.bf16 %v1720_v34, %v1720_v34  ;;  %v11531_v16 = vpack.c.bf16 %v1582_v40, %v1582_v40 }
 0x166   :  { %v1652_v22 = vpop.f32.mrf.mxu1  ;;  %9872 = vmatprep.subr.bf16.mxu0 %v13348_v32 }
 0x167   :  { %13367 = vst [vmem:[#allocation23_spill] sm:$0xff] %v11463_v19  ;;  %v1726_v62 = vadd.f32 %v1725_v23, %v1652_v22  ;;  %v1727_v31 = vpop.f32.mrf.mxu0  ;;  %v2420_v42 = vsel %vm2185_vm1, %v11491_v47, 0 }
 0x168   :  { %v1654_v27 = vpop.f32.mrf.mxu1 }
 0x169   :  { %v11475_v46 = vpack.c.bf16 %v1726_v62, %v1726_v62  ;;  %v11477_v9 = vadd.f32 %v1727_v31, %v1654_v27  ;;  %v1729_v1 = vpop.f32.mrf.mxu0 }
 0x16a   :  { %v1656_v51 = vpop.f32.mrf.mxu1 }
 0x16b   :  { %13368 = vst [vmem:[#allocation24_spill] sm:$0xff] %v11477_v9  ;;  %v2466_v54 = vsel %vm2185_vm1, %v11475_v46, 0  ;;  %9851 = vmatmul.mubr.msk.bf16.vlgmr.msra.gmra.mxu1 %vm2185_vm1, %v11471_v39  ;;  %9863 = vmatmul.mubr.msk.bf16.vlgmr.msra.gmra.mxu0 %vm2185_vm1, %v11473_v33  ;;  %v1730_v48 = vadd.f32 %v1729_v1, %v1656_v51 }
 0x16c   :  { %9855 = vmatpush3.bf16.xpose.msra.mxu1 %v2328_v38  ;;  %9873 = vmatpush3.bf16.xpose.msra.mxu0 %v2466_v54 }
 0x16d   :  { %9856 = vmatprep.mubr.msk.bf16.mxu1 %vm11219_vm0, %v13348_v32  ;;  %9874 = vmatprep.mubr.msk.bf16.mxu0 %vm11219_vm0, %v13348_v32  ;;  %v1839_v55 = vpop.f32.mrf.mxu1  ;;  %v11513_v10 = vpack.c.bf16 %v1730_v48, %v1730_v48 }
 0x16e   :  { %9866 = vmatprep.subr.bf16.mxu1 %v13348_v32  ;;  %9884 = vmatprep.subr.bf16.mxu0 %v13348_v32 }
 0x16f   :  { %v1841_v13 = vpop.f32.mrf.mxu1  ;;  %v2512_v52 = vsel %vm2185_vm1, %v11513_v10, 0 }
 0x171   :  { %v1843_v14 = vpop.f32.mrf.mxu1 }
 0x173   :  { %9857 = vmatmul.mubr.msk.bf16.vlgmr.msra.gmra.mxu1 %vm2185_vm1, %v11499_v2  ;;  %9875 = vmatmul.mubr.msk.bf16.vlgmr.msra.gmra.mxu0 %vm2185_vm1, %v11501_v30  ;;  %v11528_v50 = vpop.f32.mrf.mxu1 }
 0x174   :  { %9867 = vmatpush3.bf16.xpose.msra.mxu1 %v2420_v42  ;;  %9868 = vmatprep.mubr.msk.bf16.mxu1 %vm11219_vm0, %v13348_v32  ;;  %13369 = vst [vmem:[#allocation25_spill] sm:$0xff] %v11528_v50 }
 0x175   :  { %9878 = vmatprep.subr.bf16.mxu1 %v13348_v32  ;;  %9886 = vmatprep.mubr.msk.bf16.mxu0 %vm11219_vm0, %v13348_v32  ;;  %v1849_v15 = vpop.f32.mrf.mxu1 }
 0x177   :  { %v1851_v17 = vpop.f32.mrf.mxu1 }
 0x179   :  { %v1853_v18 = vpop.f32.mrf.mxu1 }
 0x17b   :  { %9869 = vmatmul.mubr.msk.bf16.vlgmr.msra.gmra.mxu1 %vm2185_vm1, %v11518_v37  ;;  %v11537_v22 = vpop.f32.mrf.mxu1 }
 0x17c   :  { %9879 = vmatpush3.bf16.xpose.msra.mxu1 %v2512_v52  ;;  %9880 = vmatprep.mubr.msk.bf16.mxu1 %vm11219_vm0, %v13348_v32  ;;  %13370 = vst [vmem:[#allocation26_spill] sm:$0xff] %v11537_v22 }
 0x17d   :  { %9890 = vmatprep.subr.bf16.mxu1 %v13348_v32  ;;  %v1859_v59 = vpop.f32.mrf.mxu1 }
 0x17f   :  { %v1861_v38 = vpop.f32.mrf.mxu1 }
 0x181   :  { %v1863_v1 = vpop.f32.mrf.mxu1 }
 0x183   :  { %9881 = vmatmul.mubr.msk.bf16.vlgmr.msra.gmra.mxu1 %vm2185_vm1, %v11531_v16 }
 0x184   :  { %9892 = vmatprep.mubr.msk.bf16.mxu1 %vm11219_vm0, %v13348_v32 }
 0x18c   :  { %v1766_v23 = vpop.f32.mrf.mxu0 }
 0x18d   :  { %v11539_v62 = vadd.f32 %v1839_v55, %v1766_v23 }
 0x18e   :  { %v1768_v56 = vpop.f32.mrf.mxu0 }
 0x18f   :  { %v11541_v27 = vadd.f32 %v1841_v13, %v1768_v56  ;;  %v11555_v13 = vpop.f32.mrf.mxu1 }
 0x190   :  { %v1770_v31 = vpop.f32.mrf.mxu0  ;;  %13375 = vst [vmem:[#allocation31_spill] sm:$0xff] %v11555_v13 }
 0x191   :  { %13371 = vst [vmem:[#allocation27_spill] sm:$0xff] %v11541_v27  ;;  %v11543_v34 = vadd.f32 %v1843_v14, %v1770_v31  ;;  %v1869_v23 = vpop.f32.mrf.mxu1 }
 0x192   :  { %v11545_v54 = vpop.f32.mrf.mxu0 }
 0x193   :  { %13372 = vst [vmem:[#allocation28_spill] sm:$0xff] %v11545_v54 }
 0x194   :  { %v1776_v45 = vpop.f32.mrf.mxu0 }
 0x195   :  { %v11547_v60 = vadd.f32 %v1849_v15, %v1776_v45 }
 0x196   :  { %v1778_v51 = vpop.f32.mrf.mxu0 }
 0x197   :  { %v11549_v42 = vadd.f32 %v1851_v17, %v1778_v51  ;;  %v1871_v17 = vpop.f32.mrf.mxu1 }
 0x198   :  { %v1780_v48 = vpop.f32.mrf.mxu0 }
 0x199   :  { %13373 = vst [vmem:[#allocation29_spill] sm:$0xff] %v11549_v42  ;;  %v11551_v55 = vadd.f32 %v1853_v18, %v1780_v48  ;;  %v1873_v0 = vpop.f32.mrf.mxu1 }
 0x19a   :  { %v11553_v5 = vpop.f32.mrf.mxu0 }
 0x19b   :  { %13374 = vst [vmem:[#allocation30_spill] sm:$0xff] %v11553_v5 }
 0x19c   :  { %v1786_v52 = vpop.f32.mrf.mxu0 }
 0x19d   :  { %v11557_v14 = vadd.f32 %v1859_v59, %v1786_v52 }
 0x19e   :  { %v1788_v40 = vpop.f32.mrf.mxu0 }
 0x19f   :  { %v11559_v56 = vadd.f32 %v1861_v38, %v1788_v40  ;;  %v11573_v38 = vpop.f32.mrf.mxu1 }
 0x1a0   :  { %v1790_v15 = vpop.f32.mrf.mxu0  ;;  %13382 = vst [vmem:[#allocation38_spill] sm:$0xff] %v11573_v38 }
 0x1a1   :  { %13376 = vst [vmem:[#allocation32_spill] sm:$0xff] %v11559_v56  ;;  %v11561_v31 = vadd.f32 %v1863_v1, %v1790_v15 }
 0x1a2   :  { %v11563_v45 = vpop.f32.mrf.mxu0 }
 0x1a3   :  { %13377 = vst [vmem:[#allocation33_spill] sm:$0xff] %v11561_v31  ;;  %13378 = vst [vmem:[#allocation34_spill] sm:$0xff] %v11563_v45 }
 0x1a4   :  { %v1796_v51 = vpop.f32.mrf.mxu0 }
 0x1a5   :  { %v11565_v18 = vadd.f32 %v1869_v23, %v1796_v51 }
 0x1a6   :  { %v1798_v48 = vpop.f32.mrf.mxu0 }
 0x1a7   :  { %v11567_v32 = vadd.f32 %v1871_v17, %v1798_v48 }
 0x1a8   :  { %v1800_v9 = vpop.f32.mrf.mxu0 }
 0x1a9   :  { %13379 = vst [vmem:[#allocation35_spill] sm:$0xff] %v11567_v32  ;;  %v11569_v59 = vadd.f32 %v1873_v0, %v1800_v9 }
 0x1aa   :  { %v11571_v52 = vpop.f32.mrf.mxu0 }
 0x1ab   :  { %13380 = vst [vmem:[#allocation36_spill] sm:$0xff] %v11569_v59  ;;  %13381 = vst [vmem:[#allocation37_spill] sm:$0xff] %v11571_v52 }
 0x1ac   :  { %v1985_v40 = vpop.f32.mrf.mxu0 }
 0x1ae   :  { %v1987_v1 = vpop.f32.mrf.mxu0  ;;  %v1912_v15 = vpop.f32.mrf.mxu1 }
 0x1af   :  { %v1986_v8 = vadd.f32 %v1985_v40, %v1912_v15  ;;  %v13386_v40 = vmov 0.0  }
 0x1b0   :  { %v1989_v19 = vpop.f32.mrf.mxu0  ;;  %v1914_v29 = vpop.f32.mrf.mxu1 }
 0x1b1   :  { %v11575_v23 = vpack.c.bf16 %v1986_v8, %v1986_v8  ;;  %v11577_v51 = vadd.f32 %v1987_v1, %v1914_v29 }
 0x1b2   :  { %v11579_v17 = vpop.f32.mrf.mxu0  ;;  %v1916_v48 = vpop.f32.mrf.mxu1 }
 0x1b3   :  { %13383 = vst [vmem:[#allocation39_spill] sm:$0xff] %v11577_v51  ;;  %13384 = vst [vmem:[#allocation40_spill] sm:$0xff] %v11579_v17  ;;  %v2664_v0 = vsel %vm2662_vm2, %v11575_v23, 0  ;;  %v1990_v9 = vadd.f32 %v1989_v19, %v1916_v48 }
 0x1b4   :  { %v1995_v52 = vpop.f32.mrf.mxu0  ;;  %v11583_v38 = vpop.f32.mrf.mxu1  ;;  %9885 = vmatpush3.bf16.msra.mxu0 %v2664_v0 }
 0x1b5   :  { %13385 = vst [vmem:[#allocation41_spill] sm:$0xff] %v11583_v38  ;;  %v11585_v13 = vpack.c.bf16 %v1990_v9, %v1990_v9  ;;  %9896 = vmatprep.subr.bf16.mxu0 %v13386_v40 }
 0x1b6   :  { %v1997_v15 = vpop.f32.mrf.mxu0  ;;  %v1922_v8 = vpop.f32.mrf.mxu1 }
 0x1b7   :  { %v2710_v29 = vsel %vm2662_vm2, %v11585_v13, 0  ;;  %v11590_v1 = vadd.f32 %v1995_v52, %v1922_v8 }
 0x1b8   :  { %v1999_v45 = vpop.f32.mrf.mxu0  ;;  %v1924_v3 = vpop.f32.mrf.mxu1  ;;  %9891 = vmatpush3.bf16.msra.mxu1 %v2710_v29 }
 0x1b9   :  { %v11592_v12 = vadd.f32 %v1997_v15, %v1924_v3  ;;  %9902 = vmatprep.subr.bf16.mxu1 %v13386_v40 }
 0x1ba   :  { %v11595_v19 = vpop.f32.mrf.mxu0  ;;  %v1926_v48 = vpop.f32.mrf.mxu1 }
 0x1bb   :  { %13387 = vst [vmem:[#allocation42_spill] sm:$0xff] %v11592_v12  ;;  %13388 = vst [vmem:[#allocation43_spill] sm:$0xff] %v11595_v19  ;;  %v11597_v0 = vadd.f32 %v1999_v45, %v1926_v48 }
 0x1bc   :  { %v2005_v9 = vpop.f32.mrf.mxu0  ;;  %v11599_v32 = vpop.f32.mrf.mxu1 }
 0x1bd   :  { %13389 = vst [vmem:[#allocation44_spill] sm:$0xff] %v11599_v32 }
 0x1be   :  { %v2007_v22 = vpop.f32.mrf.mxu0  ;;  %v1932_v5 = vpop.f32.mrf.mxu1 }
 0x1bf   :  { %v11601_v20 = vadd.f32 %v2005_v9, %v1932_v5 }
 0x1c0   :  { %v2009_v52 = vpop.f32.mrf.mxu0  ;;  %v1934_v8 = vpop.f32.mrf.mxu1 }
 0x1c1   :  { %v11603_v4 = vadd.f32 %v2007_v22, %v1934_v8 }
 0x1c2   :  { %v11605_v3 = vpop.f32.mrf.mxu0  ;;  %v1936_v15 = vpop.f32.mrf.mxu1 }
 0x1c3   :  { %13390 = vst [vmem:[#allocation45_spill] sm:$0xff] %v11603_v4  ;;  %13391 = vst [vmem:[#allocation46_spill] sm:$0xff] %v11605_v3  ;;  %v11607_v29 = vadd.f32 %v2009_v52, %v1936_v15 }
 0x1c4   :  { %v2015_v56 = vpop.f32.mrf.mxu0  ;;  %v11609_v50 = vpop.f32.mrf.mxu1 }
 0x1c5   :  { %13392 = vst [vmem:[#allocation47_spill] sm:$0xff] %v11609_v50 }
 0x1c6   :  { %v2017_v45 = vpop.f32.mrf.mxu0  ;;  %v1942_v48 = vpop.f32.mrf.mxu1 }
 0x1c7   :  { %v11611_v54 = vadd.f32 %v2015_v56, %v1942_v48 }
 0x1c8   :  { %v2019_v27 = vpop.f32.mrf.mxu0  ;;  %v1944_v42 = vpop.f32.mrf.mxu1 }
 0x1c9   :  { %v11613_v5 = vadd.f32 %v2017_v45, %v1944_v42 }
 0x1ca   :  { %v11615_v9 = vpop.f32.mrf.mxu0  ;;  %v1946_v22 = vpop.f32.mrf.mxu1 }
 0x1cb   :  { %13393 = vst [vmem:[#allocation48_spill] sm:$0xff] %v11613_v5  ;;  %13394 = vst [vmem:[#allocation49_spill] sm:$0xff] %v11615_v9  ;;  %v11617_v8 = vadd.f32 %v2019_v27, %v1946_v22 }
 0x1cc   :  { %v9536_v3 = vpop.f32.mrf.mxu0  ;;  %v11619_v19 = vpop.f32.mrf.mxu1 }
 0x1cd   :  { %13395 = vst [vmem:[#allocation50_spill] sm:$0xff] %v11619_v19 }
 0x1ce   :  { %v9537_v52 = vpop.f32.mrf.mxu0  ;;  %v9830_v15 = vpop.f32.mrf.mxu1 }
 0x1cf   :  { %v9538_v32 = vadd.f32 %v9537_v52, %v9536_v3 }
 0x1d0   :  { %v11621_v50 = vpop.f32.mrf.mxu0  ;;  %v2123_v4 = vpop.f32.mrf.mxu1 }
 0x1d1   :  { %13396 = vst [vmem:[#allocation51_spill] sm:$0xff] %v11621_v50  ;;  %v11623_v56 = vadd.f32 %v9538_v32, %v2123_v4 }
 0x1d2   :  { %v11625_v48 = vpop.f32.mrf.mxu0  ;;  %v9831_v45 = vpop.f32.mrf.mxu1 }
 0x1d3   :  { %13397 = vst [vmem:[#allocation52_spill] sm:$0xff] %v11623_v56  ;;  %13398 = vst [vmem:[#allocation53_spill] sm:$0xff] %v11625_v48 }
 0x1d4   :  { %v9542_v42 = vpop.f32.mrf.mxu0  ;;  %v11627_v27 = vpop.f32.mrf.mxu1 }
 0x1d5   :  { %13399 = vst [vmem:[#allocation54_spill] sm:$0xff] %v11627_v27 }
 0x1d6   :  { %v9543_v5 = vpop.f32.mrf.mxu0  ;;  %v9834_v3 = vpop.f32.mrf.mxu1 }
 0x1d7   :  { %v9544_v9 = vadd.f32 %v9543_v5, %v9542_v42 }
 0x1d8   :  { %v9545_v12 = vpop.f32.mrf.mxu0  ;;  %v2139_v48 = vpop.f32.mrf.mxu1 }
 0x1d9   :  { %v11629_v22 = vadd.f32 %v9830_v15, %v9544_v9 }
 0x1da   :  { %v9546_v19 = vpop.f32.mrf.mxu0 }
 0x1db   :  { %13400 = vst [vmem:[#allocation55_spill] sm:$0xff] %v11629_v22  ;;  %v9547_v61 = vadd.f32 %v9546_v19, %v9545_v12  ;;  %v9835_v22 = vpop.f32.mrf.mxu1 }
 0x1dc   :  { %v9548_v63 = vpop.f32.mrf.mxu0 }
 0x1dd   :  { %v11631_v52 = vadd.f32 %v9831_v45, %v9547_v61  ;;  %v2154_v45 = vlaneseq }
 0x1de   :  { %v9549_v50 = vpop.f32.mrf.mxu0 }
 0x1df   :  { %13401 = vst [vmem:[#allocation56_spill] sm:$0xff] %v11631_v52  ;;  %v9550_v32 = vadd.f32 %v9549_v50, %v9548_v63  ;;  %v11643_v63 = vshrl.u32 %v2154_v45, 7  ;;  %v2157_v50 = vand.u32 127, %v2154_v45 }
 0x1e0   :  { %v11633_v4 = vpop.f32.mrf.mxu0 }
 0x1e1   :  { %13402 = vst [vmem:[#allocation57_spill] sm:$0xff] %v11633_v4  ;;  %v11635_v56 = vadd.f32 %v9550_v32, %v2139_v48  ;;  %13407 = vst [vmem:[#allocation62_spill] sm:$0xff] %v11643_v63  ;;  %v11645_v4 = vpop.f32.mrf.mxu1  ;;  %vm11648_vm3 = vcmp.le.s32.totalorder %v2157_v50, %v11643_v63  ;;  %v13409_v48 = vmov 0 }
 0x1e2   :  { %v11637_v17 = vpop.f32.mrf.mxu0  ;;  %13408 = vst [vmem:[#allocation63_spill] sm:$0xff] %v11645_v4  ;;  %v13410_v48 = vsel %vm11648_vm3, 4294967295, %v13409_v48 }
 0x1e3   :  { %13403 = vst [vmem:[#allocation58_spill] sm:$0xff] %v11635_v56  ;;  %13404 = vst [vmem:[#allocation59_spill] sm:$0xff] %v11637_v17 }
 0x1e4   :  { %v9554_v5 = vpop.f32.mrf.mxu0  ;;  %13411 = vst [vmem:[#allocation64_spill] sm:$0xff] %v13410_v48 }
 0x1e6   :  { %v9555_v42 = vpop.f32.mrf.mxu0 }
 0x1e7   :  { %v9556_v27 = vadd.f32 %v9555_v42, %v9554_v5 }
 0x1e8   :  { %v9557_v9 = vpop.f32.mrf.mxu0 }
 0x1e9   :  { %v11639_v15 = vadd.f32 %v9834_v3, %v9556_v27 }
 0x1ea   :  { %v9558_v12 = vpop.f32.mrf.mxu0 }
 0x1eb   :  { %13405 = vst [vmem:[#allocation60_spill] sm:$0xff] %v11639_v15  ;;  %v9559_v19 = vadd.f32 %v9558_v12, %v9557_v9 }
 0x1ed   :  { %v11641_v61 = vadd.f32 %v9835_v22, %v9559_v19 }
 0x1ef   :  { %13406 = vst [vmem:[#allocation61_spill] sm:$0xff] %v11641_v61 }
 0x21b   :  { %v2226_v32 = vpop.f32.mrf.mxu1 }
 0x21c   :  { %v2554_v27 = vsel %vm11648_vm3, %v2226_v32, -1e+30 }
 0x21d   :  { %v9840_v3 = vpop.f32.mrf.mxu1  ;;  %v2563_v22 = vsel %vm2562_vm4, %v2554_v27, -inf }
 0x21e   :  { %2564 = vmax.xlane.f32.xlu0 %v2563_v22 }
 0x21f   :  { %v2229_v5 = vpop.f32.mrf.mxu1 }
 0x221   :  { %v9841_v42 = vpop.f32.mrf.mxu1 }
 0x223   :  { %v2272_v9 = vpop.f32.mrf.mxu1 }
 0x224   :  { %v2555_v12 = vsel %vm11648_vm3, %v2272_v9, -1e+30 }
 0x225   :  { %v9846_v19 = vpop.f32.mrf.mxu1  ;;  %v2566_v45 = vsel %vm2562_vm4, %v2555_v12, -inf }
 0x226   :  { %2567 = vmax.xlane.f32.xlu0 %v2566_v45 }
 0x227   :  { %v2275_v50 = vpop.f32.mrf.mxu1 }
 0x229   :  { %v9847_v63 = vpop.f32.mrf.mxu1 }
 0x22b   :  { %v2318_v61 = vpop.f32.mrf.mxu1  ;;  %v2410_v15 = vpop.f32.mrf.mxu0 }
 0x22c   :  { %v2556_v32 = vsel %vm11648_vm3, %v2318_v61, -1e+30  ;;  %v2558_v3 = vsel %vm11648_vm3, %v2410_v15, -1e+30 }
 0x22d   :  { %v9852_v22 = vpop.f32.mrf.mxu1  ;;  %v9864_v5 = vpop.f32.mrf.mxu0  ;;  %v2575_v42 = vsel %vm2562_vm4, %v2558_v3, -inf  ;;  %v2569_v9 = vsel %vm2562_vm4, %v2556_v32, -inf }
 0x22e   :  { %2576 = vmax.xlane.f32.xlu0 %v2575_v42  ;;  %2570 = vmax.xlane.f32.xlu1 %v2569_v9 }
 0x22f   :  { %v2321_v19 = vpop.f32.mrf.mxu1  ;;  %v2413_v45 = vpop.f32.mrf.mxu0 }
 0x231   :  { %v9853_v50 = vpop.f32.mrf.mxu1  ;;  %v9865_v63 = vpop.f32.mrf.mxu0 }
 0x233   :  { %v2364_v4 = vpop.f32.mrf.mxu1  ;;  %v2502_v56 = vpop.f32.mrf.mxu0 }
 0x234   :  { %v2557_v61 = vsel %vm11648_vm3, %v2364_v4, -1e+30  ;;  %v2560_v15 = vsel %vm11648_vm3, %v2502_v56, -1e+30 }
 0x235   :  { %v9858_v22 = vpop.f32.mrf.mxu1  ;;  %v9876_v5 = vpop.f32.mrf.mxu0  ;;  %v2581_v17 = vsel %vm2562_vm4, %v2560_v15, -inf  ;;  %v2572_v52 = vsel %vm2562_vm4, %v2557_v61, -inf }
 0x236   :  { %2582 = vmax.xlane.f32.xlu0 %v2581_v17  ;;  %2573 = vmax.xlane.f32.xlu1 %v2572_v52 }
 0x237   :  { %v2367_v42 = vpop.f32.mrf.mxu1  ;;  %v2505_v9 = vpop.f32.mrf.mxu0 }
 0x239   :  { %v9859_v19 = vpop.f32.mrf.mxu1  ;;  %v9877_v45 = vpop.f32.mrf.mxu0 }
 0x23b   :  { %v2456_v50 = vpop.f32.mrf.mxu1 }
 0x23c   :  { %v2559_v63 = vsel %vm11648_vm3, %v2456_v50, -1e+30 }
 0x23d   :  { %v9870_v4 = vpop.f32.mrf.mxu1  ;;  %v2578_v38 = vsel %vm2562_vm4, %v2559_v63, -inf }
 0x23e   :  { %2579 = vmax.xlane.f32.xlu1 %v2578_v38 }
 0x23f   :  { %v2459_v56 = vpop.f32.mrf.mxu1 }
 0x241   :  { %v9871_v22 = vpop.f32.mrf.mxu1 }
 0x243   :  { %v2548_v5 = vpop.f32.mrf.mxu1 }
 0x244   :  { %v11675_v59 = vsel %vm11648_vm3, %v2548_v5, -1e+30 }
 0x245   :  { %v9882_v17 = vpop.f32.mrf.mxu1  ;;  %v2584_v52 = vsel %vm2562_vm4, %v11675_v59, -inf }
 0x246   :  { %2585 = vmax.xlane.f32.xlu1 %v2584_v52 }
 0x247   :  { %v2551_v42 = vpop.f32.mrf.mxu1 }
 0x249   :  { %v9883_v9 = vpop.f32.mrf.mxu1 }
 0x2a7   :  { %v2565_v19 = vpop.xlane.xlu0 %2564 }
 0x2a8   :  { %v2587_v45 = vsub.f32 %v2554_v27, %v2565_v19 }
 0x2aa   :  { %v2595_v50 = vmul.f32 1.442695, %v2587_v45 }
 0x2ac   :  { %10930 = vpow2.f32 %v2595_v50 }
 0x2af   :  { %v2568_v4 = vpop.xlane.xlu0 %2567 }
 0x2b0   :  { %v2588_v38 = vsub.f32 %v2555_v12, %v2568_v4 }
 0x2b2   :  { %v2597_v56 = vmul.f32 1.442695, %v2588_v38 }
 0x2b4   :  { %10932 = vpow2.f32 %v2597_v56 }
 0x2b7   :  { %v2577_v22 = vpop.xlane.xlu0 %2576  ;;  %v2571_v44 = vpop.xlane.xlu1 %2570 }
 0x2b8   :  { %v2591_v53 = vsub.f32 %v2558_v3, %v2577_v22  ;;  %v2589_v5 = vsub.f32 %v2556_v32, %v2571_v44 }
 0x2b9   :  { %v10931_v58 = vpop.eup %10930 }
 0x2ba   :  { %v2599_v17 = vmul.f32 1.442695, %v2589_v5  ;;  %v2611_v51 = vsel %vm2562_vm4, %v10931_v58, 0.0  ;;  %v2603_v31 = vmul.f32 1.442695, %v2591_v53 }
 0x2bb   :  { %2612 = vadd.xlane.f32.xlu0 %v2611_v51 }
 0x2bc   :  { %10934 = vpow2.f32 %v2599_v17 }
 0x2bd   :  { %10936 = vpow2.f32 %v2603_v31 }
 0x2bf   :  { %v2583_v52 = vpop.xlane.xlu0 %2582  ;;  %v2574_v27 = vpop.xlane.xlu1 %2573 }
 0x2c0   :  { %v2593_v42 = vsub.f32 %v2560_v15, %v2583_v52  ;;  %v2590_v9 = vsub.f32 %v2557_v61, %v2574_v27 }
 0x2c1   :  { %v11680_v19 = vpop.eup %10932 }
 0x2c2   :  { %v2607_v12 = vmul.f32 1.442695, %v2593_v42  ;;  %v2601_v45 = vmul.f32 1.442695, %v2590_v9  ;;  %v2614_v3 = vsel %vm2562_vm4, %v11680_v19, 0.0 }
 0x2c3   :  { %2615 = vadd.xlane.f32.xlu1 %v2614_v3  ;;  %v11776_v3 = vpack.c.bf16 %v11611_v54, %v11611_v54 }
 0x2c4   :  { %10938 = vpow2.f32 %v2607_v12 }
 0x2c5   :  { %10940 = vpow2.f32 %v2601_v45 }
 0x2c7   :  { %v2580_v4 = vpop.xlane.xlu1 %2579 }
 0x2c8   :  { %v2592_v38 = vsub.f32 %v2559_v63, %v2580_v4 }
 0x2c9   :  { %v11684_v44 = vpop.eup %10934 }
 0x2ca   :  { %v2617_v53 = vsel %vm2562_vm4, %v11684_v44, 0.0  ;;  %v11688_v31 = vpop.eup %10936  ;;  %v2605_v56 = vmul.f32 1.442695, %v2592_v38 }
 0x2cb   :  { %2618 = vadd.xlane.f32.xlu0 %v2617_v53  ;;  %v2623_v51 = vsel %vm2562_vm4, %v11688_v31, 0.0 }
 0x2cc   :  { %10942 = vpow2.f32 %v2605_v56 }
 0x2cf   :  { %2624 = vadd.xlane.f32.xlu0 %v2623_v51 }
 0x2d1   :  { %v11692_v32 = vpop.eup %10938 }
 0x2d2   :  { %v11694_v61 = vpop.eup %10940  ;;  %v2629_v15 = vsel %vm2562_vm4, %v11692_v32, 0.0 }
 0x2d3   :  { %v2620_v50 = vsel %vm2562_vm4, %v11694_v61, 0.0  ;;  %2630 = vadd.xlane.f32.xlu0 %v2629_v15 }
 0x2d4   :  { %2621 = vadd.xlane.f32.xlu1 %v2620_v50  ;;  %v2940_v50 = vsel %vm2662_vm2, %v11776_v3, 0 }
 0x2e5   :  { %3104 = vrot.lane.b32.xlu1 %v11429_v25, %s11220_s0 }
 0x2e9   :  { %3052 = vrot.lane.b32.xlu0 %v11419_v11, %s11220_s0  ;;  %v11716_v11 = vpop.eup %10942 }
 0x2ea   :  { %v2626_v25 = vsel %vm2562_vm4, %v11716_v11, 0.0 }
 0x2ed   :  { %3156 = vrot.lane.b32.xlu0 %v11445_v57, %s11220_s0  ;;  %v2586_v57 = vpop.xlane.xlu1 %2585 }
 0x2f1   :  { %3153 = vrot.lane.b32.xlu0 %v11471_v39, %s11220_s0 }
 0x2f5   :  { %3260 = vrot.lane.b32.xlu0 %v11449_v7, %s11220_s0  ;;  %v2594_v7 = vsub.f32 %v11675_v59, %v2586_v57 }
 0x2f7   :  { %v2609_v39 = vmul.f32 1.442695, %v2594_v7 }
 0x2f9   :  { %3257 = vrot.lane.b32.xlu0 %v11473_v33, %s11220_s0  ;;  %10944 = vpow2.f32 %v2609_v39 }
 0x2fd   :  { %3364 = vrot.lane.b32.xlu0 %v11475_v46, %s11220_s0 }
 0x301   :  { %3361 = vrot.lane.b32.xlu0 %v11501_v30, %s11220_s0 }
 0x306   :  { %v11723_v33 = vpop.eup %10944 }
 0x307   :  { %v2632_v46 = vsel %vm2562_vm4, %v11723_v33, 0.0 }
 0x309   :  { %2627 = vadd.xlane.f32.xlu1 %v2626_v25 }
 0x31a   :  { %3049 = vrot.lane.b32.xlu1 %v11431_v28, %s11220_s0  ;;  %v11731_v28 = vpack.c.bf16 %v11590_v1, %v11590_v1 }
 0x31c   :  { %v2756_v52 = vsel %vm2662_vm2, %v11731_v28, 0 }
 0x33e   :  { %2633 = vadd.xlane.f32.xlu1 %v2632_v46 }
 0x344   :  { %v2613_v30 = vpop.xlane.xlu0 %2612 }
 0x345   :  { %10946 = vrcp.f32 %v2613_v30 }
 0x34c   :  { %v2616_v63 = vpop.xlane.xlu1 %2615 }
 0x34d   :  { %10948 = vrcp.f32 %v2616_v63 }
 0x34f   :  { %3101 = vrot.lane.b32.xlu1 %v11447_v6, %s11220_s0 }
 0x352   :  { %v10947_v22 = vpop.eup %10946 }
 0x353   :  { %3208 = vrot.lane.b32.xlu1 %v11469_v26, %s11220_s0  ;;  %v2643_v59 = vmul.f32 %v10947_v22, %v10931_v58  ;;  %v11745_v58 = vpack.c.bf16 %v11597_v0, %v11597_v0  ;;  %v11762_v0 = vpack.c.bf16 %v11601_v20, %v11601_v20  ;;  %v11812_v22 = vpack.c.bf16 %v11617_v8, %v11617_v8 }
 0x354   :  { %v2619_v5 = vpop.xlane.xlu0 %2618 }
 0x355   :  { %v2651_v17 = vpack.c.bf16 %v2643_v59, %v2643_v59  ;;  %10950 = vrcp.f32 %v2619_v5  ;;  %v2802_v42 = vsel %vm2662_vm2, %v11745_v58, 0  ;;  %v2848_v45 = vsel %vm2662_vm2, %v11762_v0, 0 }
 0x357   :  { %3205 = vrot.lane.b32.xlu1 %v11499_v2, %s11220_s0  ;;  %9887 = vmatmul.mubr.msk.bf16.vlgmr.msra.gmra.mxu0 %vm2562_vm4, %v2651_v17 }
 0x358   :  { %9897 = vmatpush3.bf16.msra.mxu0 %v2756_v52  ;;  %9898 = vmatprep.mubr.msk.bf16.mxu0 %vm11219_vm0, %v13386_v40  ;;  %v2625_v6 = vpop.xlane.xlu0 %2624  ;;  %v2986_v52 = vsel %vm2662_vm2, %v11812_v22, 0 }
 0x359   :  { %9908 = vmatprep.subr.bf16.mxu0 %v13386_v40  ;;  %10952 = vrcp.f32 %v2625_v6 }
 0x35a   :  { %v10949_v26 = vpop.eup %10948 }
 0x35b   :  { %3312 = vrot.lane.b32.xlu1 %v11491_v47, %s11220_s0  ;;  %v2644_v2 = vmul.f32 %v10949_v26, %v11680_v19 }
 0x35c   :  { %v2631_v9 = vpop.xlane.xlu0 %2630 }
 0x35d   :  { %v2622_v1 = vpop.xlane.xlu1 %2621  ;;  %v2652_v27 = vpack.c.bf16 %v2644_v2, %v2644_v2 }
 0x35e   :  { %10954 = vrcp.f32 %v2622_v1 }
 0x35f   :  { %3309 = vrot.lane.b32.xlu1 %v11518_v37, %s11220_s0  ;;  %9893 = vmatmul.mubr.msk.bf16.vlgmr.msra.gmra.mxu1 %vm2562_vm4, %v2652_v27  ;;  %10956 = vrcp.f32 %v2631_v9 }
 0x360   :  { %9903 = vmatpush3.bf16.msra.mxu1 %v2802_v42  ;;  %9904 = vmatprep.mubr.msk.bf16.mxu1 %vm11219_vm0, %v13386_v40 }
 0x361   :  { %9914 = vmatprep.subr.bf16.mxu1 %v13386_v40  ;;  %v3105_v38 = vpop.permute.xlu1 %3104 }
 0x362   :  { %v10951_v47 = vpop.eup %10950  ;;  %v3110_v9 = vsel %vm2185_vm1, %v3105_v38, 0 }
 0x363   :  { %3416 = vrot.lane.b32.xlu1 %v11513_v10, %s11220_s0  ;;  %v2645_v19 = vmul.f32 %v10951_v47, %v11684_v44 }
 0x365   :  { %v2653_v37 = vpack.c.bf16 %v2645_v19, %v2645_v19 }
 0x366   :  { %v10953_v12 = vpop.eup %10952 }
 0x367   :  { %3413 = vrot.lane.b32.xlu1 %v11531_v16, %s11220_s0  ;;  %9899 = vmatmul.mubr.msk.bf16.vlgmr.msra.gmra.mxu0 %vm2562_vm4, %v2653_v37  ;;  %v2647_v20 = vmul.f32 %v10953_v12, %v11688_v31  ;;  %v11780_v16 = vpack.c.bf16 %v11607_v29, %v11607_v29  ;;  %v3053_v29 = vpop.permute.xlu0 %3052 }
 0x368   :  { %9909 = vmatpush3.bf16.msra.mxu0 %v2848_v45  ;;  %9910 = vmatprep.mubr.msk.bf16.mxu0 %vm11219_vm0, %v13386_v40  ;;  %v3058_v4 = vsel %vm2185_vm1, %v3053_v29, 0 }
 0x369   :  { %9920 = vmatprep.subr.bf16.mxu0 %v13386_v40  ;;  %v2655_v53 = vpack.c.bf16 %v2647_v20, %v2647_v20  ;;  %v2894_v31 = vsel %vm2662_vm2, %v11780_v16, 0 }
 0x36b   :  { %v10955_v10 = vpop.eup %10954 }
 0x36c   :  { %v2646_v44 = vmul.f32 %v10955_v10, %v11694_v61  ;;  %v10957_v51 = vpop.eup %10956 }
 0x36d   :  { %v2649_v54 = vmul.f32 %v10957_v51, %v11692_v32  ;;  %v3157_v32 = vpop.permute.xlu0 %3156 }
 0x36e   :  { %v2654_v15 = vpack.c.bf16 %v2646_v44, %v2646_v44  ;;  %v3162_v7 = vsel %vm2185_vm1, %v3157_v32, 0 }
 0x36f   :  { %9911 = vmatmul.mubr.msk.bf16.vlgmr.msra.gmra.mxu0 %vm2562_vm4, %v2655_v53  ;;  %v2657_v61 = vpack.c.bf16 %v2649_v54, %v2649_v54 }
 0x370   :  { %9905 = vmatmul.mubr.msk.bf16.vlgmr.msra.gmra.mxu1 %vm2562_vm4, %v2654_v15  ;;  %9921 = vmatpush3.bf16.msra.mxu0 %v2940_v50 }
 0x371   :  { %9915 = vmatpush3.bf16.msra.mxu1 %v2894_v31  ;;  %9922 = vmatprep.mubr.msk.bf16.mxu0 %vm11219_vm0, %v13386_v40  ;;  %v3154_v56 = vpop.permute.xlu0 %3153 }
 0x372   :  { %9932 = vmatprep.subr.bf16.mxu0 %v13386_v40  ;;  %9916 = vmatprep.mubr.msk.bf16.mxu1 %vm11219_vm0, %v13386_v40 }
 0x373   :  { %9926 = vmatprep.subr.bf16.mxu1 %v13386_v40 }
 0x375   :  { %v3261_v39 = vpop.permute.xlu0 %3260 }
 0x376   :  { %v3266_v30 = vsel %vm2185_vm1, %v3261_v39, 0 }
 0x377   :  { %9923 = vmatmul.mubr.msk.bf16.vlgmr.msra.gmra.mxu0 %vm2562_vm4, %v2657_v61 }
 0x378   :  { %9933 = vmatpush3.bf16.xpose.msra.mxu0 %v3058_v4  ;;  %9934 = vmatprep.mubr.msk.bf16.mxu0 %vm11219_vm0, %v13386_v40 }
 0x379   :  { %9944 = vmatprep.subr.bf16.mxu0 %v13386_v40  ;;  %v3258_v46 = vpop.permute.xlu0 %3257 }
 0x37d   :  { %v3365_v17 = vpop.permute.xlu0 %3364 }
 0x37e   :  { %v3370_v6 = vsel %vm2185_vm1, %v3365_v17, 0 }
 0x381   :  { %v3362_v8 = vpop.permute.xlu0 %3361 }
 0x392   :  { %v2628_v25 = vpop.xlane.xlu1 %2627 }
 0x393   :  { %10958 = vrcp.f32 %v2628_v25 }
 0x396   :  { %v3050_v57 = vpop.permute.xlu1 %3049 }
 0x397   :  { %9935 = vmatmul.mubr.msk.bf16.vlgmr.msra.gmra.mxu0 %vm2185_vm1, %v3050_v57 }
 0x398   :  { %9945 = vmatpush3.bf16.xpose.msra.mxu0 %v3162_v7  ;;  %9946 = vmatprep.mubr.msk.bf16.mxu0 %vm11219_vm0, %v13386_v40 }
 0x399   :  { %9956 = vmatprep.subr.bf16.mxu0 %v13386_v40 }
 0x39f   :  { %9947 = vmatmul.mubr.msk.bf16.vlgmr.msra.gmra.mxu0 %vm2185_vm1, %v3154_v56 }
 0x3a0   :  { %v10959_v63 = vpop.eup %10958  ;;  %9957 = vmatpush3.bf16.xpose.msra.mxu0 %v3266_v30  ;;  %9958 = vmatprep.mubr.msk.bf16.mxu0 %vm11219_vm0, %v13386_v40 }
 0x3a1   :  { %v2648_v59 = vmul.f32 %v10959_v63, %v11716_v11  ;;  %9968 = vmatprep.subr.bf16.mxu0 %v13386_v40 }
 0x3a3   :  { %v2656_v5 = vpack.c.bf16 %v2648_v59, %v2648_v59 }
 0x3a5   :  { %9917 = vmatmul.mubr.msk.bf16.vlgmr.msra.gmra.mxu1 %vm2562_vm4, %v2656_v5 }
 0x3a6   :  { %9927 = vmatpush3.bf16.msra.mxu1 %v2986_v52  ;;  %9928 = vmatprep.mubr.msk.bf16.mxu1 %vm11219_vm0, %v13386_v40 }
 0x3a7   :  { %9959 = vmatmul.mubr.msk.bf16.vlgmr.msra.gmra.mxu0 %vm2185_vm1, %v3258_v46  ;;  %9938 = vmatprep.subr.bf16.mxu1 %v13386_v40 }
 0x3a8   :  { %9969 = vmatpush3.bf16.xpose.msra.mxu0 %v3370_v6  ;;  %9970 = vmatprep.mubr.msk.bf16.mxu0 %vm11219_vm0, %v13386_v40 }
 0x3a9   :  { %9980 = vmatprep.subr.bf16.mxu0 %v13386_v40 }
 0x3af   :  { %9971 = vmatmul.mubr.msk.bf16.vlgmr.msra.gmra.mxu0 %vm2185_vm1, %v3362_v8 }
 0x3b0   :  { %9982 = vmatprep.mubr.msk.bf16.mxu0 %vm11219_vm0, %v13386_v40 }
 0x3c7   :  { %v2634_v11 = vpop.xlane.xlu1 %2633 }
 0x3c8   :  { %10960 = vrcp.f32 %v2634_v11 }
 0x3cb   :  { %v3102_v26 = vpop.permute.xlu1 %3101 }
 0x3cf   :  { %v3209_v27 = vpop.permute.xlu1 %3208 }
 0x3d0   :  { %v3214_v19 = vsel %vm2185_vm1, %v3209_v27, 0 }
 0x3d3   :  { %v3206_v47 = vpop.permute.xlu1 %3205 }
 0x3d5   :  { %v10961_v2 = vpop.eup %10960 }
 0x3d6   :  { %v2650_v1 = vmul.f32 %v10961_v2, %v11723_v33 }
 0x3d7   :  { %v3313_v37 = vpop.permute.xlu1 %3312 }
 0x3d8   :  { %v2658_v42 = vpack.c.bf16 %v2650_v1, %v2650_v1  ;;  %v3318_v12 = vsel %vm2185_vm1, %v3313_v37, 0 }
 0x3da   :  { %9929 = vmatmul.mubr.msk.bf16.vlgmr.msra.gmra.mxu1 %vm2562_vm4, %v2658_v42 }
 0x3db   :  { %9939 = vmatpush3.bf16.xpose.msra.mxu1 %v3110_v9  ;;  %9940 = vmatprep.mubr.msk.bf16.mxu1 %vm11219_vm0, %v13386_v40  ;;  %v3310_v33 = vpop.permute.xlu1 %3309 }
 0x3dc   :  { %9950 = vmatprep.subr.bf16.mxu1 %v13386_v40 }
 0x3df   :  { %v3417_v45 = vpop.permute.xlu1 %3416 }
 0x3e0   :  { %v3422_v20 = vsel %vm2185_vm1, %v3417_v45, 0 }
 0x3e2   :  { %9941 = vmatmul.mubr.msk.bf16.vlgmr.msra.gmra.mxu1 %vm2185_vm1, %v3102_v26 }
 0x3e3   :  { %9951 = vmatpush3.bf16.xpose.msra.mxu1 %v3214_v19  ;;  %9952 = vmatprep.mubr.msk.bf16.mxu1 %vm11219_vm0, %v13386_v40  ;;  %v3414_v10 = vpop.permute.xlu1 %3413 }
 0x3e4   :  { %9962 = vmatprep.subr.bf16.mxu1 %v13386_v40 }
 0x3ea   :  { %9953 = vmatmul.mubr.msk.bf16.vlgmr.msra.gmra.mxu1 %vm2185_vm1, %v3206_v47 }
 0x3eb   :  { %9963 = vmatpush3.bf16.xpose.msra.mxu1 %v3318_v12  ;;  %9964 = vmatprep.mubr.msk.bf16.mxu1 %vm11219_vm0, %v13386_v40 }
 0x3ec   :  { %9974 = vmatprep.subr.bf16.mxu1 %v13386_v40 }
 0x3f2   :  { %9965 = vmatmul.mubr.msk.bf16.vlgmr.msra.gmra.mxu1 %vm2185_vm1, %v3310_v33 }
 0x3f3   :  { %9975 = vmatpush3.bf16.xpose.msra.mxu1 %v3422_v20  ;;  %9976 = vmatprep.mubr.msk.bf16.mxu1 %vm11219_vm0, %v13386_v40 }
 0x3f4   :  { %9986 = vmatprep.subr.bf16.mxu1 %v13386_v40 }
 0x3fa   :  { %9977 = vmatmul.mubr.msk.bf16.vlgmr.msra.gmra.mxu1 %vm2185_vm1, %v3414_v10 }
 0x3fb   :  { %9988 = vmatprep.mubr.msk.bf16.mxu1 %vm11219_vm0, %v13386_v40 }
 0x417   :  { %v2700_v44 = vpop.f32.mrf.mxu0 }
 0x419   :  { %v9888_v53 = vpop.f32.mrf.mxu0 }
 0x41b   :  { %v2703_v51 = vpop.f32.mrf.mxu0 }
 0x41d   :  { %v9889_v15 = vpop.f32.mrf.mxu0 }
 0x41f   :  { %v2746_v50 = vpop.f32.mrf.mxu1 }
 0x420   :  { %v11854_v31 = vpack.c.bf16 %v2746_v50, %v2700_v44 }
 0x421   :  { %v9894_v54 = vpop.f32.mrf.mxu1 }
 0x423   :  { %v2749_v29 = vpop.f32.mrf.mxu1 }
 0x425   :  { %v9895_v61 = vpop.f32.mrf.mxu1 }
 0x427   :  { %v2792_v4 = vpop.f32.mrf.mxu0 }
 0x429   :  { %v9900_v32 = vpop.f32.mrf.mxu0 }
 0x42b   :  { %v2795_v38 = vpop.f32.mrf.mxu0 }
 0x42d   :  { %v9901_v56 = vpop.f32.mrf.mxu0 }
 0x42f   :  { %v2884_v25 = vpop.f32.mrf.mxu0 }
 0x430   :  { %v2838_v57 = vpop.f32.mrf.mxu1 }
 0x431   :  { %v11856_v7 = vpack.c.bf16 %v2838_v57, %v2792_v4  ;;  %v9912_v39 = vpop.f32.mrf.mxu0 }
 0x432   :  { %v9906_v46 = vpop.f32.mrf.mxu1 }
 0x433   :  { %v2887_v30 = vpop.f32.mrf.mxu0 }
 0x434   :  { %v2841_v63 = vpop.f32.mrf.mxu1 }
 0x435   :  { %v9913_v59 = vpop.f32.mrf.mxu0 }
 0x436   :  { %v9907_v5 = vpop.f32.mrf.mxu1 }
 0x437   :  { %v11858_v17 = vpop.f32.mrf.mxu0 }
 0x439   :  { %v9924_v52 = vpop.f32.mrf.mxu0 }
 0x43b   :  { %v2979_v6 = vpop.f32.mrf.mxu0 }
 0x43d   :  { %v9925_v8 = vpop.f32.mrf.mxu0 }
 0x457   :  { %v3094_v11 = vpop.f32.mrf.mxu0 }
 0x458   :  { %v11862_v26 = vsel %vm11648_vm3, %v3094_v11, -1e+30 }
 0x459   :  { %v9936_v2 = vpop.f32.mrf.mxu0  ;;  %v3472_v1 = vsel %vm2562_vm4, %v11862_v26, -inf }
 0x45a   :  { %3473 = vmax.xlane.f32.xlu0 %v3472_v1 }
 0x45b   :  { %v3097_v27 = vpop.f32.mrf.mxu0 }
 0x45d   :  { %v9937_v42 = vpop.f32.mrf.mxu0 }
 0x45f   :  { %v3198_v9 = vpop.f32.mrf.mxu0 }
 0x460   :  { %v11868_v47 = vsel %vm11648_vm3, %v3198_v9, -1e+30 }
 0x461   :  { %v9948_v19 = vpop.f32.mrf.mxu0  ;;  %v3478_v37 = vsel %vm2562_vm4, %v11868_v47, -inf }
 0x462   :  { %3479 = vmax.xlane.f32.xlu0 %v3478_v37 }
 0x463   :  { %v3201_v33 = vpop.f32.mrf.mxu0 }
 0x465   :  { %v2930_v12 = vpop.f32.mrf.mxu1  ;;  %v9949_v45 = vpop.f32.mrf.mxu0 }
 0x466   :  { %v11872_v20 = vpack.c.bf16 %v2930_v12, %v2884_v25 }
 0x467   :  { %v9918_v10 = vpop.f32.mrf.mxu1  ;;  %v3302_v44 = vpop.f32.mrf.mxu0 }
 0x468   :  { %v3468_v2 = vsel %vm11648_vm3, %v3302_v44, -1e+30 }
 0x469   :  { %v2933_v53 = vpop.f32.mrf.mxu1  ;;  %v9960_v51 = vpop.f32.mrf.mxu0  ;;  %v3484_v42 = vsel %vm2562_vm4, %v3468_v2, -inf }
 0x46b   :  { %v9919_v15 = vpop.f32.mrf.mxu1  ;;  %v3305_v50 = vpop.f32.mrf.mxu0 }
 0x46d   :  { %v9961_v54 = vpop.f32.mrf.mxu0 }
 0x46f   :  { %v3406_v29 = vpop.f32.mrf.mxu0 }
 0x470   :  { %v3470_v9 = vsel %vm11648_vm3, %v3406_v29, -1e+30 }
 0x471   :  { %v9972_v61 = vpop.f32.mrf.mxu0  ;;  %v3490_v12 = vsel %vm2562_vm4, %v3470_v9, -inf }
 0x473   :  { %v3409_v4 = vpop.f32.mrf.mxu0 }
 0x475   :  { %v9973_v32 = vpop.f32.mrf.mxu0 }
 0x49a   :  { %v11874_v38 = vpop.f32.mrf.mxu1 }
 0x49c   :  { %v9930_v56 = vpop.f32.mrf.mxu1 }
 0x49e   :  { %v3025_v57 = vpop.f32.mrf.mxu1 }
 0x4a0   :  { %v9931_v39 = vpop.f32.mrf.mxu1 }
 0x4a2   :  { %v3146_v46 = vpop.f32.mrf.mxu1 }
 0x4a3   :  { %v3465_v25 = vsel %vm11648_vm3, %v3146_v46, -1e+30 }
 0x4a4   :  { %v9942_v30 = vpop.f32.mrf.mxu1  ;;  %v3475_v63 = vsel %vm2562_vm4, %v3465_v25, -inf }
 0x4a5   :  { %3476 = vmax.xlane.f32.xlu1 %v3475_v63 }
 0x4a6   :  { %v3149_v59 = vpop.f32.mrf.mxu1 }
 0x4a8   :  { %v9943_v5 = vpop.f32.mrf.mxu1 }
 0x4aa   :  { %v3250_v52 = vpop.f32.mrf.mxu1 }
 0x4ab   :  { %v11881_v6 = vsel %vm11648_vm3, %v3250_v52, -1e+30 }
 0x4ac   :  { %v9954_v8 = vpop.f32.mrf.mxu1  ;;  %v3481_v11 = vsel %vm2562_vm4, %v11881_v6, -inf }
 0x4ad   :  { %3482 = vmax.xlane.f32.xlu0 %v3481_v11 }
 0x4ae   :  { %v3253_v1 = vpop.f32.mrf.mxu1 }
 0x4b0   :  { %v9955_v27 = vpop.f32.mrf.mxu1 }
 0x4b1   :  { %3485 = vmax.xlane.f32.xlu0 %v3484_v42 }
 0x4b2   :  { %v3354_v19 = vpop.f32.mrf.mxu1 }
 0x4b3   :  { %v11892_v37 = vsel %vm11648_vm3, %v3354_v19, -1e+30 }
 0x4b4   :  { %v9966_v33 = vpop.f32.mrf.mxu1  ;;  %v3487_v45 = vsel %vm2562_vm4, %v11892_v37, -inf }
 0x4b5   :  { %3491 = vmax.xlane.f32.xlu0 %v3490_v12  ;;  %3488 = vmax.xlane.f32.xlu1 %v3487_v45 }
 0x4b6   :  { %v3357_v10 = vpop.f32.mrf.mxu1 }
 0x4b8   :  { %v9967_v44 = vpop.f32.mrf.mxu1 }
 0x4ba   :  { %v3458_v53 = vpop.f32.mrf.mxu1 }
 0x4bb   :  { %v3471_v4 = vsel %vm11648_vm3, %v3458_v53, -1e+30 }
 0x4bc   :  { %v9978_v51 = vpop.f32.mrf.mxu1  ;;  %v3493_v57 = vsel %vm2562_vm4, %v3471_v4, -inf }
 0x4be   :  { %v3461_v15 = vpop.f32.mrf.mxu1 }
 0x4c0   :  { %v9979_v50 = vpop.f32.mrf.mxu1 }
 0x4c6   :  { %3618 = vrot.lane.b32.xlu1 %v11585_v13, %s11220_s0 }
 0x4ca   :  { %3667 = vrot.lane.b32.xlu1 %v11731_v28, %s11220_s0 }
 0x4cb   :  { %3569 = vrot.lane.b32.xlu0 %v11575_v23, %s11220_s0 }
 0x4e3   :  { %v3474_v54 = vpop.xlane.xlu0 %3473 }
 0x4e4   :  { %v3496_v29 = vsub.f32 %v11862_v26, %v3474_v54 }
 0x4e6   :  { %v3504_v61 = vmul.f32 1.442695, %v3496_v29 }
 0x4e8   :  { %10962 = vpow2.f32 %v3504_v61 }
 0x4eb   :  { %v3480_v32 = vpop.xlane.xlu0 %3479 }
 0x4ec   :  { %v3498_v56 = vsub.f32 %v11868_v47, %v3480_v32 }
 0x4ee   :  { %v3508_v13 = vmul.f32 1.442695, %v3498_v56  ;;  %3494 = vmax.xlane.f32.xlu1 %v3493_v57 }
 0x4f0   :  { %10964 = vpow2.f32 %v3508_v13 }
 0x4f5   :  { %v11908_v28 = vpop.eup %10962 }
 0x4f6   :  { %v3520_v23 = vsel %vm2562_vm4, %v11908_v28, 0.0 }
 0x4f7   :  { %3521 = vadd.xlane.f32.xlu0 %v3520_v23 }
 0x4fd   :  { %v11912_v26 = vpop.eup %10964 }
 0x4fe   :  { %v3526_v39 = vsel %vm2562_vm4, %v11912_v26, 0.0 }
 0x4ff   :  { %3527 = vadd.xlane.f32.xlu0 %v3526_v39  ;;  %3716 = vrot.lane.b32.xlu1 %v11745_v58, %s11220_s0 }
 0x515   :  { %3765 = vrot.lane.b32.xlu0 %v11762_v0, %s11220_s0 }
 0x52e   :  { %v3477_v47 = vpop.xlane.xlu1 %3476 }
 0x52f   :  { %v3497_v46 = vsub.f32 %v3465_v25, %v3477_v47 }
 0x531   :  { %v3506_v30 = vmul.f32 1.442695, %v3497_v46 }
 0x533   :  { %10966 = vpow2.f32 %v3506_v30 }
 0x536   :  { %v3483_v63 = vpop.xlane.xlu0 %3482 }
 0x537   :  { %v3499_v10 = vsub.f32 %v11881_v6, %v3483_v63 }
 0x539   :  { %v3510_v44 = vmul.f32 1.442695, %v3499_v10 }
 0x53a   :  { %v3486_v59 = vpop.xlane.xlu0 %3485 }
 0x53b   :  { %v3500_v5 = vsub.f32 %v3468_v2, %v3486_v59 }
 0x53d   :  { %v3512_v52 = vmul.f32 1.442695, %v3500_v5 }
 0x53e   :  { %v3492_v8 = vpop.xlane.xlu0 %3491  ;;  %v3489_v11 = vpop.xlane.xlu1 %3488 }
 0x53f   :  { %10968 = vpow2.f32 %v3512_v52  ;;  %v3502_v1 = vsub.f32 %v3470_v9, %v3492_v8  ;;  %v3501_v53 = vsub.f32 %v11892_v37, %v3489_v11 }
 0x540   :  { %v11920_v27 = vpop.eup %10966 }
 0x541   :  { %v3516_v42 = vmul.f32 1.442695, %v3502_v1  ;;  %v3523_v58 = vsel %vm2562_vm4, %v11920_v27, 0.0  ;;  %v3514_v51 = vmul.f32 1.442695, %v3501_v53  ;;  %v13412_v53 = vmov 0  }
 0x542   :  { %v3570_v19 = vpop.permute.xlu0 %3569  ;;  %v3619_v0 = vpop.permute.xlu1 %3618  ;;  %3524 = vadd.xlane.f32.xlu1 %v3523_v58 }
 0x543   :  { %10970 = vpow2.f32 %v3516_v42  ;;  %v3575_v25 = vsel %vm2662_vm2, %v3570_v19, 0  ;;  %v3624_v33 = vsel %vm2662_vm2, %v3619_v0, 0 }
 0x544   :  { %9981 = vmatpush3.bf16.msra.mxu0 %v3575_v25  ;;  %9987 = vmatpush3.bf16.msra.mxu1 %v3624_v33  ;;  %10972 = vpow2.f32 %v3510_v44  ;;  %v10836_v25 = vld [vmem:[#allocation7 + $0xac] ss:$12 sps:$4 sm:$0xff]   ;;  %v10839_v44 = vld [vmem:[#allocation7 + $0x94] ss:$12 sps:$4 sm:$0xff]  }
 0x545   :  { %9992 = vmatprep.subr.bf16.mxu0 %v13386_v40  ;;  %9998 = vmatprep.subr.bf16.mxu1 %v13386_v40  ;;  %10974 = vpow2.f32 %v3514_v51  ;;  %v10842_v51 = vld [vmem:[#allocation7 + $0x7c] ss:$12 sps:$4 sm:$0xff]  }
 0x546   :  { %v3668_v50 = vpop.permute.xlu1 %3667 }
 0x547   :  { %v3673_v39 = vsel %vm2662_vm2, %v3668_v50, 0  ;;  %v10840_v50 = vld [vmem:[#allocation7 + $0x78] ss:$12 sps:$4 sm:$0xff]  }
 0x54c   :  { %v11928_v2 = vpop.eup %10968 }
 0x54d   :  { %v3532_v9 = vsel %vm2562_vm4, %v11928_v2, 0.0 }
 0x54e   :  { %3533 = vadd.xlane.f32.xlu0 %v3532_v9 }
 0x550   :  { %v11932_v12 = vpop.eup %10970 }
 0x551   :  { %v3538_v45 = vsel %vm2562_vm4, %v11932_v12, 0.0  ;;  %v11942_v15 = vpop.eup %10972 }
 0x552   :  { %3539 = vadd.xlane.f32.xlu0 %v3538_v45  ;;  %v3529_v54 = vsel %vm2562_vm4, %v11942_v15, 0.0  ;;  %v11946_v29 = vpop.eup %10974  ;;  %v10834_v45 = vld [vmem:[#allocation7 + $0xa8] ss:$12 sps:$4 sm:$0xff]  }
 0x553   :  { %3814 = vrot.lane.b32.xlu1 %v11780_v16, %s11220_s0  ;;  %v3535_v37 = vsel %vm2562_vm4, %v11946_v29, 0.0 }
 0x568   :  { %3863 = vrot.lane.b32.xlu0 %v11776_v3, %s11220_s0 }
 0x577   :  { %3530 = vadd.xlane.f32.xlu1 %v3529_v54  ;;  %v3495_v16 = vpop.xlane.xlu1 %3494  ;;  %v10845_v54 = vld [vmem:[#allocation7 + $0x64] ss:$12 sps:$4 sm:$0xff]  }
 0x578   :  { %v3503_v6 = vsub.f32 %v3471_v4, %v3495_v16  ;;  %v10843_v16 = vld [vmem:[#allocation7 + $0x60] ss:$12 sps:$4 sm:$0xff]  }
 0x57a   :  { %v3518_v61 = vmul.f32 1.442695, %v3503_v6 }
 0x57b   :  { %3536 = vadd.xlane.f32.xlu1 %v3535_v37 }
 0x57c   :  { %10976 = vpow2.f32 %v3518_v61 }
 0x580   :  { %v3522_v32 = vpop.xlane.xlu0 %3521 }
 0x581   :  { %10978 = vrcp.f32 %v3522_v32 }
 0x588   :  { %v3528_v3 = vpop.xlane.xlu0 %3527 }
 0x589   :  { %v11950_v56 = vpop.eup %10976  ;;  %10980 = vrcp.f32 %v3528_v3 }
 0x58a   :  { %v3541_v57 = vsel %vm2562_vm4, %v11950_v56, 0.0 }
 0x58b   :  { %3542 = vadd.xlane.f32.xlu1 %v3541_v57 }
 0x58c   :  { %v3766_v30 = vpop.permute.xlu0 %3765 }
 0x58d   :  { %v3771_v59 = vsel %vm2662_vm2, %v3766_v30, 0 }
 0x58e   :  { %v10979_v13 = vpop.eup %10978 }
 0x58f   :  { %v3552_v23 = vmul.f32 %v10979_v13, %v11908_v28  ;;  %v3717_v28 = vpop.permute.xlu1 %3716 }
 0x590   :  { %v3722_v42 = vsel %vm2662_vm2, %v3717_v28, 0  ;;  %v10848_v28 = vld [vmem:[#allocation7 + $0x80] ss:$12 sps:$4 sm:$0xff]  }
 0x591   :  { %v3560_v4 = vpack.c.bf16 %v3552_v23, %v3552_v23 }
 0x593   :  { %9983 = vmatmul.mubr.msk.bf16.vlgmr.msra.gmra.mxu0 %vm2562_vm4, %v3560_v4 }
 0x594   :  { %9993 = vmatpush3.bf16.msra.mxu0 %v3673_v39  ;;  %9994 = vmatprep.mubr.msk.bf16.mxu0 %vm11219_vm0, %v13386_v40 }
 0x595   :  { %10004 = vmatprep.subr.bf16.mxu0 %v13386_v40 }
 0x596   :  { %v10981_v47 = vpop.eup %10980 }
 0x597   :  { %v3554_v46 = vmul.f32 %v10981_v47, %v11912_v26 }
 0x599   :  { %v3562_v63 = vpack.c.bf16 %v3554_v46, %v3554_v46 }
 0x59b   :  { %9995 = vmatmul.mubr.msk.bf16.vlgmr.msra.gmra.mxu0 %vm2562_vm4, %v3562_v63 }
 0x59c   :  { %10005 = vmatpush3.bf16.msra.mxu0 %v3771_v59  ;;  %3912 = vrot.lane.b32.xlu1 %v11812_v22, %s11220_s0  ;;  %v10847_v59 = vld [vmem:[#allocation7 + $0x98] ss:$12 sps:$4 sm:$0xff]  }
 0x59d   :  { %10006 = vmatprep.mubr.msk.bf16.mxu0 %vm11219_vm0, %v13386_v40  ;;  %10016 = vmatprep.subr.bf16.mxu0 %v13386_v40 }
 0x5cb   :  { %v3525_v5 = vpop.xlane.xlu1 %3524 }
 0x5cc   :  { %10982 = vrcp.f32 %v3525_v5  ;;  %v10849_v5 = vld [vmem:[#allocation7 + $0x68] ss:$12 sps:$4 sm:$0xff]  }
 0x5cf   :  { %v3815_v6 = vpop.permute.xlu1 %3814 }
 0x5d0   :  { %v3820_v13 = vsel %vm2662_vm2, %v3815_v6, 0 }
 0x5d7   :  { %v3534_v52 = vpop.xlane.xlu0 %3533 }
 0x5d8   :  { %10984 = vrcp.f32 %v3534_v52 }
 0x5d9   :  { %v10983_v26 = vpop.eup %10982 }
 0x5da   :  { %v3553_v8 = vmul.f32 %v10983_v26, %v11920_v27 }
 0x5db   :  { %v3540_v11 = vpop.xlane.xlu0 %3539 }
 0x5dc   :  { %v3561_v1 = vpack.c.bf16 %v3553_v8, %v3553_v8  ;;  %10986 = vrcp.f32 %v3540_v11 }
 0x5de   :  { %9989 = vmatmul.mubr.msk.bf16.vlgmr.msra.gmra.mxu1 %vm2562_vm4, %v3561_v1 }
 0x5df   :  { %9999 = vmatpush3.bf16.msra.mxu1 %v3722_v42  ;;  %10000 = vmatprep.mubr.msk.bf16.mxu1 %vm11219_vm0, %v13386_v40  ;;  %v3864_v19 = vpop.permute.xlu0 %3863 }
 0x5e0   :  { %10010 = vmatprep.subr.bf16.mxu1 %v13386_v40  ;;  %v3869_v33 = vsel %vm2662_vm2, %v3864_v19, 0  ;;  %v10853_v19 = vld [vmem:[#allocation7 + $0x50] ss:$12 sps:$4 sm:$0xff]  }
 0x5e5   :  { %v10985_v22 = vpop.eup %10984 }
 0x5e6   :  { %v3556_v58 = vmul.f32 %v10985_v22, %v11928_v2  ;;  %v10837_v2 = vld [vmem:[#allocation7 + $0x90] ss:$12 sps:$4 sm:$0xff]  }
 0x5e8   :  { %v3564_v0 = vpack.c.bf16 %v3556_v58, %v3556_v58  ;;  %v10852_v58 = vld [vmem:[#allocation7 + $0x4c] ss:$12 sps:$4 sm:$0xff]  }
 0x5e9   :  { %v10987_v27 = vpop.eup %10986 }
 0x5ea   :  { %10007 = vmatmul.mubr.msk.bf16.vlgmr.msra.gmra.mxu0 %vm2562_vm4, %v3564_v0  ;;  %v3558_v9 = vmul.f32 %v10987_v27, %v11932_v12  ;;  %v10857_v27 = vld [vmem:[#allocation7 + $0x38] ss:$12 sps:$4 sm:$0xff]  }
 0x5eb   :  { %10017 = vmatpush3.bf16.msra.mxu0 %v3869_v33  ;;  %10018 = vmatprep.mubr.msk.bf16.mxu0 %vm11219_vm0, %v13386_v40 }
 0x5ec   :  { %4064 = vmatprep.subr.bf16.mxu0 %v10836_v25  ;;  %v3566_v10 = vpack.c.bf16 %v3558_v9, %v3558_v9 }
 0x5f2   :  { %10019 = vmatmul.mubr.msk.bf16.vlgmr.msra.gmra.mxu0 %vm2562_vm4, %v3566_v10 }
 0x5f3   :  { %4065 = vmatpush1.bf16.msra.mxu0 %v10834_v45  ;;  %4088 = vmatprep.mubr.bf16.mxu0 %v13412_v53  ;;  %v10861_v45 = vld [vmem:[#allocation7 + $0x20] ss:$12 sps:$4 sm:$0xff]  }
 0x5f4   :  { %4066 = vmatprep.subr.bf16.mxu0 %v10839_v44  ;;  %v10865_v44 = vld [vmem:[#allocation7 + $0x8] ss:$12 sps:$4 sm:$0xff]  }
 0x5f7   :  { %4067 = vmatpush1.bf16.msra.mxu0 %v10837_v2 }
 0x5f8   :  { %4068 = vmatprep.subr.bf16.mxu0 %v10842_v51 }
 0x5fb   :  { %4069 = vmatpush1.bf16.msra.mxu0 %v10840_v50 }
 0x5fc   :  { %4070 = vmatprep.subr.bf16.mxu0 %v10845_v54 }
 0x5ff   :  { %4071 = vmatpush1.bf16.msra.mxu0 %v10843_v16 }
 0x600   :  { %v3531_v12 = vpop.xlane.xlu1 %3530  ;;  %10044 = vmatprep.subr.bf16.mxu0 %v10853_v19 }
 0x601   :  { %10988 = vrcp.f32 %v3531_v12 }
 0x604   :  { %v3537_v61 = vpop.xlane.xlu1 %3536 }
 0x605   :  { %10990 = vrcp.f32 %v3537_v61 }
 0x60e   :  { %v10989_v37 = vpop.eup %10988 }
 0x60f   :  { %v3555_v32 = vmul.f32 %v10989_v37, %v11942_v15 }
 0x611   :  { %v3563_v3 = vpack.c.bf16 %v3555_v32, %v3555_v32  ;;  %v10850_v32 = vld [vmem:[#allocation7 + $0x48] ss:$12 sps:$4 sm:$0xff]  }
 0x612   :  { %v10991_v57 = vpop.eup %10990 }
 0x613   :  { %10001 = vmatmul.mubr.msk.bf16.vlgmr.msra.gmra.mxu1 %vm2562_vm4, %v3563_v3  ;;  %v3557_v4 = vmul.f32 %v10991_v57, %v11946_v29  ;;  %v10846_v29 = vld [vmem:[#allocation7 + $0xb0] ss:$12 sps:$4 sm:$0xff]   ;;  %v10856_v57 = vld [vmem:[#allocation7 + $0x34] ss:$12 sps:$4 sm:$0xff]  }
 0x614   :  { %10011 = vmatpush3.bf16.msra.mxu1 %v3820_v13  ;;  %v3543_v23 = vpop.xlane.xlu1 %3542  ;;  %10012 = vmatprep.mubr.msk.bf16.mxu1 %vm11219_vm0, %v13386_v40 }
 0x615   :  { %10992 = vrcp.f32 %v3543_v23  ;;  %10022 = vmatprep.subr.bf16.mxu1 %v13386_v40  ;;  %v3565_v47 = vpack.c.bf16 %v3557_v4, %v3557_v4  ;;  %v10854_v4 = vld [vmem:[#allocation7 + $0x30] ss:$12 sps:$4 sm:$0xff]  }
 0x618   :  { %v3913_v39 = vpop.permute.xlu1 %3912 }
 0x619   :  { %v3918_v15 = vsel %vm2662_vm2, %v3913_v39, 0  ;;  %v10860_v39 = vld [vmem:[#allocation7 + $0x1c] ss:$12 sps:$4 sm:$0xff]  }
 0x61b   :  { %10013 = vmatmul.mubr.msk.bf16.vlgmr.msra.gmra.mxu1 %vm2562_vm4, %v3565_v47 }
 0x61c   :  { %10023 = vmatpush3.bf16.msra.mxu1 %v3918_v15  ;;  %10024 = vmatprep.mubr.msk.bf16.mxu1 %vm11219_vm0, %v13386_v40 }
 0x61d   :  { %10028 = vmatprep.subr.bf16.mxu1 %v10846_v29 }
 0x622   :  { %v10993_v46 = vpop.eup %10992 }
 0x623   :  { %v3559_v30 = vmul.f32 %v10993_v46, %v11950_v56  ;;  %v10858_v46 = vld [vmem:[#allocation7 + $0x18] ss:$12 sps:$4 sm:$0xff]  }
 0x625   :  { %v3567_v63 = vpack.c.bf16 %v3559_v30, %v3559_v30 }
 0x627   :  { %10025 = vmatmul.mubr.msk.bf16.vlgmr.msra.gmra.mxu1 %vm2562_vm4, %v3567_v63  ;;  %v10864_v63 = vld [vmem:[#allocation7 + $0x4] ss:$12 sps:$4 sm:$0xff]  }
 0x628   :  { %10029 = vmatpush3.bf16.msra.mxu1 %v10846_v29 }
 0x629   :  { %10030 = vmatprep.subr.bf16.mxu1 %v10847_v59 }
 0x62c   :  { %10031 = vmatpush3.bf16.msra.mxu1 %v10847_v59 }
 0x62d   :  { %10032 = vmatprep.subr.bf16.mxu1 %v10848_v28 }
 0x630   :  { %10033 = vmatpush3.bf16.msra.mxu1 %v10848_v28  ;;  %v10862_v28 = vld [vmem:[#allocation7] ss:$12 sps:$4 sm:$0xff]  }
 0x631   :  { %10034 = vmatprep.subr.bf16.mxu1 %v10849_v5 }
 0x634   :  { %10035 = vmatpush3.bf16.msra.mxu1 %v10849_v5 }
 0x635   :  { %4278 = vmatprep.subr.bf16.mxu1 %v10852_v58 }
 0x653   :  { %v3611_v52 = vpop.f32.mrf.mxu0 }
 0x655   :  { %v9984_v26 = vpop.f32.mrf.mxu0 }
 0x657   :  { %v3614_v8 = vpop.f32.mrf.mxu0 }
 0x659   :  { %v9985_v11 = vpop.f32.mrf.mxu0 }
 0x65b   :  { %v3709_v56 = vpop.f32.mrf.mxu0 }
 0x65d   :  { %v9996_v1 = vpop.f32.mrf.mxu0 }
 0x65e   :  { %v12013_v1 = vpack.c.bf16 %v11539_v62, %v11539_v62  ;;  %v3031_v62 = vpack.c.bf16 %v11874_v38, %v11858_v17 }
 0x65f   :  { %v3712_v42 = vpop.f32.mrf.mxu0 }
 0x660   :  { %v12017_v42 = vpack.c.bf16 %v11543_v34, %v11543_v34  ;;  %v12042_v34 = vpack.c.bf16 %v11547_v60, %v11547_v60  ;;  %v12064_v60 = vpack.c.bf16 %v11387_v41, %v11387_v41  ;;  %v12080_v41 = vpack.c.bf16 %v11551_v55, %v11551_v55 }
 0x661   :  { %v9997_v22 = vpop.f32.mrf.mxu0  ;;  %v1564_v55 = vadd.f32 %v11375_v24, %v11391_v43  ;;  %v13415_v24 = vld [vmem:[#allocation14_spill] sm:$0xff] }
 0x662   :  { %v4436_v22 = vsel %vm2185_vm1, %v12013_v1, 0  ;;  %v4482_v58 = vsel %vm2185_vm1, %v12017_v42, 0  ;;  %v4528_v17 = vsel %vm2185_vm1, %v12042_v34, 0  ;;  %v12120_v43 = vpack.c.bf16 %v13415_v24, %v13415_v24 }
 0x69e   :  { %v3660_v0 = vpop.f32.mrf.mxu1 }
 0x69f   :  { %v3960_v25 = vpack.c.bf16 %v3660_v0, %v3611_v52  ;;  %v13414_v0 = vld [vmem:[#allocation39_spill] sm:$0xff] }
 0x6a0   :  { %v9990_v33 = vpop.f32.mrf.mxu1 }
 0x6a1   :  { %9348 = vmatmul.mubr.msk.bf16.vlgmr.msra.gmra.mxu0 %vm2185_vm1, %v3960_v25  ;;  %10036 = vmatprep.mubr.msk.bf16.mxu1 %vm2185_vm1, %v3960_v25  ;;  %v12114_v25 = vpack.c.bf16 %v13414_v0, %v13414_v0 }
 0x6a2   :  { %v3663_v9 = vpop.f32.mrf.mxu1  ;;  %4098 = vmatprep.mubr.bf16.mxu0 %v13412_v53  ;;  %10045 = vmatpush3.bf16.msra.mxu0 %v10853_v19  ;;  %v12090_v19 = vpack.c.bf16 %v11399_v49, %v11399_v49  ;;  %v13413_v49 = vld [vmem:[#allocation33_spill] sm:$0xff] }
 0x6a3   :  { %10046 = vmatprep.subr.bf16.mxu0 %v10857_v27  ;;  %v4908_v9 = vsel %vm2662_vm2, %v12114_v25, 0 }
 0x6a4   :  { %v9991_v10 = vpop.f32.mrf.mxu1 }
 0x6a5   :  { %v13417_v10 = vld [vmem:[#allocation12_spill] sm:$0xff] }
 0x6a6   :  { %10047 = vmatpush3.bf16.msra.mxu0 %v10857_v27  ;;  %v12116_v27 = vpack.c.bf16 %v1564_v55, %v1564_v55 }
 0x6a7   :  { %10048 = vmatprep.subr.bf16.mxu0 %v10861_v45 }
 0x6aa   :  { %v3807_v2 = vpop.f32.mrf.mxu0  ;;  %10049 = vmatpush3.bf16.msra.mxu0 %v10861_v45  ;;  %v13416_v45 = vld [vmem:[#allocation13_spill] sm:$0xff] }
 0x6ab   :  { %10050 = vmatprep.subr.bf16.mxu0 %v10865_v44 }
 0x6ac   :  { %v10008_v51 = vpop.f32.mrf.mxu0 }
 0x6ae   :  { %v3810_v50 = vpop.f32.mrf.mxu0  ;;  %10051 = vmatpush3.bf16.msra.mxu0 %v10865_v44  ;;  %v1574_v44 = vadd.f32 %v13417_v10, %v13416_v45 }
 0x6af   :  { %10060 = vmatprep.subr.bf16.mxu0 %v13386_v40 }
 0x6b0   :  { %v10009_v54 = vpop.f32.mrf.mxu0  ;;  %v12142_v50 = vpack.c.bf16 %v1574_v44, %v1574_v44 }
 0x6b2   :  { %v3905_v16 = vpop.f32.mrf.mxu0 }
 0x6b4   :  { %v10020_v6 = vpop.f32.mrf.mxu0 }
 0x6b5   :  { %v13420_v6 = vld [vmem:[#allocation40_spill] sm:$0xff] }
 0x6b6   :  { %v3908_v12 = vpop.f32.mrf.mxu0 }
 0x6b8   :  { %v10021_v61 = vpop.f32.mrf.mxu0 }
 0x6b9   :  { %v13421_v61 = vld [vmem:[#allocation16_spill] sm:$0xff] }
 0x6d3   :  { %v3758_v37 = vpop.f32.mrf.mxu1 }
 0x6d4   :  { %v3961_v3 = vpack.c.bf16 %v3758_v37, %v3709_v56  ;;  %v13422_v37 = vld [vmem:[#allocation15_spill] sm:$0xff] }
 0x6d5   :  { %v10002_v13 = vpop.f32.mrf.mxu1 }
 0x6d6   :  { %9349 = vmatmul.mubr.msk.bf16.gmra.mxu0 %vm2185_vm1, %v3961_v3  ;;  %10037 = vmatmul.mubr.msk.bf16.vlgmr.msra.gmra.mxu1 %vm2185_vm1, %v3961_v3 }
 0x6d7   :  { %v3761_v23 = vpop.f32.mrf.mxu1  ;;  %4108 = vmatprep.mubr.bf16.mxu0 %v13412_v53  ;;  %4279 = vmatpush1.bf16.msra.mxu1 %v10850_v32  ;;  %v1584_v32 = vadd.f32 %v13422_v37, %v13421_v61 }
 0x6d8   :  { %4280 = vmatprep.subr.bf16.mxu1 %v10856_v57 }
 0x6d9   :  { %v10003_v47 = vpop.f32.mrf.mxu1  ;;  %v12157_v57 = vpack.c.bf16 %v1584_v32, %v1584_v32 }
 0x6db   :  { %v3856_v15 = vpop.f32.mrf.mxu1  ;;  %4281 = vmatpush1.bf16.msra.mxu1 %v10854_v4 }
 0x6dc   :  { %v3962_v30 = vpack.c.bf16 %v3856_v15, %v3807_v2  ;;  %4282 = vmatprep.subr.bf16.mxu1 %v10860_v39  ;;  %v13418_v2 = vld [vmem:[#allocation36_spill] sm:$0xff] }
 0x6dd   :  { %v10014_v29 = vpop.f32.mrf.mxu1  ;;  %v12140_v51 = vpack.c.bf16 %v13418_v2, %v13418_v2 }
 0x6de   :  { %9350 = vmatmul.mubr.msk.bf16.gmra.mxu0 %vm2185_vm1, %v3962_v30  ;;  %10040 = vmatprep.mubr.msk.bf16.mxu1 %vm2185_vm1, %v3962_v30 }
 0x6df   :  { %v3859_v59 = vpop.f32.mrf.mxu1  ;;  %4118 = vmatprep.mubr.bf16.mxu0 %v13412_v53  ;;  %4283 = vmatpush1.bf16.msra.mxu1 %v10858_v46  ;;  %v4758_v54 = vsel %vm2185_vm1, %v12140_v51, 0 }
 0x6e0   :  { %4284 = vmatprep.subr.bf16.mxu1 %v10864_v63 }
 0x6e1   :  { %v10015_v5 = vpop.f32.mrf.mxu1 }
 0x6e3   :  { %4285 = vmatpush1.bf16.msra.mxu1 %v10862_v28 }
 0x6e4   :  { %10066 = vmatprep.subr.bf16.mxu1 %v13386_v40 }
 0x6e7   :  { %v3954_v52 = vpop.f32.mrf.mxu1 }
 0x6e8   :  { %v3963_v26 = vpack.c.bf16 %v3954_v52, %v3905_v16  ;;  %v13419_v16 = vld [vmem:[#allocation41_spill] sm:$0xff] }
 0x6e9   :  { %v10026_v8 = vpop.f32.mrf.mxu1  ;;  %v1992_v12 = vadd.f32 %v13420_v6, %v13419_v16 }
 0x6ea   :  { %9351 = vmatmul.mubr.msk.bf16.gmra.mxu0 %vm2185_vm1, %v3963_v26  ;;  %10041 = vmatmul.mubr.msk.bf16.gmra.mxu1 %vm2185_vm1, %v3963_v26 }
 0x6eb   :  { %v3957_v11 = vpop.f32.mrf.mxu1  ;;  %10052 = vmatprep.mubr.msk.bf16.mxu0 %vm2185_vm1, %v11854_v31  ;;  %4302 = vmatprep.mubr.bf16.mxu1 %v13412_v53  ;;  %v12155_v3 = vpack.c.bf16 %v1992_v12, %v1992_v12 }
 0x6ed   :  { %v10027_v56 = vpop.f32.mrf.mxu1  ;;  %v4954_v13 = vsel %vm2662_vm2, %v12155_v3, 0 }
 0x6f2   :  { %9368 = vmatmul.mubr.msk.bf16.vlgmr.msra.gmra.mxu1 %vm2185_vm1, %v11854_v31  ;;  %10053 = vmatmul.mubr.msk.bf16.vlgmr.msra.gmra.mxu0 %vm2185_vm1, %v11856_v7  ;;  %v12046_v31 = vpack.c.bf16 %v11379_v35, %v11379_v35  ;;  %v12060_v35 = vpack.c.bf16 %v11557_v14, %v11557_v14  ;;  %v1554_v14 = vadd.f32 %v11364_v21, %v11381_v36  ;;  %v4574_v21 = vsel %vm2185_vm1, %v12080_v41, 0 }
 0x6f3   :  { %10061 = vmatpush3.bf16.xpose.msra.mxu0 %v4436_v22  ;;  %10067 = vmatpush3.bf16.xpose.msra.mxu1 %v4482_v58 }
 0x6f4   :  { %10056 = vmatprep.mubr.msk.bf16.mxu0 %vm2185_vm1, %v11872_v20  ;;  %4312 = vmatprep.mubr.bf16.mxu1 %v13412_v53  ;;  %v12086_v38 = vpack.c.bf16 %v1554_v14, %v1554_v14 }
 0x6f5   :  { %10072 = vmatprep.subr.bf16.mxu0 %v13386_v40  ;;  %10078 = vmatprep.subr.bf16.mxu1 %v13386_v40 }
 0x6fa   :  { %9369 = vmatmul.mubr.msk.bf16.gmra.mxu1 %vm2185_vm1, %v11856_v7  ;;  %10057 = vmatmul.mubr.msk.bf16.gmra.mxu0 %vm2185_vm1, %v3031_v62  ;;  %v4620_v7 = vsel %vm2185_vm1, %v12060_v35, 0 }
 0x6fb   :  { %4322 = vmatprep.mubr.bf16.mxu1 %v13412_v53  ;;  %10062 = vmatprep.mubr.msk.bf16.mxu0 %vm11219_vm0, %v13386_v40 }
 0x702   :  { %9370 = vmatmul.mubr.msk.bf16.gmra.mxu1 %vm2185_vm1, %v11872_v20  ;;  %10063 = vmatmul.mubr.msk.bf16.vlgmr.msra.gmra.mxu0 %vm2185_vm1, %v12046_v31  ;;  %v12084_v20 = vpack.c.bf16 %v11565_v18, %v11565_v18  ;;  %v12110_v18 = vpack.c.bf16 %v13413_v49, %v13413_v49 }
 0x703   :  { %10073 = vmatpush3.bf16.xpose.msra.mxu0 %v4528_v17  ;;  %4332 = vmatprep.mubr.bf16.mxu1 %v13412_v53 }
 0x704   :  { %10074 = vmatprep.mubr.msk.bf16.mxu0 %vm11219_vm0, %v13386_v40  ;;  %10084 = vmatprep.subr.bf16.mxu0 %v13386_v40  ;;  %v4712_v36 = vsel %vm2185_vm1, %v12084_v20, 0  ;;  %v4666_v33 = vsel %vm2185_vm1, %v12110_v18, 0 }
 0x70a   :  { %9371 = vmatmul.mubr.msk.bf16.gmra.mxu1 %vm2185_vm1, %v3031_v62  ;;  %10075 = vmatmul.mubr.msk.bf16.vlgmr.msra.gmra.mxu0 %vm2185_vm1, %v12064_v60 }
 0x70b   :  { %10085 = vmatpush3.bf16.xpose.msra.mxu0 %v4620_v7  ;;  %10068 = vmatprep.mubr.msk.bf16.mxu1 %vm11219_vm0, %v13386_v40 }
 0x70c   :  { %10086 = vmatprep.mubr.msk.bf16.mxu0 %vm11219_vm0, %v13386_v40  ;;  %10096 = vmatprep.subr.bf16.mxu0 %v13386_v40 }
 0x712   :  { %10069 = vmatmul.mubr.msk.bf16.vlgmr.msra.gmra.mxu1 %vm2185_vm1, %v12086_v38  ;;  %10087 = vmatmul.mubr.msk.bf16.vlgmr.msra.gmra.mxu0 %vm2185_vm1, %v12090_v19 }
 0x713   :  { %10079 = vmatpush3.bf16.xpose.msra.mxu1 %v4574_v21  ;;  %10097 = vmatpush3.bf16.xpose.msra.mxu0 %v4712_v36 }
 0x714   :  { %10080 = vmatprep.mubr.msk.bf16.mxu1 %vm11219_vm0, %v13386_v40  ;;  %10090 = vmatprep.subr.bf16.mxu1 %v13386_v40 }
 0x715   :  { %10098 = vmatprep.mubr.msk.bf16.mxu0 %vm11219_vm0, %v13386_v40  ;;  %10108 = vmatprep.subr.bf16.mxu0 %v13386_v40 }
 0x71a   :  { %10081 = vmatmul.mubr.msk.bf16.vlgmr.msra.gmra.mxu1 %vm2185_vm1, %v12116_v27  ;;  %10099 = vmatmul.mubr.msk.bf16.vlgmr.msra.gmra.mxu0 %vm2185_vm1, %v12120_v43 }
 0x71b   :  { %10091 = vmatpush3.bf16.xpose.msra.mxu1 %v4666_v33  ;;  %10109 = vmatpush3.bf16.msra.mxu0 %v4908_v9 }
 0x71c   :  { %10092 = vmatprep.mubr.msk.bf16.mxu1 %vm11219_vm0, %v13386_v40  ;;  %10102 = vmatprep.subr.bf16.mxu1 %v13386_v40 }
 0x71d   :  { %10110 = vmatprep.mubr.msk.bf16.mxu0 %vm11219_vm0, %v13386_v40  ;;  %10120 = vmatprep.subr.bf16.mxu0 %v13386_v40 }
 0x722   :  { %10093 = vmatmul.mubr.msk.bf16.vlgmr.msra.gmra.mxu1 %vm2185_vm1, %v12142_v50 }
 0x723   :  { %10103 = vmatpush3.bf16.xpose.msra.mxu1 %v4758_v54  ;;  %10104 = vmatprep.mubr.msk.bf16.mxu1 %vm11219_vm0, %v13386_v40 }
 0x724   :  { %10114 = vmatprep.subr.bf16.mxu1 %v13386_v40 }
 0x72a   :  { %10105 = vmatmul.mubr.msk.bf16.vlgmr.msra.gmra.mxu1 %vm2185_vm1, %v12157_v57 }
 0x72b   :  { %10115 = vmatpush3.bf16.msra.mxu1 %v4954_v13  ;;  %10116 = vmatprep.mubr.msk.bf16.mxu1 %vm11219_vm0, %v13386_v40 }
 0x72c   :  { %10126 = vmatprep.subr.bf16.mxu1 %v13386_v40 }
 0x761   :  { %v12166_v23 = vpop.f32.mrf.mxu0 }
 0x763   :  { %v12168_v4 = vpop.f32.mrf.mxu0 }
 0x765   :  { %v12170_v39 = vpop.f32.mrf.mxu0 }
 0x767   :  { %v12172_v47 = vpop.f32.mrf.mxu0 }
 0x768   :  { %13423 = vst [vmem:[#allocation33_spill] sm:$0xff] %v12172_v47 }
 0x796   :  { %v4100_v15 = vpop.f32.mrf.mxu0  ;;  %v10038_v63 = vpop.f32.mrf.mxu1 }
 0x798   :  { %v4102_v46 = vpop.f32.mrf.mxu0  ;;  %v4163_v28 = vpop.f32.mrf.mxu1 }
 0x79a   :  { %v4104_v30 = vpop.f32.mrf.mxu0  ;;  %v10039_v52 = vpop.f32.mrf.mxu1 }
 0x79c   :  { %v12174_v29 = vpop.f32.mrf.mxu0  ;;  %v12176_v8 = vpop.f32.mrf.mxu1 }
 0x79d   :  { %13424 = vst [vmem:[#allocation39_spill] sm:$0xff] %v12174_v29  ;;  %13425 = vst [vmem:[#allocation14_spill] sm:$0xff] %v12176_v8 }
 0x79e   :  { %v4110_v59 = vpop.f32.mrf.mxu0 }
 0x7a0   :  { %v4112_v5 = vpop.f32.mrf.mxu0 }
 0x7a2   :  { %v4114_v26 = vpop.f32.mrf.mxu0 }
 0x7a4   :  { %v12178_v11 = vpop.f32.mrf.mxu0 }
 0x7a5   :  { %13426 = vst [vmem:[#allocation13_spill] sm:$0xff] %v12178_v11 }
 0x7aa   :  { %v4120_v56 = vpop.f32.mrf.mxu0  ;;  %v10042_v22 = vpop.f32.mrf.mxu1 }
 0x7ac   :  { %v4122_v58 = vpop.f32.mrf.mxu0  ;;  %v4179_v62 = vpop.f32.mrf.mxu1 }
 0x7ae   :  { %v4124_v17 = vpop.f32.mrf.mxu0  ;;  %v10043_v7 = vpop.f32.mrf.mxu1 }
 0x7b0   :  { %v12180_v14 = vpop.f32.mrf.mxu0  ;;  %v12182_v21 = vpop.f32.mrf.mxu1 }
 0x7b1   :  { %13427 = vst [vmem:[#allocation12_spill] sm:$0xff] %v12180_v14  ;;  %13428 = vst [vmem:[#allocation36_spill] sm:$0xff] %v12182_v21 }
 0x7b2   :  { %v12184_v36 = vpop.f32.mrf.mxu1  ;;  %v10054_v55 = vpop.f32.mrf.mxu0 }
 0x7b3   :  { %v12186_v49 = vadd.f32 %v10054_v55, %v10038_v63 }
 0x7b4   :  { %v12188_v0 = vpop.f32.mrf.mxu1  ;;  %v4377_v24 = vpop.f32.mrf.mxu0 }
 0x7b5   :  { %v12190_v33 = vadd.f32 %v4377_v24, %v4163_v28 }
 0x7b6   :  { %v12192_v9 = vpop.f32.mrf.mxu1  ;;  %v10055_v45 = vpop.f32.mrf.mxu0 }
 0x7b7   :  { %v12194_v10 = vadd.f32 %v10055_v45, %v10039_v52 }
 0x7b8   :  { %v12196_v44 = vpop.f32.mrf.mxu1  ;;  %v12198_v2 = vpop.f32.mrf.mxu0 }
 0x7b9   :  { %13429 = vst [vmem:[#allocation41_spill] sm:$0xff] %v12196_v44  ;;  %13430 = vst [vmem:[#allocation40_spill] sm:$0xff] %v12198_v2 }
 0x7ba   :  { %v4314_v54 = vpop.f32.mrf.mxu1  ;;  %v10058_v16 = vpop.f32.mrf.mxu0 }
 0x7bb   :  { %v12200_v6 = vadd.f32 %v4314_v54, %v4100_v15  ;;  %v12202_v12 = vadd.f32 %v10058_v16, %v10042_v22 }
 0x7bc   :  { %v4316_v61 = vpop.f32.mrf.mxu1  ;;  %v4393_v37 = vpop.f32.mrf.mxu0 }
 0x7bd   :  { %v12204_v32 = vadd.f32 %v4316_v61, %v4102_v46  ;;  %v12206_v13 = vadd.f32 %v4393_v37, %v4179_v62 }
 0x7be   :  { %v4318_v63 = vpop.f32.mrf.mxu1  ;;  %v10059_v28 = vpop.f32.mrf.mxu0 }
 0x7bf   :  { %v12208_v52 = vadd.f32 %v4318_v63, %v4104_v30  ;;  %v12210_v55 = vadd.f32 %v10059_v28, %v10043_v7 }
 0x7c0   :  { %v12212_v24 = vpop.f32.mrf.mxu1  ;;  %v12214_v45 = vpop.f32.mrf.mxu0 }
 0x7c1   :  { %13431 = vst [vmem:[#allocation16_spill] sm:$0xff] %v12212_v24  ;;  %13432 = vst [vmem:[#allocation15_spill] sm:$0xff] %v12214_v45 }
 0x7c2   :  { %v4324_v15 = vpop.f32.mrf.mxu1  ;;  %v4472_v54 = vpop.f32.mrf.mxu0 }
 0x7c3   :  { %v12216_v22 = vadd.f32 %v4324_v15, %v4110_v59  ;;  %v12220_v46 = vsel %vm11648_vm3, %v4472_v54, -1e+30 }
 0x7c4   :  { %v4326_v62 = vpop.f32.mrf.mxu1  ;;  %v10064_v16 = vpop.f32.mrf.mxu0  ;;  %v4808_v30 = vsel %vm2562_vm4, %v12220_v46, -inf }
 0x7c5   :  { %v12224_v61 = vadd.f32 %v4326_v62, %v4112_v5  ;;  %4809 = vmax.xlane.f32.xlu0 %v4808_v30 }
 0x7c6   :  { %v4328_v7 = vpop.f32.mrf.mxu1  ;;  %v4475_v37 = vpop.f32.mrf.mxu0 }
 0x7c7   :  { %v12226_v63 = vadd.f32 %v4328_v7, %v4114_v26 }
 0x7c8   :  { %v12228_v28 = vpop.f32.mrf.mxu1  ;;  %v10065_v59 = vpop.f32.mrf.mxu0 }
 0x7c9   :  { %13433 = vst [vmem:[#allocation65_spill] sm:$0xff] %v12228_v28 }
 0x7ca   :  { %v4334_v15 = vpop.f32.mrf.mxu1  ;;  %v4564_v14 = vpop.f32.mrf.mxu0 }
 0x7cb   :  { %v12230_v45 = vadd.f32 %v4334_v15, %v4120_v56  ;;  %v4802_v54 = vsel %vm11648_vm3, %v4564_v14, -1e+30 }
 0x7cc   :  { %v4336_v16 = vpop.f32.mrf.mxu1  ;;  %v10076_v21 = vpop.f32.mrf.mxu0  ;;  %v4814_v5 = vsel %vm2562_vm4, %v4802_v54, -inf }
 0x7cd   :  { %v12235_v62 = vadd.f32 %v4336_v16, %v4122_v58  ;;  %4815 = vmax.xlane.f32.xlu0 %v4814_v5 }
 0x7ce   :  { %v4338_v30 = vpop.f32.mrf.mxu1  ;;  %v4567_v26 = vpop.f32.mrf.mxu0 }
 0x7cf   :  { %v12237_v7 = vadd.f32 %v4338_v30, %v4124_v17 }
 0x7d0   :  { %v12239_v37 = vpop.f32.mrf.mxu1  ;;  %v10077_v59 = vpop.f32.mrf.mxu0 }
 0x7d1   :  { %13434 = vst [vmem:[#allocation66_spill] sm:$0xff] %v12239_v37 }
 0x7d2   :  { %v4518_v28 = vpop.f32.mrf.mxu1  ;;  %v4656_v56 = vpop.f32.mrf.mxu0 }
 0x7d3   :  { %v4801_v15 = vsel %vm11648_vm3, %v4518_v28, -1e+30  ;;  %v4804_v28 = vsel %vm11648_vm3, %v4656_v56, -1e+30 }
 0x7d4   :  { %v10070_v14 = vpop.f32.mrf.mxu1  ;;  %v10088_v11 = vpop.f32.mrf.mxu0  ;;  %v4811_v21 = vsel %vm2562_vm4, %v4801_v15, -inf }
 0x7d5   :  { %4812 = vmax.xlane.f32.xlu1 %v4811_v21 }
 0x7d6   :  { %v4521_v58 = vpop.f32.mrf.mxu1  ;;  %v4659_v16 = vpop.f32.mrf.mxu0 }
 0x7d7   :  { %v4820_v16 = vsel %vm2562_vm4, %v4804_v28, -inf }
 0x7d8   :  { %v10071_v5 = vpop.f32.mrf.mxu1  ;;  %v10089_v24 = vpop.f32.mrf.mxu0 }
 0x7da   :  { %v4610_v26 = vpop.f32.mrf.mxu1  ;;  %v4748_v17 = vpop.f32.mrf.mxu0 }
 0x7db   :  { %v4803_v30 = vsel %vm11648_vm3, %v4610_v26, -1e+30  ;;  %v4806_v24 = vsel %vm11648_vm3, %v4748_v17, -1e+30 }
 0x7dc   :  { %v10082_v59 = vpop.f32.mrf.mxu1  ;;  %v10100_v37 = vpop.f32.mrf.mxu0  ;;  %v4817_v29 = vsel %vm2562_vm4, %v4803_v30, -inf }
 0x7dd   :  { %4818 = vmax.xlane.f32.xlu0 %v4817_v29  ;;  %v4826_v59 = vsel %vm2562_vm4, %v4806_v24, -inf }
 0x7de   :  { %v4613_v11 = vpop.f32.mrf.mxu1  ;;  %v4751_v14 = vpop.f32.mrf.mxu0 }
 0x7e0   :  { %v10083_v21 = vpop.f32.mrf.mxu1  ;;  %v10101_v58 = vpop.f32.mrf.mxu0 }
 0x7e1   :  { %4821 = vmax.xlane.f32.xlu0 %v4820_v16 }
 0x7e2   :  { %v4702_v5 = vpop.f32.mrf.mxu1 }
 0x7e3   :  { %v4805_v37 = vsel %vm11648_vm3, %v4702_v5, -1e+30 }
 0x7e4   :  { %v10094_v26 = vpop.f32.mrf.mxu1  ;;  %v4823_v56 = vsel %vm2562_vm4, %v4805_v37, -inf }
 0x7e5   :  { %4827 = vmax.xlane.f32.xlu0 %v4826_v59  ;;  %4824 = vmax.xlane.f32.xlu1 %v4823_v56 }
 0x7e6   :  { %v4705_v29 = vpop.f32.mrf.mxu1 }
 0x7e8   :  { %v10095_v11 = vpop.f32.mrf.mxu1 }
 0x7ea   :  { %v4794_v14 = vpop.f32.mrf.mxu1 }
 0x7eb   :  { %v4807_v21 = vsel %vm11648_vm3, %v4794_v14, -1e+30 }
 0x7ec   :  { %v10106_v58 = vpop.f32.mrf.mxu1  ;;  %v4829_v17 = vsel %vm2562_vm4, %v4807_v21, -inf }
 0x7ed   :  { %4830 = vmax.xlane.f32.xlu1 %v4829_v17 }
 0x7ee   :  { %v4797_v16 = vpop.f32.mrf.mxu1 }
 0x7f0   :  { %v10107_v2 = vpop.f32.mrf.mxu1 }
 0x84e   :  { %v4810_v5 = vpop.xlane.xlu0 %4809 }
 0x84f   :  { %v4832_v26 = vsub.f32 %v12220_v46, %v4810_v5 }
 0x851   :  { %v4840_v8 = vmul.f32 1.442695, %v4832_v26 }
 0x853   :  { %10994 = vpow2.f32 %v4840_v8 }
 0x856   :  { %v4816_v44 = vpop.xlane.xlu0 %4815 }
 0x857   :  { %v4834_v59 = vsub.f32 %v4802_v54, %v4816_v44 }
 0x859   :  { %v4844_v56 = vmul.f32 1.442695, %v4834_v59 }
 0x85b   :  { %10996 = vpow2.f32 %v4844_v56 }
 0x85e   :  { %v4813_v29 = vpop.xlane.xlu1 %4812 }
 0x85f   :  { %v4833_v11 = vsub.f32 %v4801_v15, %v4813_v29 }
 0x860   :  { %v12260_v47 = vpop.eup %10994 }
 0x861   :  { %v4842_v14 = vmul.f32 1.442695, %v4833_v11  ;;  %v4856_v58 = vsel %vm2562_vm4, %v12260_v47, 0.0 }
 0x862   :  { %4857 = vadd.xlane.f32.xlu0 %v4856_v58 }
 0x863   :  { %10998 = vpow2.f32 %v4842_v14 }
 0x866   :  { %v4819_v2 = vpop.xlane.xlu0 %4818 }
 0x867   :  { %v4835_v17 = vsub.f32 %v4803_v30, %v4819_v2 }
 0x868   :  { %v12264_v16 = vpop.eup %10996 }
 0x869   :  { %v4846_v46 = vmul.f32 1.442695, %v4835_v17  ;;  %v4862_v8 = vsel %vm2562_vm4, %v12264_v16, 0.0 }
 0x86a   :  { %4863 = vadd.xlane.f32.xlu0 %v4862_v8  ;;  %v4822_v44 = vpop.xlane.xlu0 %4821 }
 0x86b   :  { %11000 = vpow2.f32 %v4846_v46  ;;  %v4836_v54 = vsub.f32 %v4804_v28, %v4822_v44 }
 0x86d   :  { %v4848_v15 = vmul.f32 1.442695, %v4836_v54 }
 0x86e   :  { %v4828_v5 = vpop.xlane.xlu0 %4827  ;;  %v4825_v26 = vpop.xlane.xlu1 %4824 }
 0x86f   :  { %11002 = vpow2.f32 %v4848_v15  ;;  %v4838_v59 = vsub.f32 %v4806_v24, %v4828_v5  ;;  %v4837_v56 = vsub.f32 %v4805_v37, %v4825_v26 }
 0x870   :  { %v12268_v29 = vpop.eup %10998 }
 0x871   :  { %v4852_v11 = vmul.f32 1.442695, %v4838_v59  ;;  %v4850_v30 = vmul.f32 1.442695, %v4837_v56  ;;  %v4859_v14 = vsel %vm2562_vm4, %v12268_v29, 0.0 }
 0x872   :  { %4860 = vadd.xlane.f32.xlu1 %v4859_v14 }
 0x873   :  { %11004 = vpow2.f32 %v4852_v11 }
 0x874   :  { %11006 = vpow2.f32 %v4850_v30 }
 0x876   :  { %v4831_v58 = vpop.xlane.xlu1 %4830 }
 0x877   :  { %v4839_v2 = vsub.f32 %v4807_v21, %v4831_v58 }
 0x878   :  { %v12272_v17 = vpop.eup %11000 }
 0x879   :  { %v4854_v28 = vmul.f32 1.442695, %v4839_v2  ;;  %v4865_v46 = vsel %vm2562_vm4, %v12272_v17, 0.0 }
 0x87a   :  { %4866 = vadd.xlane.f32.xlu1 %v4865_v46  ;;  %v13440_v46 = vld [vmem:[#allocation46_spill] sm:$0xff] }
 0x87b   :  { %11008 = vpow2.f32 %v4854_v28  ;;  %v13439_v28 = vld [vmem:[#allocation47_spill] sm:$0xff] }
 0x87c   :  { %v12276_v24 = vpop.eup %11002 }
 0x87d   :  { %v4868_v37 = vsel %vm2562_vm4, %v12276_v24, 0.0 }
 0x87e   :  { %4869 = vadd.xlane.f32.xlu0 %v4868_v37  ;;  %v2012_v37 = vadd.f32 %v13440_v46, %v13439_v28  ;;  %v10872_v28 = vld [vmem:[#allocation7 + $0xd8] ss:$12 sps:$4 sm:$0xff]   ;;  %v10874_v46 = vld [vmem:[#allocation7 + $0xdc] ss:$12 sps:$4 sm:$0xff]  }
 0x880   :  { %v12280_v8 = vpop.eup %11004 }
 0x881   :  { %v12282_v44 = vpop.eup %11006  ;;  %v4874_v21 = vsel %vm2562_vm4, %v12280_v8, 0.0 }
 0x882   :  { %4875 = vadd.xlane.f32.xlu0 %v4874_v21  ;;  %v4871_v54 = vsel %vm2562_vm4, %v12282_v44, 0.0 }
 0x883   :  { %4872 = vadd.xlane.f32.xlu1 %v4871_v54  ;;  %v12359_v54 = vpack.c.bf16 %v2012_v37, %v2012_v37  ;;  %v10875_v37 = vld [vmem:[#allocation7 + $0x110] ss:$12 sps:$4 sm:$0xff]  }
 0x888   :  { %v12288_v15 = vpop.eup %11008 }
 0x889   :  { %v4877_v5 = vsel %vm2562_vm4, %v12288_v15, 0.0 }
 0x88a   :  { %4878 = vadd.xlane.f32.xlu1 %v4877_v5 }
 0x898   :  { %5534 = vrot.lane.b32.xlu0 %v12013_v1, %s11220_s0 }
 0x89b   :  { %5531 = vrot.lane.b32.xlu1 %v12046_v31, %s11220_s0  ;;  %v13435_v31 = vld [vmem:[#allocation42_spill] sm:$0xff] }
 0x89c   :  { %5638 = vrot.lane.b32.xlu0 %v12042_v34, %s11220_s0 }
 0x89f   :  { %5586 = vrot.lane.b32.xlu1 %v12017_v42, %s11220_s0 }
 0x8a0   :  { %5635 = vrot.lane.b32.xlu0 %v12064_v60, %s11220_s0 }
 0x8a3   :  { %5583 = vrot.lane.b32.xlu1 %v12086_v38, %s11220_s0 }
 0x8a4   :  { %5742 = vrot.lane.b32.xlu0 %v12060_v35, %s11220_s0  ;;  %v12326_v35 = vpack.c.bf16 %v13435_v31, %v13435_v31  ;;  %v13441_v31 = vld [vmem:[#allocation48_spill] sm:$0xff] }
 0x8a6   :  { %v5000_v38 = vsel %vm2662_vm2, %v12326_v35, 0 }
 0x8a7   :  { %5690 = vrot.lane.b32.xlu1 %v12080_v41, %s11220_s0 }
 0x8a8   :  { %5739 = vrot.lane.b32.xlu0 %v12090_v19, %s11220_s0 }
 0x8ab   :  { %5687 = vrot.lane.b32.xlu1 %v12116_v27, %s11220_s0 }
 0x8ac   :  { %5846 = vrot.lane.b32.xlu0 %v12084_v20, %s11220_s0 }
 0x8af   :  { %5794 = vrot.lane.b32.xlu1 %v12110_v18, %s11220_s0  ;;  %v13436_v18 = vld [vmem:[#allocation45_spill] sm:$0xff] }
 0x8b0   :  { %5843 = vrot.lane.b32.xlu0 %v12120_v43, %s11220_s0  ;;  %v12337_v27 = vpack.c.bf16 %v13436_v18, %v13436_v18 }
 0x8b2   :  { %v5092_v59 = vsel %vm2662_vm2, %v12337_v27, 0 }
 0x8b3   :  { %5791 = vrot.lane.b32.xlu1 %v12142_v50, %s11220_s0 }
 0x8b7   :  { %5898 = vrot.lane.b32.xlu1 %v12140_v51, %s11220_s0 }
 0x8bb   :  { %5895 = vrot.lane.b32.xlu1 %v12157_v57, %s11220_s0  ;;  %v13437_v57 = vld [vmem:[#allocation44_spill] sm:$0xff] }
 0x8eb   :  { %v4858_v1 = vpop.xlane.xlu0 %4857 }
 0x8ec   :  { %11010 = vrcp.f32 %v4858_v1 }
 0x8f3   :  { %v4864_v42 = vpop.xlane.xlu0 %4863 }
 0x8f4   :  { %11012 = vrcp.f32 %v4864_v42 }
 0x8f9   :  { %v11011_v34 = vpop.eup %11010 }
 0x8fa   :  { %v4888_v60 = vmul.f32 %v11011_v34, %v12260_v47  ;;  %v13438_v47 = vld [vmem:[#allocation43_spill] sm:$0xff] }
 0x8fb   :  { %v4861_v41 = vpop.xlane.xlu1 %4860  ;;  %v2002_v26 = vadd.f32 %v13438_v47, %v13437_v57 }
 0x8fc   :  { %v4896_v20 = vpack.c.bf16 %v4888_v60, %v4888_v60  ;;  %11014 = vrcp.f32 %v4861_v41  ;;  %v12364_v60 = vpack.c.bf16 %v13441_v31, %v13441_v31 }
 0x8fd   :  { %v12348_v11 = vpack.c.bf16 %v2002_v26, %v2002_v26 }
 0x8fe   :  { %10111 = vmatmul.mubr.msk.bf16.vlgmr.msra.gmra.mxu0 %vm2562_vm4, %v4896_v20  ;;  %v5138_v20 = vsel %vm2662_vm2, %v12359_v54, 0 }
 0x8ff   :  { %10121 = vmatpush3.bf16.msra.mxu0 %v5000_v38  ;;  %10122 = vmatprep.mubr.msk.bf16.mxu0 %vm11219_vm0, %v13386_v40  ;;  %v5046_v21 = vsel %vm2662_vm2, %v12348_v11, 0  ;;  %v13442_v38 = vld [vmem:[#allocation50_spill] sm:$0xff] }
 0x900   :  { %10132 = vmatprep.subr.bf16.mxu0 %v13386_v40 }
 0x901   :  { %v11013_v19 = vpop.eup %11012 }
 0x902   :  { %v4890_v43 = vmul.f32 %v11013_v19, %v12264_v16  ;;  %v13443_v19 = vld [vmem:[#allocation49_spill] sm:$0xff] }
 0x903   :  { %v4867_v51 = vpop.xlane.xlu1 %4866  ;;  %v2022_v18 = vadd.f32 %v13443_v19, %v13442_v38 }
 0x904   :  { %v4898_v50 = vpack.c.bf16 %v4890_v43, %v4890_v43  ;;  %11016 = vrcp.f32 %v4867_v51 }
 0x906   :  { %10123 = vmatmul.mubr.msk.bf16.vlgmr.msra.gmra.mxu0 %vm2562_vm4, %v4898_v50  ;;  %v12378_v50 = vpack.c.bf16 %v2022_v18, %v2022_v18 }
 0x907   :  { %10133 = vmatpush3.bf16.msra.mxu0 %v5092_v59  ;;  %v4870_v56 = vpop.xlane.xlu0 %4869  ;;  %10134 = vmatprep.mubr.msk.bf16.mxu0 %vm11219_vm0, %v13386_v40 }
 0x908   :  { %11018 = vrcp.f32 %v4870_v56  ;;  %10144 = vmatprep.subr.bf16.mxu0 %v13386_v40  ;;  %v5230_v59 = vsel %vm2662_vm2, %v12378_v50, 0 }
 0x909   :  { %v11015_v16 = vpop.eup %11014 }
 0x90a   :  { %v4889_v30 = vmul.f32 %v11015_v16, %v12268_v29 }
 0x90b   :  { %v4876_v14 = vpop.xlane.xlu0 %4875 }
 0x90c   :  { %v4897_v58 = vpack.c.bf16 %v4889_v30, %v4889_v30  ;;  %11020 = vrcp.f32 %v4876_v14  ;;  %v4873_v2 = vpop.xlane.xlu1 %4872  ;;  %v10868_v14 = vld [vmem:[#allocation7 + $0x10c] ss:$12 sps:$4 sm:$0xff]  }
 0x90d   :  { %11022 = vrcp.f32 %v4873_v2  ;;  %v10871_v2 = vld [vmem:[#allocation7 + $0xf4] ss:$12 sps:$4 sm:$0xff]  }
 0x90e   :  { %10117 = vmatmul.mubr.msk.bf16.vlgmr.msra.gmra.mxu1 %vm2562_vm4, %v4897_v58  ;;  %v10869_v58 = vld [vmem:[#allocation7 + $0xf0] ss:$12 sps:$4 sm:$0xff]  }
 0x90f   :  { %10127 = vmatpush3.bf16.msra.mxu1 %v5046_v21  ;;  %10128 = vmatprep.mubr.msk.bf16.mxu1 %vm11219_vm0, %v13386_v40  ;;  %v10878_v21 = vld [vmem:[#allocation7 + $0xc4] ss:$12 sps:$4 sm:$0xff]   ;;  %v5535_v38 = vpop.permute.xlu0 %5534 }
 0x910   :  { %10138 = vmatprep.subr.bf16.mxu1 %v13386_v40 }
 0x911   :  { %v11017_v29 = vpop.eup %11016 }
 0x912   :  { %v4891_v5 = vmul.f32 %v11017_v29, %v12272_v17  ;;  %v10879_v29 = vld [vmem:[#allocation7 + $0xf8] ss:$12 sps:$4 sm:$0xff]  }
 0x913   :  { %v4879_v1 = vpop.xlane.xlu1 %4878 }
 0x914   :  { %v4899_v42 = vpack.c.bf16 %v4891_v5, %v4891_v5  ;;  %11024 = vrcp.f32 %v4879_v1  ;;  %v10880_v5 = vld [vmem:[#allocation7 + $0xe0] ss:$12 sps:$4 sm:$0xff]   ;;  %v10881_v1 = vld [vmem:[#allocation7 + $0xc8] ss:$12 sps:$4 sm:$0xff]  }
 0x915   :  { %v11019_v34 = vpop.eup %11018 }
 0x916   :  { %v4892_v41 = vmul.f32 %v11019_v34, %v12276_v24  ;;  %10129 = vmatmul.mubr.msk.bf16.vlgmr.msra.gmra.mxu1 %vm2562_vm4, %v4899_v42  ;;  %v5184_v24 = vsel %vm2662_vm2, %v12364_v60, 0 }
 0x917   :  { %10139 = vmatpush3.bf16.msra.mxu1 %v5138_v20  ;;  %10140 = vmatprep.mubr.msk.bf16.mxu1 %vm11219_vm0, %v13386_v40 }
 0x918   :  { %v4900_v17 = vpack.c.bf16 %v4892_v41, %v4892_v41  ;;  %10150 = vmatprep.subr.bf16.mxu1 %v13386_v40 }
 0x919   :  { %v11021_v43 = vpop.eup %11020 }
 0x91a   :  { %v11023_v51 = vpop.eup %11022  ;;  %10135 = vmatmul.mubr.msk.bf16.vlgmr.msra.gmra.mxu0 %vm2562_vm4, %v4900_v17  ;;  %v4894_v47 = vmul.f32 %v11021_v43, %v12280_v8  ;;  %v10866_v8 = vld [vmem:[#allocation7 + $0x108] ss:$12 sps:$4 sm:$0xff]   ;;  %v5639_v43 = vpop.permute.xlu0 %5638 }
 0x91b   :  { %v4893_v57 = vmul.f32 %v11023_v51, %v12282_v44  ;;  %10145 = vmatpush3.bf16.msra.mxu0 %v5184_v24  ;;  %10146 = vmatprep.mubr.msk.bf16.mxu0 %vm11219_vm0, %v13386_v40 }
 0x91c   :  { %v4902_v56 = vpack.c.bf16 %v4894_v47, %v4894_v47  ;;  %5376 = vmatprep.subr.bf16.mxu0 %v10868_v14  ;;  %v5644_v47 = vsel %vm2185_vm1, %v5639_v43, 0 }
 0x91d   :  { %v4901_v26 = vpack.c.bf16 %v4893_v57, %v4893_v57 }
 0x91f   :  { %10141 = vmatmul.mubr.msk.bf16.vlgmr.msra.gmra.mxu1 %vm2562_vm4, %v4901_v26 }
 0x920   :  { %10151 = vmatpush3.bf16.msra.mxu1 %v5230_v59  ;;  %10152 = vmatprep.mubr.msk.bf16.mxu1 %vm11219_vm0, %v13386_v40 }
 0x921   :  { %v11025_v16 = vpop.eup %11024  ;;  %10156 = vmatprep.subr.bf16.mxu1 %v10875_v37 }
 0x922   :  { %v4895_v44 = vmul.f32 %v11025_v16, %v12288_v15  ;;  %10147 = vmatmul.mubr.msk.bf16.vlgmr.msra.gmra.mxu0 %vm2562_vm4, %v4902_v56  ;;  %v10876_v15 = vld [vmem:[#allocation7 + $0xc0] ss:$12 sps:$4 sm:$0xff]  }
 0x923   :  { %5400 = vmatprep.mubr.bf16.mxu0 %v13412_v53  ;;  %5377 = vmatpush1.bf16.msra.mxu0 %v10866_v8 }
 0x924   :  { %v4903_v30 = vpack.c.bf16 %v4895_v44, %v4895_v44  ;;  %5378 = vmatprep.subr.bf16.mxu0 %v10871_v2 }
 0x927   :  { %10153 = vmatmul.mubr.msk.bf16.vlgmr.msra.gmra.mxu1 %vm2562_vm4, %v4903_v30  ;;  %5379 = vmatpush1.bf16.msra.mxu0 %v10869_v58  ;;  %v5540_v30 = vsel %vm2185_vm1, %v5535_v38, 0 }
 0x928   :  { %5380 = vmatprep.subr.bf16.mxu0 %v10874_v46  ;;  %10157 = vmatpush3.bf16.msra.mxu1 %v10875_v37 }
 0x929   :  { %10158 = vmatprep.subr.bf16.mxu1 %v10879_v29 }
 0x92b   :  { %5381 = vmatpush1.bf16.msra.mxu0 %v10872_v28  ;;  %v5532_v28 = vpop.permute.xlu1 %5531 }
 0x92c   :  { %5382 = vmatprep.subr.bf16.mxu0 %v10878_v21  ;;  %10159 = vmatpush3.bf16.msra.mxu1 %v10879_v29 }
 0x92d   :  { %10160 = vmatprep.subr.bf16.mxu1 %v10880_v5 }
 0x92f   :  { %5383 = vmatpush1.bf16.msra.mxu0 %v10876_v15 }
 0x930   :  { %10184 = vmatprep.subr.bf16.mxu0 %v13386_v40  ;;  %10161 = vmatpush3.bf16.msra.mxu1 %v10880_v5 }
 0x931   :  { %10162 = vmatprep.subr.bf16.mxu1 %v10881_v1 }
 0x934   :  { %10163 = vmatpush3.bf16.msra.mxu1 %v10881_v1  ;;  %v5587_v1 = vpop.permute.xlu1 %5586 }
 0x935   :  { %10172 = vmatprep.subr.bf16.mxu1 %v13386_v40 }
 0x9be   :  { %v4944_v42 = vpop.f32.mrf.mxu0 }
 0x9c0   :  { %v10112_v34 = vpop.f32.mrf.mxu0 }
 0x9c2   :  { %v4947_v31 = vpop.f32.mrf.mxu0 }
 0x9c3   :  { %v5636_v31 = vpop.permute.xlu0 %5635 }
 0x9c4   :  { %v10113_v41 = vpop.f32.mrf.mxu0 }
 0x9c6   :  { %v5036_v20 = vpop.f32.mrf.mxu0 }
 0x9c8   :  { %v10124_v19 = vpop.f32.mrf.mxu0 }
 0x9ca   :  { %v5039_v18 = vpop.f32.mrf.mxu0 }
 0x9cc   :  { %v10125_v17 = vpop.f32.mrf.mxu0 }
 0x9cd   :  { %v5584_v17 = vpop.permute.xlu1 %5583 }
 0x9ce   :  { %v4990_v51 = vpop.f32.mrf.mxu1 }
 0x9cf   :  { %v5272_v24 = vpack.c.bf16 %v4990_v51, %v4944_v42  ;;  %v5743_v51 = vpop.permute.xlu0 %5742 }
 0x9d0   :  { %v10118_v57 = vpop.f32.mrf.mxu1 }
 0x9d1   :  { %9404 = vmatmul.mubr.msk.bf16.vlgmr.msra.gmra.mxu0 %vm2185_vm1, %v5272_v24  ;;  %10164 = vmatprep.mubr.msk.bf16.mxu1 %vm2185_vm1, %v5272_v24 }
 0x9d2   :  { %10185 = vmatpush3.bf16.xpose.msra.mxu0 %v5644_v47  ;;  %v4993_v26 = vpop.f32.mrf.mxu1  ;;  %5410 = vmatprep.mubr.bf16.mxu0 %v13412_v53  ;;  %v5691_v47 = vpop.permute.xlu1 %5690 }
 0x9d3   :  { %10196 = vmatprep.subr.bf16.mxu0 %v13386_v40  ;;  %v5740_v26 = vpop.permute.xlu0 %5739 }
 0x9d4   :  { %v10119_v59 = vpop.f32.mrf.mxu1 }
 0x9d5   :  { %v5748_v59 = vsel %vm2185_vm1, %v5743_v51, 0 }
 0x9d6   :  { %v5082_v56 = vpop.f32.mrf.mxu1 }
 0x9d7   :  { %v5273_v16 = vpack.c.bf16 %v5082_v56, %v5036_v20  ;;  %v5592_v56 = vsel %vm2185_vm1, %v5587_v1, 0 }
 0x9d8   :  { %v10130_v44 = vpop.f32.mrf.mxu1 }
 0x9d9   :  { %9405 = vmatmul.mubr.msk.bf16.gmra.mxu0 %vm2185_vm1, %v5273_v16  ;;  %10165 = vmatmul.mubr.msk.bf16.vlgmr.msra.gmra.mxu1 %vm2185_vm1, %v5273_v16  ;;  %v5688_v16 = vpop.permute.xlu1 %5687  ;;  %v5847_v44 = vpop.permute.xlu0 %5846 }
 0x9da   :  { %10173 = vmatpush3.bf16.xpose.msra.mxu1 %v5540_v30  ;;  %v5085_v8 = vpop.f32.mrf.mxu1  ;;  %v5128_v14 = vpop.f32.mrf.mxu0  ;;  %5420 = vmatprep.mubr.bf16.mxu0 %v13412_v53  ;;  %v5852_v30 = vsel %vm2185_vm1, %v5847_v44, 0 }
 0x9db   :  { %10178 = vmatprep.subr.bf16.mxu1 %v13386_v40  ;;  %v5696_v8 = vsel %vm2185_vm1, %v5691_v47, 0 }
 0x9dc   :  { %v10131_v58 = vpop.f32.mrf.mxu1  ;;  %v10136_v2 = vpop.f32.mrf.mxu0 }
 0x9dd   :  { %v5844_v58 = vpop.permute.xlu0 %5843 }
 0x9de   :  { %v5131_v46 = vpop.f32.mrf.mxu0 }
 0x9df   :  { %v5174_v37 = vpop.f32.mrf.mxu1 }
 0x9e0   :  { %v5274_v15 = vpack.c.bf16 %v5174_v37, %v5128_v14  ;;  %v10137_v21 = vpop.f32.mrf.mxu0  ;;  %v5795_v14 = vpop.permute.xlu1 %5794 }
 0x9e1   :  { %v10142_v29 = vpop.f32.mrf.mxu1  ;;  %v4305_v21 = vadd.f32 %v12184_v36, %v12166_v23 }
 0x9e2   :  { %9406 = vmatmul.mubr.msk.bf16.gmra.mxu0 %vm2185_vm1, %v5274_v15  ;;  %10168 = vmatprep.mubr.msk.bf16.mxu1 %vm2185_vm1, %v5274_v15  ;;  %v5220_v5 = vpop.f32.mrf.mxu0 }
 0x9e3   :  { %v5177_v42 = vpop.f32.mrf.mxu1  ;;  %5430 = vmatprep.mubr.bf16.mxu0 %v13412_v53 }
 0x9e4   :  { %v10148_v34 = vpop.f32.mrf.mxu0  ;;  %v5792_v2 = vpop.permute.xlu1 %5791 }
 0x9e5   :  { %v10143_v41 = vpop.f32.mrf.mxu1  ;;  %v4309_v34 = vadd.f32 %v12192_v9, %v12170_v39 }
 0x9e6   :  { %v5223_v20 = vpop.f32.mrf.mxu0 }
 0x9e7   :  { %v5266_v38 = vpop.f32.mrf.mxu1 }
 0x9e8   :  { %v5275_v19 = vpack.c.bf16 %v5266_v38, %v5220_v5  ;;  %v10149_v18 = vpop.f32.mrf.mxu0  ;;  %v5899_v46 = vpop.permute.xlu1 %5898  ;;  %v4307_v5 = vadd.f32 %v12188_v0, %v12168_v4 }
 0x9e9   :  { %v10154_v43 = vpop.f32.mrf.mxu1  ;;  %v5904_v37 = vsel %vm2185_vm1, %v5899_v46, 0 }
 0x9ea   :  { %9407 = vmatmul.mubr.msk.bf16.gmra.mxu0 %vm2185_vm1, %v5275_v19  ;;  %10169 = vmatmul.mubr.msk.bf16.gmra.mxu1 %vm2185_vm1, %v5275_v19 }
 0x9eb   :  { %v5269_v24 = vpop.f32.mrf.mxu1  ;;  %10174 = vmatprep.mubr.msk.bf16.mxu1 %vm11219_vm0, %v13386_v40  ;;  %10186 = vmatprep.mubr.msk.bf16.mxu0 %vm11219_vm0, %v13386_v40 }
 0x9ec   :  { %v5896_v15 = vpop.permute.xlu1 %5895 }
 0x9ed   :  { %v10155_v57 = vpop.f32.mrf.mxu1 }
 0x9f2   :  { %10175 = vmatmul.mubr.msk.bf16.vlgmr.msra.gmra.mxu1 %vm2185_vm1, %v5532_v28  ;;  %10187 = vmatmul.mubr.msk.bf16.vlgmr.msra.gmra.mxu0 %vm2185_vm1, %v5636_v31  ;;  %v5800_v28 = vsel %vm2185_vm1, %v5795_v14, 0 }
 0x9f3   :  { %10179 = vmatpush3.bf16.xpose.msra.mxu1 %v5592_v56  ;;  %10197 = vmatpush3.bf16.xpose.msra.mxu0 %v5748_v59 }
 0x9f4   :  { %10180 = vmatprep.mubr.msk.bf16.mxu1 %vm11219_vm0, %v13386_v40  ;;  %10190 = vmatprep.subr.bf16.mxu1 %v13386_v40 }
 0x9f5   :  { %10198 = vmatprep.mubr.msk.bf16.mxu0 %vm11219_vm0, %v13386_v40  ;;  %10208 = vmatprep.subr.bf16.mxu0 %v13386_v40 }
 0x9fa   :  { %10181 = vmatmul.mubr.msk.bf16.vlgmr.msra.gmra.mxu1 %vm2185_vm1, %v5584_v17  ;;  %10199 = vmatmul.mubr.msk.bf16.vlgmr.msra.gmra.mxu0 %vm2185_vm1, %v5740_v26 }
 0x9fb   :  { %10191 = vmatpush3.bf16.xpose.msra.mxu1 %v5696_v8  ;;  %10209 = vmatpush3.bf16.xpose.msra.mxu0 %v5852_v30 }
 0x9fc   :  { %10192 = vmatprep.mubr.msk.bf16.mxu1 %vm11219_vm0, %v13386_v40  ;;  %10202 = vmatprep.subr.bf16.mxu1 %v13386_v40 }
 0x9fd   :  { %10210 = vmatprep.mubr.msk.bf16.mxu0 %vm11219_vm0, %v13386_v40  ;;  %10220 = vmatprep.subr.bf16.mxu0 %v13386_v40 }
 0xa02   :  { %10193 = vmatmul.mubr.msk.bf16.vlgmr.msra.gmra.mxu1 %vm2185_vm1, %v5688_v16  ;;  %10211 = vmatmul.mubr.msk.bf16.vlgmr.msra.gmra.mxu0 %vm2185_vm1, %v5844_v58 }
 0xa03   :  { %10203 = vmatpush3.bf16.xpose.msra.mxu1 %v5800_v28  ;;  %10204 = vmatprep.mubr.msk.bf16.mxu1 %vm11219_vm0, %v13386_v40 }
 0xa04   :  { %10214 = vmatprep.subr.bf16.mxu1 %v13386_v40  ;;  %10222 = vmatprep.mubr.msk.bf16.mxu0 %vm11219_vm0, %v13386_v40 }
 0xa0a   :  { %10205 = vmatmul.mubr.msk.bf16.vlgmr.msra.gmra.mxu1 %vm2185_vm1, %v5792_v2 }
 0xa0b   :  { %10215 = vmatpush3.bf16.xpose.msra.mxu1 %v5904_v37  ;;  %10216 = vmatprep.mubr.msk.bf16.mxu1 %vm11219_vm0, %v13386_v40 }
 0xa0c   :  { %10226 = vmatprep.subr.bf16.mxu1 %v13386_v40 }
 0xa12   :  { %10217 = vmatmul.mubr.msk.bf16.vlgmr.msra.gmra.mxu1 %vm2185_vm1, %v5896_v15 }
 0xa13   :  { %10228 = vmatprep.mubr.msk.bf16.mxu1 %vm11219_vm0, %v13386_v40 }
 0xa91   :  { %v5402_v29 = vpop.f32.mrf.mxu0 }
 0xa92   :  { %v12454_v1 = vadd.f32 %v5402_v29, %v4305_v21 }
 0xa93   :  { %v5404_v42 = vpop.f32.mrf.mxu0 }
 0xa94   :  { %v12458_v31 = vadd.f32 %v5404_v42, %v4307_v5 }
 0xa95   :  { %v5406_v41 = vpop.f32.mrf.mxu0 }
 0xa96   :  { %v12460_v20 = vadd.f32 %v5406_v41, %v4309_v34 }
 0xa97   :  { %v12462_v38 = vpop.f32.mrf.mxu0 }
 0xa99   :  { %v5412_v19 = vpop.f32.mrf.mxu0  ;;  %v10166_v18 = vpop.f32.mrf.mxu1 }
 0xa9a   :  { %v12465_v23 = vadd.f32 %v5412_v19, %v12200_v6  ;;  %v12468_v4 = vadd.f32 %v10166_v18, %v12186_v49 }
 0xa9b   :  { %v5414_v36 = vpop.f32.mrf.mxu0  ;;  %v5475_v0 = vpop.f32.mrf.mxu1 }
 0xa9c   :  { %v12471_v17 = vadd.f32 %v5414_v36, %v12204_v32  ;;  %v12474_v39 = vadd.f32 %v5475_v0, %v12190_v33 }
 0xa9d   :  { %v5416_v9 = vpop.f32.mrf.mxu0  ;;  %v10167_v43 = vpop.f32.mrf.mxu1 }
 0xa9e   :  { %v12477_v51 = vadd.f32 %v5416_v9, %v12208_v52  ;;  %v12480_v24 = vadd.f32 %v10167_v43, %v12194_v10 }
 0xa9f   :  { %v12482_v6 = vpop.f32.mrf.mxu0  ;;  %v12493_v59 = vpop.f32.mrf.mxu1 }
 0xaa2   :  { %v5422_v49 = vpop.f32.mrf.mxu0 }
 0xaa3   :  { %v12485_v57 = vadd.f32 %v5422_v49, %v12216_v22 }
 0xaa4   :  { %v5424_v47 = vpop.f32.mrf.mxu0 }
 0xaa5   :  { %v12488_v32 = vadd.f32 %v5424_v47, %v12224_v61 }
 0xaa6   :  { %v5426_v33 = vpop.f32.mrf.mxu0 }
 0xaa7   :  { %v12491_v26 = vadd.f32 %v5426_v33, %v12226_v63 }
 0xaa8   :  { %v12495_v52 = vpop.f32.mrf.mxu0 }
 0xaaa   :  { %v5432_v10 = vpop.f32.mrf.mxu0  ;;  %v10170_v56 = vpop.f32.mrf.mxu1 }
 0xaab   :  { %v12498_v16 = vadd.f32 %v5432_v10, %v12230_v45  ;;  %v12501_v22 = vadd.f32 %v10170_v56, %v12202_v12 }
 0xaac   :  { %v5434_v44 = vpop.f32.mrf.mxu0  ;;  %v5491_v30 = vpop.f32.mrf.mxu1 }
 0xaad   :  { %v12504_v61 = vadd.f32 %v5434_v44, %v12235_v62  ;;  %v12507_v63 = vadd.f32 %v5491_v30, %v12206_v13 }
 0xaae   :  { %v5436_v8 = vpop.f32.mrf.mxu0  ;;  %v10171_v14 = vpop.f32.mrf.mxu1 }
 0xaaf   :  { %v12510_v58 = vadd.f32 %v5436_v8, %v12237_v7  ;;  %v12513_v2 = vadd.f32 %v10171_v14, %v12210_v55 }
 0xab0   :  { %v12515_v45 = vpop.f32.mrf.mxu0  ;;  %v12517_v12 = vpop.f32.mrf.mxu1 }
 0xab1   :  { %13444 = vst [vmem:[#allocation42_spill] sm:$0xff] %v12515_v45  ;;  %13445 = vst [vmem:[#allocation45_spill] sm:$0xff] %v12517_v12 }
 0xab2   :  { %v5576_v28 = vpop.f32.mrf.mxu1  ;;  %v5680_v46 = vpop.f32.mrf.mxu0 }
 0xab3   :  { %v5946_v62 = vsel %vm11648_vm3, %v5576_v28, -1e+30  ;;  %v5948_v7 = vsel %vm11648_vm3, %v5680_v46, -1e+30 }
 0xab4   :  { %v10176_v37 = vpop.f32.mrf.mxu1  ;;  %v10188_v13 = vpop.f32.mrf.mxu0  ;;  %v5954_v15 = vsel %vm2562_vm4, %v5946_v62, -inf  ;;  %v5960_v42 = vsel %vm2562_vm4, %v5948_v7, -inf }
 0xab5   :  { %5955 = vmax.xlane.f32.xlu0 %v5954_v15 }
 0xab6   :  { %v5579_v21 = vpop.f32.mrf.mxu1  ;;  %v5683_v55 = vpop.f32.mrf.mxu0 }
 0xab8   :  { %v10177_v29 = vpop.f32.mrf.mxu1  ;;  %v10189_v5 = vpop.f32.mrf.mxu0 }
 0xab9   :  { %5961 = vmax.xlane.f32.xlu0 %v5960_v42 }
 0xaba   :  { %v5628_v34 = vpop.f32.mrf.mxu1  ;;  %v5784_v41 = vpop.f32.mrf.mxu0 }
 0xabb   :  { %v5947_v19 = vsel %vm11648_vm3, %v5628_v34, -1e+30  ;;  %v12529_v18 = vsel %vm11648_vm3, %v5784_v41, -1e+30 }
 0xabc   :  { %v10182_v36 = vpop.f32.mrf.mxu1  ;;  %v10200_v0 = vpop.f32.mrf.mxu0  ;;  %v5966_v9 = vsel %vm2562_vm4, %v12529_v18, -inf  ;;  %v5957_v43 = vsel %vm2562_vm4, %v5947_v19, -inf }
 0xabd   :  { %5967 = vmax.xlane.f32.xlu0 %v5966_v9  ;;  %5958 = vmax.xlane.f32.xlu1 %v5957_v43 }
 0xabe   :  { %v5631_v49 = vpop.f32.mrf.mxu1  ;;  %v5787_v47 = vpop.f32.mrf.mxu0 }
 0xac0   :  { %v10183_v33 = vpop.f32.mrf.mxu1  ;;  %v10201_v10 = vpop.f32.mrf.mxu0 }
 0xac2   :  { %v5732_v56 = vpop.f32.mrf.mxu1  ;;  %v5888_v44 = vpop.f32.mrf.mxu0 }
 0xac3   :  { %v12536_v30 = vsel %vm11648_vm3, %v5732_v56, -1e+30  ;;  %v12542_v46 = vsel %vm11648_vm3, %v5888_v44, -1e+30 }
 0xac4   :  { %v10194_v8 = vpop.f32.mrf.mxu1  ;;  %v10212_v14 = vpop.f32.mrf.mxu0  ;;  %v5963_v28 = vsel %vm2562_vm4, %v12536_v30, -inf  ;;  %v5972_v55 = vsel %vm2562_vm4, %v12542_v46, -inf }
 0xac5   :  { %5964 = vmax.xlane.f32.xlu0 %v5963_v28 }
 0xac6   :  { %v5735_v37 = vpop.f32.mrf.mxu1  ;;  %v5891_v13 = vpop.f32.mrf.mxu0 }
 0xac8   :  { %v10195_v15 = vpop.f32.mrf.mxu1  ;;  %v10213_v21 = vpop.f32.mrf.mxu0 }
 0xac9   :  { %5973 = vmax.xlane.f32.xlu0 %v5972_v55 }
 0xaca   :  { %v5836_v29 = vpop.f32.mrf.mxu1 }
 0xacb   :  { %v5951_v43 = vsel %vm11648_vm3, %v5836_v29, -1e+30 }
 0xacc   :  { %v10206_v5 = vpop.f32.mrf.mxu1  ;;  %v5969_v49 = vsel %vm2562_vm4, %v5951_v43, -inf }
 0xace   :  { %6100 = vrot.lane.b32.xlu1 %v12155_v3, %s11220_s0  ;;  %v5839_v42 = vpop.f32.mrf.mxu1 }
 0xad0   :  { %v10207_v34 = vpop.f32.mrf.mxu1 }
 0xad2   :  { %6149 = vrot.lane.b32.xlu1 %v12326_v35, %s11220_s0  ;;  %v5940_v41 = vpop.f32.mrf.mxu1 }
 0xad3   :  { %v5953_v3 = vsel %vm11648_vm3, %v5940_v41, -1e+30 }
 0xad4   :  { %v10218_v36 = vpop.f32.mrf.mxu1  ;;  %v5975_v47 = vsel %vm2562_vm4, %v5953_v3, -inf }
 0xad6   :  { %v5943_v0 = vpop.f32.mrf.mxu1 }
 0xad8   :  { %v10219_v9 = vpop.f32.mrf.mxu1 }
 0xadf   :  { %6051 = vrot.lane.b32.xlu0 %v12114_v25, %s11220_s0 }
 0xaf6   :  { %5970 = vmax.xlane.f32.xlu1 %v5969_v49 }
 0xafa   :  { %5976 = vmax.xlane.f32.xlu1 %v5975_v47 }
 0xb0b   :  { %6198 = vrot.lane.b32.xlu1 %v12348_v11, %s11220_s0 }
 0xb3e   :  { %v5956_v35 = vpop.xlane.xlu0 %5955 }
 0xb3f   :  { %v5978_v33 = vsub.f32 %v5946_v62, %v5956_v35 }
 0xb41   :  { %v5986_v10 = vmul.f32 1.442695, %v5978_v33 }
 0xb42   :  { %v5962_v56 = vpop.xlane.xlu0 %5961 }
 0xb43   :  { %11026 = vpow2.f32 %v5986_v10  ;;  %v5980_v25 = vsub.f32 %v5948_v7, %v5962_v56 }
 0xb45   :  { %v5990_v44 = vmul.f32 1.442695, %v5980_v25 }
 0xb46   :  { %v5959_v8 = vpop.xlane.xlu1 %5958  ;;  %v5968_v37 = vpop.xlane.xlu0 %5967 }
 0xb47   :  { %11028 = vpow2.f32 %v5990_v44  ;;  %v5979_v14 = vsub.f32 %v5947_v19, %v5959_v8  ;;  %v5982_v41 = vsub.f32 %v12529_v18, %v5968_v37 }
 0xb49   :  { %v5988_v28 = vmul.f32 1.442695, %v5979_v14  ;;  %v5994_v36 = vmul.f32 1.442695, %v5982_v41 }
 0xb4a   :  { %v6101_v13 = vpop.permute.xlu1 %6100 }
 0xb4b   :  { %v6106_v15 = vsel %vm2662_vm2, %v6101_v13, 0  ;;  %11030 = vpow2.f32 %v5988_v28 }
 0xb4c   :  { %10227 = vmatpush3.bf16.msra.mxu1 %v6106_v15  ;;  %11032 = vpow2.f32 %v5994_v36 }
 0xb4d   :  { %10238 = vmatprep.subr.bf16.mxu1 %v13386_v40 }
 0xb4e   :  { %v5965_v11 = vpop.xlane.xlu0 %5964  ;;  %v6150_v47 = vpop.permute.xlu1 %6149 }
 0xb4f   :  { %v5981_v9 = vsub.f32 %v12536_v30, %v5965_v11 }
 0xb50   :  { %v11027_v21 = vpop.eup %11026 }
 0xb51   :  { %v6002_v62 = vsel %vm2562_vm4, %v11027_v21, 0.0  ;;  %v5992_v35 = vmul.f32 1.442695, %v5981_v9 }
 0xb52   :  { %6003 = vadd.xlane.f32.xlu0 %v6002_v62  ;;  %v5974_v55 = vpop.xlane.xlu0 %5973 }
 0xb53   :  { %v5984_v0 = vsub.f32 %v12542_v46, %v5974_v55 }
 0xb54   :  { %v11029_v7 = vpop.eup %11028 }
 0xb55   :  { %v6008_v29 = vsel %vm2562_vm4, %v11029_v7, 0.0  ;;  %v5998_v49 = vmul.f32 1.442695, %v5984_v0 }
 0xb56   :  { %6009 = vadd.xlane.f32.xlu0 %v6008_v29  ;;  %v6052_v19 = vpop.permute.xlu0 %6051 }
 0xb57   :  { %v6057_v5 = vsel %vm2662_vm2, %v6052_v19, 0  ;;  %11034 = vpow2.f32 %v5998_v49 }
 0xb58   :  { %10221 = vmatpush3.bf16.msra.mxu0 %v6057_v5  ;;  %v11031_v42 = vpop.eup %11030  ;;  %11036 = vpow2.f32 %v5992_v35 }
 0xb59   :  { %10232 = vmatprep.subr.bf16.mxu0 %v13386_v40  ;;  %v6005_v34 = vsel %vm2562_vm4, %v11031_v42, 0.0  ;;  %v11033_v44 = vpop.eup %11032 }
 0xb5a   :  { %6006 = vadd.xlane.f32.xlu1 %v6005_v34  ;;  %v6014_v18 = vsel %vm2562_vm4, %v11033_v44, 0.0  ;;  %v6155_v34 = vsel %vm2662_vm2, %v6150_v47, 0 }
 0xb64   :  { %v12575_v46 = vpop.eup %11034 }
 0xb65   :  { %v12577_v30 = vpop.eup %11036  ;;  %v6020_v8 = vsel %vm2562_vm4, %v12575_v46, 0.0 }
 0xb6b   :  { %6296 = vrot.lane.b32.xlu1 %v12359_v54, %s11220_s0 }
 0xb6c   :  { %6247 = vrot.lane.b32.xlu0 %v12337_v27, %s11220_s0 }
 0xb7f   :  { %v5971_v33 = vpop.xlane.xlu1 %5970 }
 0xb80   :  { %v5983_v10 = vsub.f32 %v5951_v43, %v5971_v33  ;;  %v6011_v43 = vsel %vm2562_vm4, %v12577_v30, 0.0 }
 0xb82   :  { %v5996_v56 = vmul.f32 1.442695, %v5983_v10 }
 0xb83   :  { %v5977_v54 = vpop.xlane.xlu1 %5976 }
 0xb84   :  { %11038 = vpow2.f32 %v5996_v56  ;;  %v5985_v25 = vsub.f32 %v5953_v3, %v5977_v54 }
 0xb86   :  { %v6000_v27 = vmul.f32 1.442695, %v5985_v25 }
 0xb87   :  { %v6199_v11 = vpop.permute.xlu1 %6198 }
 0xb88   :  { %11040 = vpow2.f32 %v6000_v27  ;;  %v6204_v49 = vsel %vm2662_vm2, %v6199_v11, 0 }
 0xb8b   :  { %6015 = vadd.xlane.f32.xlu0 %v6014_v18  ;;  %v10884_v18 = vld [vmem:[#allocation7 + $0x16c] ss:$12 sps:$4 sm:$0xff]  }
 0xb8f   :  { %6021 = vadd.xlane.f32.xlu0 %v6020_v8  ;;  %6012 = vadd.xlane.f32.xlu1 %v6011_v43 }
 0xb91   :  { %v12583_v14 = vpop.eup %11038 }
 0xb92   :  { %v6017_v3 = vsel %vm2562_vm4, %v12583_v14, 0.0 }
 0xb93   :  { %6018 = vadd.xlane.f32.xlu1 %v6017_v3 }
 0xb95   :  { %v12587_v28 = vpop.eup %11040 }
 0xb96   :  { %v6023_v37 = vsel %vm2562_vm4, %v12587_v28, 0.0 }
 0xb97   :  { %6024 = vadd.xlane.f32.xlu1 %v6023_v37 }
 0xba5   :  { %6345 = vrot.lane.b32.xlu0 %v12364_v60, %s11220_s0 }
 0xba8   :  { %6394 = vrot.lane.b32.xlu1 %v12378_v50, %s11220_s0 }
 0xbdb   :  { %v6004_v13 = vpop.xlane.xlu0 %6003 }
 0xbdc   :  { %11042 = vrcp.f32 %v6004_v13 }
 0xbdf   :  { %v6010_v15 = vpop.xlane.xlu0 %6009 }
 0xbe0   :  { %11044 = vrcp.f32 %v6010_v15 }
 0xbe3   :  { %v6007_v62 = vpop.xlane.xlu1 %6006  ;;  %v6248_v41 = vpop.permute.xlu0 %6247 }
 0xbe4   :  { %11046 = vrcp.f32 %v6007_v62  ;;  %v10882_v62 = vld [vmem:[#allocation7 + $0x168] ss:$12 sps:$4 sm:$0xff]  }
 0xbe9   :  { %v11043_v55 = vpop.eup %11042 }
 0xbea   :  { %v6034_v29 = vmul.f32 %v11043_v55, %v11027_v21  ;;  %v6253_v21 = vsel %vm2662_vm2, %v6248_v41, 0  ;;  %v10888_v41 = vld [vmem:[#allocation7 + $0x138] ss:$12 sps:$4 sm:$0xff]  }
 0xbec   :  { %v6042_v19 = vpack.c.bf16 %v6034_v29, %v6034_v29 }
 0xbed   :  { %v11045_v5 = vpop.eup %11044 }
 0xbee   :  { %10223 = vmatmul.mubr.msk.bf16.vlgmr.msra.gmra.mxu0 %vm2562_vm4, %v6042_v19  ;;  %v6036_v60 = vmul.f32 %v11045_v5, %v11029_v7 }
 0xbef   :  { %10233 = vmatpush3.bf16.msra.mxu0 %v6155_v34  ;;  %10234 = vmatprep.mubr.msk.bf16.mxu0 %vm11219_vm0, %v13386_v40  ;;  %v10890_v34 = vld [vmem:[#allocation7 + $0x13c] ss:$12 sps:$4 sm:$0xff]  }
 0xbf0   :  { %10244 = vmatprep.subr.bf16.mxu0 %v13386_v40  ;;  %v6044_v0 = vpack.c.bf16 %v6036_v60, %v6036_v60 }
 0xbf1   :  { %v11047_v50 = vpop.eup %11046 }
 0xbf2   :  { %v6035_v36 = vmul.f32 %v11047_v50, %v11031_v42  ;;  %v6297_v42 = vpop.permute.xlu1 %6296 }
 0xbf3   :  { %v6302_v11 = vsel %vm2662_vm2, %v6297_v42, 0 }
 0xbf4   :  { %v6043_v9 = vpack.c.bf16 %v6035_v36, %v6035_v36 }
 0xbf6   :  { %10235 = vmatmul.mubr.msk.bf16.vlgmr.msra.gmra.mxu0 %vm2562_vm4, %v6044_v0  ;;  %10229 = vmatmul.mubr.msk.bf16.vlgmr.msra.gmra.mxu1 %vm2562_vm4, %v6043_v9  ;;  %v10891_v0 = vld [vmem:[#allocation7 + $0x120] ss:$12 sps:$4 sm:$0xff]  }
 0xbf7   :  { %10245 = vmatpush3.bf16.msra.mxu0 %v6253_v21  ;;  %10239 = vmatpush3.bf16.msra.mxu1 %v6204_v49  ;;  %v10894_v21 = vld [vmem:[#allocation7 + $0x170] ss:$12 sps:$4 sm:$0xff]   ;;  %v10895_v49 = vld [vmem:[#allocation7 + $0x158] ss:$12 sps:$4 sm:$0xff]  }
 0xbf8   :  { %10246 = vmatprep.mubr.msk.bf16.mxu0 %vm11219_vm0, %v13386_v40  ;;  %10256 = vmatprep.subr.bf16.mxu0 %v13386_v40 }
 0xbf9   :  { %10240 = vmatprep.mubr.msk.bf16.mxu1 %vm11219_vm0, %v13386_v40  ;;  %10250 = vmatprep.subr.bf16.mxu1 %v13386_v40 }
 0xc14   :  { %v6016_v7 = vpop.xlane.xlu0 %6015 }
 0xc15   :  { %11048 = vrcp.f32 %v6016_v7  ;;  %v10896_v7 = vld [vmem:[#allocation7 + $0x140] ss:$12 sps:$4 sm:$0xff]  }
 0xc18   :  { %v6022_v47 = vpop.xlane.xlu0 %6021  ;;  %v6013_v35 = vpop.xlane.xlu1 %6012 }
 0xc19   :  { %11050 = vrcp.f32 %v6022_v47 }
 0xc1a   :  { %11052 = vrcp.f32 %v6013_v35 }
 0xc1c   :  { %v6019_v33 = vpop.xlane.xlu1 %6018  ;;  %v6346_v25 = vpop.permute.xlu0 %6345 }
 0xc1d   :  { %11054 = vrcp.f32 %v6019_v33  ;;  %v6351_v3 = vsel %vm2662_vm2, %v6346_v25, 0 }
 0xc20   :  { %v6025_v54 = vpop.xlane.xlu1 %6024 }
 0xc21   :  { %11056 = vrcp.f32 %v6025_v54 }
 0xc22   :  { %v11049_v10 = vpop.eup %11048 }
 0xc23   :  { %v6038_v56 = vmul.f32 %v11049_v10, %v11033_v44  ;;  %v13446_v10 = vld [vmem:[#allocation29_spill] sm:$0xff] }
 0xc24   :  { %v6395_v19 = vpop.permute.xlu1 %6394 }
 0xc25   :  { %v6046_v27 = vpack.c.bf16 %v6038_v56, %v6038_v56  ;;  %v6400_v50 = vsel %vm2662_vm2, %v6395_v19, 0  ;;  %v12634_v56 = vpack.c.bf16 %v13446_v10, %v13446_v10  ;;  %v13449_v10 = vld [vmem:[#allocation25_spill] sm:$0xff] }
 0xc26   :  { %v11051_v8 = vpop.eup %11050 }
 0xc27   :  { %v11053_v43 = vpop.eup %11052  ;;  %10247 = vmatmul.mubr.msk.bf16.vlgmr.msra.gmra.mxu0 %vm2562_vm4, %v6046_v27  ;;  %v6040_v13 = vmul.f32 %v11051_v8, %v12575_v46  ;;  %v10885_v46 = vld [vmem:[#allocation7 + $0x150] ss:$12 sps:$4 sm:$0xff]  }
 0xc28   :  { %v6037_v37 = vmul.f32 %v11053_v43, %v12577_v30  ;;  %10257 = vmatpush3.bf16.msra.mxu0 %v6351_v3  ;;  %10258 = vmatprep.mubr.msk.bf16.mxu0 %vm11219_vm0, %v13386_v40  ;;  %v10887_v30 = vld [vmem:[#allocation7 + $0x154] ss:$12 sps:$4 sm:$0xff]   ;;  %v6820_v43 = vsel %vm2185_vm1, %v12634_v56, 0 }
 0xc29   :  { %6546 = vmatprep.subr.bf16.mxu0 %v10884_v18  ;;  %v6048_v55 = vpack.c.bf16 %v6040_v13, %v6040_v13 }
 0xc2a   :  { %v6045_v44 = vpack.c.bf16 %v6037_v37, %v6037_v37  ;;  %v11055_v15 = vpop.eup %11054 }
 0xc2b   :  { %v6039_v29 = vmul.f32 %v11055_v15, %v12583_v14  ;;  %v10893_v14 = vld [vmem:[#allocation7 + $0x124] ss:$12 sps:$4 sm:$0xff]  }
 0xc2c   :  { %10241 = vmatmul.mubr.msk.bf16.vlgmr.msra.gmra.mxu1 %vm2562_vm4, %v6045_v44 }
 0xc2d   :  { %10251 = vmatpush3.bf16.msra.mxu1 %v6302_v11  ;;  %10252 = vmatprep.mubr.msk.bf16.mxu1 %vm11219_vm0, %v13386_v40  ;;  %v6047_v5 = vpack.c.bf16 %v6039_v29, %v6039_v29 }
 0xc2e   :  { %10262 = vmatprep.subr.bf16.mxu1 %v13386_v40  ;;  %v11057_v60 = vpop.eup %11056 }
 0xc2f   :  { %10259 = vmatmul.mubr.msk.bf16.vlgmr.msra.gmra.mxu0 %vm2562_vm4, %v6048_v55  ;;  %v6041_v36 = vmul.f32 %v11057_v60, %v12587_v28  ;;  %v10897_v28 = vld [vmem:[#allocation7 + $0x128] ss:$12 sps:$4 sm:$0xff]  }
 0xc30   :  { %6547 = vmatpush1.bf16.msra.mxu0 %v10882_v62  ;;  %6570 = vmatprep.mubr.bf16.mxu0 %v13412_v53  ;;  %v13447_v62 = vld [vmem:[#allocation27_spill] sm:$0xff] }
 0xc31   :  { %6548 = vmatprep.subr.bf16.mxu0 %v10887_v30  ;;  %v6049_v9 = vpack.c.bf16 %v6041_v36, %v6041_v36  ;;  %v12644_v55 = vpack.c.bf16 %v13447_v62, %v13447_v62 }
 0xc34   :  { %10253 = vmatmul.mubr.msk.bf16.vlgmr.msra.gmra.mxu1 %vm2562_vm4, %v6047_v5  ;;  %6549 = vmatpush1.bf16.msra.mxu0 %v10885_v46 }
 0xc35   :  { %10263 = vmatpush3.bf16.msra.mxu1 %v6400_v50  ;;  %10264 = vmatprep.mubr.msk.bf16.mxu1 %vm11219_vm0, %v13386_v40 }
 0xc36   :  { %6550 = vmatprep.subr.bf16.mxu0 %v10890_v34  ;;  %10268 = vmatprep.subr.bf16.mxu1 %v10894_v21  ;;  %v6728_v34 = vsel %vm2185_vm1, %v12644_v55, 0 }
 0xc38   :  { %6551 = vmatpush1.bf16.msra.mxu0 %v10888_v41 }
 0xc39   :  { %6552 = vmatprep.subr.bf16.mxu0 %v10893_v14 }
 0xc3c   :  { %10265 = vmatmul.mubr.msk.bf16.vlgmr.msra.gmra.mxu1 %vm2562_vm4, %v6049_v9  ;;  %6553 = vmatpush1.bf16.msra.mxu0 %v10891_v0 }
 0xc3d   :  { %10296 = vmatprep.subr.bf16.mxu0 %v13386_v40  ;;  %10269 = vmatpush3.bf16.msra.mxu1 %v10894_v21 }
 0xc3e   :  { %10270 = vmatprep.subr.bf16.mxu1 %v10895_v49 }
 0xc41   :  { %10271 = vmatpush3.bf16.msra.mxu1 %v10895_v49 }
 0xc42   :  { %10272 = vmatprep.subr.bf16.mxu1 %v10896_v7 }
 0xc45   :  { %10273 = vmatpush3.bf16.msra.mxu1 %v10896_v7 }
 0xc46   :  { %10274 = vmatprep.subr.bf16.mxu1 %v10897_v28 }
 0xc49   :  { %10275 = vmatpush3.bf16.msra.mxu1 %v10897_v28 }
 0xc4a   :  { %10284 = vmatprep.subr.bf16.mxu1 %v13386_v40 }
 0xcae   :  { %v6093_v42 = vpop.f32.mrf.mxu0 }
 0xcb0   :  { %v10224_v47 = vpop.f32.mrf.mxu0 }
 0xcb2   :  { %v6096_v35 = vpop.f32.mrf.mxu0 }
 0xcb4   :  { %v10225_v33 = vpop.f32.mrf.mxu0 }
 0xcb5   :  { %v13448_v33 = vld [vmem:[#allocation28_spill] sm:$0xff] }
 0xcb6   :  { %v6191_v54 = vpop.f32.mrf.mxu0  ;;  %v6142_v25 = vpop.f32.mrf.mxu1 }
 0xcb7   :  { %v6442_v27 = vpack.c.bf16 %v6142_v25, %v6093_v42 }
 0xcb8   :  { %v10236_v18 = vpop.f32.mrf.mxu0  ;;  %v10230_v8 = vpop.f32.mrf.mxu1 }
 0xcb9   :  { %9440 = vmatmul.mubr.msk.bf16.vlgmr.msra.gmra.mxu0 %vm2185_vm1, %v6442_v27  ;;  %10276 = vmatprep.mubr.msk.bf16.mxu1 %vm2185_vm1, %v6442_v27  ;;  %v13450_v8 = vld [vmem:[#allocation32_spill] sm:$0xff] }
 0xcba   :  { %v6194_v3 = vpop.f32.mrf.mxu0  ;;  %10297 = vmatpush3.bf16.xpose.msra.mxu0 %v6820_v43  ;;  %v6145_v37 = vpop.f32.mrf.mxu1  ;;  %6580 = vmatprep.mubr.bf16.mxu0 %v13412_v53  ;;  %v12667_v43 = vpack.c.bf16 %v13450_v8, %v13450_v8 }
 0xcbb   :  { %10308 = vmatprep.subr.bf16.mxu0 %v13386_v40  ;;  %v13451_v3 = vld [vmem:[#allocation17_spill] sm:$0xff] }
 0xcbc   :  { %v10237_v13 = vpop.f32.mrf.mxu0  ;;  %v10231_v44 = vpop.f32.mrf.mxu1  ;;  %v12671_v37 = vpack.c.bf16 %v13451_v3, %v13451_v3 }
 0xcbd   :  { %v13452_v13 = vld [vmem:[#allocation19_spill] sm:$0xff] }
 0xcbe   :  { %v12675_v44 = vpack.c.bf16 %v13452_v13, %v13452_v13  ;;  %v13466_v13 = vld [vmem:[#allocation51_spill] sm:$0xff] }
 0xce7   :  { %v6289_v15 = vpop.f32.mrf.mxu0 }
 0xce9   :  { %v10248_v11 = vpop.f32.mrf.mxu0 }
 0xcea   :  { %v13454_v11 = vld [vmem:[#allocation26_spill] sm:$0xff] }
 0xceb   :  { %v6292_v30 = vpop.f32.mrf.mxu0 }
 0xcec   :  { %v6240_v29 = vpop.f32.mrf.mxu1  ;;  %v6912_v30 = vsel %vm2185_vm1, %v12667_v43, 0 }
 0xced   :  { %v6443_v46 = vpack.c.bf16 %v6240_v29, %v6191_v54  ;;  %v10249_v19 = vpop.f32.mrf.mxu0  ;;  %v1846_v54 = vadd.f32 %v13449_v10, %v13448_v33  ;;  %v13464_v10 = vld [vmem:[#allocation37_spill] sm:$0xff] }
 0xcee   :  { %v10242_v5 = vpop.f32.mrf.mxu1  ;;  %v13455_v19 = vld [vmem:[#allocation35_spill] sm:$0xff] }
 0xcef   :  { %9441 = vmatmul.mubr.msk.bf16.gmra.mxu0 %vm2185_vm1, %v6443_v46  ;;  %10277 = vmatmul.mubr.msk.bf16.vlgmr.msra.gmra.mxu1 %vm2185_vm1, %v6443_v46  ;;  %v6387_v60 = vpop.f32.mrf.mxu0  ;;  %v12663_v18 = vpack.c.bf16 %v1846_v54, %v1846_v54  ;;  %v12697_v5 = vpack.c.bf16 %v13455_v19, %v13455_v19  ;;  %v13465_v54 = vld [vmem:[#allocation38_spill] sm:$0xff] }
 0xcf0   :  { %10285 = vmatpush3.bf16.xpose.msra.mxu1 %v6728_v34  ;;  %v6243_v50 = vpop.f32.mrf.mxu1  ;;  %6590 = vmatprep.mubr.bf16.mxu0 %v13412_v53  ;;  %v13456_v34 = vld [vmem:[#allocation18_spill] sm:$0xff] }
 0xcf1   :  { %v10260_v41 = vpop.f32.mrf.mxu0  ;;  %10290 = vmatprep.subr.bf16.mxu1 %v13386_v40  ;;  %v6774_v29 = vsel %vm2185_vm1, %v12663_v18, 0  ;;  %v13457_v50 = vld [vmem:[#allocation21_spill] sm:$0xff] }
 0xcf2   :  { %v10243_v14 = vpop.f32.mrf.mxu1  ;;  %v12705_v41 = vpack.c.bf16 %v13457_v50, %v13457_v50 }
 0xcf3   :  { %v6390_v36 = vpop.f32.mrf.mxu0  ;;  %v13458_v14 = vld [vmem:[#allocation34_spill] sm:$0xff] }
 0xcf4   :  { %v6338_v0 = vpop.f32.mrf.mxu1  ;;  %v13459_v36 = vld [vmem:[#allocation31_spill] sm:$0xff] }
 0xcf5   :  { %v6444_v9 = vpack.c.bf16 %v6338_v0, %v6289_v15  ;;  %v10261_v21 = vpop.f32.mrf.mxu0  ;;  %v13453_v15 = vld [vmem:[#allocation30_spill] sm:$0xff]  ;;  %v1866_v0 = vadd.f32 %v13459_v36, %v13458_v14  ;;  %v13471_v14 = vld [vmem:[#allocation24_spill] sm:$0xff] }
 0xcf6   :  { %v10254_v49 = vpop.f32.mrf.mxu1  ;;  %v1856_v62 = vadd.f32 %v13454_v11, %v13453_v15  ;;  %v13467_v15 = vld [vmem:[#allocation53_spill] sm:$0xff]  ;;  %v12773_v36 = vpack.c.bf16 %v13471_v14, %v13471_v14 }
 0xcf7   :  { %9442 = vmatmul.mubr.msk.bf16.gmra.mxu0 %vm2185_vm1, %v6444_v9  ;;  %10280 = vmatprep.mubr.msk.bf16.mxu1 %vm2185_vm1, %v6444_v9  ;;  %v7004_v9 = vsel %vm2185_vm1, %v12697_v5, 0  ;;  %v12723_v49 = vpack.c.bf16 %v1866_v0, %v1866_v0  ;;  %v9541_v11 = vadd.f32 %v13467_v15, %v13466_v13 }
 0xcf8   :  { %v6341_v7 = vpop.f32.mrf.mxu1  ;;  %6600 = vmatprep.mubr.bf16.mxu0 %v13412_v53  ;;  %v12693_v46 = vpack.c.bf16 %v1856_v62, %v1856_v62  ;;  %v13468_v62 = vld [vmem:[#allocation22_spill] sm:$0xff] }
 0xcf9   :  { %v13460_v7 = vld [vmem:[#allocation52_spill] sm:$0xff]  ;;  %v6958_v8 = vsel %vm2185_vm1, %v12723_v49, 0 }
 0xcfa   :  { %v10255_v28 = vpop.f32.mrf.mxu1  ;;  %v6866_v21 = vsel %vm2185_vm1, %v12693_v46, 0 }
 0xcfb   :  { %v12727_v28 = vpack.c.bf16 %v13460_v7, %v13460_v7 }
 0xcfc   :  { %v6436_v42 = vpop.f32.mrf.mxu1 }
 0xcfd   :  { %v6445_v47 = vpack.c.bf16 %v6436_v42, %v6387_v60  ;;  %v12701_v60 = vpack.c.bf16 %v13456_v34, %v13456_v34  ;;  %13461 = vst [vmem:[#allocation44_spill] sm:$0xff] %v12727_v28  ;;  %v13462_v42 = vld [vmem:[#allocation20_spill] sm:$0xff] }
 0xcfe   :  { %v10266_v35 = vpop.f32.mrf.mxu1 }
 0xcff   :  { %9443 = vmatmul.mubr.msk.bf16.gmra.mxu0 %vm2185_vm1, %v6445_v47  ;;  %10281 = vmatmul.mubr.msk.bf16.gmra.mxu1 %vm2185_vm1, %v6445_v47  ;;  %v12731_v47 = vpack.c.bf16 %v13462_v42, %v13462_v42  ;;  %v13463_v35 = vld [vmem:[#allocation23_spill] sm:$0xff] }
 0xd00   :  { %v6439_v25 = vpop.f32.mrf.mxu1  ;;  %10286 = vmatprep.mubr.msk.bf16.mxu1 %vm11219_vm0, %v13386_v40  ;;  %10298 = vmatprep.mubr.msk.bf16.mxu0 %vm11219_vm0, %v13386_v40  ;;  %v12735_v33 = vpack.c.bf16 %v13463_v35, %v13463_v35 }
 0xd01   :  { %v1876_v25 = vadd.f32 %v13465_v54, %v13464_v10 }
 0xd02   :  { %v10267_v27 = vpop.f32.mrf.mxu1 }
 0xd03   :  { %v7200_v27 = vsel %vm2662_vm2, %v12727_v28, 0  ;;  %v12753_v3 = vpack.c.bf16 %v1876_v25, %v1876_v25 }
 0xd05   :  { %v7050_v34 = vsel %vm2185_vm1, %v12753_v3, 0 }
 0xd07   :  { %10287 = vmatmul.mubr.msk.bf16.vlgmr.msra.gmra.mxu1 %vm2185_vm1, %v12671_v37  ;;  %10299 = vmatmul.mubr.msk.bf16.vlgmr.msra.gmra.mxu0 %vm2185_vm1, %v12675_v44 }
 0xd08   :  { %10291 = vmatpush3.bf16.xpose.msra.mxu1 %v6774_v29  ;;  %10309 = vmatpush3.bf16.xpose.msra.mxu0 %v6912_v30  ;;  %v12759_v30 = vpack.c.bf16 %v13468_v62, %v13468_v62  ;;  %v13469_v29 = vld [vmem:[#allocation54_spill] sm:$0xff] }
 0xd09   :  { %10292 = vmatprep.mubr.msk.bf16.mxu1 %vm11219_vm0, %v13386_v40  ;;  %10302 = vmatprep.subr.bf16.mxu1 %v13386_v40  ;;  %v2127_v19 = vadd.f32 %v9541_v11, %v13469_v29 }
 0xd0a   :  { %10310 = vmatprep.mubr.msk.bf16.mxu0 %vm11219_vm0, %v13386_v40  ;;  %10320 = vmatprep.subr.bf16.mxu0 %v13386_v40 }
 0xd0b   :  { %v12769_v50 = vpack.c.bf16 %v2127_v19, %v2127_v19 }
 0xd0d   :  { %13470 = vst [vmem:[#allocation43_spill] sm:$0xff] %v12769_v50  ;;  %v7246_v0 = vsel %vm2662_vm2, %v12769_v50, 0 }
 0xd0f   :  { %10293 = vmatmul.mubr.msk.bf16.vlgmr.msra.gmra.mxu1 %vm2185_vm1, %v12701_v60  ;;  %10311 = vmatmul.mubr.msk.bf16.vlgmr.msra.gmra.mxu0 %vm2185_vm1, %v12705_v41 }
 0xd10   :  { %10303 = vmatpush3.bf16.xpose.msra.mxu1 %v6866_v21  ;;  %10321 = vmatpush3.bf16.xpose.msra.mxu0 %v7004_v9 }
 0xd11   :  { %10304 = vmatprep.mubr.msk.bf16.mxu1 %vm11219_vm0, %v13386_v40  ;;  %10314 = vmatprep.subr.bf16.mxu1 %v13386_v40 }
 0xd12   :  { %10322 = vmatprep.mubr.msk.bf16.mxu0 %vm11219_vm0, %v13386_v40  ;;  %10332 = vmatprep.subr.bf16.mxu0 %v13386_v40 }
 0xd17   :  { %10305 = vmatmul.mubr.msk.bf16.vlgmr.msra.gmra.mxu1 %vm2185_vm1, %v12731_v47  ;;  %10323 = vmatmul.mubr.msk.bf16.vlgmr.msra.gmra.mxu0 %vm2185_vm1, %v12735_v33 }
 0xd18   :  { %10315 = vmatpush3.bf16.xpose.msra.mxu1 %v6958_v8  ;;  %10333 = vmatpush3.bf16.msra.mxu0 %v7200_v27 }
 0xd19   :  { %10316 = vmatprep.mubr.msk.bf16.mxu1 %vm11219_vm0, %v13386_v40  ;;  %10326 = vmatprep.subr.bf16.mxu1 %v13386_v40 }
 0xd1a   :  { %10334 = vmatprep.mubr.msk.bf16.mxu0 %vm11219_vm0, %v13386_v40  ;;  %10344 = vmatprep.subr.bf16.mxu0 %v13386_v40 }
 0xd1f   :  { %10317 = vmatmul.mubr.msk.bf16.vlgmr.msra.gmra.mxu1 %vm2185_vm1, %v12759_v30 }
 0xd20   :  { %10327 = vmatpush3.bf16.xpose.msra.mxu1 %v7050_v34  ;;  %10328 = vmatprep.mubr.msk.bf16.mxu1 %vm11219_vm0, %v13386_v40 }
 0xd21   :  { %10338 = vmatprep.subr.bf16.mxu1 %v13386_v40 }
 0xd27   :  { %10329 = vmatmul.mubr.msk.bf16.vlgmr.msra.gmra.mxu1 %vm2185_vm1, %v12773_v36 }
 0xd28   :  { %10339 = vmatpush3.bf16.msra.mxu1 %v7246_v0  ;;  %10340 = vmatprep.mubr.msk.bf16.mxu1 %vm11219_vm0, %v13386_v40 }
 0xd29   :  { %10350 = vmatprep.subr.bf16.mxu1 %v13386_v40 }
 0xd79   :  { %v6572_v9 = vpop.f32.mrf.mxu0 }
 0xd7a   :  { %v12783_v21 = vadd.f32 %v6572_v9, %v12454_v1 }
 0xd7b   :  { %v6574_v7 = vpop.f32.mrf.mxu0 }
 0xd7c   :  { %v12786_v42 = vadd.f32 %v6574_v7, %v12458_v31 }
 0xd7d   :  { %v6576_v35 = vpop.f32.mrf.mxu0 }
 0xd7e   :  { %v12789_v10 = vadd.f32 %v6576_v35, %v12460_v20 }
 0xd7f   :  { %v12791_v54 = vpop.f32.mrf.mxu0 }
 0xdaf   :  { %v6582_v25 = vpop.f32.mrf.mxu0  ;;  %v10278_v27 = vpop.f32.mrf.mxu1 }
 0xdb0   :  { %v12794_v8 = vadd.f32 %v6582_v25, %v12465_v23  ;;  %v12797_v13 = vadd.f32 %v10278_v27, %v12468_v4 }
 0xdb1   :  { %v6584_v1 = vpop.f32.mrf.mxu0  ;;  %v6645_v15 = vpop.f32.mrf.mxu1 }
 0xdb2   :  { %v12800_v11 = vadd.f32 %v6584_v1, %v12471_v17  ;;  %v12803_v31 = vadd.f32 %v6645_v15, %v12474_v39 }
 0xdb3   :  { %v6586_v20 = vpop.f32.mrf.mxu0  ;;  %v10279_v62 = vpop.f32.mrf.mxu1 }
 0xdb4   :  { %v12806_v29 = vadd.f32 %v6586_v20, %v12477_v51  ;;  %v12809_v19 = vadd.f32 %v10279_v62, %v12480_v24 }
 0xdb5   :  { %v12811_v23 = vpop.f32.mrf.mxu0  ;;  %v12822_v9 = vpop.f32.mrf.mxu1 }
 0xdb7   :  { %v6592_v4 = vpop.f32.mrf.mxu0 }
 0xdb8   :  { %v12814_v34 = vadd.f32 %v6592_v4, %v12485_v57 }
 0xdb9   :  { %v6594_v14 = vpop.f32.mrf.mxu0 }
 0xdba   :  { %v12817_v17 = vadd.f32 %v6594_v14, %v12488_v32 }
 0xdbb   :  { %v6596_v39 = vpop.f32.mrf.mxu0 }
 0xdbc   :  { %v12820_v0 = vadd.f32 %v6596_v39, %v12491_v26 }
 0xdbd   :  { %v12824_v51 = vpop.f32.mrf.mxu0 }
 0xdbf   :  { %v6602_v24 = vpop.f32.mrf.mxu0  ;;  %v10282_v7 = vpop.f32.mrf.mxu1 }
 0xdc0   :  { %v12827_v35 = vadd.f32 %v6602_v24, %v12498_v16  ;;  %v12830_v57 = vadd.f32 %v10282_v7, %v12501_v22 }
 0xdc1   :  { %v6604_v25 = vpop.f32.mrf.mxu0  ;;  %v6661_v27 = vpop.f32.mrf.mxu1 }
 0xdc2   :  { %v12833_v32 = vadd.f32 %v6604_v25, %v12504_v61  ;;  %v12836_v26 = vadd.f32 %v6661_v27, %v12507_v63 }
 0xdc3   :  { %v6606_v1 = vpop.f32.mrf.mxu0  ;;  %v10283_v15 = vpop.f32.mrf.mxu1 }
 0xdc4   :  { %13472 = vst [vmem:[#allocation47_spill] sm:$0xff] %v12833_v32  ;;  %13473 = vst [vmem:[#allocation46_spill] sm:$0xff] %v12836_v26  ;;  %v12839_v20 = vadd.f32 %v6606_v1, %v12510_v58  ;;  %v12842_v62 = vadd.f32 %v10283_v15, %v12513_v2 }
 0xdc5   :  { %v12844_v16 = vpop.f32.mrf.mxu0  ;;  %v12846_v22 = vpop.f32.mrf.mxu1 }
 0xdc6   :  { %13474 = vst [vmem:[#allocation48_spill] sm:$0xff] %v12839_v20  ;;  %13475 = vst [vmem:[#allocation50_spill] sm:$0xff] %v12842_v62 }
 0xdc7   :  { %13476 = vst [vmem:[#allocation49_spill] sm:$0xff] %v12844_v16  ;;  %13477 = vst [vmem:[#allocation29_spill] sm:$0xff] %v12846_v22  ;;  %v6764_v4 = vpop.f32.mrf.mxu1  ;;  %v6856_v14 = vpop.f32.mrf.mxu0 }
 0xdc8   :  { %v7092_v61 = vsel %vm11648_vm3, %v6764_v4, -1e+30  ;;  %v7094_v58 = vsel %vm11648_vm3, %v6856_v14, -1e+30 }
 0xdc9   :  { %v7100_v63 = vsel %vm2562_vm4, %v7092_v61, -inf  ;;  %v10288_v39 = vpop.f32.mrf.mxu1  ;;  %v10300_v24 = vpop.f32.mrf.mxu0  ;;  %v7106_v25 = vsel %vm2562_vm4, %v7094_v58, -inf }
 0xdca   :  { %7101 = vmax.xlane.f32.xlu0 %v7100_v63 }
 0xdcb   :  { %v6767_v7 = vpop.f32.mrf.mxu1  ;;  %v6859_v2 = vpop.f32.mrf.mxu0 }
 0xdcd   :  { %v10289_v27 = vpop.f32.mrf.mxu1  ;;  %v10301_v1 = vpop.f32.mrf.mxu0 }
 0xdce   :  { %7107 = vmax.xlane.f32.xlu0 %v7106_v25 }
 0xdcf   :  { %v6810_v15 = vpop.f32.mrf.mxu1  ;;  %v6948_v28 = vpop.f32.mrf.mxu0 }
 0xdd0   :  { %v7093_v4 = vsel %vm11648_vm3, %v6810_v15, -1e+30  ;;  %v7096_v15 = vsel %vm11648_vm3, %v6948_v28, -1e+30 }
 0xdd1   :  { %v7103_v50 = vsel %vm2562_vm4, %v7093_v4, -inf  ;;  %v10294_v39 = vpop.f32.mrf.mxu1  ;;  %v10312_v24 = vpop.f32.mrf.mxu0 }
 0xdd2   :  { %7104 = vmax.xlane.f32.xlu1 %v7103_v50  ;;  %v7112_v50 = vsel %vm2562_vm4, %v7096_v15, -inf }
 0xdd3   :  { %v6813_v62 = vpop.f32.mrf.mxu1  ;;  %v6951_v14 = vpop.f32.mrf.mxu0 }
 0xdd5   :  { %v10295_v63 = vpop.f32.mrf.mxu1  ;;  %v10313_v7 = vpop.f32.mrf.mxu0 }
 0xdd7   :  { %v6902_v2 = vpop.f32.mrf.mxu1  ;;  %v7040_v20 = vpop.f32.mrf.mxu0 }
 0xdd8   :  { %v7095_v27 = vsel %vm11648_vm3, %v6902_v2, -1e+30  ;;  %v7098_v63 = vsel %vm11648_vm3, %v7040_v20, -1e+30 }
 0xdd9   :  { %v7109_v25 = vsel %vm2562_vm4, %v7095_v27, -inf  ;;  %v10306_v1 = vpop.f32.mrf.mxu1  ;;  %v10324_v22 = vpop.f32.mrf.mxu0 }
 0xdda   :  { %7110 = vmax.xlane.f32.xlu0 %v7109_v25  ;;  %v7118_v22 = vsel %vm2562_vm4, %v7098_v63, -inf }
 0xddb   :  { %v6905_v39 = vpop.f32.mrf.mxu1  ;;  %v7043_v24 = vpop.f32.mrf.mxu0 }
 0xddd   :  { %v10307_v62 = vpop.f32.mrf.mxu1  ;;  %v10325_v14 = vpop.f32.mrf.mxu0 }
 0xdde   :  { %7113 = vmax.xlane.f32.xlu0 %v7112_v50 }
 0xddf   :  { %v6994_v7 = vpop.f32.mrf.mxu1 }
 0xde0   :  { %v7097_v2 = vsel %vm11648_vm3, %v6994_v7, -1e+30 }
 0xde1   :  { %v7115_v1 = vsel %vm2562_vm4, %v7097_v2, -inf  ;;  %v10318_v28 = vpop.f32.mrf.mxu1 }
 0xde2   :  { %7119 = vmax.xlane.f32.xlu0 %v7118_v22  ;;  %7116 = vmax.xlane.f32.xlu1 %v7115_v1 }
 0xde3   :  { %v6997_v25 = vpop.f32.mrf.mxu1 }
 0xde5   :  { %v10319_v39 = vpop.f32.mrf.mxu1 }
 0xde7   :  { %v7086_v24 = vpop.f32.mrf.mxu1 }
 0xde8   :  { %v7099_v62 = vsel %vm11648_vm3, %v7086_v24, -1e+30 }
 0xde9   :  { %v7121_v20 = vsel %vm2562_vm4, %v7099_v62, -inf  ;;  %v10330_v50 = vpop.f32.mrf.mxu1 }
 0xdea   :  { %7122 = vmax.xlane.f32.xlu1 %v7121_v20 }
 0xdeb   :  { %v7089_v14 = vpop.f32.mrf.mxu1 }
 0xded   :  { %v10331_v16 = vpop.f32.mrf.mxu1 }
 0xe53   :  { %v7102_v7 = vpop.xlane.xlu0 %7101 }
 0xe54   :  { %v7124_v26 = vsub.f32 %v7092_v61, %v7102_v7 }
 0xe56   :  { %v7132_v32 = vmul.f32 1.442695, %v7124_v26 }
 0xe57   :  { %v7108_v12 = vpop.xlane.xlu0 %7107 }
 0xe58   :  { %11058 = vpow2.f32 %v7132_v32  ;;  %v7126_v28 = vsub.f32 %v7094_v58, %v7108_v12 }
 0xe5a   :  { %v7136_v22 = vmul.f32 1.442695, %v7126_v28 }
 0xe5b   :  { %v7105_v1 = vpop.xlane.xlu1 %7104 }
 0xe5c   :  { %11060 = vpow2.f32 %v7136_v22  ;;  %v7125_v25 = vsub.f32 %v7093_v4, %v7105_v1 }
 0xe5e   :  { %v7134_v39 = vmul.f32 1.442695, %v7125_v25 }
 0xe60   :  { %11062 = vpow2.f32 %v7134_v39 }
 0xe63   :  { %v7111_v48 = vpop.xlane.xlu0 %7110 }
 0xe64   :  { %v7127_v24 = vsub.f32 %v7095_v27, %v7111_v48 }
 0xe65   :  { %v12872_v45 = vpop.eup %11058 }
 0xe66   :  { %v7138_v50 = vmul.f32 1.442695, %v7127_v24  ;;  %v7148_v16 = vsel %vm2562_vm4, %v12872_v45, 0.0 }
 0xe67   :  { %7149 = vadd.xlane.f32.xlu0 %v7148_v16  ;;  %v7114_v61 = vpop.xlane.xlu0 %7113 }
 0xe68   :  { %11064 = vpow2.f32 %v7138_v50  ;;  %v7128_v26 = vsub.f32 %v7096_v15, %v7114_v61 }
 0xe69   :  { %v12876_v32 = vpop.eup %11060 }
 0xe6a   :  { %v7140_v12 = vmul.f32 1.442695, %v7128_v26  ;;  %v7154_v58 = vsel %vm2562_vm4, %v12876_v32, 0.0 }
 0xe6b   :  { %7155 = vadd.xlane.f32.xlu0 %v7154_v58  ;;  %v7120_v4 = vpop.xlane.xlu0 %7119  ;;  %v7117_v20 = vpop.xlane.xlu1 %7116  ;;  %v13481_v58 = vld [vmem:[#allocation59_spill] sm:$0xff] }
 0xe6c   :  { %11066 = vpow2.f32 %v7140_v12  ;;  %v7130_v48 = vsub.f32 %v7098_v63, %v7120_v4  ;;  %v7129_v27 = vsub.f32 %v7097_v2, %v7117_v20  ;;  %v13482_v20 = vld [vmem:[#allocation58_spill] sm:$0xff] }
 0xe6d   :  { %v12880_v14 = vpop.eup %11062 }
 0xe6e   :  { %v7144_v7 = vmul.f32 1.442695, %v7130_v48  ;;  %v7142_v28 = vmul.f32 1.442695, %v7129_v27  ;;  %v7151_v22 = vsel %vm2562_vm4, %v12880_v14, 0.0  ;;  %v12956_v48 = vpack.c.bf16 %v13482_v20, %v13482_v20 }
 0xe6f   :  { %7152 = vadd.xlane.f32.xlu1 %v7151_v22 }
 0xe70   :  { %11068 = vpow2.f32 %v7144_v7 }
 0xe71   :  { %11070 = vpow2.f32 %v7142_v28 }
 0xe73   :  { %v7123_v15 = vpop.xlane.xlu1 %7122 }
 0xe74   :  { %v7131_v1 = vsub.f32 %v7099_v62, %v7123_v15 }
 0xe75   :  { %v12884_v25 = vpop.eup %11064 }
 0xe76   :  { %v7146_v39 = vmul.f32 1.442695, %v7131_v1  ;;  %v7157_v24 = vsel %vm2562_vm4, %v12884_v25, 0.0  ;;  %v7384_v1 = vsel %vm2662_vm2, %v12956_v48, 0 }
 0xe77   :  { %7158 = vadd.xlane.f32.xlu1 %v7157_v24 }
 0xe78   :  { %11072 = vpow2.f32 %v7146_v39  ;;  %v13483_v39 = vld [vmem:[#allocation63_spill] sm:$0xff] }
 0xe79   :  { %v12888_v63 = vpop.eup %11066 }
 0xe7a   :  { %v7160_v2 = vsel %vm2562_vm4, %v12888_v63, 0.0 }
 0xe7b   :  { %7161 = vadd.xlane.f32.xlu0 %v7160_v2 }
 0xe7d   :  { %v12892_v50 = vpop.eup %11068 }
 0xe7e   :  { %v12894_v16 = vpop.eup %11070  ;;  %v7166_v62 = vsel %vm2562_vm4, %v12892_v50, 0.0 }
 0xe7f   :  { %7167 = vadd.xlane.f32.xlu0 %v7166_v62  ;;  %v7163_v61 = vsel %vm2562_vm4, %v12894_v16, 0.0 }
 0xe80   :  { %7164 = vadd.xlane.f32.xlu1 %v7163_v61 }
 0xe85   :  { %v12900_v26 = vpop.eup %11072 }
 0xe86   :  { %v7169_v12 = vsel %vm2562_vm4, %v12900_v26, 0.0 }
 0xe87   :  { %7170 = vadd.xlane.f32.xlu1 %v7169_v12 }
 0xe95   :  { %7826 = vrot.lane.b32.xlu0 %v12644_v55, %s11220_s0 }
 0xe98   :  { %7823 = vrot.lane.b32.xlu1 %v12671_v37, %s11220_s0  ;;  %v13478_v37 = vld [vmem:[#allocation55_spill] sm:$0xff] }
 0xe99   :  { %7930 = vrot.lane.b32.xlu0 %v12634_v56, %s11220_s0 }
 0xe9c   :  { %7878 = vrot.lane.b32.xlu1 %v12663_v18, %s11220_s0 }
 0xe9d   :  { %7927 = vrot.lane.b32.xlu0 %v12675_v44, %s11220_s0  ;;  %v12938_v44 = vpack.c.bf16 %v13478_v37, %v13478_v37 }
 0xea0   :  { %7875 = vrot.lane.b32.xlu1 %v12701_v60, %s11220_s0 }
 0xea1   :  { %8034 = vrot.lane.b32.xlu0 %v12667_v43, %s11220_s0 }
 0xea4   :  { %7982 = vrot.lane.b32.xlu1 %v12693_v46, %s11220_s0 }
 0xea5   :  { %8031 = vrot.lane.b32.xlu0 %v12705_v41, %s11220_s0 }
 0xea8   :  { %7979 = vrot.lane.b32.xlu1 %v12731_v47, %s11220_s0 }
 0xea9   :  { %8138 = vrot.lane.b32.xlu0 %v12697_v5, %s11220_s0 }
 0xeac   :  { %8086 = vrot.lane.b32.xlu1 %v12723_v49, %s11220_s0  ;;  %v7292_v49 = vsel %vm2662_vm2, %v12938_v44, 0 }
 0xead   :  { %8135 = vrot.lane.b32.xlu0 %v12735_v33, %s11220_s0 }
 0xeb0   :  { %8083 = vrot.lane.b32.xlu1 %v12759_v30, %s11220_s0 }
 0xeb4   :  { %8190 = vrot.lane.b32.xlu1 %v12753_v3, %s11220_s0  ;;  %v13479_v3 = vld [vmem:[#allocation56_spill] sm:$0xff] }
 0xeb5   :  { %v12950_v30 = vpack.c.bf16 %v13479_v3, %v13479_v3 }
 0xeb7   :  { %v7338_v15 = vsel %vm2662_vm2, %v12950_v30, 0 }
 0xeb8   :  { %8187 = vrot.lane.b32.xlu1 %v12773_v36, %s11220_s0  ;;  %v13480_v36 = vld [vmem:[#allocation57_spill] sm:$0xff] }
 0xeb9   :  { %v9553_v4 = vadd.f32 %v13481_v58, %v13480_v36  ;;  %v10898_v36 = vld [vmem:[#allocation7 + $0x1c8] ss:$12 sps:$4 sm:$0xff]  }
 0xebb   :  { %v2143_v24 = vadd.f32 %v9553_v4, %v13483_v39  ;;  %v10913_v39 = vld [vmem:[#allocation7 + $0x188] ss:$12 sps:$4 sm:$0xff]  }
 0xebd   :  { %v12972_v2 = vpack.c.bf16 %v2143_v24, %v2143_v24 }
 0xebf   :  { %v7430_v37 = vsel %vm2662_vm2, %v12972_v2, 0 }
 0xef0   :  { %v7150_v56 = vpop.xlane.xlu0 %7149 }
 0xef1   :  { %11074 = vrcp.f32 %v7150_v56 }
 0xef4   :  { %v7156_v55 = vpop.xlane.xlu0 %7155 }
 0xef5   :  { %11076 = vrcp.f32 %v7156_v55  ;;  %v13484_v55 = vld [vmem:[#allocation60_spill] sm:$0xff] }
 0xef8   :  { %v7153_v18 = vpop.xlane.xlu1 %7152 }
 0xef9   :  { %11078 = vrcp.f32 %v7153_v18  ;;  %v12977_v18 = vpack.c.bf16 %v13484_v55, %v13484_v55 }
 0xefe   :  { %v11075_v43 = vpop.eup %11074 }
 0xeff   :  { %v7180_v46 = vmul.f32 %v11075_v43, %v12872_v45 }
 0xf00   :  { %v7159_v5 = vpop.xlane.xlu1 %7158 }
 0xf01   :  { %v7188_v60 = vpack.c.bf16 %v7180_v46, %v7180_v46  ;;  %11080 = vrcp.f32 %v7159_v5  ;;  %v10900_v46 = vld [vmem:[#allocation7 + $0x1cc] ss:$12 sps:$4 sm:$0xff]  }
 0xf02   :  { %v11077_v41 = vpop.eup %11076 }
 0xf03   :  { %10335 = vmatmul.mubr.msk.bf16.vlgmr.msra.gmra.mxu0 %vm2562_vm4, %v7188_v60  ;;  %v7182_v33 = vmul.f32 %v11077_v41, %v12876_v32  ;;  %v13485_v41 = vld [vmem:[#allocation61_spill] sm:$0xff] }
 0xf04   :  { %10345 = vmatpush3.bf16.msra.mxu0 %v7292_v49  ;;  %v7162_v47 = vpop.xlane.xlu0 %7161  ;;  %10346 = vmatprep.mubr.msk.bf16.mxu0 %vm11219_vm0, %v13386_v40  ;;  %v12991_v49 = vpack.c.bf16 %v13485_v41, %v13485_v41 }
 0xf05   :  { %11082 = vrcp.f32 %v7162_v47  ;;  %10356 = vmatprep.subr.bf16.mxu0 %v13386_v40  ;;  %v7190_v28 = vpack.c.bf16 %v7182_v33, %v7182_v33 }
 0xf06   :  { %v11079_v45 = vpop.eup %11078  ;;  %v7522_v3 = vsel %vm2662_vm2, %v12991_v49, 0 }
 0xf07   :  { %v7181_v27 = vmul.f32 %v11079_v45, %v12880_v14 }
 0xf08   :  { %v7168_v7 = vpop.xlane.xlu0 %7167 }
 0xf09   :  { %v7189_v32 = vpack.c.bf16 %v7181_v27, %v7181_v27  ;;  %11084 = vrcp.f32 %v7168_v7  ;;  %v7165_v22 = vpop.xlane.xlu1 %7164  ;;  %v10904_v7 = vld [vmem:[#allocation7 + $0x198] ss:$12 sps:$4 sm:$0xff]  }
 0xf0a   :  { %11086 = vrcp.f32 %v7165_v22  ;;  %v10908_v22 = vld [vmem:[#allocation7 + $0x180] ss:$12 sps:$4 sm:$0xff]  }
 0xf0b   :  { %10341 = vmatmul.mubr.msk.bf16.vlgmr.msra.gmra.mxu1 %vm2562_vm4, %v7189_v32  ;;  %10347 = vmatmul.mubr.msk.bf16.vlgmr.msra.gmra.mxu0 %vm2562_vm4, %v7190_v28  ;;  %v10906_v28 = vld [vmem:[#allocation7 + $0x19c] ss:$12 sps:$4 sm:$0xff]  }
 0xf0c   :  { %10351 = vmatpush3.bf16.msra.mxu1 %v7338_v15  ;;  %10357 = vmatpush3.bf16.msra.mxu0 %v7384_v1  ;;  %v10907_v32 = vld [vmem:[#allocation7 + $0x1d0] ss:$12 sps:$4 sm:$0xff]   ;;  %v10911_v15 = vld [vmem:[#allocation7 + $0x1b8] ss:$12 sps:$4 sm:$0xff]   ;;  %v10912_v1 = vld [vmem:[#allocation7 + $0x1a0] ss:$12 sps:$4 sm:$0xff]  }
 0xf0d   :  { %10352 = vmatprep.mubr.msk.bf16.mxu1 %vm11219_vm0, %v13386_v40  ;;  %10362 = vmatprep.subr.bf16.mxu1 %v13386_v40 }
 0xf0e   :  { %v11081_v14 = vpop.eup %11080  ;;  %10358 = vmatprep.mubr.msk.bf16.mxu0 %vm11219_vm0, %v13386_v40  ;;  %10368 = vmatprep.subr.bf16.mxu0 %v13386_v40 }
 0xf0f   :  { %v7183_v62 = vmul.f32 %v11081_v14, %v12884_v25  ;;  %v7827_v14 = vpop.permute.xlu0 %7826 }
 0xf10   :  { %v7171_v61 = vpop.xlane.xlu1 %7170 }
 0xf11   :  { %v7191_v12 = vpack.c.bf16 %v7183_v62, %v7183_v62  ;;  %11088 = vrcp.f32 %v7171_v61 }
 0xf12   :  { %v11083_v56 = vpop.eup %11082 }
 0xf13   :  { %v7184_v43 = vmul.f32 %v11083_v56, %v12888_v63  ;;  %10353 = vmatmul.mubr.msk.bf16.vlgmr.msra.gmra.mxu1 %vm2562_vm4, %v7191_v12  ;;  %v7476_v63 = vsel %vm2662_vm2, %v12977_v18, 0  ;;  %v7931_v56 = vpop.permute.xlu0 %7930 }
 0xf14   :  { %10363 = vmatpush3.bf16.msra.mxu1 %v7430_v37  ;;  %10364 = vmatprep.mubr.msk.bf16.mxu1 %vm11219_vm0, %v13386_v40 }
 0xf15   :  { %v7192_v25 = vpack.c.bf16 %v7184_v43, %v7184_v43  ;;  %10374 = vmatprep.subr.bf16.mxu1 %v13386_v40 }
 0xf16   :  { %v11085_v5 = vpop.eup %11084 }
 0xf17   :  { %v11087_v60 = vpop.eup %11086  ;;  %10359 = vmatmul.mubr.msk.bf16.vlgmr.msra.gmra.mxu0 %vm2562_vm4, %v7192_v25  ;;  %v7186_v33 = vmul.f32 %v11085_v5, %v12892_v50  ;;  %v10901_v50 = vld [vmem:[#allocation7 + $0x1b0] ss:$12 sps:$4 sm:$0xff]   ;;  %v7936_v5 = vsel %vm2185_vm1, %v7931_v56, 0 }
 0xf18   :  { %v7185_v47 = vmul.f32 %v11087_v60, %v12894_v16  ;;  %10369 = vmatpush3.bf16.msra.mxu0 %v7476_v63  ;;  %10370 = vmatprep.mubr.msk.bf16.mxu0 %vm11219_vm0, %v13386_v40  ;;  %v10903_v16 = vld [vmem:[#allocation7 + $0x1b4] ss:$12 sps:$4 sm:$0xff]  }
 0xf19   :  { %7668 = vmatprep.subr.bf16.mxu0 %v10900_v46  ;;  %v7194_v58 = vpack.c.bf16 %v7186_v33, %v7186_v33 }
 0xf1a   :  { %v7193_v45 = vpack.c.bf16 %v7185_v47, %v7185_v47 }
 0xf1c   :  { %10365 = vmatmul.mubr.msk.bf16.vlgmr.msra.gmra.mxu1 %vm2562_vm4, %v7193_v45 }
 0xf1d   :  { %10375 = vmatpush3.bf16.msra.mxu1 %v7522_v3  ;;  %10376 = vmatprep.mubr.msk.bf16.mxu1 %vm11219_vm0, %v13386_v40 }
 0xf1e   :  { %v11089_v4 = vpop.eup %11088  ;;  %10380 = vmatprep.subr.bf16.mxu1 %v10907_v32 }
 0xf1f   :  { %v7187_v20 = vmul.f32 %v11089_v4, %v12900_v26  ;;  %10371 = vmatmul.mubr.msk.bf16.vlgmr.msra.gmra.mxu0 %vm2562_vm4, %v7194_v58  ;;  %v10910_v26 = vld [vmem:[#allocation7 + $0x184] ss:$12 sps:$4 sm:$0xff]  }
 0xf20   :  { %7669 = vmatpush1.bf16.msra.mxu0 %v10898_v36  ;;  %7692 = vmatprep.mubr.bf16.mxu0 %v13412_v53  ;;  %v7832_v36 = vsel %vm2185_vm1, %v7827_v14, 0 }
 0xf21   :  { %v7195_v27 = vpack.c.bf16 %v7187_v20, %v7187_v20  ;;  %7670 = vmatprep.subr.bf16.mxu0 %v10903_v16 }
 0xf24   :  { %10377 = vmatmul.mubr.msk.bf16.vlgmr.msra.gmra.mxu1 %vm2562_vm4, %v7195_v27  ;;  %7671 = vmatpush1.bf16.msra.mxu0 %v10901_v50  ;;  %v7824_v50 = vpop.permute.xlu1 %7823 }
 0xf25   :  { %7672 = vmatprep.subr.bf16.mxu0 %v10906_v28  ;;  %10381 = vmatpush3.bf16.msra.mxu1 %v10907_v32 }
 0xf26   :  { %10382 = vmatprep.subr.bf16.mxu1 %v10911_v15 }
 0xf28   :  { %7673 = vmatpush1.bf16.msra.mxu0 %v10904_v7 }
 0xf29   :  { %7674 = vmatprep.subr.bf16.mxu0 %v10910_v26  ;;  %10383 = vmatpush3.bf16.msra.mxu1 %v10911_v15  ;;  %v7879_v15 = vpop.permute.xlu1 %7878 }
 0xf2a   :  { %10384 = vmatprep.subr.bf16.mxu1 %v10912_v1 }
 0xf2c   :  { %7675 = vmatpush1.bf16.msra.mxu0 %v10908_v22 }
 0xf2d   :  { %10408 = vmatprep.subr.bf16.mxu0 %v13386_v40  ;;  %10385 = vmatpush3.bf16.msra.mxu1 %v10912_v1 }
 0xf2e   :  { %10386 = vmatprep.subr.bf16.mxu1 %v10913_v39 }
 0xf31   :  { %10387 = vmatpush3.bf16.msra.mxu1 %v10913_v39 }
 0xf32   :  { %10396 = vmatprep.subr.bf16.mxu1 %v13386_v40 }
 0xfc3   :  { %v7236_v24 = vpop.f32.mrf.mxu0 }
 0xfc5   :  { %v10336_v62 = vpop.f32.mrf.mxu0 }
 0xfc7   :  { %v7239_v61 = vpop.f32.mrf.mxu0 }
 0xfc9   :  { %v10337_v12 = vpop.f32.mrf.mxu0 }
 0xfcb   :  { %v7282_v55 = vpop.f32.mrf.mxu1  ;;  %v7328_v43 = vpop.f32.mrf.mxu0 }
 0xfcc   :  { %v7564_v37 = vpack.c.bf16 %v7282_v55, %v7236_v24  ;;  %v7928_v24 = vpop.permute.xlu0 %7927  ;;  %v7876_v55 = vpop.permute.xlu1 %7875 }
 0xfcd   :  { %v10342_v25 = vpop.f32.mrf.mxu1  ;;  %v10348_v46 = vpop.f32.mrf.mxu0 }
 0xfce   :  { %9476 = vmatmul.mubr.msk.bf16.vlgmr.msra.gmra.mxu0 %vm2185_vm1, %v7564_v37  ;;  %10388 = vmatprep.mubr.msk.bf16.mxu1 %vm2185_vm1, %v7564_v37 }
 0xfcf   :  { %10409 = vmatpush3.bf16.xpose.msra.mxu0 %v7936_v5  ;;  %v7285_v60 = vpop.f32.mrf.mxu1  ;;  %v7331_v63 = vpop.f32.mrf.mxu0  ;;  %7702 = vmatprep.mubr.bf16.mxu0 %v13412_v53 }
 0xfd0   :  { %10420 = vmatprep.subr.bf16.mxu0 %v13386_v40  ;;  %v8035_v37 = vpop.permute.xlu0 %8034  ;;  %v7983_v5 = vpop.permute.xlu1 %7982 }
 0xfd1   :  { %v10343_v41 = vpop.f32.mrf.mxu1  ;;  %v10349_v47 = vpop.f32.mrf.mxu0  ;;  %v8040_v63 = vsel %vm2185_vm1, %v8035_v37, 0 }
 0xfd2   :  { %v7884_v41 = vsel %vm2185_vm1, %v7879_v15, 0 }
 0xfd3   :  { %v7374_v33 = vpop.f32.mrf.mxu1 }
 0xfd4   :  { %v7565_v45 = vpack.c.bf16 %v7374_v33, %v7328_v43  ;;  %v8032_v60 = vpop.permute.xlu0 %8031  ;;  %v7980_v47 = vpop.permute.xlu1 %7979 }
 0xfd5   :  { %v10354_v3 = vpop.f32.mrf.mxu1 }
 0xfd6   :  { %9477 = vmatmul.mubr.msk.bf16.gmra.mxu0 %vm2185_vm1, %v7565_v45  ;;  %10389 = vmatmul.mubr.msk.bf16.vlgmr.msra.gmra.mxu1 %vm2185_vm1, %v7565_v45  ;;  %v7988_v3 = vsel %vm2185_vm1, %v7983_v5, 0 }
 0xfd7   :  { %10397 = vmatpush3.bf16.xpose.msra.mxu1 %v7832_v36  ;;  %v7377_v58 = vpop.f32.mrf.mxu1  ;;  %v7420_v16 = vpop.f32.mrf.mxu0  ;;  %7712 = vmatprep.mubr.bf16.mxu0 %v13412_v53 }
 0xfd8   :  { %10402 = vmatprep.subr.bf16.mxu1 %v13386_v40  ;;  %v8139_v33 = vpop.permute.xlu0 %8138  ;;  %v8087_v36 = vpop.permute.xlu1 %8086 }
 0xfd9   :  { %v10355_v4 = vpop.f32.mrf.mxu1  ;;  %v10360_v20 = vpop.f32.mrf.mxu0  ;;  %v8144_v45 = vsel %vm2185_vm1, %v8139_v33, 0 }
 0xfda   :  { %v8092_v4 = vsel %vm2185_vm1, %v8087_v36, 0 }
 0xfdb   :  { %v7423_v27 = vpop.f32.mrf.mxu0 }
 0xfdc   :  { %v7466_v7 = vpop.f32.mrf.mxu1  ;;  %v8136_v58 = vpop.permute.xlu0 %8135 }
 0xfdd   :  { %v7566_v28 = vpack.c.bf16 %v7466_v7, %v7420_v16  ;;  %v10361_v32 = vpop.f32.mrf.mxu0  ;;  %v8084_v16 = vpop.permute.xlu1 %8083 }
 0xfde   :  { %v10366_v22 = vpop.f32.mrf.mxu1  ;;  %v13487_v32 = vld [vmem:[#allocation41_spill] sm:$0xff] }
 0xfdf   :  { %9478 = vmatmul.mubr.msk.bf16.gmra.mxu0 %vm2185_vm1, %v7566_v28  ;;  %10392 = vmatprep.mubr.msk.bf16.mxu1 %vm2185_vm1, %v7566_v28  ;;  %v7512_v26 = vpop.f32.mrf.mxu0  ;;  %v13486_v28 = vld [vmem:[#allocation33_spill] sm:$0xff] }
 0xfe0   :  { %v7469_v1 = vpop.f32.mrf.mxu1  ;;  %7722 = vmatprep.mubr.bf16.mxu0 %v13412_v53  ;;  %v4311_v22 = vadd.f32 %v13487_v32, %v13486_v28 }
 0xfe1   :  { %v10372_v39 = vpop.f32.mrf.mxu0  ;;  %v8191_v20 = vpop.permute.xlu1 %8190 }
 0xfe2   :  { %v10367_v14 = vpop.f32.mrf.mxu1  ;;  %v5510_v1 = vadd.f32 %v12462_v38, %v4311_v22 }
 0xfe3   :  { %v7515_v62 = vpop.f32.mrf.mxu0 }
 0xfe4   :  { %v7558_v61 = vpop.f32.mrf.mxu1  ;;  %v6680_v14 = vadd.f32 %v12791_v54, %v5510_v1  ;;  %v13494_v1 = vld [vmem:[#allocation36_spill] sm:$0xff] }
 0xfe5   :  { %v7567_v12 = vpack.c.bf16 %v7558_v61, %v7512_v26  ;;  %v10373_v56 = vpop.f32.mrf.mxu0  ;;  %v8188_v27 = vpop.permute.xlu1 %8187 }
 0xfe6   :  { %v10378_v43 = vpop.f32.mrf.mxu1 }
 0xfe7   :  { %9479 = vmatmul.mubr.msk.bf16.gmra.mxu0 %vm2185_vm1, %v7567_v12  ;;  %10393 = vmatmul.mubr.msk.bf16.gmra.mxu1 %vm2185_vm1, %v7567_v12  ;;  %v13488_v43 = vld [vmem:[#allocation14_spill] sm:$0xff] }
 0xfe8   :  { %v7561_v25 = vpop.f32.mrf.mxu1  ;;  %10398 = vmatprep.mubr.msk.bf16.mxu1 %vm11219_vm0, %v13386_v40  ;;  %10410 = vmatprep.mubr.msk.bf16.mxu0 %vm11219_vm0, %v13386_v40 }
 0xfe9   :  { %v13490_v25 = vld [vmem:[#allocation39_spill] sm:$0xff] }
 0xfea   :  { %v10379_v46 = vpop.f32.mrf.mxu1 }
 0xfeb   :  { %v13491_v46 = vld [vmem:[#allocation16_spill] sm:$0xff] }
 0xfec   :  { %v4321_v38 = vadd.f32 %v13491_v46, %v13490_v25  ;;  %v13500_v25 = vld [vmem:[#allocation47_spill] sm:$0xff] }
 0xfef   :  { %10399 = vmatmul.mubr.msk.bf16.vlgmr.msra.gmra.mxu1 %vm2185_vm1, %v7824_v50  ;;  %10411 = vmatmul.mubr.msk.bf16.vlgmr.msra.gmra.mxu0 %vm2185_vm1, %v7928_v24  ;;  %v8196_v50 = vsel %vm2185_vm1, %v8191_v20, 0 }
 0xff0   :  { %10403 = vmatpush3.bf16.xpose.msra.mxu1 %v7884_v41  ;;  %10421 = vmatpush3.bf16.xpose.msra.mxu0 %v8040_v63 }
 0xff1   :  { %10404 = vmatprep.mubr.msk.bf16.mxu1 %vm11219_vm0, %v13386_v40  ;;  %10414 = vmatprep.subr.bf16.mxu1 %v13386_v40 }
 0xff2   :  { %10422 = vmatprep.mubr.msk.bf16.mxu0 %vm11219_vm0, %v13386_v40  ;;  %10432 = vmatprep.subr.bf16.mxu0 %v13386_v40 }
 0xff7   :  { %10405 = vmatmul.mubr.msk.bf16.vlgmr.msra.gmra.mxu1 %vm2185_vm1, %v7876_v55  ;;  %10423 = vmatmul.mubr.msk.bf16.vlgmr.msra.gmra.mxu0 %vm2185_vm1, %v8032_v60  ;;  %v5516_v60 = vadd.f32 %v12482_v6, %v4321_v38  ;;  %v13501_v38 = vld [vmem:[#allocation46_spill] sm:$0xff] }
 0xff8   :  { %10415 = vmatpush3.bf16.xpose.msra.mxu1 %v7988_v3  ;;  %10433 = vmatpush3.bf16.xpose.msra.mxu0 %v8144_v45 }
 0xff9   :  { %10416 = vmatprep.mubr.msk.bf16.mxu1 %vm11219_vm0, %v13386_v40  ;;  %10426 = vmatprep.subr.bf16.mxu1 %v13386_v40 }
 0xffa   :  { %10434 = vmatprep.mubr.msk.bf16.mxu0 %vm11219_vm0, %v13386_v40  ;;  %10444 = vmatprep.subr.bf16.mxu0 %v13386_v40 }
 0xfff   :  { %10417 = vmatmul.mubr.msk.bf16.vlgmr.msra.gmra.mxu1 %vm2185_vm1, %v7980_v47  ;;  %10435 = vmatmul.mubr.msk.bf16.vlgmr.msra.gmra.mxu0 %vm2185_vm1, %v8136_v58 }
0x1000   :  { %10427 = vmatpush3.bf16.xpose.msra.mxu1 %v8092_v4  ;;  %10428 = vmatprep.mubr.msk.bf16.mxu1 %vm11219_vm0, %v13386_v40  ;;  %v13493_v4 = vld [vmem:[#allocation65_spill] sm:$0xff] }
0x1001   :  { %10438 = vmatprep.subr.bf16.mxu1 %v13386_v40  ;;  %10446 = vmatprep.mubr.msk.bf16.mxu0 %vm11219_vm0, %v13386_v40 }
0x1007   :  { %10429 = vmatmul.mubr.msk.bf16.vlgmr.msra.gmra.mxu1 %vm2185_vm1, %v8084_v16  ;;  %v13492_v16 = vld [vmem:[#allocation13_spill] sm:$0xff] }
0x1008   :  { %10439 = vmatpush3.bf16.xpose.msra.mxu1 %v8196_v50  ;;  %10440 = vmatprep.mubr.msk.bf16.mxu1 %vm11219_vm0, %v13386_v40  ;;  %v4331_v20 = vadd.f32 %v13493_v4, %v13492_v16 }
0x1009   :  { %10450 = vmatprep.subr.bf16.mxu1 %v13386_v40 }
0x100f   :  { %10441 = vmatmul.mubr.msk.bf16.vlgmr.msra.gmra.mxu1 %vm2185_vm1, %v8188_v27 }
0x1010   :  { %10452 = vmatprep.mubr.msk.bf16.mxu1 %vm11219_vm0, %v13386_v40 }
0x108e   :  { %v7694_v7 = vpop.f32.mrf.mxu0 }
0x108f   :  { %v13066_v26 = vadd.f32 %v7694_v7, %v12783_v21  ;;  %v13489_v21 = vld [vmem:[#allocation40_spill] sm:$0xff] }
0x1090   :  { %v7696_v15 = vpop.f32.mrf.mxu0  ;;  %v4381_v37 = vadd.f32 %v13489_v21, %v13488_v43  ;;  %v13499_v21 = vld [vmem:[#allocation45_spill] sm:$0xff] }
0x1091   :  { %v13070_v39 = vadd.f32 %v7696_v15, %v12786_v42 }
0x1092   :  { %v7698_v24 = vpop.f32.mrf.mxu0  ;;  %v5511_v63 = vadd.f32 %v12493_v59, %v4381_v37 }
0x1093   :  { %v13074_v62 = vadd.f32 %v7698_v24, %v12789_v10 }
0x1094   :  { %v7700_v61 = vpop.f32.mrf.mxu0  ;;  %v6681_v3 = vadd.f32 %v12822_v9, %v5511_v63  ;;  %v13502_v63 = vld [vmem:[#allocation49_spill] sm:$0xff] }
0x1095   :  { %v13076_v12 = vadd.f32 %v7700_v61, %v6680_v14  ;;  %v13496_v14 = vld [vmem:[#allocation12_spill] sm:$0xff]  ;;  %v13497_v61 = vld [vmem:[#allocation66_spill] sm:$0xff] }
0x1096   :  { %v7704_v56 = vpop.f32.mrf.mxu0  ;;  %v10390_v55 = vpop.f32.mrf.mxu1 }
0x1097   :  { %v13083_v42 = vadd.f32 %v7704_v56, %v12794_v8  ;;  %v13086_v5 = vadd.f32 %v10390_v55, %v12797_v13  ;;  %v6686_v8 = vadd.f32 %v12811_v23, %v5516_v60  ;;  %v13498_v55 = vld [vmem:[#allocation42_spill] sm:$0xff] }
0x1098   :  { %v7706_v54 = vpop.f32.mrf.mxu0  ;;  %v7767_v10 = vpop.f32.mrf.mxu1 }
0x1099   :  { %v13091_v41 = vadd.f32 %v7706_v54, %v12800_v11  ;;  %v13094_v47 = vadd.f32 %v7767_v10, %v12803_v31 }
0x109a   :  { %v7708_v33 = vpop.f32.mrf.mxu0  ;;  %v10391_v45 = vpop.f32.mrf.mxu1 }
0x109b   :  { %v13099_v13 = vadd.f32 %v7708_v33, %v12806_v29  ;;  %v13102_v36 = vadd.f32 %v10391_v45, %v12809_v19  ;;  %v5522_v29 = vadd.f32 %v12495_v52, %v4331_v20  ;;  %v4341_v52 = vadd.f32 %v13497_v61, %v13496_v14  ;;  %v13503_v33 = vld [vmem:[#allocation29_spill] sm:$0xff] }
0x109c   :  { %v7710_v6 = vpop.f32.mrf.mxu0  ;;  %v7770_v59 = vpop.f32.mrf.mxu1 }
0x109d   :  { %v13104_v58 = vadd.f32 %v7710_v6, %v6686_v8  ;;  %v13106_v11 = vadd.f32 %v7770_v59, %v6681_v3  ;;  %v6692_v27 = vadd.f32 %v12824_v51, %v5522_v29  ;;  %v5528_v43 = vadd.f32 %v13498_v55, %v4341_v52  ;;  %v13505_v3 = vld [vmem:[#allocation50_spill] sm:$0xff] }
0x109f   :  { %v7714_v31 = vpop.f32.mrf.mxu0 }
0x10a0   :  { %v13111_v23 = vadd.f32 %v7714_v31, %v12814_v34  ;;  %v13495_v34 = vld [vmem:[#allocation15_spill] sm:$0xff] }
0x10a1   :  { %v7716_v9 = vpop.f32.mrf.mxu0  ;;  %v4397_v24 = vadd.f32 %v13495_v34, %v13494_v1 }
0x10a2   :  { %v13115_v50 = vadd.f32 %v7716_v9, %v12817_v17 }
0x10a3   :  { %v7718_v19 = vpop.f32.mrf.mxu0  ;;  %v5523_v37 = vadd.f32 %v13499_v21, %v4397_v24 }
0x10a4   :  { %v13119_v7 = vadd.f32 %v7718_v19, %v12820_v0 }
0x10a5   :  { %v7720_v28 = vpop.f32.mrf.mxu0  ;;  %v6693_v45 = vadd.f32 %v13503_v33, %v5523_v37 }
0x10a6   :  { %v13121_v32 = vadd.f32 %v7720_v28, %v6692_v27 }
0x10a7   :  { %v7724_v22 = vpop.f32.mrf.mxu0  ;;  %v10394_v15 = vpop.f32.mrf.mxu1 }
0x10a8   :  { %v13128_v17 = vadd.f32 %v7724_v22, %v12827_v35  ;;  %v13131_v56 = vadd.f32 %v10394_v15, %v12830_v57  ;;  %v6698_v35 = vadd.f32 %v13502_v63, %v5528_v43  ;;  %v13504_v57 = vld [vmem:[#allocation48_spill] sm:$0xff] }
0x10a9   :  { %v7726_v51 = vpop.f32.mrf.mxu0  ;;  %v7783_v0 = vpop.f32.mrf.mxu1 }
0x10aa   :  { %v13136_v46 = vadd.f32 %v7726_v51, %v13500_v25  ;;  %v13139_v54 = vadd.f32 %v7783_v0, %v13501_v38 }
0x10ab   :  { %v7728_v10 = vpop.f32.mrf.mxu0  ;;  %v10395_v60 = vpop.f32.mrf.mxu1 }
0x10ac   :  { %v13144_v8 = vadd.f32 %v7728_v10, %v13504_v57  ;;  %v13147_v6 = vadd.f32 %v10395_v60, %v13505_v3 }
0x10ad   :  { %v7730_v59 = vpop.f32.mrf.mxu0  ;;  %v7786_v31 = vpop.f32.mrf.mxu1 }
0x10ae   :  { %v13149_v16 = vadd.f32 %v7730_v59, %v6698_v35  ;;  %v13151_v4 = vadd.f32 %v7786_v31, %v6693_v45 }
0x10af   :  { %v7868_v20 = vpop.f32.mrf.mxu1  ;;  %v7972_v9 = vpop.f32.mrf.mxu0 }
0x10b0   :  { %v8238_v19 = vsel %vm11648_vm3, %v7868_v20, -1e+30  ;;  %v8240_v15 = vsel %vm11648_vm3, %v7972_v9, -1e+30 }
0x10b1   :  { %v8246_v27 = vsel %vm2562_vm4, %v8238_v19, -inf  ;;  %v10400_v28 = vpop.f32.mrf.mxu1  ;;  %v10412_v22 = vpop.f32.mrf.mxu0  ;;  %v8252_v24 = vsel %vm2562_vm4, %v8240_v15, -inf }
0x10b2   :  { %8247 = vmax.xlane.f32.xlu0 %v8246_v27 }
0x10b3   :  { %v7871_v1 = vpop.f32.mrf.mxu1  ;;  %v7975_v34 = vpop.f32.mrf.mxu0 }
0x10b5   :  { %v10401_v14 = vpop.f32.mrf.mxu1  ;;  %v10413_v61 = vpop.f32.mrf.mxu0 }
0x10b6   :  { %8253 = vmax.xlane.f32.xlu0 %v8252_v24  ;;  %v13507_v24 = vld [vmem:[#allocation43_spill] sm:$0xff] }
0x10b7   :  { %v7920_v52 = vpop.f32.mrf.mxu1  ;;  %v8076_v51 = vpop.f32.mrf.mxu0 }
0x10b8   :  { %v8239_v0 = vsel %vm11648_vm3, %v7920_v52, -1e+30  ;;  %v13163_v55 = vsel %vm11648_vm3, %v8076_v51, -1e+30 }
0x10b9   :  { %v8249_v43 = vsel %vm2562_vm4, %v8239_v0, -inf  ;;  %v8258_v21 = vsel %vm2562_vm4, %v13163_v55, -inf  ;;  %v10406_v37 = vpop.f32.mrf.mxu1  ;;  %v10424_v25 = vpop.f32.mrf.mxu0 }
0x10ba   :  { %8259 = vmax.xlane.f32.xlu0 %v8258_v21  ;;  %8250 = vmax.xlane.f32.xlu1 %v8249_v43  ;;  %v13508_v37 = vld [vmem:[#allocation44_spill] sm:$0xff] }
0x10bb   :  { %v7923_v38 = vpop.f32.mrf.mxu1  ;;  %v8079_v10 = vpop.f32.mrf.mxu0 }
0x10bd   :  { %v10407_v60 = vpop.f32.mrf.mxu1  ;;  %v10425_v63 = vpop.f32.mrf.mxu0 }
0x10bf   :  { %v8024_v35 = vpop.f32.mrf.mxu1  ;;  %v8180_v33 = vpop.f32.mrf.mxu0 }
0x10c0   :  { %v13170_v45 = vsel %vm11648_vm3, %v8024_v35, -1e+30  ;;  %v13176_v31 = vsel %vm11648_vm3, %v8180_v33, -1e+30 }
0x10c1   :  { %v8255_v57 = vsel %vm2562_vm4, %v13170_v45, -inf  ;;  %v10418_v3 = vpop.f32.mrf.mxu1  ;;  %v10436_v59 = vpop.f32.mrf.mxu0  ;;  %v8264_v27 = vsel %vm2562_vm4, %v13176_v31, -inf }
0x10c2   :  { %8256 = vmax.xlane.f32.xlu0 %v8255_v57 }
0x10c3   :  { %v8027_v20 = vpop.f32.mrf.mxu1  ;;  %v8183_v9 = vpop.f32.mrf.mxu0 }
0x10c5   :  { %v10419_v28 = vpop.f32.mrf.mxu1  ;;  %v10437_v22 = vpop.f32.mrf.mxu0 }
0x10c6   :  { %8265 = vmax.xlane.f32.xlu0 %v8264_v27 }
0x10c7   :  { %v8128_v1 = vpop.f32.mrf.mxu1 }
0x10c8   :  { %v8243_v25 = vsel %vm11648_vm3, %v8128_v1, -1e+30 }
0x10c9   :  { %v10430_v34 = vpop.f32.mrf.mxu1  ;;  %v8261_v38 = vsel %vm2562_vm4, %v8243_v25, -inf }
0x10cb   :  { %8392 = vrot.lane.b32.xlu1 %v13507_v24, %s11220_s0  ;;  %v8131_v14 = vpop.f32.mrf.mxu1 }
0x10cd   :  { %v10431_v61 = vpop.f32.mrf.mxu1 }
0x10cf   :  { %8441 = vrot.lane.b32.xlu1 %v12938_v44, %s11220_s0  ;;  %v8232_v52 = vpop.f32.mrf.mxu1 }
0x10d0   :  { %v8245_v10 = vsel %vm11648_vm3, %v8232_v52, -1e+30 }
0x10d1   :  { %v10442_v51 = vpop.f32.mrf.mxu1  ;;  %v8267_v60 = vsel %vm2562_vm4, %v8245_v10, -inf }
0x10d3   :  { %v8235_v43 = vpop.f32.mrf.mxu1 }
0x10d5   :  { %v10443_v21 = vpop.f32.mrf.mxu1 }
0x10dc   :  { %8343 = vrot.lane.b32.xlu0 %v13508_v37, %s11220_s0 }
0x10f3   :  { %8262 = vmax.xlane.f32.xlu1 %v8261_v38 }
0x10f7   :  { %8268 = vmax.xlane.f32.xlu1 %v8267_v60 }
0x1108   :  { %8490 = vrot.lane.b32.xlu1 %v12950_v30, %s11220_s0 }
0x113b   :  { %v8248_v44 = vpop.xlane.xlu0 %8247 }
0x113c   :  { %v8270_v63 = vsub.f32 %v8238_v19, %v8248_v44 }
0x113e   :  { %v8278_v35 = vmul.f32 1.442695, %v8270_v63 }
0x113f   :  { %v8254_v33 = vpop.xlane.xlu0 %8253 }
0x1140   :  { %11090 = vpow2.f32 %v8278_v35  ;;  %v8272_v57 = vsub.f32 %v8240_v15, %v8254_v33 }
0x1142   :  { %v8282_v3 = vmul.f32 1.442695, %v8272_v57 }
0x1143   :  { %v8251_v59 = vpop.xlane.xlu1 %8250  ;;  %v8260_v29 = vpop.xlane.xlu0 %8259 }
0x1144   :  { %11092 = vpow2.f32 %v8282_v3  ;;  %v8271_v20 = vsub.f32 %v8239_v0, %v8251_v59  ;;  %v8274_v52 = vsub.f32 %v13163_v55, %v8260_v29 }
0x1146   :  { %v8280_v9 = vmul.f32 1.442695, %v8271_v20  ;;  %v8286_v51 = vmul.f32 1.442695, %v8274_v52 }
0x1147   :  { %v8393_v27 = vpop.permute.xlu1 %8392 }
0x1148   :  { %v8398_v28 = vsel %vm2662_vm2, %v8393_v27, 0  ;;  %11094 = vpow2.f32 %v8280_v9 }
0x1149   :  { %10451 = vmatpush3.bf16.msra.mxu1 %v8398_v28  ;;  %11096 = vpow2.f32 %v8286_v51 }
0x114a   :  { %10462 = vmatprep.subr.bf16.mxu1 %v13386_v40 }
0x114b   :  { %v8257_v30 = vpop.xlane.xlu0 %8256  ;;  %v8442_v38 = vpop.permute.xlu1 %8441 }
0x114c   :  { %v8273_v21 = vsub.f32 %v13170_v45, %v8257_v30 }
0x114d   :  { %v11091_v22 = vpop.eup %11090 }
0x114e   :  { %v8294_v19 = vsel %vm2562_vm4, %v11091_v22, 0.0  ;;  %v8284_v60 = vmul.f32 1.442695, %v8273_v21 }
0x114f   :  { %8295 = vadd.xlane.f32.xlu0 %v8294_v19  ;;  %v8266_v1 = vpop.xlane.xlu0 %8265 }
0x1150   :  { %v8276_v43 = vsub.f32 %v13176_v31, %v8266_v1 }
0x1151   :  { %v11093_v15 = vpop.eup %11092 }
0x1152   :  { %v8300_v34 = vsel %vm2562_vm4, %v11093_v15, 0.0  ;;  %v8290_v37 = vmul.f32 1.442695, %v8276_v43 }
0x1153   :  { %8301 = vadd.xlane.f32.xlu0 %v8300_v34  ;;  %v8344_v0 = vpop.permute.xlu0 %8343 }
0x1154   :  { %v8349_v24 = vsel %vm2662_vm2, %v8344_v0, 0  ;;  %11098 = vpow2.f32 %v8290_v37 }
0x1155   :  { %10445 = vmatpush3.bf16.msra.mxu0 %v8349_v24  ;;  %v11095_v14 = vpop.eup %11094  ;;  %11100 = vpow2.f32 %v8284_v60  ;;  %v8447_v24 = vsel %vm2662_vm2, %v8442_v38, 0 }
0x1156   :  { %10456 = vmatprep.subr.bf16.mxu0 %v13386_v40  ;;  %v8297_v61 = vsel %vm2562_vm4, %v11095_v14, 0.0  ;;  %v11097_v57 = vpop.eup %11096 }
0x1157   :  { %8298 = vadd.xlane.f32.xlu1 %v8297_v61  ;;  %v8306_v55 = vsel %vm2562_vm4, %v11097_v57, 0.0 }
0x1161   :  { %v13209_v31 = vpop.eup %11098 }
0x1162   :  { %v13211_v45 = vpop.eup %11100  ;;  %v8312_v3 = vsel %vm2562_vm4, %v13209_v31, 0.0 }
0x1168   :  { %8588 = vrot.lane.b32.xlu1 %v12972_v2, %s11220_s0 }
0x1169   :  { %8539 = vrot.lane.b32.xlu0 %v12956_v48, %s11220_s0 }
0x117c   :  { %v8263_v44 = vpop.xlane.xlu1 %8262 }
0x117d   :  { %v8275_v63 = vsub.f32 %v8243_v25, %v8263_v44  ;;  %v8303_v25 = vsel %vm2562_vm4, %v13211_v45, 0.0 }
0x117f   :  { %v8288_v35 = vmul.f32 1.442695, %v8275_v63 }
0x1180   :  { %v8269_v2 = vpop.xlane.xlu1 %8268 }
0x1181   :  { %11102 = vpow2.f32 %v8288_v35  ;;  %v8277_v33 = vsub.f32 %v8245_v10, %v8269_v2 }
0x1183   :  { %v8292_v48 = vmul.f32 1.442695, %v8277_v33 }
0x1184   :  { %v8491_v28 = vpop.permute.xlu1 %8490 }
0x1185   :  { %11104 = vpow2.f32 %v8292_v48  ;;  %v8496_v21 = vsel %vm2662_vm2, %v8491_v28, 0  ;;  %v10916_v48 = vld [vmem:[#allocation7 + $0x22c] ss:$12 sps:$4 sm:$0xff]   ;;  %v10914_v28 = vld [vmem:[#allocation7 + $0x228] ss:$12 sps:$4 sm:$0xff]  }
0x1188   :  { %8307 = vadd.xlane.f32.xlu0 %v8306_v55 }
0x118c   :  { %8313 = vadd.xlane.f32.xlu0 %v8312_v3  ;;  %8304 = vadd.xlane.f32.xlu1 %v8303_v25 }
0x118e   :  { %v13217_v59 = vpop.eup %11102 }
0x118f   :  { %v8309_v10 = vsel %vm2562_vm4, %v13217_v59, 0.0 }
0x1190   :  { %8310 = vadd.xlane.f32.xlu1 %v8309_v10 }
0x1192   :  { %v13221_v20 = vpop.eup %11104 }
0x1193   :  { %v8315_v9 = vsel %vm2562_vm4, %v13221_v20, 0.0 }
0x1194   :  { %8316 = vadd.xlane.f32.xlu1 %v8315_v9 }
0x11a2   :  { %8637 = vrot.lane.b32.xlu0 %v12977_v18, %s11220_s0 }
0x11a5   :  { %8686 = vrot.lane.b32.xlu1 %v12991_v49, %s11220_s0 }
0x11d8   :  { %v8296_v29 = vpop.xlane.xlu0 %8295 }
0x11d9   :  { %11106 = vrcp.f32 %v8296_v29 }
0x11dc   :  { %v8302_v27 = vpop.xlane.xlu0 %8301 }
0x11dd   :  { %11108 = vrcp.f32 %v8302_v27 }
0x11e0   :  { %v8299_v30 = vpop.xlane.xlu1 %8298  ;;  %v8540_v61 = vpop.permute.xlu0 %8539 }
0x11e1   :  { %11110 = vrcp.f32 %v8299_v30 }
0x11e6   :  { %v11107_v19 = vpop.eup %11106 }
0x11e7   :  { %v8326_v1 = vmul.f32 %v11107_v19, %v11091_v22  ;;  %v8545_v22 = vsel %vm2662_vm2, %v8540_v61, 0 }
0x11e9   :  { %v8334_v34 = vpack.c.bf16 %v8326_v1, %v8326_v1 }
0x11ea   :  { %v11109_v0 = vpop.eup %11108 }
0x11eb   :  { %10447 = vmatmul.mubr.msk.bf16.vlgmr.msra.gmra.mxu0 %vm2562_vm4, %v8334_v34  ;;  %v8328_v18 = vmul.f32 %v11109_v0, %v11093_v15  ;;  %v10922_v0 = vld [vmem:[#allocation7 + $0x1fc] ss:$12 sps:$4 sm:$0xff]  }
0x11ec   :  { %10457 = vmatpush3.bf16.msra.mxu0 %v8447_v24  ;;  %10458 = vmatprep.mubr.msk.bf16.mxu0 %vm11219_vm0, %v13386_v40 }
0x11ed   :  { %10468 = vmatprep.subr.bf16.mxu0 %v13386_v40  ;;  %v8336_v51 = vpack.c.bf16 %v8328_v18, %v8328_v18 }
0x11ee   :  { %v11111_v49 = vpop.eup %11110 }
0x11ef   :  { %v8327_v52 = vmul.f32 %v11111_v49, %v11095_v14  ;;  %v8589_v14 = vpop.permute.xlu1 %8588  ;;  %v10920_v49 = vld [vmem:[#allocation7 + $0x1f8] ss:$12 sps:$4 sm:$0xff]  }
0x11f0   :  { %v8594_v27 = vsel %vm2662_vm2, %v8589_v14, 0 }
0x11f1   :  { %v8335_v43 = vpack.c.bf16 %v8327_v52, %v8327_v52  ;;  %v10923_v52 = vld [vmem:[#allocation7 + $0x1e0] ss:$12 sps:$4 sm:$0xff]  }
0x11f3   :  { %10459 = vmatmul.mubr.msk.bf16.vlgmr.msra.gmra.mxu0 %vm2562_vm4, %v8336_v51  ;;  %10453 = vmatmul.mubr.msk.bf16.vlgmr.msra.gmra.mxu1 %vm2562_vm4, %v8335_v43  ;;  %v10926_v43 = vld [vmem:[#allocation7 + $0x230] ss:$12 sps:$4 sm:$0xff]  }
0x11f4   :  { %10469 = vmatpush3.bf16.msra.mxu0 %v8545_v22  ;;  %10463 = vmatpush3.bf16.msra.mxu1 %v8496_v21  ;;  %v10927_v22 = vld [vmem:[#allocation7 + $0x218] ss:$12 sps:$4 sm:$0xff]   ;;  %v10928_v21 = vld [vmem:[#allocation7 + $0x200] ss:$12 sps:$4 sm:$0xff]  }
0x11f5   :  { %10470 = vmatprep.mubr.msk.bf16.mxu0 %vm11219_vm0, %v13386_v40  ;;  %10480 = vmatprep.subr.bf16.mxu0 %v13386_v40 }
0x11f6   :  { %10464 = vmatprep.mubr.msk.bf16.mxu1 %vm11219_vm0, %v13386_v40  ;;  %10474 = vmatprep.subr.bf16.mxu1 %v13386_v40 }
0x1211   :  { %v8308_v15 = vpop.xlane.xlu0 %8307 }
0x1212   :  { %11112 = vrcp.f32 %v8308_v15 }
0x1215   :  { %v8314_v37 = vpop.xlane.xlu0 %8313  ;;  %v8305_v38 = vpop.xlane.xlu1 %8304 }
0x1216   :  { %11114 = vrcp.f32 %v8314_v37 }
0x1217   :  { %11116 = vrcp.f32 %v8305_v38 }
0x1219   :  { %v8311_v60 = vpop.xlane.xlu1 %8310  ;;  %v8638_v2 = vpop.permute.xlu0 %8637 }
0x121a   :  { %11118 = vrcp.f32 %v8311_v60  ;;  %v8643_v25 = vsel %vm2662_vm2, %v8638_v2, 0 }
0x121d   :  { %v8317_v35 = vpop.xlane.xlu1 %8316 }
0x121e   :  { %11120 = vrcp.f32 %v8317_v35 }
0x121f   :  { %v11113_v44 = vpop.eup %11112 }
0x1220   :  { %v8330_v63 = vmul.f32 %v11113_v44, %v11097_v57 }
0x1221   :  { %v8687_v1 = vpop.permute.xlu1 %8686 }
0x1222   :  { %v8338_v33 = vpack.c.bf16 %v8330_v63, %v8330_v63  ;;  %v8692_v18 = vsel %vm2662_vm2, %v8687_v1, 0 }
0x1223   :  { %v11115_v55 = vpop.eup %11114 }
0x1224   :  { %v11117_v3 = vpop.eup %11116  ;;  %10471 = vmatmul.mubr.msk.bf16.vlgmr.msra.gmra.mxu0 %vm2562_vm4, %v8338_v33  ;;  %v8332_v9 = vmul.f32 %v11115_v55, %v13209_v31  ;;  %v10917_v31 = vld [vmem:[#allocation7 + $0x210] ss:$12 sps:$4 sm:$0xff]  }
0x1225   :  { %v8329_v10 = vmul.f32 %v11117_v3, %v13211_v45  ;;  %10481 = vmatpush3.bf16.msra.mxu0 %v8643_v25  ;;  %10482 = vmatprep.mubr.msk.bf16.mxu0 %vm11219_vm0, %v13386_v40  ;;  %v10919_v45 = vld [vmem:[#allocation7 + $0x214] ss:$12 sps:$4 sm:$0xff]  }
0x1226   :  { %8838 = vmatprep.subr.bf16.mxu0 %v10916_v48  ;;  %v8340_v30 = vpack.c.bf16 %v8332_v9, %v8332_v9 }
0x1227   :  { %v8337_v57 = vpack.c.bf16 %v8329_v10, %v8329_v10  ;;  %v11119_v29 = vpop.eup %11118 }
0x1228   :  { %v8331_v19 = vmul.f32 %v11119_v29, %v13217_v59  ;;  %v10925_v59 = vld [vmem:[#allocation7 + $0x1e4] ss:$12 sps:$4 sm:$0xff]  }
0x1229   :  { %10465 = vmatmul.mubr.msk.bf16.vlgmr.msra.gmra.mxu1 %vm2562_vm4, %v8337_v57 }
0x122a   :  { %10475 = vmatpush3.bf16.msra.mxu1 %v8594_v27  ;;  %10476 = vmatprep.mubr.msk.bf16.mxu1 %vm11219_vm0, %v13386_v40  ;;  %v8339_v34 = vpack.c.bf16 %v8331_v19, %v8331_v19 }
0x122b   :  { %10486 = vmatprep.subr.bf16.mxu1 %v13386_v40  ;;  %v11121_v24 = vpop.eup %11120 }
0x122c   :  { %10483 = vmatmul.mubr.msk.bf16.vlgmr.msra.gmra.mxu0 %vm2562_vm4, %v8340_v30  ;;  %v8333_v61 = vmul.f32 %v11121_v24, %v13221_v20 }
0x122d   :  { %8839 = vmatpush1.bf16.msra.mxu0 %v10914_v28  ;;  %8862 = vmatprep.mubr.bf16.mxu0 %v13412_v53 }
0x122e   :  { %8840 = vmatprep.subr.bf16.mxu0 %v10919_v45  ;;  %v8341_v51 = vpack.c.bf16 %v8333_v61, %v8333_v61 }
0x1231   :  { %10477 = vmatmul.mubr.msk.bf16.vlgmr.msra.gmra.mxu1 %vm2562_vm4, %v8339_v34  ;;  %8841 = vmatpush1.bf16.msra.mxu0 %v10917_v31 }
0x1232   :  { %10487 = vmatpush3.bf16.msra.mxu1 %v8692_v18  ;;  %10488 = vmatprep.mubr.msk.bf16.mxu1 %vm11219_vm0, %v13386_v40  ;;  %v10929_v40 = vld [vmem:[#allocation7 + $0x1e8] ss:$12 sps:$4 sm:$0xff]  }
0x1233   :  { %8842 = vmatprep.subr.bf16.mxu0 %v10922_v0  ;;  %10492 = vmatprep.subr.bf16.mxu1 %v10926_v43 }
0x1235   :  { %8843 = vmatpush1.bf16.msra.mxu0 %v10920_v49 }
0x1236   :  { %8844 = vmatprep.subr.bf16.mxu0 %v10925_v59 }
0x1239   :  { %10489 = vmatmul.mubr.msk.bf16.vlgmr.msra.gmra.mxu1 %vm2562_vm4, %v8341_v51  ;;  %8845 = vmatpush1.bf16.msra.mxu0 %v10923_v52 }
0x123a   :  { %10493 = vmatpush3.bf16.msra.mxu1 %v10926_v43 }
0x123b   :  { %10494 = vmatprep.subr.bf16.mxu1 %v10927_v22 }
0x123e   :  { %10495 = vmatpush3.bf16.msra.mxu1 %v10927_v22  ;;  %v8992_v22 = vld [vmem:[%s13344_s3] sm:$0x7]  ;;  %s11221_s3 = smov [#allocation8]  }
0x123f   :  { %10496 = vmatprep.subr.bf16.mxu1 %v10928_v21  ;;  %s9075_s10 = sshll.u32 %s11221_s3, 4  ;;  %s9076_s10 = int_to_ptr.vmem [resolvable:$true] %s9075_s10 }
0x1240   :  { %s11182_s11 = scalar_lea.vmem %s9076_s10, 3072  ;;  %p11187_p2 = scmp.lt.s32.totalorder %s9076_s10, %s9076_s10 }
0x1241   :  { %p11183_p1 = scmp.ne.s32.totalorder %s9076_s10, %s11182_s11  ;;  %p11188_p3 = scmp.lt.s32.totalorder %s11182_s11, %s11182_s11 }
0x1242   :  { %10497 = vmatpush3.bf16.msra.mxu1 %v10928_v21  ;;  %v8993_v21 = vunpack.c.l.bf16 %v8992_v22 }
0x1243   :  { %10498 = vmatprep.subr.bf16.mxu1 %v10929_v40  ;;  %p11189_p4 = por %p11188_p3, %p11187_p2 }
0x1245   :  { %p11190_p5 = pnand %p11189_p4, %p11183_p1 }
0x1246   :  { %10499 = vmatpush3.bf16.msra.mxu1 %v10929_v40  ;;  %v13509_v40 = vld [vmem:[#allocation62_spill] sm:$0xff] }
0x12ab   :  { %v8385_v20 = vpop.f32.mrf.mxu0 }
0x12ad   :  { %v10448_v15 = vpop.f32.mrf.mxu0 }
0x12ae   :  { %v9001_v15 = vsub.s32 2, %v13509_v40 }
0x12af   :  { %v8388_v14 = vpop.f32.mrf.mxu0 }
0x12b0   :  { %v9002_v14 = vrot.slane %v8993_v21, %v9001_v15 }
0x12b1   :  { %v10449_v37 = vpop.f32.mrf.mxu0 }
0x12b3   :  { %v8483_v38 = vpop.f32.mrf.mxu0  ;;  %v8434_v60 = vpop.f32.mrf.mxu1 }
0x12b4   :  { %v8734_v44 = vpack.c.bf16 %v8434_v60, %v8385_v20  ;;  %v8997_v20 = vsub.s32 0, %v13509_v40 }
0x12b5   :  { %v10460_v63 = vpop.f32.mrf.mxu0  ;;  %v10454_v35 = vpop.f32.mrf.mxu1 }
0x12b6   :  { %9512 = vmatmul.mubr.msk.bf16.vlgmr.msra.gmra.mxu0 %vm2185_vm1, %v8734_v44  ;;  %10500 = vmatprep.mubr.msk.bf16.mxu1 %vm2185_vm1, %v8734_v44  ;;  %v13283_v44 = vrot.slane %v9002_v14, %v8997_v20 }
0x12b7   :  { %v8486_v2 = vpop.f32.mrf.mxu0  ;;  %v8437_v33 = vpop.f32.mrf.mxu1  ;;  %8872 = vmatprep.mubr.bf16.mxu0 %v13412_v53 }
0x12b9   :  { %v10461_v48 = vpop.f32.mrf.mxu0  ;;  %v10455_v55 = vpop.f32.mrf.mxu1 }
0x12e4   :  { %v8581_v3 = vpop.f32.mrf.mxu0 }
0x12e6   :  { %v10472_v25 = vpop.f32.mrf.mxu0 }
0x12e8   :  { %v8584_v10 = vpop.f32.mrf.mxu0 }
0x12e9   :  { %v8532_v9 = vpop.f32.mrf.mxu1 }
0x12ea   :  { %v8735_v57 = vpack.c.bf16 %v8532_v9, %v8483_v38  ;;  %v10473_v29 = vpop.f32.mrf.mxu0  ;;  %v9005_v9 = vsub.s32 4, %v13509_v40 }
0x12eb   :  { %v10466_v27 = vpop.f32.mrf.mxu1 }
0x12ec   :  { %9513 = vmatmul.mubr.msk.bf16.gmra.mxu0 %vm2185_vm1, %v8735_v57  ;;  %10501 = vmatmul.mubr.msk.bf16.vlgmr.msra.gmra.mxu1 %vm2185_vm1, %v8735_v57  ;;  %v8679_v28 = vpop.f32.mrf.mxu0  ;;  %v9006_v57 = vrot.slane %v8993_v21, %v9005_v9 }
0x12ed   :  { %v8535_v30 = vpop.f32.mrf.mxu1  ;;  %8882 = vmatprep.mubr.bf16.mxu0 %v13412_v53 }
0x12ee   :  { %v10484_v45 = vpop.f32.mrf.mxu0 }
0x12ef   :  { %v10467_v19 = vpop.f32.mrf.mxu1 }
0x12f0   :  { %v8682_v31 = vpop.f32.mrf.mxu0 }
0x12f1   :  { %v8630_v1 = vpop.f32.mrf.mxu1 }
0x12f2   :  { %v8736_v34 = vpack.c.bf16 %v8630_v1, %v8581_v3  ;;  %v10485_v0 = vpop.f32.mrf.mxu0 }
0x12f3   :  { %v10478_v24 = vpop.f32.mrf.mxu1 }
0x12f4   :  { %9514 = vmatmul.mubr.msk.bf16.gmra.mxu0 %vm2185_vm1, %v8736_v34  ;;  %10504 = vmatprep.mubr.msk.bf16.mxu1 %vm2185_vm1, %v8736_v34 }
0x12f5   :  { %v8633_v18 = vpop.f32.mrf.mxu1  ;;  %8892 = vmatprep.mubr.bf16.mxu0 %v13412_v53  ;;  %v8998_v53 = vrot.slane %v8993_v21, %v8997_v20 }
0x12f7   :  { %v10479_v49 = vpop.f32.mrf.mxu1  ;;  %v13280_v37 = vrot.slane %v8998_v53, %v8997_v20 }
0x12f9   :  { %v8728_v59 = vpop.f32.mrf.mxu1 }
0x12fa   :  { %v8737_v61 = vpack.c.bf16 %v8728_v59, %v8679_v28 }
0x12fb   :  { %v10490_v52 = vpop.f32.mrf.mxu1 }
0x12fc   :  { %9515 = vmatmul.mubr.msk.bf16.gmra.mxu0 %vm2185_vm1, %v8737_v61  ;;  %10505 = vmatmul.mubr.msk.bf16.gmra.mxu1 %vm2185_vm1, %v8737_v61 }
0x12fd   :  { %v8731_v51 = vpop.f32.mrf.mxu1 }
0x12ff   :  { %v10491_v43 = vpop.f32.mrf.mxu1 }
0x1376   :  { %v8864_v38 = vpop.f32.mrf.mxu0 }
0x1377   :  { %v8968_v60 = vadd.f32 %v8864_v38, %v13066_v26 }
0x1378   :  { %v8866_v63 = vpop.f32.mrf.mxu0 }
0x1379   :  { %v9022_v35 = vadd.f32 %v13280_v37, %v8968_v60  ;;  %v8969_v2 = vadd.f32 %v8866_v63, %v13070_v39  ;;  %v13293_v39 = vrot.slane %v9006_v57, %v8997_v20 }
0x137a   :  { %v8868_v33 = vpop.f32.mrf.mxu0 }
0x137b   :  { %9046 = vst [vmem:[#allocation8] sm:$0xff] %v9022_v35  ;;  %v9023_v48 = vadd.f32 %v13283_v44, %v8969_v2  ;;  %v8971_v55 = vadd.f32 %v8868_v33, %v13074_v62 }
0x137c   :  { %v8870_v3 = vpop.f32.mrf.mxu0 }
0x137d   :  { %9047 = vst [vmem:[#allocation8 + $0x8] sm:$0xff] %v9023_v48  ;;  %v9025_v25 = vadd.f32 %v13280_v37, %v8971_v55  ;;  %v8972_v10 = vadd.f32 %v8870_v3, %v13076_v12 }
0x137f   :  { %9049 = vst [vmem:[#allocation8 + $0x18] sm:$0xff] %v9025_v25  ;;  %v9026_v26 = vadd.f32 %v13283_v44, %v8972_v10 }
0x1381   :  { %9050 = vst [vmem:[#allocation8 + $0x20] sm:$0xff] %v9026_v26 }
0x13ac   :  { %v8874_v29 = vpop.f32.mrf.mxu0  ;;  %v10502_v27 = vpop.f32.mrf.mxu1 }
0x13ad   :  { %v8974_v28 = vadd.f32 %v8874_v29, %v13083_v42  ;;  %v8976_v62 = vadd.f32 %v10502_v27, %v13086_v5 }
0x13ae   :  { %v8876_v30 = vpop.f32.mrf.mxu0  ;;  %v8937_v45 = vpop.f32.mrf.mxu1 }
0x13af   :  { %v9028_v19 = vadd.f32 %v13280_v37, %v8974_v28  ;;  %v9030_v12 = vadd.f32 %v13293_v39, %v8976_v62  ;;  %v8975_v31 = vadd.f32 %v8876_v30, %v13091_v41  ;;  %v8970_v1 = vadd.f32 %v8937_v45, %v13094_v47 }
0x13b0   :  { %v8878_v34 = vpop.f32.mrf.mxu0  ;;  %v10503_v0 = vpop.f32.mrf.mxu1 }
0x13b1   :  { %9052 = vst [vmem:[#allocation8 + $0x30] sm:$0xff] %v9028_v19  ;;  %9054 = vst [vmem:[#allocation8 + $0x40] sm:$0xff] %v9030_v12  ;;  %v9029_v24 = vadd.f32 %v13283_v44, %v8975_v31  ;;  %v9024_v42 = vadd.f32 %v13293_v39, %v8970_v1  ;;  %v8977_v5 = vadd.f32 %v8878_v34, %v13099_v13 }
0x13b2   :  { %v8979_v18 = vadd.f32 %v10503_v0, %v13102_v36  ;;  %v8880_v49 = vpop.f32.mrf.mxu0  ;;  %v8940_v59 = vpop.f32.mrf.mxu1 }
0x13b3   :  { %9053 = vst [vmem:[#allocation8 + $0x38] sm:$0xff] %v9029_v24  ;;  %9048 = vst [vmem:[#allocation8 + $0x10] sm:$0xff] %v9024_v42  ;;  %v9031_v41 = vadd.f32 %v13280_v37, %v8977_v5  ;;  %v8978_v61 = vadd.f32 %v8880_v49, %v13104_v58  ;;  %v8973_v52 = vadd.f32 %v8940_v59, %v13106_v11 }
0x13b4   :  { %v9033_v47 = vadd.f32 %v13293_v39, %v8979_v18  ;;  %v8884_v51 = vpop.f32.mrf.mxu0 }
0x13b5   :  { %9055 = vst [vmem:[#allocation8 + $0x48] sm:$0xff] %v9031_v41  ;;  %v9032_v43 = vadd.f32 %v13283_v44, %v8978_v61  ;;  %v9027_v13 = vadd.f32 %v13293_v39, %v8973_v52  ;;  %v8980_v36 = vadd.f32 %v8884_v51, %v13111_v23 }
0x13b6   :  { %9057 = vst [vmem:[#allocation8 + $0x58] sm:$0xff] %v9033_v47  ;;  %v8886_v22 = vpop.f32.mrf.mxu0 }
0x13b7   :  { %9056 = vst [vmem:[#allocation8 + $0x50] sm:$0xff] %v9032_v43  ;;  %9051 = vst [vmem:[#allocation8 + $0x28] sm:$0xff] %v9027_v13  ;;  %v9034_v21 = vadd.f32 %v13280_v37, %v8980_v36  ;;  %v8981_v40 = vadd.f32 %v8886_v22, %v13115_v50 }
0x13b8   :  { %v8888_v20 = vpop.f32.mrf.mxu0 }
0x13b9   :  { %9058 = vst [vmem:[#allocation8 + $0x60] sm:$0xff] %v9034_v21  ;;  %v9035_v58 = vadd.f32 %v13283_v44, %v8981_v40  ;;  %v8983_v11 = vadd.f32 %v8888_v20, %v13119_v7 }
0x13ba   :  { %v8890_v15 = vpop.f32.mrf.mxu0 }
0x13bb   :  { %9059 = vst [vmem:[#allocation8 + $0x68] sm:$0xff] %v9035_v58  ;;  %v9037_v53 = vadd.f32 %v13280_v37, %v8983_v11  ;;  %v8984_v14 = vadd.f32 %v8890_v15, %v13121_v32 }
0x13bc   :  { %v8894_v23 = vpop.f32.mrf.mxu0  ;;  %v10506_v38 = vpop.f32.mrf.mxu1 }
0x13bd   :  { %9061 = vst [vmem:[#allocation8 + $0x78] sm:$0xff] %v9037_v53  ;;  %v9038_v60 = vadd.f32 %v13283_v44, %v8984_v14  ;;  %v8986_v63 = vadd.f32 %v8894_v23, %v13128_v17  ;;  %v8988_v50 = vadd.f32 %v10506_v38, %v13131_v56 }
0x13be   :  { %v8896_v35 = vpop.f32.mrf.mxu0  ;;  %v8953_v2 = vpop.f32.mrf.mxu1 }
0x13bf   :  { %9062 = vst [vmem:[#allocation8 + $0x80] sm:$0xff] %v9038_v60  ;;  %v9040_v7 = vadd.f32 %v13280_v37, %v8986_v63  ;;  %v9042_v33 = vadd.f32 %v13293_v39, %v8988_v50  ;;  %v8987_v48 = vadd.f32 %v8896_v35, %v13136_v46  ;;  %v8982_v32 = vadd.f32 %v8953_v2, %v13139_v54 }
0x13c0   :  { %v8898_v55 = vpop.f32.mrf.mxu0  ;;  %v10507_v3 = vpop.f32.mrf.mxu1 }
0x13c1   :  { %9064 = vst [vmem:[#allocation8 + $0x90] sm:$0xff] %v9040_v7  ;;  %9066 = vst [vmem:[#allocation8 + $0xa0] sm:$0xff] %v9042_v33  ;;  %v9041_v25 = vadd.f32 %v13283_v44, %v8987_v48  ;;  %v9036_v17 = vadd.f32 %v13293_v39, %v8982_v32  ;;  %v8989_v56 = vadd.f32 %v8898_v55, %v13144_v8 }
0x13c2   :  { %v8991_v10 = vadd.f32 %v10507_v3, %v13147_v6  ;;  %v8900_v26 = vpop.f32.mrf.mxu0  ;;  %v8956_v9 = vpop.f32.mrf.mxu1 }
0x13c3   :  { %9065 = vst [vmem:[#allocation8 + $0x98] sm:$0xff] %v9041_v25  ;;  %9060 = vst [vmem:[#allocation8 + $0x70] sm:$0xff] %v9036_v17  ;;  %v9043_v46 = vadd.f32 %v13280_v37, %v8989_v56  ;;  %v8990_v57 = vadd.f32 %v8900_v26, %v13149_v16  ;;  %v8985_v29 = vadd.f32 %v8956_v9, %v13151_v4 }
0x13c4   :  { %v9045_v54 = vadd.f32 %v13293_v39, %v8991_v10 }
0x13c5   :  { %9067 = vst [vmem:[#allocation8 + $0xa8] sm:$0xff] %v9043_v46  ;;  %v9044_v8 = vadd.f32 %v13283_v44, %v8990_v57  ;;  %v9039_v6 = vadd.f32 %v13293_v39, %v8985_v29 }
0x13c6   :  { %9069 = vst [vmem:[#allocation8 + $0xb8] sm:$0xff] %v9045_v54 }
0x13c7   :  { %9068 = vst [vmem:[#allocation8 + $0xb0] sm:$0xff] %v9044_v8  ;;  %9063 = vst [vmem:[#allocation8 + $0x88] sm:$0xff] %v9039_v6 }
0x13c8   :  { %11193 = shalt.err (!%p11190_p5)
}
0x13c9   :  { %9081 = dma.vmem_to_hbm [thread:$0]  %s9076_s10, 3072, %s13345_s4, [#allocation4], %s11212_s25, %s11212_s25, %s11213_s26  }
0x13ca   :  { %11206 = dma.done.wait [#allocation4], 3072  }
0x13cb   :  { %11207 = vsyncadd [#allocation4], 4294964224 }
0x13cc   :  { %9085 = vsyncpa [#allocation3], 1 }
0x13cd   :  { %9086 = vsyncpa [#allocation6], 1 }
0x13ce   :  { %9087 = vsyncpa [#allocation4], 1 }

// kernel: tpu_custom_call.1
= control target key start
LH: loop header
LB: loop body
LE: loop exit
PB: predicated region body
PF: predicated region fallthrough
CT: control target
= control target key end

     0   :  { %9 = vsyncpa [#allocation3], 0  ;;  %s13341_s0 = inlined_call_operand.hbm [shape: f32[8,8,384], index: 0, kind: input, shape index: {}]   ;;  %s13342_s1 = inlined_call_operand.hbm [shape: bf16[384,1152], index: 1, kind: input, shape index: {}]   ;;  %s13343_s2 = inlined_call_operand.hbm [shape: bf16[384,384], index: 2, kind: input, shape index: {}]   ;;  %s13344_s3 = inlined_call_operand.vmem [shape: bf16[1,384], index: 3, kind: input, shape index: {}]   ;;  %s13345_s4 = inlined_call_operand.hbm [shape: f32[8,8,384], index: 4, kind: output, shape index: {}]  }
   0x1   :  { %10 = vsyncpa [#allocation6], 0 }
   0x2   :  { %11 = vsyncpa [#allocation4], 0  ;;  %s11208_s15 = smov [#allocation5]  }
   0x3   :  { %s29_s16 = sshll.u32 %s11208_s15, 4  ;;  %s30_s16 = int_to_ptr.vmem [resolvable:$true] %s29_s16 }
   0x4   :  { %s11130_s17 = scalar_lea.vmem %s30_s16, 27648  ;;  %p11135_p1 = scmp.lt.s32.totalorder %s30_s16, %s30_s16 }
   0x5   :  { %p11131_p0 = scmp.ne.s32.totalorder %s30_s16, %s11130_s17  ;;  %p11136_p2 = scmp.lt.s32.totalorder %s11130_s17, %s11130_s17 }
   0x7   :  { %p11137_p3 = por %p11136_p2, %p11135_p1 }
   0x9   :  { %p11138_p4 = pnand %p11137_p3, %p11131_p0 }
   0xb   :  { %11141 = shalt.err (!%p11138_p4)
}
   0xc   :  { %s11209_s18 = smov 576   ;;  %s11210_s19 = smov 36  }
   0xd   :  { %35 = dma.hbm_to_vmem [thread:$0]  %s13342_s1, 27648, %s30_s16, [#allocation6], %s11209_s18, %s11209_s18, %s11210_s19  }
   0xe   :  { %s11211_s22 = smov [#allocation2]  }
   0xf   :  { %s17_s23 = sshll.u32 %s11211_s22, 4  ;;  %s18_s23 = int_to_ptr.vmem [resolvable:$true] %s17_s23 }
  0x10   :  { %s11150_s24 = scalar_lea.vmem %s18_s23, 3072  ;;  %p11155_p6 = scmp.lt.s32.totalorder %s18_s23, %s18_s23 }
  0x11   :  { %p11151_p5 = scmp.ne.s32.totalorder %s18_s23, %s11150_s24  ;;  %p11156_p7 = scmp.lt.s32.totalorder %s11150_s24, %s11150_s24 }
  0x13   :  { %p11157_p8 = por %p11156_p7, %p11155_p6 }
  0x15   :  { %p11158_p9 = pnand %p11157_p8, %p11151_p5 }
  0x17   :  { %11161 = shalt.err (!%p11158_p9)
}
  0x18   :  { %s11212_s25 = smov 384   ;;  %s11213_s26 = smov 24  }
  0x19   :  { %23 = dma.hbm_to_vmem [thread:$0]  %s13341_s0, 3072, %s18_s23, [#allocation3], %s11212_s25, %s11212_s25, %s11213_s26  }
  0x1a   :  { %s11214_s1 = smov [#allocation7]  }
  0x1b   :  { %s41_s29 = sshll.u32 %s11214_s1, 4  ;;  %s42_s29 = int_to_ptr.vmem [resolvable:$true] %s41_s29 }
  0x1c   :  { %s11170_s30 = scalar_lea.vmem %s42_s29, 9216  ;;  %p11175_p11 = scmp.lt.s32.totalorder %s42_s29, %s42_s29 }
  0x1d   :  { %p11171_p10 = scmp.ne.s32.totalorder %s42_s29, %s11170_s30  ;;  %p11176_p12 = scmp.lt.s32.totalorder %s11170_s30, %s11170_s30 }
  0x1f   :  { %p11177_p13 = por %p11176_p12, %p11175_p11 }
  0x21   :  { %p11178_p0 = pnand %p11177_p13, %p11171_p10 }
  0x23   :  { %11181 = shalt.err (!%p11178_p0)
}
  0x24   :  { %s11215_s5 = smov 192   ;;  %s11216_s6 = smov 12  }
  0x25   :  { %47 = dma.hbm_to_vmem [thread:$0]  %s13343_s2, 9216, %s42_s29, [#allocation6], %s11215_s5, %s11215_s5, %s11216_s6  }
  0x26   :  { %11202 = dma.done.wait [#allocation3], 3072  }
  0x27   :  { %11203 = vsyncadd [#allocation3], 4294964224 }
  0x28   :  { %11204 = dma.done.wait [#allocation6], 36864  }
  0x29   :  { %11205 = vsyncadd [#allocation6], 4294930432  ;;  %v13346_v0 = vmov 0   ;;  %v10522_v1 = vld [vmem:[#allocation5 + $0x1fc] ss:$36 sps:$4 sm:$0xff]   ;;  %v62_v33 = vld [vmem:[#allocation2 + $0x10] sm:$0xff] }
  0x2a   :  { %1545 = vmatprep.mubr.bf16.mxu1 %v13346_v0  ;;  %v10524_v2 = vld [vmem:[#allocation5 + $0x67c] ss:$36 sps:$4 sm:$0xff]   ;;  %1440 = vmatprep.subr.bf16.mxu0 %v10522_v1  ;;  %v10528_v5 = vld [vmem:[#allocation5 + $0x1b4] ss:$36 sps:$4 sm:$0xff]   ;;  %v10534_v9 = vld [vmem:[#allocation5 + $0x16c] ss:$36 sps:$4 sm:$0xff]  }
  0x2b   :  { %v10526_v3 = vld [vmem:[#allocation5 + $0x1f8] ss:$36 sps:$4 sm:$0xff]   ;;  %1513 = vmatprep.subr.bf16.mxu1 %v10524_v2  ;;  %v10532_v7 = vld [vmem:[#allocation5 + $0x1b0] ss:$36 sps:$4 sm:$0xff]   ;;  %v10538_v11 = vld [vmem:[#allocation5 + $0x168] ss:$36 sps:$4 sm:$0xff]  }
  0x2c   :  { %v10527_v4 = vld [vmem:[#allocation5 + $0x678] ss:$36 sps:$4 sm:$0xff]   ;;  %1441 = vmatpush1.bf16.msra.mxu0 %v10526_v3  ;;  %v10533_v8 = vld [vmem:[#allocation5 + $0x630] ss:$36 sps:$4 sm:$0xff]   ;;  %v10539_v12 = vld [vmem:[#allocation5 + $0x5e8] ss:$36 sps:$4 sm:$0xff]  }
  0x2d   :  { %1514 = vmatpush1.bf16.msra.mxu1 %v10527_v4  ;;  %v10530_v6 = vld [vmem:[#allocation5 + $0x634] ss:$36 sps:$4 sm:$0xff]   ;;  %1442 = vmatprep.subr.bf16.mxu0 %v10528_v5  ;;  %v10536_v10 = vld [vmem:[#allocation5 + $0x5ec] ss:$36 sps:$4 sm:$0xff]   ;;  %v10540_v13 = vld [vmem:[#allocation5 + $0x124] ss:$36 sps:$4 sm:$0xff]  }
  0x2e   :  { %1515 = vmatprep.subr.bf16.mxu1 %v10530_v6  ;;  %v10542_v14 = vld [vmem:[#allocation5 + $0x5a4] ss:$36 sps:$4 sm:$0xff]   ;;  %v10546_v17 = vld [vmem:[#allocation5 + $0xdc] ss:$36 sps:$4 sm:$0xff]   ;;  %v10552_v21 = vld [vmem:[#allocation5 + $0x94] ss:$36 sps:$4 sm:$0xff]  }
  0x2f   :  { %v10544_v15 = vld [vmem:[#allocation5 + $0x120] ss:$36 sps:$4 sm:$0xff]   ;;  %v10550_v19 = vld [vmem:[#allocation5 + $0xd8] ss:$36 sps:$4 sm:$0xff]   ;;  %v10556_v23 = vld [vmem:[#allocation5 + $0x90] ss:$36 sps:$4 sm:$0xff]  }
  0x30   :  { %1443 = vmatpush1.bf16.msra.mxu0 %v10532_v7  ;;  %v10545_v16 = vld [vmem:[#allocation5 + $0x5a0] ss:$36 sps:$4 sm:$0xff]   ;;  %v10551_v20 = vld [vmem:[#allocation5 + $0x558] ss:$36 sps:$4 sm:$0xff]   ;;  %v10557_v24 = vld [vmem:[#allocation5 + $0x510] ss:$36 sps:$4 sm:$0xff]  }
  0x31   :  { %1516 = vmatpush1.bf16.msra.mxu1 %v10533_v8  ;;  %1444 = vmatprep.subr.bf16.mxu0 %v10534_v9  ;;  %v10548_v18 = vld [vmem:[#allocation5 + $0x55c] ss:$36 sps:$4 sm:$0xff]   ;;  %v10554_v22 = vld [vmem:[#allocation5 + $0x514] ss:$36 sps:$4 sm:$0xff]   ;;  %v10558_v25 = vld [vmem:[#allocation5 + $0x4c] ss:$36 sps:$4 sm:$0xff]  }
  0x32   :  { %1517 = vmatprep.subr.bf16.mxu1 %v10536_v10  ;;  %v10560_v26 = vld [vmem:[#allocation5 + $0x4cc] ss:$36 sps:$4 sm:$0xff]   ;;  %v10564_v29 = vld [vmem:[#allocation5 + $0x4] ss:$36 sps:$4 sm:$0xff]   ;;  %v10570_v35 = vld [vmem:[#allocation5 + $0x43c] ss:$36 sps:$4 sm:$0xff]  }
  0x33   :  { %v10562_v27 = vld [vmem:[#allocation5 + $0x48] ss:$36 sps:$4 sm:$0xff]   ;;  %v10568_v31 = vld [vmem:[#allocation5] ss:$36 sps:$4 sm:$0xff]   ;;  %v10575_v39 = vld [vmem:[#allocation5 + $0x438] ss:$36 sps:$4 sm:$0xff]  }
  0x34   :  { %1445 = vmatpush1.bf16.msra.mxu0 %v10538_v11  ;;  %v10563_v28 = vld [vmem:[#allocation5 + $0x4c8] ss:$36 sps:$4 sm:$0xff]   ;;  %v10569_v32 = vld [vmem:[#allocation5 + $0x480] ss:$36 sps:$4 sm:$0xff]   ;;  %v10576_v40 = vld [vmem:[#allocation5 + $0x3f4] ss:$36 sps:$4 sm:$0xff]  }
  0x35   :  { %1518 = vmatpush1.bf16.msra.mxu1 %v10539_v12  ;;  %1446 = vmatprep.subr.bf16.mxu0 %v10540_v13  ;;  %v10566_v30 = vld [vmem:[#allocation5 + $0x484] ss:$36 sps:$4 sm:$0xff]   ;;  %v10580_v41 = vld [vmem:[#allocation5 + $0x1bc] ss:$36 sps:$4 sm:$0xff]   ;;  %v10581_v43 = vld [vmem:[#allocation5 + $0x3f0] ss:$36 sps:$4 sm:$0xff]  }
  0x36   :  { %1519 = vmatprep.subr.bf16.mxu1 %v10542_v14  ;;  %v65_v34 = vld [vmem:[#allocation2 + $0x28] sm:$0xff]  ;;  %v10572_v38 = vld [vmem:[#allocation5 + $0x200] ss:$36 sps:$4 sm:$0xff]   ;;  %v10578_v42 = vld [vmem:[#allocation5 + $0x1b8] ss:$36 sps:$4 sm:$0xff]   ;;  %vm11219_vm0 = vmmov 0  }
  0x37   :  { %v10574_v36 = vld [vmem:[#allocation5 + $0x204] ss:$36 sps:$4 sm:$0xff]   ;;  %v11260_v37 = vpack.c.bf16 %v65_v34, %v62_v33  ;;  %v10582_v44 = vld [vmem:[#allocation5 + $0x3ac] ss:$36 sps:$4 sm:$0xff]   ;;  %v10586_v45 = vld [vmem:[#allocation5 + $0x174] ss:$36 sps:$4 sm:$0xff]  }
  0x38   :  { %1447 = vmatpush1.bf16.msra.mxu0 %v10544_v15  ;;  %v10584_v46 = vld [vmem:[#allocation5 + $0x170] ss:$36 sps:$4 sm:$0xff]   ;;  %v10587_v47 = vld [vmem:[#allocation5 + $0x3a8] ss:$36 sps:$4 sm:$0xff]   ;;  %v64_v51 = vld [vmem:[#allocation2 + $0x20] sm:$0xff]  ;;  %vm2185_vm1 = vcmask 523264  }
  0x39   :  { %1520 = vmatpush1.bf16.msra.mxu1 %v10545_v16  ;;  %1448 = vmatprep.subr.bf16.mxu0 %v10546_v17  ;;  %v10588_v48 = vld [vmem:[#allocation5 + $0x364] ss:$36 sps:$4 sm:$0xff]   ;;  %v10592_v49 = vld [vmem:[#allocation5 + $0x12c] ss:$36 sps:$4 sm:$0xff]   ;;  %v10594_v55 = vld [vmem:[#allocation5 + $0x31c] ss:$36 sps:$4 sm:$0xff]  }
  0x3a   :  { %1521 = vmatprep.subr.bf16.mxu1 %v10548_v18  ;;  %v61_v50 = vld [vmem:[#allocation2 + $0x8] sm:$0xff]  ;;  %v10593_v53 = vld [vmem:[#allocation5 + $0x360] ss:$36 sps:$4 sm:$0xff]   ;;  %v10599_v58 = vld [vmem:[#allocation5 + $0x318] ss:$36 sps:$4 sm:$0xff]   ;;  %vm2662_vm2 = vcmask 1043456  }
  0x3b   :  { %v10590_v52 = vld [vmem:[#allocation5 + $0x128] ss:$36 sps:$4 sm:$0xff]   ;;  %v11264_v54 = vpack.c.bf16 %v64_v51, %v61_v50  ;;  %v10596_v57 = vld [vmem:[#allocation5 + $0xe0] ss:$36 sps:$4 sm:$0xff]   ;;  %v71_v60 = vld [vmem:[#allocation2 + $0x58] sm:$0xff]  ;;  %vm2562_vm4 = vcmask 64512  }
  0x3c   :  { %1449 = vmatpush1.bf16.msra.mxu0 %v10550_v19  ;;  %v10598_v56 = vld [vmem:[#allocation5 + $0xe4] ss:$36 sps:$4 sm:$0xff]   ;;  %v10600_v61 = vld [vmem:[#allocation5 + $0x2d4] ss:$36 sps:$4 sm:$0xff]   ;;  %v10604_v63 = vld [vmem:[#allocation5 + $0x9c] ss:$36 sps:$4 sm:$0xff]  }
  0x3d   :  { %1522 = vmatpush1.bf16.msra.mxu1 %v10551_v20  ;;  %1450 = vmatprep.subr.bf16.mxu0 %v10552_v21  ;;  %v68_v59 = vld [vmem:[#allocation2 + $0x40] sm:$0xff]  ;;  %v10602_v1 = vld [vmem:[#allocation5 + $0x98] ss:$36 sps:$4 sm:$0xff]   ;;  %v10605_v2 = vld [vmem:[#allocation5 + $0x2d0] ss:$36 sps:$4 sm:$0xff]   ;;  %s11220_s0 = smov 64  }
  0x3e   :  { %1523 = vmatprep.subr.bf16.mxu1 %v10554_v22  ;;  %1472 = vmatprep.mubr.bf16.mxu0 %v11264_v54  ;;  %v11267_v62 = vpack.c.bf16 %v71_v60, %v68_v59  ;;  %v10606_v3 = vld [vmem:[#allocation5 + $0x28c] ss:$36 sps:$4 sm:$0xff]   ;;  %v10610_v4 = vld [vmem:[#allocation5 + $0x54] ss:$36 sps:$4 sm:$0xff]   ;;  %v10612_v10 = vld [vmem:[#allocation5 + $0x244] ss:$36 sps:$4 sm:$0xff]  }
  0x3f   :  { %v74_v5 = vld [vmem:[#allocation2 + $0x70] sm:$0xff]  ;;  %v77_v6 = vld [vmem:[#allocation2 + $0x88] sm:$0xff]  ;;  %v10617_v13 = vld [vmem:[#allocation5 + $0x240] ss:$36 sps:$4 sm:$0xff]  }
  0x40   :  { %1451 = vmatpush1.bf16.msra.mxu0 %v10556_v23  ;;  %v10608_v7 = vld [vmem:[#allocation5 + $0x50] ss:$36 sps:$4 sm:$0xff]   ;;  %v10611_v8 = vld [vmem:[#allocation5 + $0x288] ss:$36 sps:$4 sm:$0xff]   ;;  %v11271_v9 = vpack.c.bf16 %v77_v6, %v74_v5  ;;  %v60_v14 = vld [vmem:[#allocation2] sm:$0xff] }
  0x41   :  { %1524 = vmatpush1.bf16.msra.mxu1 %v10557_v24  ;;  %1452 = vmatprep.subr.bf16.mxu0 %v10558_v25  ;;  %v10616_v11 = vld [vmem:[#allocation5 + $0xc] ss:$36 sps:$4 sm:$0xff]   ;;  %v63_v15 = vld [vmem:[#allocation2 + $0x18] sm:$0xff]  ;;  %v10620_v16 = vld [vmem:[#allocation5 + $0x444] ss:$36 sps:$4 sm:$0xff]  }
  0x42   :  { %1525 = vmatprep.subr.bf16.mxu1 %v10560_v26  ;;  %v10614_v12 = vld [vmem:[#allocation5 + $0x8] ss:$36 sps:$4 sm:$0xff]   ;;  %v10618_v18 = vld [vmem:[#allocation5 + $0x440] ss:$36 sps:$4 sm:$0xff]   ;;  %v83_v20 = vld [vmem:[#allocation2 + $0xb8] sm:$0xff]  ;;  %v11275_v21 = vpack.c.bf16 %v63_v15, %v60_v14 }
  0x43   :  { %v10623_v17 = vld [vmem:[#allocation5 + $0x684] ss:$36 sps:$4 sm:$0xff]   ;;  %v67_v22 = vld [vmem:[#allocation2 + $0x38] sm:$0xff]  ;;  %v70_v23 = vld [vmem:[#allocation2 + $0x50] sm:$0xff] }
  0x44   :  { %1453 = vmatpush1.bf16.msra.mxu0 %v10562_v27  ;;  %v80_v19 = vld [vmem:[#allocation2 + $0xa0] sm:$0xff]  ;;  %v10632_v33 = vld [vmem:[#allocation5 + $0x3b4] ss:$36 sps:$4 sm:$0xff]   ;;  %v10662_v6 = vld [vmem:[#allocation5 + $0x24c] ss:$36 sps:$4 sm:$0xff]  }
  0x45   :  { %1526 = vmatpush1.bf16.msra.mxu1 %v10563_v28  ;;  %1454 = vmatprep.subr.bf16.mxu0 %v10564_v29  ;;  %v11277_v24 = vpack.c.bf16 %v83_v20, %v80_v19  ;;  %v10621_v25 = vld [vmem:[#allocation5 + $0x680] ss:$36 sps:$4 sm:$0xff]   ;;  %v10624_v28 = vld [vmem:[#allocation5 + $0x3f8] ss:$36 sps:$4 sm:$0xff]   ;;  %v10657_v5 = vld [vmem:[#allocation5 + $0x4d0] ss:$36 sps:$4 sm:$0xff]  }
  0x46   :  { %1527 = vmatprep.subr.bf16.mxu1 %v10566_v30  ;;  %v10626_v26 = vld [vmem:[#allocation5 + $0x3fc] ss:$36 sps:$4 sm:$0xff]   ;;  %v11279_v30 = vpack.c.bf16 %v70_v23, %v67_v22  ;;  %v10635_v34 = vld [vmem:[#allocation5 + $0x5f4] ss:$36 sps:$4 sm:$0xff]   ;;  %v10690_v14 = vld [vmem:[#allocation5 + $0x688] ss:$36 sps:$4 sm:$0xff]  }
  0x47   :  { %v10629_v27 = vld [vmem:[#allocation5 + $0x63c] ss:$36 sps:$4 sm:$0xff]   ;;  %v10671_v15 = vld [vmem:[#allocation5 + $0x1c4] ss:$36 sps:$4 sm:$0xff]  }
  0x48   :  { %1455 = vmatpush1.bf16.msra.mxu0 %v10568_v31  ;;  %v10627_v29 = vld [vmem:[#allocation5 + $0x638] ss:$36 sps:$4 sm:$0xff]   ;;  %v66_v31 = vld [vmem:[#allocation2 + $0x30] sm:$0xff]  ;;  %v10642_v50 = vld [vmem:[#allocation5 + $0x320] ss:$36 sps:$4 sm:$0xff]  }
  0x49   :  { %1528 = vmatpush1.bf16.msra.mxu1 %v10569_v32  ;;  %1456 = vmatprep.subr.bf16.mxu0 %v10570_v35  ;;  %v69_v32 = vld [vmem:[#allocation2 + $0x48] sm:$0xff]  ;;  %v10630_v35 = vld [vmem:[#allocation5 + $0x3b0] ss:$36 sps:$4 sm:$0xff]   ;;  %v10645_v51 = vld [vmem:[#allocation5 + $0x560] ss:$36 sps:$4 sm:$0xff]  }
  0x4a   :  { %1586 = vmatprep.subr.bf16.mxu1 %v10574_v36  ;;  %v10633_v36 = vld [vmem:[#allocation5 + $0x5f0] ss:$36 sps:$4 sm:$0xff]   ;;  %v10651_v59 = vld [vmem:[#allocation5 + $0x518] ss:$36 sps:$4 sm:$0xff]  }
  0x4b   :  { %v10674_v19 = vld [vmem:[#allocation5 + $0x17c] ss:$36 sps:$4 sm:$0xff]  }
  0x4c   :  { %1546 = vmatmul.mubr.bf16.vlgmr.msra.gmra.mxu1 %v11260_v37  ;;  %1457 = vmatpush2.bf16.msra.mxu0 %v10575_v39  ;;  %v73_v39 = vld [vmem:[#allocation2 + $0x68] sm:$0xff]  ;;  %v10704_v20 = vld [vmem:[#allocation5 + $0x5fc] ss:$36 sps:$4 sm:$0xff]  }
  0x4d   :  { %1587 = vmatpush1.bf16.msra.mxu1 %v10572_v38  ;;  %1458 = vmatprep.subr.bf16.mxu0 %v10576_v40  ;;  %v11285_v38 = vpack.c.bf16 %v69_v32, %v66_v31  ;;  %v76_v40 = vld [vmem:[#allocation2 + $0x80] sm:$0xff]  ;;  %v10672_v22 = vld [vmem:[#allocation5 + $0x178] ss:$36 sps:$4 sm:$0xff]   ;;  %v10716_v31 = vld [vmem:[#allocation5 + $0x56c] ss:$36 sps:$4 sm:$0xff]  }
  0x4e   :  { %1588 = vmatprep.subr.bf16.mxu1 %v10580_v41  ;;  %1555 = vmatprep.mubr.bf16.mxu1 %v13346_v0  ;;  %v10638_v41 = vld [vmem:[#allocation5 + $0x36c] ss:$36 sps:$4 sm:$0xff]   ;;  %v10702_v23 = vld [vmem:[#allocation5 + $0x5f8] ss:$36 sps:$4 sm:$0xff]  }
  0x4f   :  { %v10678_v32 = vld [vmem:[#allocation5 + $0xe8] ss:$36 sps:$4 sm:$0xff]  }
  0x50   :  { %1459 = vmatpush2.bf16.msra.mxu0 %v10581_v43  ;;  %v10636_v43 = vld [vmem:[#allocation5 + $0x368] ss:$36 sps:$4 sm:$0xff]  }
  0x51   :  { %1589 = vmatpush1.bf16.msra.mxu1 %v10578_v42  ;;  %1460 = vmatprep.subr.bf16.mxu0 %v10582_v44  ;;  %v10641_v42 = vld [vmem:[#allocation5 + $0x5ac] ss:$36 sps:$4 sm:$0xff]  }
  0x52   :  { %1590 = vmatprep.subr.bf16.mxu1 %v10586_v45  ;;  %v10639_v44 = vld [vmem:[#allocation5 + $0x5a8] ss:$36 sps:$4 sm:$0xff]   ;;  %v11287_v45 = vpack.c.bf16 %v76_v40, %v73_v39  ;;  %v10720_v39 = vld [vmem:[#allocation5 + $0x520] ss:$36 sps:$4 sm:$0xff]  }
  0x53   :  { %v10686_v40 = vld [vmem:[#allocation5 + $0x5c] ss:$36 sps:$4 sm:$0xff]  }
  0x54   :  { %1461 = vmatpush2.bf16.msra.mxu0 %v10587_v47  ;;  %1556 = vmatmul.mubr.bf16.gmra.mxu1 %v11267_v62  ;;  %v75_v47 = vld [vmem:[#allocation2 + $0x78] sm:$0xff] }
  0x55   :  { %1591 = vmatpush1.bf16.msra.mxu1 %v10584_v46  ;;  %1462 = vmatprep.subr.bf16.mxu0 %v10588_v48  ;;  %v72_v46 = vld [vmem:[#allocation2 + $0x60] sm:$0xff] }
  0x56   :  { %1592 = vmatprep.subr.bf16.mxu1 %v10592_v49  ;;  %1565 = vmatprep.mubr.bf16.mxu1 %v13346_v0  ;;  %v10644_v48 = vld [vmem:[#allocation5 + $0x324] ss:$36 sps:$4 sm:$0xff]  }
  0x57   :  { %v10647_v49 = vld [vmem:[#allocation5 + $0x564] ss:$36 sps:$4 sm:$0xff]  }
  0x58   :  { %1463 = vmatpush2.bf16.msra.mxu0 %v10593_v53  ;;  %v79_v53 = vld [vmem:[#allocation2 + $0x98] sm:$0xff] }
  0x59   :  { %1593 = vmatpush1.bf16.msra.mxu1 %v10590_v52  ;;  %1464 = vmatprep.subr.bf16.mxu0 %v10594_v55  ;;  %v11291_v52 = vpack.c.bf16 %v75_v47, %v72_v46  ;;  %v82_v55 = vld [vmem:[#allocation2 + $0xb0] sm:$0xff] }
  0x5a   :  { %1594 = vmatprep.subr.bf16.mxu1 %v10598_v56  ;;  %v10650_v56 = vld [vmem:[#allocation5 + $0x2dc] ss:$36 sps:$4 sm:$0xff]   ;;  %v11293_v60 = vpack.c.bf16 %v82_v55, %v79_v53  ;;  %v10734_v46 = vld [vmem:[#allocation5 + $0x494] ss:$36 sps:$4 sm:$0xff]   ;;  %v10701_v55 = vld [vmem:[#allocation5 + $0x404] ss:$36 sps:$4 sm:$0xff]  }
  0x5b   :  { %v10687_v47 = vld [vmem:[#allocation5 + $0x10] ss:$36 sps:$4 sm:$0xff]  }
  0x5c   :  { %1465 = vmatpush2.bf16.msra.mxu0 %v10599_v58  ;;  %1566 = vmatmul.mubr.bf16.gmra.mxu1 %v11271_v9  ;;  %v10648_v58 = vld [vmem:[#allocation5 + $0x2d8] ss:$36 sps:$4 sm:$0xff]   ;;  %v10738_v53 = vld [vmem:[#allocation5 + $0x210] ss:$36 sps:$4 sm:$0xff]  }
  0x5d   :  { %1595 = vmatpush1.bf16.msra.mxu1 %v10596_v57  ;;  %1466 = vmatprep.subr.bf16.mxu0 %v10600_v61  ;;  %v10653_v57 = vld [vmem:[#allocation5 + $0x51c] ss:$36 sps:$4 sm:$0xff]   ;;  %v78_v61 = vld [vmem:[#allocation2 + $0x90] sm:$0xff] }
  0x5e   :  { %1596 = vmatprep.subr.bf16.mxu1 %v10604_v63  ;;  %1575 = vmatprep.mubr.bf16.mxu1 %v13346_v0  ;;  %v81_v63 = vld [vmem:[#allocation2 + $0xa8] sm:$0xff] }
  0x60   :  { %1467 = vmatpush2.bf16.msra.mxu0 %v10605_v2  ;;  %v10659_v2 = vld [vmem:[#allocation5 + $0x4d4] ss:$36 sps:$4 sm:$0xff]  }
  0x61   :  { %1597 = vmatpush1.bf16.msra.mxu1 %v10602_v1  ;;  %1468 = vmatprep.subr.bf16.mxu0 %v10606_v3  ;;  %v10656_v1 = vld [vmem:[#allocation5 + $0x294] ss:$36 sps:$4 sm:$0xff]   ;;  %v11297_v3 = vpack.c.bf16 %v81_v63, %v78_v61  ;;  %v10746_v61 = vld [vmem:[#allocation5 + $0x184] ss:$36 sps:$4 sm:$0xff]  }
  0x62   :  { %1598 = vmatprep.subr.bf16.mxu1 %v10610_v4  ;;  %v10654_v4 = vld [vmem:[#allocation5 + $0x290] ss:$36 sps:$4 sm:$0xff]   ;;  %v10705_v63 = vld [vmem:[#allocation5 + $0x3b8] ss:$36 sps:$4 sm:$0xff]  }
  0x64   :  { %1469 = vmatpush2.bf16.msra.mxu0 %v10611_v8  ;;  %1576 = vmatmul.mubr.bf16.gmra.mxu1 %v11277_v24  ;;  %v10660_v8 = vld [vmem:[#allocation5 + $0x248] ss:$36 sps:$4 sm:$0xff]  }
  0x65   :  { %1599 = vmatpush1.bf16.msra.mxu1 %v10608_v7  ;;  %1470 = vmatprep.subr.bf16.mxu0 %v10612_v10  ;;  %v10665_v7 = vld [vmem:[#allocation5 + $0x48c] ss:$36 sps:$4 sm:$0xff]  }
  0x66   :  { %1600 = vmatprep.subr.bf16.mxu1 %v10616_v11  ;;  %1618 = vmatprep.mubr.bf16.mxu1 %v11264_v54  ;;  %v10663_v10 = vld [vmem:[#allocation5 + $0x488] ss:$36 sps:$4 sm:$0xff]  }
  0x67   :  { %v10668_v11 = vld [vmem:[#allocation5 + $0x20c] ss:$36 sps:$4 sm:$0xff]  }
  0x68   :  { %1471 = vmatpush2.bf16.msra.mxu0 %v10617_v13  ;;  %v10666_v13 = vld [vmem:[#allocation5 + $0x208] ss:$36 sps:$4 sm:$0xff]  }
  0x69   :  { %1601 = vmatpush1.bf16.msra.mxu1 %v10614_v12  ;;  %1659 = vmatprep.subr.bf16.mxu0 %v10623_v17  ;;  %v10692_v12 = vld [vmem:[#allocation5 + $0x68c] ss:$36 sps:$4 sm:$0xff]   ;;  %v10669_v17 = vld [vmem:[#allocation5 + $0x1c0] ss:$36 sps:$4 sm:$0xff]  }
  0x6a   :  { %1602 = vmatprep.subr.bf16.mxu1 %v10620_v16  ;;  %v10698_v16 = vld [vmem:[#allocation5 + $0x644] ss:$36 sps:$4 sm:$0xff]  }
  0x6b   :  { %1473 = vmatmul.mubr.bf16.vlgmr.msra.gmra.mxu0 %v11275_v21 }
  0x6c   :  { %1660 = vmatpush1.bf16.msra.mxu0 %v10621_v25  ;;  %1482 = vmatprep.mubr.bf16.mxu0 %v11279_v30  ;;  %v10677_v25 = vld [vmem:[#allocation5 + $0x134] ss:$36 sps:$4 sm:$0xff]  }
  0x6d   :  { %1603 = vmatpush2.bf16.msra.mxu1 %v10618_v18  ;;  %1661 = vmatprep.subr.bf16.mxu0 %v10629_v27  ;;  %v10696_v18 = vld [vmem:[#allocation5 + $0x640] ss:$36 sps:$4 sm:$0xff]   ;;  %v10675_v27 = vld [vmem:[#allocation5 + $0x130] ss:$36 sps:$4 sm:$0xff]  }
  0x6e   :  { %1604 = vmatprep.subr.bf16.mxu1 %v10626_v26  ;;  %v10710_v26 = vld [vmem:[#allocation5 + $0x5b4] ss:$36 sps:$4 sm:$0xff]  }
  0x70   :  { %1662 = vmatpush1.bf16.msra.mxu0 %v10627_v29  ;;  %v10680_v29 = vld [vmem:[#allocation5 + $0xec] ss:$36 sps:$4 sm:$0xff]  }
  0x71   :  { %1605 = vmatpush2.bf16.msra.mxu1 %v10624_v28  ;;  %1663 = vmatprep.subr.bf16.mxu0 %v10635_v34  ;;  %v10708_v28 = vld [vmem:[#allocation5 + $0x5b0] ss:$36 sps:$4 sm:$0xff]   ;;  %v10683_v34 = vld [vmem:[#allocation5 + $0xa4] ss:$36 sps:$4 sm:$0xff]  }
  0x72   :  { %1606 = vmatprep.subr.bf16.mxu1 %v10632_v33  ;;  %v10714_v33 = vld [vmem:[#allocation5 + $0x568] ss:$36 sps:$4 sm:$0xff]  }
  0x73   :  { %1483 = vmatmul.mubr.bf16.gmra.mxu0 %v11285_v38 }
  0x74   :  { %1664 = vmatpush1.bf16.msra.mxu0 %v10633_v36  ;;  %1492 = vmatprep.mubr.bf16.mxu0 %v11287_v45  ;;  %v10681_v36 = vld [vmem:[#allocation5 + $0xa0] ss:$36 sps:$4 sm:$0xff]  }
  0x75   :  { %1607 = vmatpush2.bf16.msra.mxu1 %v10630_v35  ;;  %1665 = vmatprep.subr.bf16.mxu0 %v10641_v42  ;;  %v10722_v35 = vld [vmem:[#allocation5 + $0x524] ss:$36 sps:$4 sm:$0xff]   ;;  %v10684_v42 = vld [vmem:[#allocation5 + $0x58] ss:$36 sps:$4 sm:$0xff]  }
  0x76   :  { %1608 = vmatprep.subr.bf16.mxu1 %v10638_v41  ;;  %v10728_v41 = vld [vmem:[#allocation5 + $0x4dc] ss:$36 sps:$4 sm:$0xff]  }
  0x78   :  { %1666 = vmatpush1.bf16.msra.mxu0 %v10639_v44  ;;  %v10689_v44 = vld [vmem:[#allocation5 + $0x14] ss:$36 sps:$4 sm:$0xff]  }
  0x79   :  { %1609 = vmatpush2.bf16.msra.mxu1 %v10636_v43  ;;  %1667 = vmatprep.subr.bf16.mxu0 %v10647_v49  ;;  %v10726_v43 = vld [vmem:[#allocation5 + $0x4d8] ss:$36 sps:$4 sm:$0xff]   ;;  %v10695_v49 = vld [vmem:[#allocation5 + $0x44c] ss:$36 sps:$4 sm:$0xff]  }
  0x7a   :  { %1610 = vmatprep.subr.bf16.mxu1 %v10644_v48  ;;  %v10732_v48 = vld [vmem:[#allocation5 + $0x490] ss:$36 sps:$4 sm:$0xff]  }
  0x7b   :  { %1493 = vmatmul.mubr.bf16.gmra.mxu0 %v11291_v52 }
  0x7c   :  { %1668 = vmatpush1.bf16.msra.mxu0 %v10645_v51  ;;  %1502 = vmatprep.mubr.bf16.mxu0 %v11293_v60  ;;  %v10693_v51 = vld [vmem:[#allocation5 + $0x448] ss:$36 sps:$4 sm:$0xff]  }
  0x7d   :  { %1611 = vmatpush2.bf16.msra.mxu1 %v10642_v50  ;;  %1669 = vmatprep.subr.bf16.mxu0 %v10653_v57  ;;  %v10740_v50 = vld [vmem:[#allocation5 + $0x214] ss:$36 sps:$4 sm:$0xff]   ;;  %v10699_v57 = vld [vmem:[#allocation5 + $0x400] ss:$36 sps:$4 sm:$0xff]  }
  0x7e   :  { %1612 = vmatprep.subr.bf16.mxu1 %v10650_v56  ;;  %v10743_v56 = vld [vmem:[#allocation5 + $0x1cc] ss:$36 sps:$4 sm:$0xff]  }
  0x80   :  { %1670 = vmatpush1.bf16.msra.mxu0 %v10651_v59  ;;  %v10741_v59 = vld [vmem:[#allocation5 + $0x1c8] ss:$36 sps:$4 sm:$0xff]  }
  0x81   :  { %1613 = vmatpush2.bf16.msra.mxu1 %v10648_v58  ;;  %1671 = vmatprep.subr.bf16.mxu0 %v10659_v2  ;;  %v10707_v58 = vld [vmem:[#allocation5 + $0x3bc] ss:$36 sps:$4 sm:$0xff]   ;;  %v10713_v2 = vld [vmem:[#allocation5 + $0x374] ss:$36 sps:$4 sm:$0xff]  }
  0x82   :  { %1614 = vmatprep.subr.bf16.mxu1 %v10656_v1  ;;  %v10744_v1 = vld [vmem:[#allocation5 + $0x180] ss:$36 sps:$4 sm:$0xff]  }
  0x83   :  { %1503 = vmatmul.mubr.bf16.gmra.mxu0 %v11297_v3 }
  0x84   :  { %1672 = vmatpush1.bf16.msra.mxu0 %v10657_v5  ;;  %1691 = vmatprep.mubr.bf16.mxu0 %v13346_v0  ;;  %v10711_v5 = vld [vmem:[#allocation5 + $0x370] ss:$36 sps:$4 sm:$0xff]  }
  0x85   :  { %1615 = vmatpush2.bf16.msra.mxu1 %v10654_v4  ;;  %1673 = vmatprep.subr.bf16.mxu0 %v10665_v7  ;;  %v10749_v4 = vld [vmem:[#allocation5 + $0x13c] ss:$36 sps:$4 sm:$0xff]  }
  0x86   :  { %1616 = vmatprep.subr.bf16.mxu1 %v10662_v6  ;;  %v10719_v6 = vld [vmem:[#allocation5 + $0x32c] ss:$36 sps:$4 sm:$0xff]   ;;  %v10747_v7 = vld [vmem:[#allocation5 + $0x138] ss:$36 sps:$4 sm:$0xff]  }
  0x88   :  { %1674 = vmatpush1.bf16.msra.mxu0 %v10663_v10  ;;  %v10717_v10 = vld [vmem:[#allocation5 + $0x328] ss:$36 sps:$4 sm:$0xff]  }
  0x89   :  { %1617 = vmatpush2.bf16.msra.mxu1 %v10660_v8  ;;  %1732 = vmatprep.subr.bf16.mxu0 %v10668_v11  ;;  %v10752_v8 = vld [vmem:[#allocation5 + $0xf4] ss:$36 sps:$4 sm:$0xff]   ;;  %v10725_v11 = vld [vmem:[#allocation5 + $0x2e4] ss:$36 sps:$4 sm:$0xff]  }
  0x8a   :  { %1805 = vmatprep.subr.bf16.mxu1 %v10692_v12  ;;  %v10750_v12 = vld [vmem:[#allocation5 + $0xf0] ss:$36 sps:$4 sm:$0xff]  }
  0x8b   :  { %1692 = vmatmul.mubr.bf16.vlgmr.msra.gmra.mxu0 %v11260_v37 }
  0x8c   :  { %1619 = vmatmul.mubr.bf16.vlgmr.msra.gmra.mxu1 %v11275_v21  ;;  %1701 = vmatprep.mubr.bf16.mxu0 %v13346_v0 }
  0x8d   :  { %1628 = vmatprep.mubr.bf16.mxu1 %v11279_v30  ;;  %1733 = vmatpush1.bf16.msra.mxu0 %v10666_v13  ;;  %v10758_v13 = vld [vmem:[#allocation5 + $0xac] ss:$36 sps:$4 sm:$0xff]  }
  0x8e   :  { %1806 = vmatpush1.bf16.msra.mxu1 %v10690_v14  ;;  %1734 = vmatprep.subr.bf16.mxu0 %v10671_v15  ;;  %v10723_v14 = vld [vmem:[#allocation5 + $0x2e0] ss:$36 sps:$4 sm:$0xff]  }
  0x8f   :  { %1807 = vmatprep.subr.bf16.mxu1 %v10698_v16  ;;  %v10731_v15 = vld [vmem:[#allocation5 + $0x29c] ss:$36 sps:$4 sm:$0xff]   ;;  %v10756_v16 = vld [vmem:[#allocation5 + $0xa8] ss:$36 sps:$4 sm:$0xff]  }
  0x91   :  { %1735 = vmatpush1.bf16.msra.mxu0 %v10669_v17  ;;  %v10764_v17 = vld [vmem:[#allocation5 + $0x64] ss:$36 sps:$4 sm:$0xff]  }
  0x92   :  { %1808 = vmatpush1.bf16.msra.mxu1 %v10696_v18  ;;  %1736 = vmatprep.subr.bf16.mxu0 %v10674_v19  ;;  %v10729_v18 = vld [vmem:[#allocation5 + $0x298] ss:$36 sps:$4 sm:$0xff]  }
  0x93   :  { %1809 = vmatprep.subr.bf16.mxu1 %v10704_v20  ;;  %1702 = vmatmul.mubr.bf16.gmra.mxu0 %v11267_v62  ;;  %v10737_v19 = vld [vmem:[#allocation5 + $0x254] ss:$36 sps:$4 sm:$0xff]   ;;  %v10762_v20 = vld [vmem:[#allocation5 + $0x60] ss:$36 sps:$4 sm:$0xff]  }
  0x94   :  { %1629 = vmatmul.mubr.bf16.gmra.mxu1 %v11285_v38  ;;  %1711 = vmatprep.mubr.bf16.mxu0 %v13346_v0 }
  0x95   :  { %1638 = vmatprep.mubr.bf16.mxu1 %v11287_v45  ;;  %1737 = vmatpush1.bf16.msra.mxu0 %v10672_v22  ;;  %v10770_v22 = vld [vmem:[#allocation5 + $0x1c] ss:$36 sps:$4 sm:$0xff]  }
  0x96   :  { %1810 = vmatpush1.bf16.msra.mxu1 %v10702_v23  ;;  %1738 = vmatprep.subr.bf16.mxu0 %v10677_v25  ;;  %v10735_v23 = vld [vmem:[#allocation5 + $0x250] ss:$36 sps:$4 sm:$0xff]  }
  0x97   :  { %1811 = vmatprep.subr.bf16.mxu1 %v10710_v26  ;;  %v10755_v25 = vld [vmem:[#allocation5 + $0x694] ss:$36 sps:$4 sm:$0xff]  }
  0x98   :  { %v10768_v26 = vld [vmem:[#allocation5 + $0x18] ss:$36 sps:$4 sm:$0xff]  }
  0x99   :  { %1739 = vmatpush1.bf16.msra.mxu0 %v10675_v27  ;;  %v10776_v27 = vld [vmem:[#allocation5 + $0x454] ss:$36 sps:$4 sm:$0xff]  }
  0x9a   :  { %1812 = vmatpush1.bf16.msra.mxu1 %v10708_v28  ;;  %1740 = vmatprep.subr.bf16.mxu0 %v10680_v29  ;;  %v10753_v28 = vld [vmem:[#allocation5 + $0x690] ss:$36 sps:$4 sm:$0xff]  }
  0x9b   :  { %1813 = vmatprep.subr.bf16.mxu1 %v10716_v31  ;;  %1712 = vmatmul.mubr.bf16.gmra.mxu0 %v11271_v9  ;;  %v10761_v29 = vld [vmem:[#allocation5 + $0x64c] ss:$36 sps:$4 sm:$0xff]  }
  0x9c   :  { %1639 = vmatmul.mubr.bf16.gmra.mxu1 %v11291_v52  ;;  %1721 = vmatprep.mubr.bf16.mxu0 %v13346_v0  ;;  %v10774_v31 = vld [vmem:[#allocation5 + $0x450] ss:$36 sps:$4 sm:$0xff]  }
  0x9d   :  { %1648 = vmatprep.mubr.bf16.mxu1 %v11293_v60  ;;  %1741 = vmatpush1.bf16.msra.mxu0 %v10678_v32  ;;  %v10782_v32 = vld [vmem:[#allocation5 + $0x40c] ss:$36 sps:$4 sm:$0xff]  }
  0x9e   :  { %1814 = vmatpush1.bf16.msra.mxu1 %v10714_v33  ;;  %1742 = vmatprep.subr.bf16.mxu0 %v10683_v34  ;;  %v10759_v33 = vld [vmem:[#allocation5 + $0x648] ss:$36 sps:$4 sm:$0xff]  }
  0x9f   :  { %1815 = vmatprep.subr.bf16.mxu1 %v10722_v35  ;;  %v10767_v34 = vld [vmem:[#allocation5 + $0x604] ss:$36 sps:$4 sm:$0xff]  }
  0xa0   :  { %v10780_v35 = vld [vmem:[#allocation5 + $0x408] ss:$36 sps:$4 sm:$0xff]  }
  0xa1   :  { %1743 = vmatpush1.bf16.msra.mxu0 %v10681_v36  ;;  %v10788_v36 = vld [vmem:[#allocation5 + $0x3c4] ss:$36 sps:$4 sm:$0xff]  }
  0xa2   :  { %1816 = vmatpush1.bf16.msra.mxu1 %v10720_v39  ;;  %1744 = vmatprep.subr.bf16.mxu0 %v10686_v40  ;;  %v10765_v39 = vld [vmem:[#allocation5 + $0x600] ss:$36 sps:$4 sm:$0xff]  }
  0xa3   :  { %1817 = vmatprep.subr.bf16.mxu1 %v10728_v41  ;;  %1722 = vmatmul.mubr.bf16.gmra.mxu0 %v11277_v24  ;;  %v10773_v40 = vld [vmem:[#allocation5 + $0x5bc] ss:$36 sps:$4 sm:$0xff]  }
  0xa4   :  { %1649 = vmatmul.mubr.bf16.gmra.mxu1 %v11297_v3  ;;  %1764 = vmatprep.mubr.bf16.mxu0 %v11264_v54  ;;  %v10786_v41 = vld [vmem:[#allocation5 + $0x3c0] ss:$36 sps:$4 sm:$0xff]  }
  0xa5   :  { %1837 = vmatprep.mubr.bf16.mxu1 %v13346_v0  ;;  %1745 = vmatpush1.bf16.msra.mxu0 %v10684_v42  ;;  %v10794_v42 = vld [vmem:[#allocation5 + $0x37c] ss:$36 sps:$4 sm:$0xff]  }
  0xa6   :  { %1818 = vmatpush1.bf16.msra.mxu1 %v10726_v43  ;;  %1746 = vmatprep.subr.bf16.mxu0 %v10689_v44  ;;  %v10771_v43 = vld [vmem:[#allocation5 + $0x5b8] ss:$36 sps:$4 sm:$0xff]  }
  0xa7   :  { %1819 = vmatprep.subr.bf16.mxu1 %v10734_v46  ;;  %v10779_v44 = vld [vmem:[#allocation5 + $0x574] ss:$36 sps:$4 sm:$0xff]  }
  0xa8   :  { %v10792_v46 = vld [vmem:[#allocation5 + $0x378] ss:$36 sps:$4 sm:$0xff]  }
  0xa9   :  { %1747 = vmatpush1.bf16.msra.mxu0 %v10687_v47  ;;  %v10800_v47 = vld [vmem:[#allocation5 + $0x334] ss:$36 sps:$4 sm:$0xff]  }
  0xaa   :  { %1820 = vmatpush1.bf16.msra.mxu1 %v10732_v48  ;;  %1748 = vmatprep.subr.bf16.mxu0 %v10695_v49  ;;  %v10777_v48 = vld [vmem:[#allocation5 + $0x570] ss:$36 sps:$4 sm:$0xff]  }
  0xab   :  { %1878 = vmatprep.subr.bf16.mxu1 %v10740_v50  ;;  %v10785_v49 = vld [vmem:[#allocation5 + $0x52c] ss:$36 sps:$4 sm:$0xff]  }
  0xac   :  { %v10798_v50 = vld [vmem:[#allocation5 + $0x330] ss:$36 sps:$4 sm:$0xff]  }
  0xad   :  { %1838 = vmatmul.mubr.bf16.vlgmr.msra.gmra.mxu1 %v11260_v37  ;;  %1749 = vmatpush2.bf16.msra.mxu0 %v10693_v51  ;;  %v10805_v51 = vld [vmem:[#allocation5 + $0x2ec] ss:$36 sps:$4 sm:$0xff]  }
  0xae   :  { %1879 = vmatpush1.bf16.msra.mxu1 %v10738_v53  ;;  %1750 = vmatprep.subr.bf16.mxu0 %v10701_v55  ;;  %v10783_v53 = vld [vmem:[#allocation5 + $0x528] ss:$36 sps:$4 sm:$0xff]  }
  0xaf   :  { %1880 = vmatprep.subr.bf16.mxu1 %v10743_v56  ;;  %1847 = vmatprep.mubr.bf16.mxu1 %v13346_v0  ;;  %v10791_v55 = vld [vmem:[#allocation5 + $0x4e4] ss:$36 sps:$4 sm:$0xff]  }
  0xb0   :  { %v10803_v56 = vld [vmem:[#allocation5 + $0x2e8] ss:$36 sps:$4 sm:$0xff]  }
  0xb1   :  { %1751 = vmatpush2.bf16.msra.mxu0 %v10699_v57  ;;  %v10810_v57 = vld [vmem:[#allocation5 + $0x2a4] ss:$36 sps:$4 sm:$0xff]  }
  0xb2   :  { %1881 = vmatpush1.bf16.msra.mxu1 %v10741_v59  ;;  %1752 = vmatprep.subr.bf16.mxu0 %v10707_v58  ;;  %v10789_v58 = vld [vmem:[#allocation5 + $0x4e0] ss:$36 sps:$4 sm:$0xff]  }
  0xb3   :  { %1882 = vmatprep.subr.bf16.mxu1 %v10746_v61  ;;  %v10797_v59 = vld [vmem:[#allocation5 + $0x49c] ss:$36 sps:$4 sm:$0xff]  }
  0xb4   :  { %v10808_v61 = vld [vmem:[#allocation5 + $0x2a0] ss:$36 sps:$4 sm:$0xff]  }
  0xb5   :  { %1848 = vmatmul.mubr.bf16.gmra.mxu1 %v11267_v62  ;;  %1753 = vmatpush2.bf16.msra.mxu0 %v10705_v63  ;;  %v10815_v63 = vld [vmem:[#allocation5 + $0x25c] ss:$36 sps:$4 sm:$0xff]  }
  0xb6   :  { %1883 = vmatpush1.bf16.msra.mxu1 %v10744_v1  ;;  %1754 = vmatprep.subr.bf16.mxu0 %v10713_v2  ;;  %v10795_v1 = vld [vmem:[#allocation5 + $0x498] ss:$36 sps:$4 sm:$0xff]  }
  0xb7   :  { %1884 = vmatprep.subr.bf16.mxu1 %v10749_v4  ;;  %1857 = vmatprep.mubr.bf16.mxu1 %v13346_v0  ;;  %v10801_v2 = vld [vmem:[#allocation5 + $0x458] ss:$36 sps:$4 sm:$0xff]  }
  0xb8   :  { %v10813_v4 = vld [vmem:[#allocation5 + $0x258] ss:$36 sps:$4 sm:$0xff]  }
  0xb9   :  { %1755 = vmatpush2.bf16.msra.mxu0 %v10711_v5  ;;  %v10818_v5 = vld [vmem:[#allocation5 + $0x698] ss:$36 sps:$4 sm:$0xff]  }
  0xba   :  { %1885 = vmatpush1.bf16.msra.mxu1 %v10747_v7  ;;  %1756 = vmatprep.subr.bf16.mxu0 %v10719_v6  ;;  %v10802_v6 = vld [vmem:[#allocation5 + $0x218] ss:$36 sps:$4 sm:$0xff]   ;;  %v10806_v7 = vld [vmem:[#allocation5 + $0x410] ss:$36 sps:$4 sm:$0xff]  }
  0xbb   :  { %1886 = vmatprep.subr.bf16.mxu1 %v10752_v8  ;;  %v10821_v8 = vld [vmem:[#allocation5 + $0x650] ss:$36 sps:$4 sm:$0xff]  }
  0xbd   :  { %1858 = vmatmul.mubr.bf16.gmra.mxu1 %v11271_v9  ;;  %1757 = vmatpush2.bf16.msra.mxu0 %v10717_v10  ;;  %v10807_v10 = vld [vmem:[#allocation5 + $0x1d0] ss:$36 sps:$4 sm:$0xff]  }
  0xbe   :  { %1887 = vmatpush1.bf16.msra.mxu1 %v10750_v12  ;;  %1758 = vmatprep.subr.bf16.mxu0 %v10725_v11  ;;  %v10811_v11 = vld [vmem:[#allocation5 + $0x3c8] ss:$36 sps:$4 sm:$0xff]  }
  0xbf   :  { %1888 = vmatprep.subr.bf16.mxu1 %v10758_v13  ;;  %1867 = vmatprep.mubr.bf16.mxu1 %v13346_v0  ;;  %v10824_v12 = vld [vmem:[#allocation5 + $0x608] ss:$36 sps:$4 sm:$0xff]  }
  0xc0   :  { %v10812_v13 = vld [vmem:[#allocation5 + $0x188] ss:$36 sps:$4 sm:$0xff]  }
  0xc1   :  { %1759 = vmatpush2.bf16.msra.mxu0 %v10723_v14  ;;  %v10816_v14 = vld [vmem:[#allocation5 + $0x380] ss:$36 sps:$4 sm:$0xff]  }
  0xc2   :  { %1889 = vmatpush1.bf16.msra.mxu1 %v10756_v16  ;;  %1760 = vmatprep.subr.bf16.mxu0 %v10731_v15  ;;  %v10827_v15 = vld [vmem:[#allocation5 + $0x5c0] ss:$36 sps:$4 sm:$0xff]  }
  0xc3   :  { %1890 = vmatprep.subr.bf16.mxu1 %v10764_v17  ;;  %v10817_v16 = vld [vmem:[#allocation5 + $0x140] ss:$36 sps:$4 sm:$0xff]   ;;  %v10819_v17 = vld [vmem:[#allocation5 + $0x338] ss:$36 sps:$4 sm:$0xff]  }
  0xc5   :  { %1868 = vmatmul.mubr.bf16.gmra.mxu1 %v11277_v24  ;;  %1761 = vmatpush2.bf16.msra.mxu0 %v10729_v18  ;;  %v10830_v18 = vld [vmem:[#allocation5 + $0x578] ss:$36 sps:$4 sm:$0xff]  }
  0xc6   :  { %1891 = vmatpush1.bf16.msra.mxu1 %v10762_v20  ;;  %1762 = vmatprep.subr.bf16.mxu0 %v10737_v19  ;;  %v10820_v19 = vld [vmem:[#allocation5 + $0xf8] ss:$36 sps:$4 sm:$0xff]   ;;  %v10822_v20 = vld [vmem:[#allocation5 + $0x2f0] ss:$36 sps:$4 sm:$0xff]  }
  0xc7   :  { %1892 = vmatprep.subr.bf16.mxu1 %v10770_v22  ;;  %1910 = vmatprep.mubr.bf16.mxu1 %v11264_v54  ;;  %v10831_v22 = vld [vmem:[#allocation5 + $0x530] ss:$36 sps:$4 sm:$0xff]  }
  0xc9   :  { %1763 = vmatpush2.bf16.msra.mxu0 %v10735_v23  ;;  %v10823_v23 = vld [vmem:[#allocation5 + $0xb0] ss:$36 sps:$4 sm:$0xff]  }
  0xca   :  { %1893 = vmatpush1.bf16.msra.mxu1 %v10768_v26  ;;  %1951 = vmatprep.subr.bf16.mxu0 %v10755_v25  ;;  %v10825_v25 = vld [vmem:[#allocation5 + $0x2a8] ss:$36 sps:$4 sm:$0xff]  }
  0xcb   :  { %1894 = vmatprep.subr.bf16.mxu1 %v10776_v27  ;;  %v10832_v26 = vld [vmem:[#allocation5 + $0x4e8] ss:$36 sps:$4 sm:$0xff]  }
  0xcc   :  { %1765 = vmatmul.mubr.bf16.vlgmr.msra.gmra.mxu0 %v11275_v21  ;;  %v10826_v27 = vld [vmem:[#allocation5 + $0x68] ss:$36 sps:$4 sm:$0xff]  }
  0xcd   :  { %1952 = vmatpush1.bf16.msra.mxu0 %v10753_v28  ;;  %1774 = vmatprep.mubr.bf16.mxu0 %v11279_v30  ;;  %v10828_v28 = vld [vmem:[#allocation5 + $0x260] ss:$36 sps:$4 sm:$0xff]  }
  0xce   :  { %1953 = vmatprep.subr.bf16.mxu0 %v10761_v29  ;;  %1895 = vmatpush2.bf16.msra.mxu1 %v10774_v31  ;;  %v10833_v29 = vld [vmem:[#allocation5 + $0x4a0] ss:$36 sps:$4 sm:$0xff]  }
  0xcf   :  { %1896 = vmatprep.subr.bf16.mxu1 %v10782_v32  ;;  %v10829_v31 = vld [vmem:[#allocation5 + $0x20] ss:$36 sps:$4 sm:$0xff]   ;;  %v13348_v32 = vmov 0.0  }
  0xd1   :  { %1954 = vmatpush1.bf16.msra.mxu0 %v10759_v33 }
  0xd2   :  { %1955 = vmatprep.subr.bf16.mxu0 %v10767_v34  ;;  %1897 = vmatpush2.bf16.msra.mxu1 %v10780_v35 }
  0xd3   :  { %1898 = vmatprep.subr.bf16.mxu1 %v10788_v36 }
  0xd4   :  { %1775 = vmatmul.mubr.bf16.gmra.mxu0 %v11285_v38 }
  0xd5   :  { %1956 = vmatpush1.bf16.msra.mxu0 %v10765_v39  ;;  %1784 = vmatprep.mubr.bf16.mxu0 %v11287_v45 }
  0xd6   :  { %1957 = vmatprep.subr.bf16.mxu0 %v10773_v40  ;;  %1899 = vmatpush2.bf16.msra.mxu1 %v10786_v41 }
  0xd7   :  { %1900 = vmatprep.subr.bf16.mxu1 %v10794_v42 }
  0xd9   :  { %1958 = vmatpush1.bf16.msra.mxu0 %v10771_v43 }
  0xda   :  { %1959 = vmatprep.subr.bf16.mxu0 %v10779_v44  ;;  %1901 = vmatpush2.bf16.msra.mxu1 %v10792_v46 }
  0xdb   :  { %1902 = vmatprep.subr.bf16.mxu1 %v10800_v47 }
  0xdc   :  { %1785 = vmatmul.mubr.bf16.gmra.mxu0 %v11291_v52 }
  0xdd   :  { %1960 = vmatpush1.bf16.msra.mxu0 %v10777_v48  ;;  %1794 = vmatprep.mubr.bf16.mxu0 %v11293_v60 }
  0xde   :  { %1961 = vmatprep.subr.bf16.mxu0 %v10785_v49  ;;  %1903 = vmatpush2.bf16.msra.mxu1 %v10798_v50 }
  0xdf   :  { %1904 = vmatprep.subr.bf16.mxu1 %v10805_v51 }
  0xe1   :  { %1962 = vmatpush1.bf16.msra.mxu0 %v10783_v53 }
  0xe2   :  { %1963 = vmatprep.subr.bf16.mxu0 %v10791_v55  ;;  %1905 = vmatpush2.bf16.msra.mxu1 %v10803_v56 }
  0xe3   :  { %1906 = vmatprep.subr.bf16.mxu1 %v10810_v57 }
  0xe4   :  { %1795 = vmatmul.mubr.bf16.gmra.mxu0 %v11297_v3 }
  0xe5   :  { %1964 = vmatpush1.bf16.msra.mxu0 %v10789_v58  ;;  %1983 = vmatprep.mubr.bf16.mxu0 %v13346_v0 }
  0xe6   :  { %1965 = vmatprep.subr.bf16.mxu0 %v10797_v59  ;;  %1907 = vmatpush2.bf16.msra.mxu1 %v10808_v61 }
  0xe7   :  { %1908 = vmatprep.subr.bf16.mxu1 %v10815_v63 }
  0xe9   :  { %1966 = vmatpush1.bf16.msra.mxu0 %v10795_v1 }
  0xea   :  { %9520 = vmatprep.subr.bf16.mxu0 %v10801_v2  ;;  %1909 = vmatpush2.bf16.msra.mxu1 %v10813_v4 }
  0xeb   :  { %9812 = vmatprep.subr.bf16.mxu1 %v10818_v5 }
  0xec   :  { %1984 = vmatmul.mubr.bf16.vlgmr.msra.gmra.mxu0 %v11260_v37 }
  0xed   :  { %9521 = vmatpush3.bf16.msra.mxu0 %v10802_v6  ;;  %1993 = vmatprep.mubr.bf16.mxu0 %v13346_v0 }
  0xee   :  { %9522 = vmatprep.subr.bf16.mxu0 %v10806_v7  ;;  %1911 = vmatmul.mubr.bf16.vlgmr.msra.gmra.mxu1 %v11275_v21 }
  0xef   :  { %9813 = vmatpush3.bf16.msra.mxu1 %v10818_v5  ;;  %1920 = vmatprep.mubr.bf16.mxu1 %v11279_v30 }
  0xf0   :  { %9814 = vmatprep.subr.bf16.mxu1 %v10821_v8 }
  0xf1   :  { %9523 = vmatpush3.bf16.msra.mxu0 %v10807_v10 }
  0xf2   :  { %9524 = vmatprep.subr.bf16.mxu0 %v10811_v11 }
  0xf3   :  { %9815 = vmatpush3.bf16.msra.mxu1 %v10821_v8 }
  0xf4   :  { %1994 = vmatmul.mubr.bf16.gmra.mxu0 %v11267_v62  ;;  %9816 = vmatprep.subr.bf16.mxu1 %v10824_v12 }
  0xf5   :  { %9525 = vmatpush3.bf16.msra.mxu0 %v10812_v13  ;;  %2003 = vmatprep.mubr.bf16.mxu0 %v13346_v0 }
  0xf6   :  { %9526 = vmatprep.subr.bf16.mxu0 %v10816_v14  ;;  %1921 = vmatmul.mubr.bf16.gmra.mxu1 %v11285_v38 }
  0xf7   :  { %9817 = vmatpush3.bf16.msra.mxu1 %v10824_v12  ;;  %1930 = vmatprep.mubr.bf16.mxu1 %v11287_v45 }
  0xf8   :  { %9818 = vmatprep.subr.bf16.mxu1 %v10827_v15 }
  0xf9   :  { %9527 = vmatpush3.bf16.msra.mxu0 %v10817_v16 }
  0xfa   :  { %9528 = vmatprep.subr.bf16.mxu0 %v10819_v17 }
  0xfb   :  { %9819 = vmatpush3.bf16.msra.mxu1 %v10827_v15 }
  0xfc   :  { %2004 = vmatmul.mubr.bf16.gmra.mxu0 %v11271_v9  ;;  %9820 = vmatprep.subr.bf16.mxu1 %v10830_v18 }
  0xfd   :  { %9529 = vmatpush3.bf16.msra.mxu0 %v10820_v19  ;;  %2013 = vmatprep.mubr.bf16.mxu0 %v13346_v0 }
  0xfe   :  { %9530 = vmatprep.subr.bf16.mxu0 %v10822_v20  ;;  %1931 = vmatmul.mubr.bf16.gmra.mxu1 %v11291_v52 }
  0xff   :  { %9821 = vmatpush3.bf16.msra.mxu1 %v10830_v18  ;;  %1940 = vmatprep.mubr.bf16.mxu1 %v11293_v60 }
 0x100   :  { %9822 = vmatprep.subr.bf16.mxu1 %v10831_v22 }
 0x101   :  { %9531 = vmatpush3.bf16.msra.mxu0 %v10823_v23 }
 0x102   :  { %9532 = vmatprep.subr.bf16.mxu0 %v10825_v25 }
 0x103   :  { %9823 = vmatpush3.bf16.msra.mxu1 %v10831_v22 }
 0x104   :  { %2014 = vmatmul.mubr.bf16.gmra.mxu0 %v11277_v24  ;;  %9824 = vmatprep.subr.bf16.mxu1 %v10832_v26 }
 0x105   :  { %9533 = vmatpush3.bf16.msra.mxu0 %v10826_v27  ;;  %2056 = vmatprep.mubr.bf16.mxu0 %v11264_v54 }
 0x106   :  { %9534 = vmatprep.subr.bf16.mxu0 %v10828_v28  ;;  %1941 = vmatmul.mubr.bf16.gmra.mxu1 %v11297_v3 }
 0x107   :  { %9825 = vmatpush3.bf16.msra.mxu1 %v10832_v26  ;;  %9828 = vmatprep.mubr.bf16.mxu1 %v11260_v37 }
 0x108   :  { %9826 = vmatprep.subr.bf16.mxu1 %v10833_v29 }
 0x109   :  { %9535 = vmatpush3.bf16.msra.mxu0 %v10829_v31 }
 0x10a   :  { %9860 = vmatprep.subr.bf16.mxu0 %v13348_v32 }
 0x10b   :  { %9827 = vmatpush3.bf16.msra.mxu1 %v10833_v29 }
 0x10c   :  { %2057 = vmatmul.mubr.bf16.vlgmr.msra.gmra.mxu0 %v11275_v21  ;;  %9836 = vmatprep.subr.bf16.mxu1 %v13348_v32  ;;  %v11354_v54 = vpop.f32.mrf.mxu1 }
 0x10d   :  { %2064 = vmatprep.mubr.bf16.mxu0 %v11279_v30 }
 0x10e   :  { %9829 = vmatmul.mubr.bf16.vlgmr.msra.gmra.mxu1 %v11267_v62  ;;  %v1549_v33 = vpop.f32.mrf.mxu1 }
 0x10f   :  { %9832 = vmatprep.mubr.bf16.mxu1 %v11271_v9 }
 0x110   :  { %v11360_v37 = vpop.f32.mrf.mxu1 }
 0x112   :  { %v11364_v21 = vpop.f32.mrf.mxu1 }
 0x114   :  { %2065 = vmatmul.mubr.bf16.gmra.mxu0 %v11285_v38  ;;  %v11367_v62 = vpop.f32.mrf.mxu1 }
 0x115   :  { %2072 = vmatprep.mubr.bf16.mxu0 %v11287_v45 }
 0x116   :  { %9833 = vmatmul.mubr.bf16.gmra.mxu1 %v11277_v24  ;;  %v1559_v9 = vpop.f32.mrf.mxu1 }
 0x117   :  { %9838 = vmatprep.mubr.msk.bf16.mxu1 %vm11219_vm0, %v13348_v32 }
 0x118   :  { %v11371_v30 = vpop.f32.mrf.mxu1 }
 0x11a   :  { %v11375_v24 = vpop.f32.mrf.mxu1 }
 0x11c   :  { %2073 = vmatmul.mubr.bf16.gmra.mxu0 %v11291_v52  ;;  %v11377_v34 = vpop.f32.mrf.mxu1 }
 0x11d   :  { %2080 = vmatprep.mubr.bf16.mxu0 %v11293_v60 }
 0x11e   :  { %v1569_v60 = vpop.f32.mrf.mxu1 }
 0x120   :  { %v11385_v40 = vpop.f32.mrf.mxu1 }
 0x122   :  { %v11393_v44 = vpop.f32.mrf.mxu1 }
 0x123   :  { %13356 = vst [vmem:[#allocation12_spill] sm:$0xff] %v11393_v44 }
 0x124   :  { %2081 = vmatmul.mubr.bf16.gmra.mxu0 %v11297_v3  ;;  %v11397_v48 = vpop.f32.mrf.mxu1 }
 0x125   :  { %9862 = vmatprep.mubr.msk.bf16.mxu0 %vm11219_vm0, %v13348_v32 }
 0x126   :  { %v1579_v51 = vpop.f32.mrf.mxu1 }
 0x128   :  { %v11407_v56 = vpop.f32.mrf.mxu1 }
 0x12a   :  { %v11413_v61 = vpop.f32.mrf.mxu1 }
 0x12b   :  { %v1474_v38 = vpop.f32.mrf.mxu0  ;;  %13359 = vst [vmem:[#allocation15_spill] sm:$0xff] %v11413_v61 }
 0x12c   :  { %v1548_v19 = vadd.f32 %v11354_v54, %v1474_v38 }
 0x12d   :  { %v1476_v45 = vpop.f32.mrf.mxu0 }
 0x12e   :  { %v11379_v35 = vadd.f32 %v1549_v33, %v1476_v45  ;;  %v11431_v28 = vpack.c.bf16 %v1548_v19, %v1548_v19 }
 0x12f   :  { %v1478_v52 = vpop.f32.mrf.mxu0 }
 0x131   :  { %v11381_v36 = vpop.f32.mrf.mxu0 }
 0x133   :  { %v11383_v39 = vpop.f32.mrf.mxu0 }
 0x135   :  { %v1486_v3 = vpop.f32.mrf.mxu0 }
 0x136   :  { %v11387_v41 = vadd.f32 %v1559_v9, %v1486_v3 }
 0x137   :  { %v11389_v42 = vpop.f32.mrf.mxu0 }
 0x139   :  { %v11391_v43 = vpop.f32.mrf.mxu0 }
 0x13b   :  { %v11395_v46 = vpop.f32.mrf.mxu0 }
 0x13d   :  { %v1496_v47 = vpop.f32.mrf.mxu0 }
 0x13e   :  { %v11399_v49 = vadd.f32 %v1569_v60, %v1496_v47  ;;  %v1552_v60 = vadd.f32 %v11360_v37, %v1478_v52 }
 0x13f   :  { %v11401_v50 = vpop.f32.mrf.mxu0 }
 0x141   :  { %v11403_v53 = vpop.f32.mrf.mxu0 }
 0x142   :  { %13357 = vst [vmem:[#allocation13_spill] sm:$0xff] %v11403_v53 }
 0x143   :  { %v11405_v55 = vpop.f32.mrf.mxu0 }
 0x145   :  { %v1506_v57 = vpop.f32.mrf.mxu0 }
 0x146   :  { %v11409_v58 = vadd.f32 %v1579_v51, %v1506_v57 }
 0x147   :  { %v11411_v59 = vpop.f32.mrf.mxu0 }
 0x148   :  { %13358 = vst [vmem:[#allocation14_spill] sm:$0xff] %v11409_v58 }
 0x149   :  { %v11415_v63 = vpop.f32.mrf.mxu0 }
 0x14a   :  { %13360 = vst [vmem:[#allocation16_spill] sm:$0xff] %v11415_v63 }
 0x14b   :  { %v1693_v2 = vpop.f32.mrf.mxu0 }
 0x14c   :  { %v1620_v1 = vpop.f32.mrf.mxu1 }
 0x14d   :  { %v11417_v4 = vadd.f32 %v1693_v2, %v1620_v1  ;;  %v1695_v6 = vpop.f32.mrf.mxu0 }
 0x14e   :  { %v1622_v5 = vpop.f32.mrf.mxu1 }
 0x14f   :  { %13361 = vst [vmem:[#allocation17_spill] sm:$0xff] %v11417_v4  ;;  %v1696_v7 = vadd.f32 %v1695_v6, %v1622_v5  ;;  %v1697_v10 = vpop.f32.mrf.mxu0  ;;  %v11447_v6 = vpack.c.bf16 %v1552_v60, %v1552_v60  ;;  %v1578_v60 = vadd.f32 %v11397_v48, %v11405_v55 }
 0x150   :  { %v1624_v8 = vpop.f32.mrf.mxu1 }
 0x151   :  { %v11419_v11 = vpack.c.bf16 %v1696_v7, %v1696_v7  ;;  %v11421_v12 = vadd.f32 %v1697_v10, %v1624_v8  ;;  %v1699_v14 = vpop.f32.mrf.mxu0 }
 0x152   :  { %v1626_v13 = vpop.f32.mrf.mxu1 }
 0x153   :  { %13362 = vst [vmem:[#allocation18_spill] sm:$0xff] %v11421_v12  ;;  %v2190_v15 = vsel %vm2185_vm1, %v11419_v11, 0  ;;  %v1700_v16 = vadd.f32 %v1699_v14, %v1626_v13  ;;  %v1703_v18 = vpop.f32.mrf.mxu0 }
 0x154   :  { %v1630_v17 = vpop.f32.mrf.mxu1  ;;  %9837 = vmatpush3.bf16.xpose.msra.mxu1 %v2190_v15  ;;  %v1558_v15 = vadd.f32 %v11367_v62, %v11383_v39 }
 0x155   :  { %v11426_v20 = vadd.f32 %v1703_v18, %v1630_v17  ;;  %9842 = vmatprep.subr.bf16.mxu1 %v13348_v32  ;;  %v1705_v23 = vpop.f32.mrf.mxu0  ;;  %v11429_v25 = vpack.c.bf16 %v1700_v16, %v1700_v16  ;;  %v1568_v18 = vadd.f32 %v11377_v34, %v11395_v46 }
 0x156   :  { %v1632_v22 = vpop.f32.mrf.mxu1  ;;  %v11471_v39 = vpack.c.bf16 %v1558_v15, %v1558_v15 }
 0x157   :  { %13363 = vst [vmem:[#allocation19_spill] sm:$0xff] %v11426_v20  ;;  %v1707_v27 = vpop.f32.mrf.mxu0  ;;  %v1706_v9 = vadd.f32 %v1705_v23, %v1632_v22  ;;  %v2236_v54 = vsel %vm2185_vm1, %v11429_v25, 0 }
 0x158   :  { %v1634_v26 = vpop.f32.mrf.mxu1 }
 0x159   :  { %v11433_v29 = vadd.f32 %v1707_v27, %v1634_v26  ;;  %v1709_v33 = vpop.f32.mrf.mxu0  ;;  %v11445_v57 = vpack.c.bf16 %v1706_v9, %v1706_v9 }
 0x15a   :  { %v1636_v31 = vpop.f32.mrf.mxu1 }
 0x15b   :  { %13364 = vst [vmem:[#allocation20_spill] sm:$0xff] %v11433_v29  ;;  %9839 = vmatmul.mubr.msk.bf16.vlgmr.msra.gmra.mxu1 %vm2185_vm1, %v11431_v28  ;;  %v1713_v45 = vpop.f32.mrf.mxu0  ;;  %v2282_v37 = vsel %vm2185_vm1, %v11445_v57, 0  ;;  %v1710_v52 = vadd.f32 %v1709_v33, %v1636_v31  ;;  %v11473_v33 = vpack.c.bf16 %v1568_v18, %v1568_v18 }
 0x15c   :  { %v1640_v38 = vpop.f32.mrf.mxu1  ;;  %9843 = vmatpush3.bf16.xpose.msra.mxu1 %v2236_v54  ;;  %9844 = vmatprep.mubr.msk.bf16.mxu1 %vm11219_vm0, %v13348_v32 }
 0x15d   :  { %v11442_v3 = vadd.f32 %v1713_v45, %v1640_v38  ;;  %9848 = vmatprep.subr.bf16.mxu1 %v13348_v32  ;;  %v1715_v51 = vpop.f32.mrf.mxu0  ;;  %v11469_v26 = vpack.c.bf16 %v1710_v52, %v1710_v52  ;;  %v1562_v45 = vadd.f32 %v11371_v30, %v11389_v42  ;;  %v11501_v30 = vpack.c.bf16 %v1578_v60, %v1578_v60 }
 0x15e   :  { %v1642_v47 = vpop.f32.mrf.mxu1 }
 0x15f   :  { %13365 = vst [vmem:[#allocation21_spill] sm:$0xff] %v11442_v3  ;;  %v1716_v1 = vadd.f32 %v1715_v51, %v1642_v47  ;;  %v1717_v5 = vpop.f32.mrf.mxu0  ;;  %v2328_v38 = vsel %vm2185_vm1, %v11469_v26, 0 }
 0x160   :  { %v1644_v2 = vpop.f32.mrf.mxu1 }
 0x161   :  { %v11449_v7 = vpack.c.bf16 %v1716_v1, %v1716_v1  ;;  %v11451_v8 = vadd.f32 %v1717_v5, %v1644_v2  ;;  %v1719_v13 = vpop.f32.mrf.mxu0  ;;  %v11499_v2 = vpack.c.bf16 %v1562_v45, %v1562_v45  ;;  %v1572_v5 = vadd.f32 %v11385_v40, %v11401_v50 }
 0x162   :  { %v1646_v10 = vpop.f32.mrf.mxu1  ;;  %v1582_v40 = vadd.f32 %v11407_v56, %v11411_v59 }
 0x163   :  { %13366 = vst [vmem:[#allocation22_spill] sm:$0xff] %v11451_v8  ;;  %v2374_v14 = vsel %vm2185_vm1, %v11449_v7, 0  ;;  %9845 = vmatmul.mubr.msk.bf16.vlgmr.msra.gmra.mxu1 %vm2185_vm1, %v11447_v6  ;;  %v1723_v17 = vpop.f32.mrf.mxu0  ;;  %v1720_v34 = vadd.f32 %v1719_v13, %v1646_v10 }
 0x164   :  { %v1650_v16 = vpop.f32.mrf.mxu1  ;;  %9849 = vmatpush3.bf16.xpose.msra.mxu1 %v2282_v37  ;;  %9861 = vmatpush3.bf16.xpose.msra.mxu0 %v2374_v14  ;;  %v11518_v37 = vpack.c.bf16 %v1572_v5, %v1572_v5 }
 0x165   :  { %v11463_v19 = vadd.f32 %v1723_v17, %v1650_v16  ;;  %9850 = vmatprep.mubr.msk.bf16.mxu1 %vm11219_vm0, %v13348_v32  ;;  %9854 = vmatprep.subr.bf16.mxu1 %v13348_v32  ;;  %v1725_v23 = vpop.f32.mrf.mxu0  ;;  %v11491_v47 = vpack.c.bf16 %v1720_v34, %v1720_v34  ;;  %v11531_v16 = vpack.c.bf16 %v1582_v40, %v1582_v40 }
 0x166   :  { %v1652_v22 = vpop.f32.mrf.mxu1  ;;  %9872 = vmatprep.subr.bf16.mxu0 %v13348_v32 }
 0x167   :  { %13367 = vst [vmem:[#allocation23_spill] sm:$0xff] %v11463_v19  ;;  %v1726_v62 = vadd.f32 %v1725_v23, %v1652_v22  ;;  %v1727_v31 = vpop.f32.mrf.mxu0  ;;  %v2420_v42 = vsel %vm2185_vm1, %v11491_v47, 0 }
 0x168   :  { %v1654_v27 = vpop.f32.mrf.mxu1 }
 0x169   :  { %v11475_v46 = vpack.c.bf16 %v1726_v62, %v1726_v62  ;;  %v11477_v9 = vadd.f32 %v1727_v31, %v1654_v27  ;;  %v1729_v1 = vpop.f32.mrf.mxu0 }
 0x16a   :  { %v1656_v51 = vpop.f32.mrf.mxu1 }
 0x16b   :  { %13368 = vst [vmem:[#allocation24_spill] sm:$0xff] %v11477_v9  ;;  %v2466_v54 = vsel %vm2185_vm1, %v11475_v46, 0  ;;  %9851 = vmatmul.mubr.msk.bf16.vlgmr.msra.gmra.mxu1 %vm2185_vm1, %v11471_v39  ;;  %9863 = vmatmul.mubr.msk.bf16.vlgmr.msra.gmra.mxu0 %vm2185_vm1, %v11473_v33  ;;  %v1730_v48 = vadd.f32 %v1729_v1, %v1656_v51 }
 0x16c   :  { %9855 = vmatpush3.bf16.xpose.msra.mxu1 %v2328_v38  ;;  %9873 = vmatpush3.bf16.xpose.msra.mxu0 %v2466_v54 }
 0x16d   :  { %9856 = vmatprep.mubr.msk.bf16.mxu1 %vm11219_vm0, %v13348_v32  ;;  %9874 = vmatprep.mubr.msk.bf16.mxu0 %vm11219_vm0, %v13348_v32  ;;  %v1839_v55 = vpop.f32.mrf.mxu1  ;;  %v11513_v10 = vpack.c.bf16 %v1730_v48, %v1730_v48 }
 0x16e   :  { %9866 = vmatprep.subr.bf16.mxu1 %v13348_v32  ;;  %9884 = vmatprep.subr.bf16.mxu0 %v13348_v32 }
 0x16f   :  { %v1841_v13 = vpop.f32.mrf.mxu1  ;;  %v2512_v52 = vsel %vm2185_vm1, %v11513_v10, 0 }
 0x171   :  { %v1843_v14 = vpop.f32.mrf.mxu1 }
 0x173   :  { %9857 = vmatmul.mubr.msk.bf16.vlgmr.msra.gmra.mxu1 %vm2185_vm1, %v11499_v2  ;;  %9875 = vmatmul.mubr.msk.bf16.vlgmr.msra.gmra.mxu0 %vm2185_vm1, %v11501_v30  ;;  %v11528_v50 = vpop.f32.mrf.mxu1 }
 0x174   :  { %9867 = vmatpush3.bf16.xpose.msra.mxu1 %v2420_v42  ;;  %9868 = vmatprep.mubr.msk.bf16.mxu1 %vm11219_vm0, %v13348_v32  ;;  %13369 = vst [vmem:[#allocation25_spill] sm:$0xff] %v11528_v50 }
 0x175   :  { %9878 = vmatprep.subr.bf16.mxu1 %v13348_v32  ;;  %9886 = vmatprep.mubr.msk.bf16.mxu0 %vm11219_vm0, %v13348_v32  ;;  %v1849_v15 = vpop.f32.mrf.mxu1 }
 0x177   :  { %v1851_v17 = vpop.f32.mrf.mxu1 }
 0x179   :  { %v1853_v18 = vpop.f32.mrf.mxu1 }
 0x17b   :  { %9869 = vmatmul.mubr.msk.bf16.vlgmr.msra.gmra.mxu1 %vm2185_vm1, %v11518_v37  ;;  %v11537_v22 = vpop.f32.mrf.mxu1 }
 0x17c   :  { %9879 = vmatpush3.bf16.xpose.msra.mxu1 %v2512_v52  ;;  %9880 = vmatprep.mubr.msk.bf16.mxu1 %vm11219_vm0, %v13348_v32  ;;  %13370 = vst [vmem:[#allocation26_spill] sm:$0xff] %v11537_v22 }
 0x17d   :  { %9890 = vmatprep.subr.bf16.mxu1 %v13348_v32  ;;  %v1859_v59 = vpop.f32.mrf.mxu1 }
 0x17f   :  { %v1861_v38 = vpop.f32.mrf.mxu1 }
 0x181   :  { %v1863_v1 = vpop.f32.mrf.mxu1 }
 0x183   :  { %9881 = vmatmul.mubr.msk.bf16.vlgmr.msra.gmra.mxu1 %vm2185_vm1, %v11531_v16 }
 0x184   :  { %9892 = vmatprep.mubr.msk.bf16.mxu1 %vm11219_vm0, %v13348_v32 }
 0x18c   :  { %v1766_v23 = vpop.f32.mrf.mxu0 }
 0x18d   :  { %v11539_v62 = vadd.f32 %v1839_v55, %v1766_v23 }
 0x18e   :  { %v1768_v56 = vpop.f32.mrf.mxu0 }
 0x18f   :  { %v11541_v27 = vadd.f32 %v1841_v13, %v1768_v56  ;;  %v11555_v13 = vpop.f32.mrf.mxu1 }
 0x190   :  { %v1770_v31 = vpop.f32.mrf.mxu0  ;;  %13375 = vst [vmem:[#allocation31_spill] sm:$0xff] %v11555_v13 }
 0x191   :  { %13371 = vst [vmem:[#allocation27_spill] sm:$0xff] %v11541_v27  ;;  %v11543_v34 = vadd.f32 %v1843_v14, %v1770_v31  ;;  %v1869_v23 = vpop.f32.mrf.mxu1 }
 0x192   :  { %v11545_v54 = vpop.f32.mrf.mxu0 }
 0x193   :  { %13372 = vst [vmem:[#allocation28_spill] sm:$0xff] %v11545_v54 }
 0x194   :  { %v1776_v45 = vpop.f32.mrf.mxu0 }
 0x195   :  { %v11547_v60 = vadd.f32 %v1849_v15, %v1776_v45 }
 0x196   :  { %v1778_v51 = vpop.f32.mrf.mxu0 }
 0x197   :  { %v11549_v42 = vadd.f32 %v1851_v17, %v1778_v51  ;;  %v1871_v17 = vpop.f32.mrf.mxu1 }
 0x198   :  { %v1780_v48 = vpop.f32.mrf.mxu0 }
 0x199   :  { %13373 = vst [vmem:[#allocation29_spill] sm:$0xff] %v11549_v42  ;;  %v11551_v55 = vadd.f32 %v1853_v18, %v1780_v48  ;;  %v1873_v0 = vpop.f32.mrf.mxu1 }
 0x19a   :  { %v11553_v5 = vpop.f32.mrf.mxu0 }
 0x19b   :  { %13374 = vst [vmem:[#allocation30_spill] sm:$0xff] %v11553_v5 }
 0x19c   :  { %v1786_v52 = vpop.f32.mrf.mxu0 }
 0x19d   :  { %v11557_v14 = vadd.f32 %v1859_v59, %v1786_v52 }
 0x19e   :  { %v1788_v40 = vpop.f32.mrf.mxu0 }
 0x19f   :  { %v11559_v56 = vadd.f32 %v1861_v38, %v1788_v40  ;;  %v11573_v38 = vpop.f32.mrf.mxu1 }
 0x1a0   :  { %v1790_v15 = vpop.f32.mrf.mxu0  ;;  %13382 = vst [vmem:[#allocation38_spill] sm:$0xff] %v11573_v38 }
 0x1a1   :  { %13376 = vst [vmem:[#allocation32_spill] sm:$0xff] %v11559_v56  ;;  %v11561_v31 = vadd.f32 %v1863_v1, %v1790_v15 }
 0x1a2   :  { %v11563_v45 = vpop.f32.mrf.mxu0 }
 0x1a3   :  { %13377 = vst [vmem:[#allocation33_spill] sm:$0xff] %v11561_v31  ;;  %13378 = vst [vmem:[#allocation34_spill] sm:$0xff] %v11563_v45 }
 0x1a4   :  { %v1796_v51 = vpop.f32.mrf.mxu0 }
 0x1a5   :  { %v11565_v18 = vadd.f32 %v1869_v23, %v1796_v51 }
 0x1a6   :  { %v1798_v48 = vpop.f32.mrf.mxu0 }
 0x1a7   :  { %v11567_v32 = vadd.f32 %v1871_v17, %v1798_v48 }
 0x1a8   :  { %v1800_v9 = vpop.f32.mrf.mxu0 }
 0x1a9   :  { %13379 = vst [vmem:[#allocation35_spill] sm:$0xff] %v11567_v32  ;;  %v11569_v59 = vadd.f32 %v1873_v0, %v1800_v9 }
 0x1aa   :  { %v11571_v52 = vpop.f32.mrf.mxu0 }
 0x1ab   :  { %13380 = vst [vmem:[#allocation36_spill] sm:$0xff] %v11569_v59  ;;  %13381 = vst [vmem:[#allocation37_spill] sm:$0xff] %v11571_v52 }
 0x1ac   :  { %v1985_v40 = vpop.f32.mrf.mxu0 }
 0x1ae   :  { %v1987_v1 = vpop.f32.mrf.mxu0  ;;  %v1912_v15 = vpop.f32.mrf.mxu1 }
 0x1af   :  { %v1986_v8 = vadd.f32 %v1985_v40, %v1912_v15  ;;  %v13386_v40 = vmov 0.0  }
 0x1b0   :  { %v1989_v19 = vpop.f32.mrf.mxu0  ;;  %v1914_v29 = vpop.f32.mrf.mxu1 }
 0x1b1   :  { %v11575_v23 = vpack.c.bf16 %v1986_v8, %v1986_v8  ;;  %v11577_v51 = vadd.f32 %v1987_v1, %v1914_v29 }
 0x1b2   :  { %v11579_v17 = vpop.f32.mrf.mxu0  ;;  %v1916_v48 = vpop.f32.mrf.mxu1 }
 0x1b3   :  { %13383 = vst [vmem:[#allocation39_spill] sm:$0xff] %v11577_v51  ;;  %13384 = vst [vmem:[#allocation40_spill] sm:$0xff] %v11579_v17  ;;  %v2664_v0 = vsel %vm2662_vm2, %v11575_v23, 0  ;;  %v1990_v9 = vadd.f32 %v1989_v19, %v1916_v48 }
 0x1b4   :  { %v1995_v52 = vpop.f32.mrf.mxu0  ;;  %v11583_v38 = vpop.f32.mrf.mxu1  ;;  %9885 = vmatpush3.bf16.msra.mxu0 %v2664_v0 }
 0x1b5   :  { %13385 = vst [vmem:[#allocation41_spill] sm:$0xff] %v11583_v38  ;;  %v11585_v13 = vpack.c.bf16 %v1990_v9, %v1990_v9  ;;  %9896 = vmatprep.subr.bf16.mxu0 %v13386_v40 }
 0x1b6   :  { %v1997_v15 = vpop.f32.mrf.mxu0  ;;  %v1922_v8 = vpop.f32.mrf.mxu1 }
 0x1b7   :  { %v2710_v29 = vsel %vm2662_vm2, %v11585_v13, 0  ;;  %v11590_v1 = vadd.f32 %v1995_v52, %v1922_v8 }
 0x1b8   :  { %v1999_v45 = vpop.f32.mrf.mxu0  ;;  %v1924_v3 = vpop.f32.mrf.mxu1  ;;  %9891 = vmatpush3.bf16.msra.mxu1 %v2710_v29 }
 0x1b9   :  { %v11592_v12 = vadd.f32 %v1997_v15, %v1924_v3  ;;  %9902 = vmatprep.subr.bf16.mxu1 %v13386_v40 }
 0x1ba   :  { %v11595_v19 = vpop.f32.mrf.mxu0  ;;  %v1926_v48 = vpop.f32.mrf.mxu1 }
 0x1bb   :  { %13387 = vst [vmem:[#allocation42_spill] sm:$0xff] %v11592_v12  ;;  %13388 = vst [vmem:[#allocation43_spill] sm:$0xff] %v11595_v19  ;;  %v11597_v0 = vadd.f32 %v1999_v45, %v1926_v48 }
 0x1bc   :  { %v2005_v9 = vpop.f32.mrf.mxu0  ;;  %v11599_v32 = vpop.f32.mrf.mxu1 }
 0x1bd   :  { %13389 = vst [vmem:[#allocation44_spill] sm:$0xff] %v11599_v32 }
 0x1be   :  { %v2007_v22 = vpop.f32.mrf.mxu0  ;;  %v1932_v5 = vpop.f32.mrf.mxu1 }
 0x1bf   :  { %v11601_v20 = vadd.f32 %v2005_v9, %v1932_v5 }
 0x1c0   :  { %v2009_v52 = vpop.f32.mrf.mxu0  ;;  %v1934_v8 = vpop.f32.mrf.mxu1 }
 0x1c1   :  { %v11603_v4 = vadd.f32 %v2007_v22, %v1934_v8 }
 0x1c2   :  { %v11605_v3 = vpop.f32.mrf.mxu0  ;;  %v1936_v15 = vpop.f32.mrf.mxu1 }
 0x1c3   :  { %13390 = vst [vmem:[#allocation45_spill] sm:$0xff] %v11603_v4  ;;  %13391 = vst [vmem:[#allocation46_spill] sm:$0xff] %v11605_v3  ;;  %v11607_v29 = vadd.f32 %v2009_v52, %v1936_v15 }
 0x1c4   :  { %v2015_v56 = vpop.f32.mrf.mxu0  ;;  %v11609_v50 = vpop.f32.mrf.mxu1 }
 0x1c5   :  { %13392 = vst [vmem:[#allocation47_spill] sm:$0xff] %v11609_v50 }
 0x1c6   :  { %v2017_v45 = vpop.f32.mrf.mxu0  ;;  %v1942_v48 = vpop.f32.mrf.mxu1 }
 0x1c7   :  { %v11611_v54 = vadd.f32 %v2015_v56, %v1942_v48 }
 0x1c8   :  { %v2019_v27 = vpop.f32.mrf.mxu0  ;;  %v1944_v42 = vpop.f32.mrf.mxu1 }
 0x1c9   :  { %v11613_v5 = vadd.f32 %v2017_v45, %v1944_v42 }
 0x1ca   :  { %v11615_v9 = vpop.f32.mrf.mxu0  ;;  %v1946_v22 = vpop.f32.mrf.mxu1 }
 0x1cb   :  { %13393 = vst [vmem:[#allocation48_spill] sm:$0xff] %v11613_v5  ;;  %13394 = vst [vmem:[#allocation49_spill] sm:$0xff] %v11615_v9  ;;  %v11617_v8 = vadd.f32 %v2019_v27, %v1946_v22 }
 0x1cc   :  { %v9536_v3 = vpop.f32.mrf.mxu0  ;;  %v11619_v19 = vpop.f32.mrf.mxu1 }
 0x1cd   :  { %13395 = vst [vmem:[#allocation50_spill] sm:$0xff] %v11619_v19 }
 0x1ce   :  { %v9537_v52 = vpop.f32.mrf.mxu0  ;;  %v9830_v15 = vpop.f32.mrf.mxu1 }
 0x1cf   :  { %v9538_v32 = vadd.f32 %v9537_v52, %v9536_v3 }
 0x1d0   :  { %v11621_v50 = vpop.f32.mrf.mxu0  ;;  %v2123_v4 = vpop.f32.mrf.mxu1 }
 0x1d1   :  { %13396 = vst [vmem:[#allocation51_spill] sm:$0xff] %v11621_v50  ;;  %v11623_v56 = vadd.f32 %v9538_v32, %v2123_v4 }
 0x1d2   :  { %v11625_v48 = vpop.f32.mrf.mxu0  ;;  %v9831_v45 = vpop.f32.mrf.mxu1 }
 0x1d3   :  { %13397 = vst [vmem:[#allocation52_spill] sm:$0xff] %v11623_v56  ;;  %13398 = vst [vmem:[#allocation53_spill] sm:$0xff] %v11625_v48 }
 0x1d4   :  { %v9542_v42 = vpop.f32.mrf.mxu0  ;;  %v11627_v27 = vpop.f32.mrf.mxu1 }
 0x1d5   :  { %13399 = vst [vmem:[#allocation54_spill] sm:$0xff] %v11627_v27 }
 0x1d6   :  { %v9543_v5 = vpop.f32.mrf.mxu0  ;;  %v9834_v3 = vpop.f32.mrf.mxu1 }
 0x1d7   :  { %v9544_v9 = vadd.f32 %v9543_v5, %v9542_v42 }
 0x1d8   :  { %v9545_v12 = vpop.f32.mrf.mxu0  ;;  %v2139_v48 = vpop.f32.mrf.mxu1 }
 0x1d9   :  { %v11629_v22 = vadd.f32 %v9830_v15, %v9544_v9 }
 0x1da   :  { %v9546_v19 = vpop.f32.mrf.mxu0 }
 0x1db   :  { %13400 = vst [vmem:[#allocation55_spill] sm:$0xff] %v11629_v22  ;;  %v9547_v61 = vadd.f32 %v9546_v19, %v9545_v12  ;;  %v9835_v22 = vpop.f32.mrf.mxu1 }
 0x1dc   :  { %v9548_v63 = vpop.f32.mrf.mxu0 }
 0x1dd   :  { %v11631_v52 = vadd.f32 %v9831_v45, %v9547_v61  ;;  %v2154_v45 = vlaneseq }
 0x1de   :  { %v9549_v50 = vpop.f32.mrf.mxu0 }
 0x1df   :  { %13401 = vst [vmem:[#allocation56_spill] sm:$0xff] %v11631_v52  ;;  %v9550_v32 = vadd.f32 %v9549_v50, %v9548_v63  ;;  %v11643_v63 = vshrl.u32 %v2154_v45, 7  ;;  %v2157_v50 = vand.u32 127, %v2154_v45 }
 0x1e0   :  { %v11633_v4 = vpop.f32.mrf.mxu0 }
 0x1e1   :  { %13402 = vst [vmem:[#allocation57_spill] sm:$0xff] %v11633_v4  ;;  %v11635_v56 = vadd.f32 %v9550_v32, %v2139_v48  ;;  %13407 = vst [vmem:[#allocation62_spill] sm:$0xff] %v11643_v63  ;;  %v11645_v4 = vpop.f32.mrf.mxu1  ;;  %vm11648_vm3 = vcmp.le.s32.totalorder %v2157_v50, %v11643_v63  ;;  %v13409_v48 = vmov 0 }
 0x1e2   :  { %v11637_v17 = vpop.f32.mrf.mxu0  ;;  %13408 = vst [vmem:[#allocation63_spill] sm:$0xff] %v11645_v4  ;;  %v13410_v48 = vsel %vm11648_vm3, 4294967295, %v13409_v48 }
 0x1e3   :  { %13403 = vst [vmem:[#allocation58_spill] sm:$0xff] %v11635_v56  ;;  %13404 = vst [vmem:[#allocation59_spill] sm:$0xff] %v11637_v17 }
 0x1e4   :  { %v9554_v5 = vpop.f32.mrf.mxu0  ;;  %13411 = vst [vmem:[#allocation64_spill] sm:$0xff] %v13410_v48 }
 0x1e6   :  { %v9555_v42 = vpop.f32.mrf.mxu0 }
 0x1e7   :  { %v9556_v27 = vadd.f32 %v9555_v42, %v9554_v5 }
 0x1e8   :  { %v9557_v9 = vpop.f32.mrf.mxu0 }
 0x1e9   :  { %v11639_v15 = vadd.f32 %v9834_v3, %v9556_v27 }
 0x1ea   :  { %v9558_v12 = vpop.f32.mrf.mxu0 }
 0x1eb   :  { %13405 = vst [vmem:[#allocation60_spill] sm:$0xff] %v11639_v15  ;;  %v9559_v19 = vadd.f32 %v9558_v12, %v9557_v9 }
 0x1ed   :  { %v11641_v61 = vadd.f32 %v9835_v22, %v9559_v19 }
 0x1ef   :  { %13406 = vst [vmem:[#allocation61_spill] sm:$0xff] %v11641_v61 }
 0x21b   :  { %v2226_v32 = vpop.f32.mrf.mxu1 }
 0x21c   :  { %v2554_v27 = vsel %vm11648_vm3, %v2226_v32, -1e+30 }
 0x21d   :  { %v9840_v3 = vpop.f32.mrf.mxu1  ;;  %v2563_v22 = vsel %vm2562_vm4, %v2554_v27, -inf }
 0x21e   :  { %2564 = vmax.xlane.f32.xlu0 %v2563_v22 }
 0x21f   :  { %v2229_v5 = vpop.f32.mrf.mxu1 }
 0x221   :  { %v9841_v42 = vpop.f32.mrf.mxu1 }
 0x223   :  { %v2272_v9 = vpop.f32.mrf.mxu1 }
 0x224   :  { %v2555_v12 = vsel %vm11648_vm3, %v2272_v9, -1e+30 }
 0x225   :  { %v9846_v19 = vpop.f32.mrf.mxu1  ;;  %v2566_v45 = vsel %vm2562_vm4, %v2555_v12, -inf }
 0x226   :  { %2567 = vmax.xlane.f32.xlu0 %v2566_v45 }
 0x227   :  { %v2275_v50 = vpop.f32.mrf.mxu1 }
 0x229   :  { %v9847_v63 = vpop.f32.mrf.mxu1 }
 0x22b   :  { %v2318_v61 = vpop.f32.mrf.mxu1  ;;  %v2410_v15 = vpop.f32.mrf.mxu0 }
 0x22c   :  { %v2556_v32 = vsel %vm11648_vm3, %v2318_v61, -1e+30  ;;  %v2558_v3 = vsel %vm11648_vm3, %v2410_v15, -1e+30 }
 0x22d   :  { %v9852_v22 = vpop.f32.mrf.mxu1  ;;  %v9864_v5 = vpop.f32.mrf.mxu0  ;;  %v2575_v42 = vsel %vm2562_vm4, %v2558_v3, -inf  ;;  %v2569_v9 = vsel %vm2562_vm4, %v2556_v32, -inf }
 0x22e   :  { %2576 = vmax.xlane.f32.xlu0 %v2575_v42  ;;  %2570 = vmax.xlane.f32.xlu1 %v2569_v9 }
 0x22f   :  { %v2321_v19 = vpop.f32.mrf.mxu1  ;;  %v2413_v45 = vpop.f32.mrf.mxu0 }
 0x231   :  { %v9853_v50 = vpop.f32.mrf.mxu1  ;;  %v9865_v63 = vpop.f32.mrf.mxu0 }
 0x233   :  { %v2364_v4 = vpop.f32.mrf.mxu1  ;;  %v2502_v56 = vpop.f32.mrf.mxu0 }
 0x234   :  { %v2557_v61 = vsel %vm11648_vm3, %v2364_v4, -1e+30  ;;  %v2560_v15 = vsel %vm11648_vm3, %v2502_v56, -1e+30 }
 0x235   :  { %v9858_v22 = vpop.f32.mrf.mxu1  ;;  %v9876_v5 = vpop.f32.mrf.mxu0  ;;  %v2581_v17 = vsel %vm2562_vm4, %v2560_v15, -inf  ;;  %v2572_v52 = vsel %vm2562_vm4, %v2557_v61, -inf }
 0x236   :  { %2582 = vmax.xlane.f32.xlu0 %v2581_v17  ;;  %2573 = vmax.xlane.f32.xlu1 %v2572_v52 }
 0x237   :  { %v2367_v42 = vpop.f32.mrf.mxu1  ;;  %v2505_v9 = vpop.f32.mrf.mxu0 }
 0x239   :  { %v9859_v19 = vpop.f32.mrf.mxu1  ;;  %v9877_v45 = vpop.f32.mrf.mxu0 }
 0x23b   :  { %v2456_v50 = vpop.f32.mrf.mxu1 }
 0x23c   :  { %v2559_v63 = vsel %vm11648_vm3, %v2456_v50, -1e+30 }
 0x23d   :  { %v9870_v4 = vpop.f32.mrf.mxu1  ;;  %v2578_v38 = vsel %vm2562_vm4, %v2559_v63, -inf }
 0x23e   :  { %2579 = vmax.xlane.f32.xlu1 %v2578_v38 }
 0x23f   :  { %v2459_v56 = vpop.f32.mrf.mxu1 }
 0x241   :  { %v9871_v22 = vpop.f32.mrf.mxu1 }
 0x243   :  { %v2548_v5 = vpop.f32.mrf.mxu1 }
 0x244   :  { %v11675_v59 = vsel %vm11648_vm3, %v2548_v5, -1e+30 }
 0x245   :  { %v9882_v17 = vpop.f32.mrf.mxu1  ;;  %v2584_v52 = vsel %vm2562_vm4, %v11675_v59, -inf }
 0x246   :  { %2585 = vmax.xlane.f32.xlu1 %v2584_v52 }
 0x247   :  { %v2551_v42 = vpop.f32.mrf.mxu1 }
 0x249   :  { %v9883_v9 = vpop.f32.mrf.mxu1 }
 0x2a7   :  { %v2565_v19 = vpop.xlane.xlu0 %2564 }
 0x2a8   :  { %v2587_v45 = vsub.f32 %v2554_v27, %v2565_v19 }
 0x2aa   :  { %v2595_v50 = vmul.f32 1.442695, %v2587_v45 }
 0x2ac   :  { %10930 = vpow2.f32 %v2595_v50 }
 0x2af   :  { %v2568_v4 = vpop.xlane.xlu0 %2567 }
 0x2b0   :  { %v2588_v38 = vsub.f32 %v2555_v12, %v2568_v4 }
 0x2b2   :  { %v2597_v56 = vmul.f32 1.442695, %v2588_v38 }
 0x2b4   :  { %10932 = vpow2.f32 %v2597_v56 }
 0x2b7   :  { %v2577_v22 = vpop.xlane.xlu0 %2576  ;;  %v2571_v44 = vpop.xlane.xlu1 %2570 }
 0x2b8   :  { %v2591_v53 = vsub.f32 %v2558_v3, %v2577_v22  ;;  %v2589_v5 = vsub.f32 %v2556_v32, %v2571_v44 }
 0x2b9   :  { %v10931_v58 = vpop.eup %10930 }
 0x2ba   :  { %v2599_v17 = vmul.f32 1.442695, %v2589_v5  ;;  %v2611_v51 = vsel %vm2562_vm4, %v10931_v58, 0.0  ;;  %v2603_v31 = vmul.f32 1.442695, %v2591_v53 }
 0x2bb   :  { %2612 = vadd.xlane.f32.xlu0 %v2611_v51 }
 0x2bc   :  { %10934 = vpow2.f32 %v2599_v17 }
 0x2bd   :  { %10936 = vpow2.f32 %v2603_v31 }
 0x2bf   :  { %v2583_v52 = vpop.xlane.xlu0 %2582  ;;  %v2574_v27 = vpop.xlane.xlu1 %2573 }
 0x2c0   :  { %v2593_v42 = vsub.f32 %v2560_v15, %v2583_v52  ;;  %v2590_v9 = vsub.f32 %v2557_v61, %v2574_v27 }
 0x2c1   :  { %v11680_v19 = vpop.eup %10932 }
 0x2c2   :  { %v2607_v12 = vmul.f32 1.442695, %v2593_v42  ;;  %v2601_v45 = vmul.f32 1.442695, %v2590_v9  ;;  %v2614_v3 = vsel %vm2562_vm4, %v11680_v19, 0.0 }
 0x2c3   :  { %2615 = vadd.xlane.f32.xlu1 %v2614_v3  ;;  %v11776_v3 = vpack.c.bf16 %v11611_v54, %v11611_v54 }
 0x2c4   :  { %10938 = vpow2.f32 %v2607_v12 }
 0x2c5   :  { %10940 = vpow2.f32 %v2601_v45 }
 0x2c7   :  { %v2580_v4 = vpop.xlane.xlu1 %2579 }
 0x2c8   :  { %v2592_v38 = vsub.f32 %v2559_v63, %v2580_v4 }
 0x2c9   :  { %v11684_v44 = vpop.eup %10934 }
 0x2ca   :  { %v2617_v53 = vsel %vm2562_vm4, %v11684_v44, 0.0  ;;  %v11688_v31 = vpop.eup %10936  ;;  %v2605_v56 = vmul.f32 1.442695, %v2592_v38 }
 0x2cb   :  { %2618 = vadd.xlane.f32.xlu0 %v2617_v53  ;;  %v2623_v51 = vsel %vm2562_vm4, %v11688_v31, 0.0 }
 0x2cc   :  { %10942 = vpow2.f32 %v2605_v56 }
 0x2cf   :  { %2624 = vadd.xlane.f32.xlu0 %v2623_v51 }
 0x2d1   :  { %v11692_v32 = vpop.eup %10938 }
 0x2d2   :  { %v11694_v61 = vpop.eup %10940  ;;  %v2629_v15 = vsel %vm2562_vm4, %v11692_v32, 0.0 }
 0x2d3   :  { %v2620_v50 = vsel %vm2562_vm4, %v11694_v61, 0.0  ;;  %2630 = vadd.xlane.f32.xlu0 %v2629_v15 }
 0x2d4   :  { %2621 = vadd.xlane.f32.xlu1 %v2620_v50  ;;  %v2940_v50 = vsel %vm2662_vm2, %v11776_v3, 0 }
 0x2e5   :  { %3104 = vrot.lane.b32.xlu1 %v11429_v25, %s11220_s0 }
 0x2e9   :  { %3052 = vrot.lane.b32.xlu0 %v11419_v11, %s11220_s0  ;;  %v11716_v11 = vpop.eup %10942 }
 0x2ea   :  { %v2626_v25 = vsel %vm2562_vm4, %v11716_v11, 0.0 }
 0x2ed   :  { %3156 = vrot.lane.b32.xlu0 %v11445_v57, %s11220_s0  ;;  %v2586_v57 = vpop.xlane.xlu1 %2585 }
 0x2f1   :  { %3153 = vrot.lane.b32.xlu0 %v11471_v39, %s11220_s0 }
 0x2f5   :  { %3260 = vrot.lane.b32.xlu0 %v11449_v7, %s11220_s0  ;;  %v2594_v7 = vsub.f32 %v11675_v59, %v2586_v57 }
 0x2f7   :  { %v2609_v39 = vmul.f32 1.442695, %v2594_v7 }
 0x2f9   :  { %3257 = vrot.lane.b32.xlu0 %v11473_v33, %s11220_s0  ;;  %10944 = vpow2.f32 %v2609_v39 }
 0x2fd   :  { %3364 = vrot.lane.b32.xlu0 %v11475_v46, %s11220_s0 }
 0x301   :  { %3361 = vrot.lane.b32.xlu0 %v11501_v30, %s11220_s0 }
 0x306   :  { %v11723_v33 = vpop.eup %10944 }
 0x307   :  { %v2632_v46 = vsel %vm2562_vm4, %v11723_v33, 0.0 }
 0x309   :  { %2627 = vadd.xlane.f32.xlu1 %v2626_v25 }
 0x31a   :  { %3049 = vrot.lane.b32.xlu1 %v11431_v28, %s11220_s0  ;;  %v11731_v28 = vpack.c.bf16 %v11590_v1, %v11590_v1 }
 0x31c   :  { %v2756_v52 = vsel %vm2662_vm2, %v11731_v28, 0 }
 0x33e   :  { %2633 = vadd.xlane.f32.xlu1 %v2632_v46 }
 0x344   :  { %v2613_v30 = vpop.xlane.xlu0 %2612 }
 0x345   :  { %10946 = vrcp.f32 %v2613_v30 }
 0x34c   :  { %v2616_v63 = vpop.xlane.xlu1 %2615 }
 0x34d   :  { %10948 = vrcp.f32 %v2616_v63 }
 0x34f   :  { %3101 = vrot.lane.b32.xlu1 %v11447_v6, %s11220_s0 }
 0x352   :  { %v10947_v22 = vpop.eup %10946 }
 0x353   :  { %3208 = vrot.lane.b32.xlu1 %v11469_v26, %s11220_s0  ;;  %v2643_v59 = vmul.f32 %v10947_v22, %v10931_v58  ;;  %v11745_v58 = vpack.c.bf16 %v11597_v0, %v11597_v0  ;;  %v11762_v0 = vpack.c.bf16 %v11601_v20, %v11601_v20  ;;  %v11812_v22 = vpack.c.bf16 %v11617_v8, %v11617_v8 }
 0x354   :  { %v2619_v5 = vpop.xlane.xlu0 %2618 }
 0x355   :  { %v2651_v17 = vpack.c.bf16 %v2643_v59, %v2643_v59  ;;  %10950 = vrcp.f32 %v2619_v5  ;;  %v2802_v42 = vsel %vm2662_vm2, %v11745_v58, 0  ;;  %v2848_v45 = vsel %vm2662_vm2, %v11762_v0, 0 }
 0x357   :  { %3205 = vrot.lane.b32.xlu1 %v11499_v2, %s11220_s0  ;;  %9887 = vmatmul.mubr.msk.bf16.vlgmr.msra.gmra.mxu0 %vm2562_vm4, %v2651_v17 }
 0x358   :  { %9897 = vmatpush3.bf16.msra.mxu0 %v2756_v52  ;;  %9898 = vmatprep.mubr.msk.bf16.mxu0 %vm11219_vm0, %v13386_v40  ;;  %v2625_v6 = vpop.xlane.xlu0 %2624  ;;  %v2986_v52 = vsel %vm2662_vm2, %v11812_v22, 0 }
 0x359   :  { %9908 = vmatprep.subr.bf16.mxu0 %v13386_v40  ;;  %10952 = vrcp.f32 %v2625_v6 }
 0x35a   :  { %v10949_v26 = vpop.eup %10948 }
 0x35b   :  { %3312 = vrot.lane.b32.xlu1 %v11491_v47, %s11220_s0  ;;  %v2644_v2 = vmul.f32 %v10949_v26, %v11680_v19 }
 0x35c   :  { %v2631_v9 = vpop.xlane.xlu0 %2630 }
 0x35d   :  { %v2622_v1 = vpop.xlane.xlu1 %2621  ;;  %v2652_v27 = vpack.c.bf16 %v2644_v2, %v2644_v2 }
 0x35e   :  { %10954 = vrcp.f32 %v2622_v1 }
 0x35f   :  { %3309 = vrot.lane.b32.xlu1 %v11518_v37, %s11220_s0  ;;  %9893 = vmatmul.mubr.msk.bf16.vlgmr.msra.gmra.mxu1 %vm2562_vm4, %v2652_v27  ;;  %10956 = vrcp.f32 %v2631_v9 }
 0x360   :  { %9903 = vmatpush3.bf16.msra.mxu1 %v2802_v42  ;;  %9904 = vmatprep.mubr.msk.bf16.mxu1 %vm11219_vm0, %v13386_v40 }
 0x361   :  { %9914 = vmatprep.subr.bf16.mxu1 %v13386_v40  ;;  %v3105_v38 = vpop.permute.xlu1 %3104 }
 0x362   :  { %v10951_v47 = vpop.eup %10950  ;;  %v3110_v9 = vsel %vm2185_vm1, %v3105_v38, 0 }
 0x363   :  { %3416 = vrot.lane.b32.xlu1 %v11513_v10, %s11220_s0  ;;  %v2645_v19 = vmul.f32 %v10951_v47, %v11684_v44 }
 0x365   :  { %v2653_v37 = vpack.c.bf16 %v2645_v19, %v2645_v19 }
 0x366   :  { %v10953_v12 = vpop.eup %10952 }
 0x367   :  { %3413 = vrot.lane.b32.xlu1 %v11531_v16, %s11220_s0  ;;  %9899 = vmatmul.mubr.msk.bf16.vlgmr.msra.gmra.mxu0 %vm2562_vm4, %v2653_v37  ;;  %v2647_v20 = vmul.f32 %v10953_v12, %v11688_v31  ;;  %v11780_v16 = vpack.c.bf16 %v11607_v29, %v11607_v29  ;;  %v3053_v29 = vpop.permute.xlu0 %3052 }
 0x368   :  { %9909 = vmatpush3.bf16.msra.mxu0 %v2848_v45  ;;  %9910 = vmatprep.mubr.msk.bf16.mxu0 %vm11219_vm0, %v13386_v40  ;;  %v3058_v4 = vsel %vm2185_vm1, %v3053_v29, 0 }
 0x369   :  { %9920 = vmatprep.subr.bf16.mxu0 %v13386_v40  ;;  %v2655_v53 = vpack.c.bf16 %v2647_v20, %v2647_v20  ;;  %v2894_v31 = vsel %vm2662_vm2, %v11780_v16, 0 }
 0x36b   :  { %v10955_v10 = vpop.eup %10954 }
 0x36c   :  { %v2646_v44 = vmul.f32 %v10955_v10, %v11694_v61  ;;  %v10957_v51 = vpop.eup %10956 }
 0x36d   :  { %v2649_v54 = vmul.f32 %v10957_v51, %v11692_v32  ;;  %v3157_v32 = vpop.permute.xlu0 %3156 }
 0x36e   :  { %v2654_v15 = vpack.c.bf16 %v2646_v44, %v2646_v44  ;;  %v3162_v7 = vsel %vm2185_vm1, %v3157_v32, 0 }
 0x36f   :  { %9911 = vmatmul.mubr.msk.bf16.vlgmr.msra.gmra.mxu0 %vm2562_vm4, %v2655_v53  ;;  %v2657_v61 = vpack.c.bf16 %v2649_v54, %v2649_v54 }
 0x370   :  { %9905 = vmatmul.mubr.msk.bf16.vlgmr.msra.gmra.mxu1 %vm2562_vm4, %v2654_v15  ;;  %9921 = vmatpush3.bf16.msra.mxu0 %v2940_v50 }
 0x371   :  { %9915 = vmatpush3.bf16.msra.mxu1 %v2894_v31  ;;  %9922 = vmatprep.mubr.msk.bf16.mxu0 %vm11219_vm0, %v13386_v40  ;;  %v3154_v56 = vpop.permute.xlu0 %3153 }
 0x372   :  { %9932 = vmatprep.subr.bf16.mxu0 %v13386_v40  ;;  %9916 = vmatprep.mubr.msk.bf16.mxu1 %vm11219_vm0, %v13386_v40 }
 0x373   :  { %9926 = vmatprep.subr.bf16.mxu1 %v13386_v40 }
 0x375   :  { %v3261_v39 = vpop.permute.xlu0 %3260 }
 0x376   :  { %v3266_v30 = vsel %vm2185_vm1, %v3261_v39, 0 }
 0x377   :  { %9923 = vmatmul.mubr.msk.bf16.vlgmr.msra.gmra.mxu0 %vm2562_vm4, %v2657_v61 }
 0x378   :  { %9933 = vmatpush3.bf16.xpose.msra.mxu0 %v3058_v4  ;;  %9934 = vmatprep.mubr.msk.bf16.mxu0 %vm11219_vm0, %v13386_v40 }
 0x379   :  { %9944 = vmatprep.subr.bf16.mxu0 %v13386_v40  ;;  %v3258_v46 = vpop.permute.xlu0 %3257 }
 0x37d   :  { %v3365_v17 = vpop.permute.xlu0 %3364 }
 0x37e   :  { %v3370_v6 = vsel %vm2185_vm1, %v3365_v17, 0 }
 0x381   :  { %v3362_v8 = vpop.permute.xlu0 %3361 }
 0x392   :  { %v2628_v25 = vpop.xlane.xlu1 %2627 }
 0x393   :  { %10958 = vrcp.f32 %v2628_v25 }
 0x396   :  { %v3050_v57 = vpop.permute.xlu1 %3049 }
 0x397   :  { %9935 = vmatmul.mubr.msk.bf16.vlgmr.msra.gmra.mxu0 %vm2185_vm1, %v3050_v57 }
 0x398   :  { %9945 = vmatpush3.bf16.xpose.msra.mxu0 %v3162_v7  ;;  %9946 = vmatprep.mubr.msk.bf16.mxu0 %vm11219_vm0, %v13386_v40 }
 0x399   :  { %9956 = vmatprep.subr.bf16.mxu0 %v13386_v40 }
 0x39f   :  { %9947 = vmatmul.mubr.msk.bf16.vlgmr.msra.gmra.mxu0 %vm2185_vm1, %v3154_v56 }
 0x3a0   :  { %v10959_v63 = vpop.eup %10958  ;;  %9957 = vmatpush3.bf16.xpose.msra.mxu0 %v3266_v30  ;;  %9958 = vmatprep.mubr.msk.bf16.mxu0 %vm11219_vm0, %v13386_v40 }
 0x3a1   :  { %v2648_v59 = vmul.f32 %v10959_v63, %v11716_v11  ;;  %9968 = vmatprep.subr.bf16.mxu0 %v13386_v40 }
 0x3a3   :  { %v2656_v5 = vpack.c.bf16 %v2648_v59, %v2648_v59 }
 0x3a5   :  { %9917 = vmatmul.mubr.msk.bf16.vlgmr.msra.gmra.mxu1 %vm2562_vm4, %v2656_v5 }
 0x3a6   :  { %9927 = vmatpush3.bf16.msra.mxu1 %v2986_v52  ;;  %9928 = vmatprep.mubr.msk.bf16.mxu1 %vm11219_vm0, %v13386_v40 }
 0x3a7   :  { %9959 = vmatmul.mubr.msk.bf16.vlgmr.msra.gmra.mxu0 %vm2185_vm1, %v3258_v46  ;;  %9938 = vmatprep.subr.bf16.mxu1 %v13386_v40 }
 0x3a8   :  { %9969 = vmatpush3.bf16.xpose.msra.mxu0 %v3370_v6  ;;  %9970 = vmatprep.mubr.msk.bf16.mxu0 %vm11219_vm0, %v13386_v40 }
 0x3a9   :  { %9980 = vmatprep.subr.bf16.mxu0 %v13386_v40 }
 0x3af   :  { %9971 = vmatmul.mubr.msk.bf16.vlgmr.msra.gmra.mxu0 %vm2185_vm1, %v3362_v8 }
 0x3b0   :  { %9982 = vmatprep.mubr.msk.bf16.mxu0 %vm11219_vm0, %v13386_v40 }
 0x3c7   :  { %v2634_v11 = vpop.xlane.xlu1 %2633 }
 0x3c8   :  { %10960 = vrcp.f32 %v2634_v11 }
 0x3cb   :  { %v3102_v26 = vpop.permute.xlu1 %3101 }
 0x3cf   :  { %v3209_v27 = vpop.permute.xlu1 %3208 }
 0x3d0   :  { %v3214_v19 = vsel %vm2185_vm1, %v3209_v27, 0 }
 0x3d3   :  { %v3206_v47 = vpop.permute.xlu1 %3205 }
 0x3d5   :  { %v10961_v2 = vpop.eup %10960 }
 0x3d6   :  { %v2650_v1 = vmul.f32 %v10961_v2, %v11723_v33 }
 0x3d7   :  { %v3313_v37 = vpop.permute.xlu1 %3312 }
 0x3d8   :  { %v2658_v42 = vpack.c.bf16 %v2650_v1, %v2650_v1  ;;  %v3318_v12 = vsel %vm2185_vm1, %v3313_v37, 0 }
 0x3da   :  { %9929 = vmatmul.mubr.msk.bf16.vlgmr.msra.gmra.mxu1 %vm2562_vm4, %v2658_v42 }
 0x3db   :  { %9939 = vmatpush3.bf16.xpose.msra.mxu1 %v3110_v9  ;;  %9940 = vmatprep.mubr.msk.bf16.mxu1 %vm11219_vm0, %v13386_v40  ;;  %v3310_v33 = vpop.permute.xlu1 %3309 }
 0x3dc   :  { %9950 = vmatprep.subr.bf16.mxu1 %v13386_v40 }
 0x3df   :  { %v3417_v45 = vpop.permute.xlu1 %3416 }
 0x3e0   :  { %v3422_v20 = vsel %vm2185_vm1, %v3417_v45, 0 }
 0x3e2   :  { %9941 = vmatmul.mubr.msk.bf16.vlgmr.msra.gmra.mxu1 %vm2185_vm1, %v3102_v26 }
 0x3e3   :  { %9951 = vmatpush3.bf16.xpose.msra.mxu1 %v3214_v19  ;;  %9952 = vmatprep.mubr.msk.bf16.mxu1 %vm11219_vm0, %v13386_v40  ;;  %v3414_v10 = vpop.permute.xlu1 %3413 }
 0x3e4   :  { %9962 = vmatprep.subr.bf16.mxu1 %v13386_v40 }
 0x3ea   :  { %9953 = vmatmul.mubr.msk.bf16.vlgmr.msra.gmra.mxu1 %vm2185_vm1, %v3206_v47 }
 0x3eb   :  { %9963 = vmatpush3.bf16.xpose.msra.mxu1 %v3318_v12  ;;  %9964 = vmatprep.mubr.msk.bf16.mxu1 %vm11219_vm0, %v13386_v40 }
 0x3ec   :  { %9974 = vmatprep.subr.bf16.mxu1 %v13386_v40 }
 0x3f2   :  { %9965 = vmatmul.mubr.msk.bf16.vlgmr.msra.gmra.mxu1 %vm2185_vm1, %v3310_v33 }
 0x3f3   :  { %9975 = vmatpush3.bf16.xpose.msra.mxu1 %v3422_v20  ;;  %9976 = vmatprep.mubr.msk.bf16.mxu1 %vm11219_vm0, %v13386_v40 }
 0x3f4   :  { %9986 = vmatprep.subr.bf16.mxu1 %v13386_v40 }
 0x3fa   :  { %9977 = vmatmul.mubr.msk.bf16.vlgmr.msra.gmra.mxu1 %vm2185_vm1, %v3414_v10 }
 0x3fb   :  { %9988 = vmatprep.mubr.msk.bf16.mxu1 %vm11219_vm0, %v13386_v40 }
 0x417   :  { %v2700_v44 = vpop.f32.mrf.mxu0 }
 0x419   :  { %v9888_v53 = vpop.f32.mrf.mxu0 }
 0x41b   :  { %v2703_v51 = vpop.f32.mrf.mxu0 }
 0x41d   :  { %v9889_v15 = vpop.f32.mrf.mxu0 }
 0x41f   :  { %v2746_v50 = vpop.f32.mrf.mxu1 }
 0x420   :  { %v11854_v31 = vpack.c.bf16 %v2746_v50, %v2700_v44 }
 0x421   :  { %v9894_v54 = vpop.f32.mrf.mxu1 }
 0x423   :  { %v2749_v29 = vpop.f32.mrf.mxu1 }
 0x425   :  { %v9895_v61 = vpop.f32.mrf.mxu1 }
 0x427   :  { %v2792_v4 = vpop.f32.mrf.mxu0 }
 0x429   :  { %v9900_v32 = vpop.f32.mrf.mxu0 }
 0x42b   :  { %v2795_v38 = vpop.f32.mrf.mxu0 }
 0x42d   :  { %v9901_v56 = vpop.f32.mrf.mxu0 }
 0x42f   :  { %v2884_v25 = vpop.f32.mrf.mxu0 }
 0x430   :  { %v2838_v57 = vpop.f32.mrf.mxu1 }
 0x431   :  { %v11856_v7 = vpack.c.bf16 %v2838_v57, %v2792_v4  ;;  %v9912_v39 = vpop.f32.mrf.mxu0 }
 0x432   :  { %v9906_v46 = vpop.f32.mrf.mxu1 }
 0x433   :  { %v2887_v30 = vpop.f32.mrf.mxu0 }
 0x434   :  { %v2841_v63 = vpop.f32.mrf.mxu1 }
 0x435   :  { %v9913_v59 = vpop.f32.mrf.mxu0 }
 0x436   :  { %v9907_v5 = vpop.f32.mrf.mxu1 }
 0x437   :  { %v11858_v17 = vpop.f32.mrf.mxu0 }
 0x439   :  { %v9924_v52 = vpop.f32.mrf.mxu0 }
 0x43b   :  { %v2979_v6 = vpop.f32.mrf.mxu0 }
 0x43d   :  { %v9925_v8 = vpop.f32.mrf.mxu0 }
 0x457   :  { %v3094_v11 = vpop.f32.mrf.mxu0 }
 0x458   :  { %v11862_v26 = vsel %vm11648_vm3, %v3094_v11, -1e+30 }
 0x459   :  { %v9936_v2 = vpop.f32.mrf.mxu0  ;;  %v3472_v1 = vsel %vm2562_vm4, %v11862_v26, -inf }
 0x45a   :  { %3473 = vmax.xlane.f32.xlu0 %v3472_v1 }
 0x45b   :  { %v3097_v27 = vpop.f32.mrf.mxu0 }
 0x45d   :  { %v9937_v42 = vpop.f32.mrf.mxu0 }
 0x45f   :  { %v3198_v9 = vpop.f32.mrf.mxu0 }
 0x460   :  { %v11868_v47 = vsel %vm11648_vm3, %v3198_v9, -1e+30 }
 0x461   :  { %v9948_v19 = vpop.f32.mrf.mxu0  ;;  %v3478_v37 = vsel %vm2562_vm4, %v11868_v47, -inf }
 0x462   :  { %3479 = vmax.xlane.f32.xlu0 %v3478_v37 }
 0x463   :  { %v3201_v33 = vpop.f32.mrf.mxu0 }
 0x465   :  { %v2930_v12 = vpop.f32.mrf.mxu1  ;;  %v9949_v45 = vpop.f32.mrf.mxu0 }
 0x466   :  { %v11872_v20 = vpack.c.bf16 %v2930_v12, %v2884_v25 }
 0x467   :  { %v9918_v10 = vpop.f32.mrf.mxu1  ;;  %v3302_v44 = vpop.f32.mrf.mxu0 }
 0x468   :  { %v3468_v2 = vsel %vm11648_vm3, %v3302_v44, -1e+30 }
 0x469   :  { %v2933_v53 = vpop.f32.mrf.mxu1  ;;  %v9960_v51 = vpop.f32.mrf.mxu0  ;;  %v3484_v42 = vsel %vm2562_vm4, %v3468_v2, -inf }
 0x46b   :  { %v9919_v15 = vpop.f32.mrf.mxu1  ;;  %v3305_v50 = vpop.f32.mrf.mxu0 }
 0x46d   :  { %v9961_v54 = vpop.f32.mrf.mxu0 }
 0x46f   :  { %v3406_v29 = vpop.f32.mrf.mxu0 }
 0x470   :  { %v3470_v9 = vsel %vm11648_vm3, %v3406_v29, -1e+30 }
 0x471   :  { %v9972_v61 = vpop.f32.mrf.mxu0  ;;  %v3490_v12 = vsel %vm2562_vm4, %v3470_v9, -inf }
 0x473   :  { %v3409_v4 = vpop.f32.mrf.mxu0 }
 0x475   :  { %v9973_v32 = vpop.f32.mrf.mxu0 }
 0x49a   :  { %v11874_v38 = vpop.f32.mrf.mxu1 }
 0x49c   :  { %v9930_v56 = vpop.f32.mrf.mxu1 }
 0x49e   :  { %v3025_v57 = vpop.f32.mrf.mxu1 }
 0x4a0   :  { %v9931_v39 = vpop.f32.mrf.mxu1 }
 0x4a2   :  { %v3146_v46 = vpop.f32.mrf.mxu1 }
 0x4a3   :  { %v3465_v25 = vsel %vm11648_vm3, %v3146_v46, -1e+30 }
 0x4a4   :  { %v9942_v30 = vpop.f32.mrf.mxu1  ;;  %v3475_v63 = vsel %vm2562_vm4, %v3465_v25, -inf }
 0x4a5   :  { %3476 = vmax.xlane.f32.xlu1 %v3475_v63 }
 0x4a6   :  { %v3149_v59 = vpop.f32.mrf.mxu1 }
 0x4a8   :  { %v9943_v5 = vpop.f32.mrf.mxu1 }
 0x4aa   :  { %v3250_v52 = vpop.f32.mrf.mxu1 }
 0x4ab   :  { %v11881_v6 = vsel %vm11648_vm3, %v3250_v52, -1e+30 }
 0x4ac   :  { %v9954_v8 = vpop.f32.mrf.mxu1  ;;  %v3481_v11 = vsel %vm2562_vm4, %v11881_v6, -inf }
 0x4ad   :  { %3482 = vmax.xlane.f32.xlu0 %v3481_v11 }
 0x4ae   :  { %v3253_v1 = vpop.f32.mrf.mxu1 }
 0x4b0   :  { %v9955_v27 = vpop.f32.mrf.mxu1 }
 0x4b1   :  { %3485 = vmax.xlane.f32.xlu0 %v3484_v42 }
 0x4b2   :  { %v3354_v19 = vpop.f32.mrf.mxu1 }
 0x4b3   :  { %v11892_v37 = vsel %vm11648_vm3, %v3354_v19, -1e+30 }
 0x4b4   :  { %v9966_v33 = vpop.f32.mrf.mxu1  ;;  %v3487_v45 = vsel %vm2562_vm4, %v11892_v37, -inf }
 0x4b5   :  { %3491 = vmax.xlane.f32.xlu0 %v3490_v12  ;;  %3488 = vmax.xlane.f32.xlu1 %v3487_v45 }
 0x4b6   :  { %v3357_v10 = vpop.f32.mrf.mxu1 }
 0x4b8   :  { %v9967_v44 = vpop.f32.mrf.mxu1 }
 0x4ba   :  { %v3458_v53 = vpop.f32.mrf.mxu1 }
 0x4bb   :  { %v3471_v4 = vsel %vm11648_vm3, %v3458_v53, -1e+30 }
 0x4bc   :  { %v9978_v51 = vpop.f32.mrf.mxu1  ;;  %v3493_v57 = vsel %vm2562_vm4, %v3471_v4, -inf }
 0x4be   :  { %v3461_v15 = vpop.f32.mrf.mxu1 }
 0x4c0   :  { %v9979_v50 = vpop.f32.mrf.mxu1 }
 0x4c6   :  { %3618 = vrot.lane.b32.xlu1 %v11585_v13, %s11220_s0 }
 0x4ca   :  { %3667 = vrot.lane.b32.xlu1 %v11731_v28, %s11220_s0 }
 0x4cb   :  { %3569 = vrot.lane.b32.xlu0 %v11575_v23, %s11220_s0 }
 0x4e3   :  { %v3474_v54 = vpop.xlane.xlu0 %3473 }
 0x4e4   :  { %v3496_v29 = vsub.f32 %v11862_v26, %v3474_v54 }
 0x4e6   :  { %v3504_v61 = vmul.f32 1.442695, %v3496_v29 }
 0x4e8   :  { %10962 = vpow2.f32 %v3504_v61 }
 0x4eb   :  { %v3480_v32 = vpop.xlane.xlu0 %3479 }
 0x4ec   :  { %v3498_v56 = vsub.f32 %v11868_v47, %v3480_v32 }
 0x4ee   :  { %v3508_v13 = vmul.f32 1.442695, %v3498_v56  ;;  %3494 = vmax.xlane.f32.xlu1 %v3493_v57 }
 0x4f0   :  { %10964 = vpow2.f32 %v3508_v13 }
 0x4f5   :  { %v11908_v28 = vpop.eup %10962 }
 0x4f6   :  { %v3520_v23 = vsel %vm2562_vm4, %v11908_v28, 0.0 }
 0x4f7   :  { %3521 = vadd.xlane.f32.xlu0 %v3520_v23 }
 0x4fd   :  { %v11912_v26 = vpop.eup %10964 }
 0x4fe   :  { %v3526_v39 = vsel %vm2562_vm4, %v11912_v26, 0.0 }
 0x4ff   :  { %3527 = vadd.xlane.f32.xlu0 %v3526_v39  ;;  %3716 = vrot.lane.b32.xlu1 %v11745_v58, %s11220_s0 }
 0x515   :  { %3765 = vrot.lane.b32.xlu0 %v11762_v0, %s11220_s0 }
 0x52e   :  { %v3477_v47 = vpop.xlane.xlu1 %3476 }
 0x52f   :  { %v3497_v46 = vsub.f32 %v3465_v25, %v3477_v47 }
 0x531   :  { %v3506_v30 = vmul.f32 1.442695, %v3497_v46 }
 0x533   :  { %10966 = vpow2.f32 %v3506_v30 }
 0x536   :  { %v3483_v63 = vpop.xlane.xlu0 %3482 }
 0x537   :  { %v3499_v10 = vsub.f32 %v11881_v6, %v3483_v63 }
 0x539   :  { %v3510_v44 = vmul.f32 1.442695, %v3499_v10 }
 0x53a   :  { %v3486_v59 = vpop.xlane.xlu0 %3485 }
 0x53b   :  { %v3500_v5 = vsub.f32 %v3468_v2, %v3486_v59 }
 0x53d   :  { %v3512_v52 = vmul.f32 1.442695, %v3500_v5 }
 0x53e   :  { %v3492_v8 = vpop.xlane.xlu0 %3491  ;;  %v3489_v11 = vpop.xlane.xlu1 %3488 }
 0x53f   :  { %10968 = vpow2.f32 %v3512_v52  ;;  %v3502_v1 = vsub.f32 %v3470_v9, %v3492_v8  ;;  %v3501_v53 = vsub.f32 %v11892_v37, %v3489_v11 }
 0x540   :  { %v11920_v27 = vpop.eup %10966 }
 0x541   :  { %v3516_v42 = vmul.f32 1.442695, %v3502_v1  ;;  %v3523_v58 = vsel %vm2562_vm4, %v11920_v27, 0.0  ;;  %v3514_v51 = vmul.f32 1.442695, %v3501_v53  ;;  %v13412_v53 = vmov 0  }
 0x542   :  { %v3570_v19 = vpop.permute.xlu0 %3569  ;;  %v3619_v0 = vpop.permute.xlu1 %3618  ;;  %3524 = vadd.xlane.f32.xlu1 %v3523_v58 }
 0x543   :  { %10970 = vpow2.f32 %v3516_v42  ;;  %v3575_v25 = vsel %vm2662_vm2, %v3570_v19, 0  ;;  %v3624_v33 = vsel %vm2662_vm2, %v3619_v0, 0 }
 0x544   :  { %9981 = vmatpush3.bf16.msra.mxu0 %v3575_v25  ;;  %9987 = vmatpush3.bf16.msra.mxu1 %v3624_v33  ;;  %10972 = vpow2.f32 %v3510_v44  ;;  %v10836_v25 = vld [vmem:[#allocation7 + $0xac] ss:$12 sps:$4 sm:$0xff]   ;;  %v10839_v44 = vld [vmem:[#allocation7 + $0x94] ss:$12 sps:$4 sm:$0xff]  }
 0x545   :  { %9992 = vmatprep.subr.bf16.mxu0 %v13386_v40  ;;  %9998 = vmatprep.subr.bf16.mxu1 %v13386_v40  ;;  %10974 = vpow2.f32 %v3514_v51  ;;  %v10842_v51 = vld [vmem:[#allocation7 + $0x7c] ss:$12 sps:$4 sm:$0xff]  }
 0x546   :  { %v3668_v50 = vpop.permute.xlu1 %3667 }
 0x547   :  { %v3673_v39 = vsel %vm2662_vm2, %v3668_v50, 0  ;;  %v10840_v50 = vld [vmem:[#allocation7 + $0x78] ss:$12 sps:$4 sm:$0xff]  }
 0x54c   :  { %v11928_v2 = vpop.eup %10968 }
 0x54d   :  { %v3532_v9 = vsel %vm2562_vm4, %v11928_v2, 0.0 }
 0x54e   :  { %3533 = vadd.xlane.f32.xlu0 %v3532_v9 }
 0x550   :  { %v11932_v12 = vpop.eup %10970 }
 0x551   :  { %v3538_v45 = vsel %vm2562_vm4, %v11932_v12, 0.0  ;;  %v11942_v15 = vpop.eup %10972 }
 0x552   :  { %3539 = vadd.xlane.f32.xlu0 %v3538_v45  ;;  %v3529_v54 = vsel %vm2562_vm4, %v11942_v15, 0.0  ;;  %v11946_v29 = vpop.eup %10974  ;;  %v10834_v45 = vld [vmem:[#allocation7 + $0xa8] ss:$12 sps:$4 sm:$0xff]  }
 0x553   :  { %3814 = vrot.lane.b32.xlu1 %v11780_v16, %s11220_s0  ;;  %v3535_v37 = vsel %vm2562_vm4, %v11946_v29, 0.0 }
 0x568   :  { %3863 = vrot.lane.b32.xlu0 %v11776_v3, %s11220_s0 }
 0x577   :  { %3530 = vadd.xlane.f32.xlu1 %v3529_v54  ;;  %v3495_v16 = vpop.xlane.xlu1 %3494  ;;  %v10845_v54 = vld [vmem:[#allocation7 + $0x64] ss:$12 sps:$4 sm:$0xff]  }
 0x578   :  { %v3503_v6 = vsub.f32 %v3471_v4, %v3495_v16  ;;  %v10843_v16 = vld [vmem:[#allocation7 + $0x60] ss:$12 sps:$4 sm:$0xff]  }
 0x57a   :  { %v3518_v61 = vmul.f32 1.442695, %v3503_v6 }
 0x57b   :  { %3536 = vadd.xlane.f32.xlu1 %v3535_v37 }
 0x57c   :  { %10976 = vpow2.f32 %v3518_v61 }
 0x580   :  { %v3522_v32 = vpop.xlane.xlu0 %3521 }
 0x581   :  { %10978 = vrcp.f32 %v3522_v32 }
 0x588   :  { %v3528_v3 = vpop.xlane.xlu0 %3527 }
 0x589   :  { %v11950_v56 = vpop.eup %10976  ;;  %10980 = vrcp.f32 %v3528_v3 }
 0x58a   :  { %v3541_v57 = vsel %vm2562_vm4, %v11950_v56, 0.0 }
 0x58b   :  { %3542 = vadd.xlane.f32.xlu1 %v3541_v57 }
 0x58c   :  { %v3766_v30 = vpop.permute.xlu0 %3765 }
 0x58d   :  { %v3771_v59 = vsel %vm2662_vm2, %v3766_v30, 0 }
 0x58e   :  { %v10979_v13 = vpop.eup %10978 }
 0x58f   :  { %v3552_v23 = vmul.f32 %v10979_v13, %v11908_v28  ;;  %v3717_v28 = vpop.permute.xlu1 %3716 }
 0x590   :  { %v3722_v42 = vsel %vm2662_vm2, %v3717_v28, 0  ;;  %v10848_v28 = vld [vmem:[#allocation7 + $0x80] ss:$12 sps:$4 sm:$0xff]  }
 0x591   :  { %v3560_v4 = vpack.c.bf16 %v3552_v23, %v3552_v23 }
 0x593   :  { %9983 = vmatmul.mubr.msk.bf16.vlgmr.msra.gmra.mxu0 %vm2562_vm4, %v3560_v4 }
 0x594   :  { %9993 = vmatpush3.bf16.msra.mxu0 %v3673_v39  ;;  %9994 = vmatprep.mubr.msk.bf16.mxu0 %vm11219_vm0, %v13386_v40 }
 0x595   :  { %10004 = vmatprep.subr.bf16.mxu0 %v13386_v40 }
 0x596   :  { %v10981_v47 = vpop.eup %10980 }
 0x597   :  { %v3554_v46 = vmul.f32 %v10981_v47, %v11912_v26 }
 0x599   :  { %v3562_v63 = vpack.c.bf16 %v3554_v46, %v3554_v46 }
 0x59b   :  { %9995 = vmatmul.mubr.msk.bf16.vlgmr.msra.gmra.mxu0 %vm2562_vm4, %v3562_v63 }
 0x59c   :  { %10005 = vmatpush3.bf16.msra.mxu0 %v3771_v59  ;;  %3912 = vrot.lane.b32.xlu1 %v11812_v22, %s11220_s0  ;;  %v10847_v59 = vld [vmem:[#allocation7 + $0x98] ss:$12 sps:$4 sm:$0xff]  }
 0x59d   :  { %10006 = vmatprep.mubr.msk.bf16.mxu0 %vm11219_vm0, %v13386_v40  ;;  %10016 = vmatprep.subr.bf16.mxu0 %v13386_v40 }
 0x5cb   :  { %v3525_v5 = vpop.xlane.xlu1 %3524 }
 0x5cc   :  { %10982 = vrcp.f32 %v3525_v5  ;;  %v10849_v5 = vld [vmem:[#allocation7 + $0x68] ss:$12 sps:$4 sm:$0xff]  }
 0x5cf   :  { %v3815_v6 = vpop.permute.xlu1 %3814 }
 0x5d0   :  { %v3820_v13 = vsel %vm2662_vm2, %v3815_v6, 0 }
 0x5d7   :  { %v3534_v52 = vpop.xlane.xlu0 %3533 }
 0x5d8   :  { %10984 = vrcp.f32 %v3534_v52 }
 0x5d9   :  { %v10983_v26 = vpop.eup %10982 }
 0x5da   :  { %v3553_v8 = vmul.f32 %v10983_v26, %v11920_v27 }
 0x5db   :  { %v3540_v11 = vpop.xlane.xlu0 %3539 }
 0x5dc   :  { %v3561_v1 = vpack.c.bf16 %v3553_v8, %v3553_v8  ;;  %10986 = vrcp.f32 %v3540_v11 }
 0x5de   :  { %9989 = vmatmul.mubr.msk.bf16.vlgmr.msra.gmra.mxu1 %vm2562_vm4, %v3561_v1 }
 0x5df   :  { %9999 = vmatpush3.bf16.msra.mxu1 %v3722_v42  ;;  %10000 = vmatprep.mubr.msk.bf16.mxu1 %vm11219_vm0, %v13386_v40  ;;  %v3864_v19 = vpop.permute.xlu0 %3863 }
 0x5e0   :  { %10010 = vmatprep.subr.bf16.mxu1 %v13386_v40  ;;  %v3869_v33 = vsel %vm2662_vm2, %v3864_v19, 0  ;;  %v10853_v19 = vld [vmem:[#allocation7 + $0x50] ss:$12 sps:$4 sm:$0xff]  }
 0x5e5   :  { %v10985_v22 = vpop.eup %10984 }
 0x5e6   :  { %v3556_v58 = vmul.f32 %v10985_v22, %v11928_v2  ;;  %v10837_v2 = vld [vmem:[#allocation7 + $0x90] ss:$12 sps:$4 sm:$0xff]  }
 0x5e8   :  { %v3564_v0 = vpack.c.bf16 %v3556_v58, %v3556_v58  ;;  %v10852_v58 = vld [vmem:[#allocation7 + $0x4c] ss:$12 sps:$4 sm:$0xff]  }
 0x5e9   :  { %v10987_v27 = vpop.eup %10986 }
 0x5ea   :  { %10007 = vmatmul.mubr.msk.bf16.vlgmr.msra.gmra.mxu0 %vm2562_vm4, %v3564_v0  ;;  %v3558_v9 = vmul.f32 %v10987_v27, %v11932_v12  ;;  %v10857_v27 = vld [vmem:[#allocation7 + $0x38] ss:$12 sps:$4 sm:$0xff]  }
 0x5eb   :  { %10017 = vmatpush3.bf16.msra.mxu0 %v3869_v33  ;;  %10018 = vmatprep.mubr.msk.bf16.mxu0 %vm11219_vm0, %v13386_v40 }
 0x5ec   :  { %4064 = vmatprep.subr.bf16.mxu0 %v10836_v25  ;;  %v3566_v10 = vpack.c.bf16 %v3558_v9, %v3558_v9 }
 0x5f2   :  { %10019 = vmatmul.mubr.msk.bf16.vlgmr.msra.gmra.mxu0 %vm2562_vm4, %v3566_v10 }
 0x5f3   :  { %4065 = vmatpush1.bf16.msra.mxu0 %v10834_v45  ;;  %4088 = vmatprep.mubr.bf16.mxu0 %v13412_v53  ;;  %v10861_v45 = vld [vmem:[#allocation7 + $0x20] ss:$12 sps:$4 sm:$0xff]  }
 0x5f4   :  { %4066 = vmatprep.subr.bf16.mxu0 %v10839_v44  ;;  %v10865_v44 = vld [vmem:[#allocation7 + $0x8] ss:$12 sps:$4 sm:$0xff]  }
 0x5f7   :  { %4067 = vmatpush1.bf16.msra.mxu0 %v10837_v2 }
 0x5f8   :  { %4068 = vmatprep.subr.bf16.mxu0 %v10842_v51 }
 0x5fb   :  { %4069 = vmatpush1.bf16.msra.mxu0 %v10840_v50 }
 0x5fc   :  { %4070 = vmatprep.subr.bf16.mxu0 %v10845_v54 }
 0x5ff   :  { %4071 = vmatpush1.bf16.msra.mxu0 %v10843_v16 }
 0x600   :  { %v3531_v12 = vpop.xlane.xlu1 %3530  ;;  %10044 = vmatprep.subr.bf16.mxu0 %v10853_v19 }
 0x601   :  { %10988 = vrcp.f32 %v3531_v12 }
 0x604   :  { %v3537_v61 = vpop.xlane.xlu1 %3536 }
 0x605   :  { %10990 = vrcp.f32 %v3537_v61 }
 0x60e   :  { %v10989_v37 = vpop.eup %10988 }
 0x60f   :  { %v3555_v32 = vmul.f32 %v10989_v37, %v11942_v15 }
 0x611   :  { %v3563_v3 = vpack.c.bf16 %v3555_v32, %v3555_v32  ;;  %v10850_v32 = vld [vmem:[#allocation7 + $0x48] ss:$12 sps:$4 sm:$0xff]  }
 0x612   :  { %v10991_v57 = vpop.eup %10990 }
 0x613   :  { %10001 = vmatmul.mubr.msk.bf16.vlgmr.msra.gmra.mxu1 %vm2562_vm4, %v3563_v3  ;;  %v3557_v4 = vmul.f32 %v10991_v57, %v11946_v29  ;;  %v10846_v29 = vld [vmem:[#allocation7 + $0xb0] ss:$12 sps:$4 sm:$0xff]   ;;  %v10856_v57 = vld [vmem:[#allocation7 + $0x34] ss:$12 sps:$4 sm:$0xff]  }
 0x614   :  { %10011 = vmatpush3.bf16.msra.mxu1 %v3820_v13  ;;  %v3543_v23 = vpop.xlane.xlu1 %3542  ;;  %10012 = vmatprep.mubr.msk.bf16.mxu1 %vm11219_vm0, %v13386_v40 }
 0x615   :  { %10992 = vrcp.f32 %v3543_v23  ;;  %10022 = vmatprep.subr.bf16.mxu1 %v13386_v40  ;;  %v3565_v47 = vpack.c.bf16 %v3557_v4, %v3557_v4  ;;  %v10854_v4 = vld [vmem:[#allocation7 + $0x30] ss:$12 sps:$4 sm:$0xff]  }
 0x618   :  { %v3913_v39 = vpop.permute.xlu1 %3912 }
 0x619   :  { %v3918_v15 = vsel %vm2662_vm2, %v3913_v39, 0  ;;  %v10860_v39 = vld [vmem:[#allocation7 + $0x1c] ss:$12 sps:$4 sm:$0xff]  }
 0x61b   :  { %10013 = vmatmul.mubr.msk.bf16.vlgmr.msra.gmra.mxu1 %vm2562_vm4, %v3565_v47 }
 0x61c   :  { %10023 = vmatpush3.bf16.msra.mxu1 %v3918_v15  ;;  %10024 = vmatprep.mubr.msk.bf16.mxu1 %vm11219_vm0, %v13386_v40 }
 0x61d   :  { %10028 = vmatprep.subr.bf16.mxu1 %v10846_v29 }
 0x622   :  { %v10993_v46 = vpop.eup %10992 }
 0x623   :  { %v3559_v30 = vmul.f32 %v10993_v46, %v11950_v56  ;;  %v10858_v46 = vld [vmem:[#allocation7 + $0x18] ss:$12 sps:$4 sm:$0xff]  }
 0x625   :  { %v3567_v63 = vpack.c.bf16 %v3559_v30, %v3559_v30 }
 0x627   :  { %10025 = vmatmul.mubr.msk.bf16.vlgmr.msra.gmra.mxu1 %vm2562_vm4, %v3567_v63  ;;  %v10864_v63 = vld [vmem:[#allocation7 + $0x4] ss:$12 sps:$4 sm:$0xff]  }
 0x628   :  { %10029 = vmatpush3.bf16.msra.mxu1 %v10846_v29 }
 0x629   :  { %10030 = vmatprep.subr.bf16.mxu1 %v10847_v59 }
 0x62c   :  { %10031 = vmatpush3.bf16.msra.mxu1 %v10847_v59 }
 0x62d   :  { %10032 = vmatprep.subr.bf16.mxu1 %v10848_v28 }
 0x630   :  { %10033 = vmatpush3.bf16.msra.mxu1 %v10848_v28  ;;  %v10862_v28 = vld [vmem:[#allocation7] ss:$12 sps:$4 sm:$0xff]  }
 0x631   :  { %10034 = vmatprep.subr.bf16.mxu1 %v10849_v5 }
 0x634   :  { %10035 = vmatpush3.bf16.msra.mxu1 %v10849_v5 }
 0x635   :  { %4278 = vmatprep.subr.bf16.mxu1 %v10852_v58 }
 0x653   :  { %v3611_v52 = vpop.f32.mrf.mxu0 }
 0x655   :  { %v9984_v26 = vpop.f32.mrf.mxu0 }
 0x657   :  { %v3614_v8 = vpop.f32.mrf.mxu0 }
 0x659   :  { %v9985_v11 = vpop.f32.mrf.mxu0 }
 0x65b   :  { %v3709_v56 = vpop.f32.mrf.mxu0 }
 0x65d   :  { %v9996_v1 = vpop.f32.mrf.mxu0 }
 0x65e   :  { %v12013_v1 = vpack.c.bf16 %v11539_v62, %v11539_v62  ;;  %v3031_v62 = vpack.c.bf16 %v11874_v38, %v11858_v17 }
 0x65f   :  { %v3712_v42 = vpop.f32.mrf.mxu0 }
 0x660   :  { %v12017_v42 = vpack.c.bf16 %v11543_v34, %v11543_v34  ;;  %v12042_v34 = vpack.c.bf16 %v11547_v60, %v11547_v60  ;;  %v12064_v60 = vpack.c.bf16 %v11387_v41, %v11387_v41  ;;  %v12080_v41 = vpack.c.bf16 %v11551_v55, %v11551_v55 }
 0x661   :  { %v9997_v22 = vpop.f32.mrf.mxu0  ;;  %v1564_v55 = vadd.f32 %v11375_v24, %v11391_v43  ;;  %v13415_v24 = vld [vmem:[#allocation14_spill] sm:$0xff] }
 0x662   :  { %v4436_v22 = vsel %vm2185_vm1, %v12013_v1, 0  ;;  %v4482_v58 = vsel %vm2185_vm1, %v12017_v42, 0  ;;  %v4528_v17 = vsel %vm2185_vm1, %v12042_v34, 0  ;;  %v12120_v43 = vpack.c.bf16 %v13415_v24, %v13415_v24 }
 0x69e   :  { %v3660_v0 = vpop.f32.mrf.mxu1 }
 0x69f   :  { %v3960_v25 = vpack.c.bf16 %v3660_v0, %v3611_v52  ;;  %v13414_v0 = vld [vmem:[#allocation39_spill] sm:$0xff] }
 0x6a0   :  { %v9990_v33 = vpop.f32.mrf.mxu1 }
 0x6a1   :  { %9348 = vmatmul.mubr.msk.bf16.vlgmr.msra.gmra.mxu0 %vm2185_vm1, %v3960_v25  ;;  %10036 = vmatprep.mubr.msk.bf16.mxu1 %vm2185_vm1, %v3960_v25  ;;  %v12114_v25 = vpack.c.bf16 %v13414_v0, %v13414_v0 }
 0x6a2   :  { %v3663_v9 = vpop.f32.mrf.mxu1  ;;  %4098 = vmatprep.mubr.bf16.mxu0 %v13412_v53  ;;  %10045 = vmatpush3.bf16.msra.mxu0 %v10853_v19  ;;  %v12090_v19 = vpack.c.bf16 %v11399_v49, %v11399_v49  ;;  %v13413_v49 = vld [vmem:[#allocation33_spill] sm:$0xff] }
 0x6a3   :  { %10046 = vmatprep.subr.bf16.mxu0 %v10857_v27  ;;  %v4908_v9 = vsel %vm2662_vm2, %v12114_v25, 0 }
 0x6a4   :  { %v9991_v10 = vpop.f32.mrf.mxu1 }
 0x6a5   :  { %v13417_v10 = vld [vmem:[#allocation12_spill] sm:$0xff] }
 0x6a6   :  { %10047 = vmatpush3.bf16.msra.mxu0 %v10857_v27  ;;  %v12116_v27 = vpack.c.bf16 %v1564_v55, %v1564_v55 }
 0x6a7   :  { %10048 = vmatprep.subr.bf16.mxu0 %v10861_v45 }
 0x6aa   :  { %v3807_v2 = vpop.f32.mrf.mxu0  ;;  %10049 = vmatpush3.bf16.msra.mxu0 %v10861_v45  ;;  %v13416_v45 = vld [vmem:[#allocation13_spill] sm:$0xff] }
 0x6ab   :  { %10050 = vmatprep.subr.bf16.mxu0 %v10865_v44 }
 0x6ac   :  { %v10008_v51 = vpop.f32.mrf.mxu0 }
 0x6ae   :  { %v3810_v50 = vpop.f32.mrf.mxu0  ;;  %10051 = vmatpush3.bf16.msra.mxu0 %v10865_v44  ;;  %v1574_v44 = vadd.f32 %v13417_v10, %v13416_v45 }
 0x6af   :  { %10060 = vmatprep.subr.bf16.mxu0 %v13386_v40 }
 0x6b0   :  { %v10009_v54 = vpop.f32.mrf.mxu0  ;;  %v12142_v50 = vpack.c.bf16 %v1574_v44, %v1574_v44 }
 0x6b2   :  { %v3905_v16 = vpop.f32.mrf.mxu0 }
 0x6b4   :  { %v10020_v6 = vpop.f32.mrf.mxu0 }
 0x6b5   :  { %v13420_v6 = vld [vmem:[#allocation40_spill] sm:$0xff] }
 0x6b6   :  { %v3908_v12 = vpop.f32.mrf.mxu0 }
 0x6b8   :  { %v10021_v61 = vpop.f32.mrf.mxu0 }
 0x6b9   :  { %v13421_v61 = vld [vmem:[#allocation16_spill] sm:$0xff] }
 0x6d3   :  { %v3758_v37 = vpop.f32.mrf.mxu1 }
 0x6d4   :  { %v3961_v3 = vpack.c.bf16 %v3758_v37, %v3709_v56  ;;  %v13422_v37 = vld [vmem:[#allocation15_spill] sm:$0xff] }
 0x6d5   :  { %v10002_v13 = vpop.f32.mrf.mxu1 }
 0x6d6   :  { %9349 = vmatmul.mubr.msk.bf16.gmra.mxu0 %vm2185_vm1, %v3961_v3  ;;  %10037 = vmatmul.mubr.msk.bf16.vlgmr.msra.gmra.mxu1 %vm2185_vm1, %v3961_v3 }
 0x6d7   :  { %v3761_v23 = vpop.f32.mrf.mxu1  ;;  %4108 = vmatprep.mubr.bf16.mxu0 %v13412_v53  ;;  %4279 = vmatpush1.bf16.msra.mxu1 %v10850_v32  ;;  %v1584_v32 = vadd.f32 %v13422_v37, %v13421_v61 }
 0x6d8   :  { %4280 = vmatprep.subr.bf16.mxu1 %v10856_v57 }
 0x6d9   :  { %v10003_v47 = vpop.f32.mrf.mxu1  ;;  %v12157_v57 = vpack.c.bf16 %v1584_v32, %v1584_v32 }
 0x6db   :  { %v3856_v15 = vpop.f32.mrf.mxu1  ;;  %4281 = vmatpush1.bf16.msra.mxu1 %v10854_v4 }
 0x6dc   :  { %v3962_v30 = vpack.c.bf16 %v3856_v15, %v3807_v2  ;;  %4282 = vmatprep.subr.bf16.mxu1 %v10860_v39  ;;  %v13418_v2 = vld [vmem:[#allocation36_spill] sm:$0xff] }
 0x6dd   :  { %v10014_v29 = vpop.f32.mrf.mxu1  ;;  %v12140_v51 = vpack.c.bf16 %v13418_v2, %v13418_v2 }
 0x6de   :  { %9350 = vmatmul.mubr.msk.bf16.gmra.mxu0 %vm2185_vm1, %v3962_v30  ;;  %10040 = vmatprep.mubr.msk.bf16.mxu1 %vm2185_vm1, %v3962_v30 }
 0x6df   :  { %v3859_v59 = vpop.f32.mrf.mxu1  ;;  %4118 = vmatprep.mubr.bf16.mxu0 %v13412_v53  ;;  %4283 = vmatpush1.bf16.msra.mxu1 %v10858_v46  ;;  %v4758_v54 = vsel %vm2185_vm1, %v12140_v51, 0 }
 0x6e0   :  { %4284 = vmatprep.subr.bf16.mxu1 %v10864_v63 }
 0x6e1   :  { %v10015_v5 = vpop.f32.mrf.mxu1 }
 0x6e3   :  { %4285 = vmatpush1.bf16.msra.mxu1 %v10862_v28 }
 0x6e4   :  { %10066 = vmatprep.subr.bf16.mxu1 %v13386_v40 }
 0x6e7   :  { %v3954_v52 = vpop.f32.mrf.mxu1 }
 0x6e8   :  { %v3963_v26 = vpack.c.bf16 %v3954_v52, %v3905_v16  ;;  %v13419_v16 = vld [vmem:[#allocation41_spill] sm:$0xff] }
 0x6e9   :  { %v10026_v8 = vpop.f32.mrf.mxu1  ;;  %v1992_v12 = vadd.f32 %v13420_v6, %v13419_v16 }
 0x6ea   :  { %9351 = vmatmul.mubr.msk.bf16.gmra.mxu0 %vm2185_vm1, %v3963_v26  ;;  %10041 = vmatmul.mubr.msk.bf16.gmra.mxu1 %vm2185_vm1, %v3963_v26 }
 0x6eb   :  { %v3957_v11 = vpop.f32.mrf.mxu1  ;;  %10052 = vmatprep.mubr.msk.bf16.mxu0 %vm2185_vm1, %v11854_v31  ;;  %4302 = vmatprep.mubr.bf16.mxu1 %v13412_v53  ;;  %v12155_v3 = vpack.c.bf16 %v1992_v12, %v1992_v12 }
 0x6ed   :  { %v10027_v56 = vpop.f32.mrf.mxu1  ;;  %v4954_v13 = vsel %vm2662_vm2, %v12155_v3, 0 }
 0x6f2   :  { %9368 = vmatmul.mubr.msk.bf16.vlgmr.msra.gmra.mxu1 %vm2185_vm1, %v11854_v31  ;;  %10053 = vmatmul.mubr.msk.bf16.vlgmr.msra.gmra.mxu0 %vm2185_vm1, %v11856_v7  ;;  %v12046_v31 = vpack.c.bf16 %v11379_v35, %v11379_v35  ;;  %v12060_v35 = vpack.c.bf16 %v11557_v14, %v11557_v14  ;;  %v1554_v14 = vadd.f32 %v11364_v21, %v11381_v36  ;;  %v4574_v21 = vsel %vm2185_vm1, %v12080_v41, 0 }
 0x6f3   :  { %10061 = vmatpush3.bf16.xpose.msra.mxu0 %v4436_v22  ;;  %10067 = vmatpush3.bf16.xpose.msra.mxu1 %v4482_v58 }
 0x6f4   :  { %10056 = vmatprep.mubr.msk.bf16.mxu0 %vm2185_vm1, %v11872_v20  ;;  %4312 = vmatprep.mubr.bf16.mxu1 %v13412_v53  ;;  %v12086_v38 = vpack.c.bf16 %v1554_v14, %v1554_v14 }
 0x6f5   :  { %10072 = vmatprep.subr.bf16.mxu0 %v13386_v40  ;;  %10078 = vmatprep.subr.bf16.mxu1 %v13386_v40 }
 0x6fa   :  { %9369 = vmatmul.mubr.msk.bf16.gmra.mxu1 %vm2185_vm1, %v11856_v7  ;;  %10057 = vmatmul.mubr.msk.bf16.gmra.mxu0 %vm2185_vm1, %v3031_v62  ;;  %v4620_v7 = vsel %vm2185_vm1, %v12060_v35, 0 }
 0x6fb   :  { %4322 = vmatprep.mubr.bf16.mxu1 %v13412_v53  ;;  %10062 = vmatprep.mubr.msk.bf16.mxu0 %vm11219_vm0, %v13386_v40 }
 0x702   :  { %9370 = vmatmul.mubr.msk.bf16.gmra.mxu1 %vm2185_vm1, %v11872_v20  ;;  %10063 = vmatmul.mubr.msk.bf16.vlgmr.msra.gmra.mxu0 %vm2185_vm1, %v12046_v31  ;;  %v12084_v20 = vpack.c.bf16 %v11565_v18, %v11565_v18  ;;  %v12110_v18 = vpack.c.bf16 %v13413_v49, %v13413_v49 }
 0x703   :  { %10073 = vmatpush3.bf16.xpose.msra.mxu0 %v4528_v17  ;;  %4332 = vmatprep.mubr.bf16.mxu1 %v13412_v53 }
 0x704   :  { %10074 = vmatprep.mubr.msk.bf16.mxu0 %vm11219_vm0, %v13386_v40  ;;  %10084 = vmatprep.subr.bf16.mxu0 %v13386_v40  ;;  %v4712_v36 = vsel %vm2185_vm1, %v12084_v20, 0  ;;  %v4666_v33 = vsel %vm2185_vm1, %v12110_v18, 0 }
 0x70a   :  { %9371 = vmatmul.mubr.msk.bf16.gmra.mxu1 %vm2185_vm1, %v3031_v62  ;;  %10075 = vmatmul.mubr.msk.bf16.vlgmr.msra.gmra.mxu0 %vm2185_vm1, %v12064_v60 }
 0x70b   :  { %10085 = vmatpush3.bf16.xpose.msra.mxu0 %v4620_v7  ;;  %10068 = vmatprep.mubr.msk.bf16.mxu1 %vm11219_vm0, %v13386_v40 }
 0x70c   :  { %10086 = vmatprep.mubr.msk.bf16.mxu0 %vm11219_vm0, %v13386_v40  ;;  %10096 = vmatprep.subr.bf16.mxu0 %v13386_v40 }
 0x712   :  { %10069 = vmatmul.mubr.msk.bf16.vlgmr.msra.gmra.mxu1 %vm2185_vm1, %v12086_v38  ;;  %10087 = vmatmul.mubr.msk.bf16.vlgmr.msra.gmra.mxu0 %vm2185_vm1, %v12090_v19 }
 0x713   :  { %10079 = vmatpush3.bf16.xpose.msra.mxu1 %v4574_v21  ;;  %10097 = vmatpush3.bf16.xpose.msra.mxu0 %v4712_v36 }
 0x714   :  { %10080 = vmatprep.mubr.msk.bf16.mxu1 %vm11219_vm0, %v13386_v40  ;;  %10090 = vmatprep.subr.bf16.mxu1 %v13386_v40 }
 0x715   :  { %10098 = vmatprep.mubr.msk.bf16.mxu0 %vm11219_vm0, %v13386_v40  ;;  %10108 = vmatprep.subr.bf16.mxu0 %v13386_v40 }
 0x71a   :  { %10081 = vmatmul.mubr.msk.bf16.vlgmr.msra.gmra.mxu1 %vm2185_vm1, %v12116_v27  ;;  %10099 = vmatmul.mubr.msk.bf16.vlgmr.msra.gmra.mxu0 %vm2185_vm1, %v12120_v43 }
 0x71b   :  { %10091 = vmatpush3.bf16.xpose.msra.mxu1 %v4666_v33  ;;  %10109 = vmatpush3.bf16.msra.mxu0 %v4908_v9 }
 0x71c   :  { %10092 = vmatprep.mubr.msk.bf16.mxu1 %vm11219_vm0, %v13386_v40  ;;  %10102 = vmatprep.subr.bf16.mxu1 %v13386_v40 }
 0x71d   :  { %10110 = vmatprep.mubr.msk.bf16.mxu0 %vm11219_vm0, %v13386_v40  ;;  %10120 = vmatprep.subr.bf16.mxu0 %v13386_v40 }
 0x722   :  { %10093 = vmatmul.mubr.msk.bf16.vlgmr.msra.gmra.mxu1 %vm2185_vm1, %v12142_v50 }
 0x723   :  { %10103 = vmatpush3.bf16.xpose.msra.mxu1 %v4758_v54  ;;  %10104 = vmatprep.mubr.msk.bf16.mxu1 %vm11219_vm0, %v13386_v40 }
 0x724   :  { %10114 = vmatprep.subr.bf16.mxu1 %v13386_v40 }
 0x72a   :  { %10105 = vmatmul.mubr.msk.bf16.vlgmr.msra.gmra.mxu1 %vm2185_vm1, %v12157_v57 }
 0x72b   :  { %10115 = vmatpush3.bf16.msra.mxu1 %v4954_v13  ;;  %10116 = vmatprep.mubr.msk.bf16.mxu1 %vm11219_vm0, %v13386_v40 }
 0x72c   :  { %10126 = vmatprep.subr.bf16.mxu1 %v13386_v40 }
 0x761   :  { %v12166_v23 = vpop.f32.mrf.mxu0 }
 0x763   :  { %v12168_v4 = vpop.f32.mrf.mxu0 }
 0x765   :  { %v12170_v39 = vpop.f32.mrf.mxu0 }
 0x767   :  { %v12172_v47 = vpop.f32.mrf.mxu0 }
 0x768   :  { %13423 = vst [vmem:[#allocation33_spill] sm:$0xff] %v12172_v47 }
 0x796   :  { %v4100_v15 = vpop.f32.mrf.mxu0  ;;  %v10038_v63 = vpop.f32.mrf.mxu1 }
 0x798   :  { %v4102_v46 = vpop.f32.mrf.mxu0  ;;  %v4163_v28 = vpop.f32.mrf.mxu1 }
 0x79a   :  { %v4104_v30 = vpop.f32.mrf.mxu0  ;;  %v10039_v52 = vpop.f32.mrf.mxu1 }
 0x79c   :  { %v12174_v29 = vpop.f32.mrf.mxu0  ;;  %v12176_v8 = vpop.f32.mrf.mxu1 }
 0x79d   :  { %13424 = vst [vmem:[#allocation39_spill] sm:$0xff] %v12174_v29  ;;  %13425 = vst [vmem:[#allocation14_spill] sm:$0xff] %v12176_v8 }
 0x79e   :  { %v4110_v59 = vpop.f32.mrf.mxu0 }
 0x7a0   :  { %v4112_v5 = vpop.f32.mrf.mxu0 }
 0x7a2   :  { %v4114_v26 = vpop.f32.mrf.mxu0 }
 0x7a4   :  { %v12178_v11 = vpop.f32.mrf.mxu0 }
 0x7a5   :  { %13426 = vst [vmem:[#allocation13_spill] sm:$0xff] %v12178_v11 }
 0x7aa   :  { %v4120_v56 = vpop.f32.mrf.mxu0  ;;  %v10042_v22 = vpop.f32.mrf.mxu1 }
 0x7ac   :  { %v4122_v58 = vpop.f32.mrf.mxu0  ;;  %v4179_v62 = vpop.f32.mrf.mxu1 }
 0x7ae   :  { %v4124_v17 = vpop.f32.mrf.mxu0  ;;  %v10043_v7 = vpop.f32.mrf.mxu1 }
 0x7b0   :  { %v12180_v14 = vpop.f32.mrf.mxu0  ;;  %v12182_v21 = vpop.f32.mrf.mxu1 }
 0x7b1   :  { %13427 = vst [vmem:[#allocation12_spill] sm:$0xff] %v12180_v14  ;;  %13428 = vst [vmem:[#allocation36_spill] sm:$0xff] %v12182_v21 }
 0x7b2   :  { %v12184_v36 = vpop.f32.mrf.mxu1  ;;  %v10054_v55 = vpop.f32.mrf.mxu0 }
 0x7b3   :  { %v12186_v49 = vadd.f32 %v10054_v55, %v10038_v63 }
 0x7b4   :  { %v12188_v0 = vpop.f32.mrf.mxu1  ;;  %v4377_v24 = vpop.f32.mrf.mxu0 }
 0x7b5   :  { %v12190_v33 = vadd.f32 %v4377_v24, %v4163_v28 }
 0x7b6   :  { %v12192_v9 = vpop.f32.mrf.mxu1  ;;  %v10055_v45 = vpop.f32.mrf.mxu0 }
 0x7b7   :  { %v12194_v10 = vadd.f32 %v10055_v45, %v10039_v52 }
 0x7b8   :  { %v12196_v44 = vpop.f32.mrf.mxu1  ;;  %v12198_v2 = vpop.f32.mrf.mxu0 }
 0x7b9   :  { %13429 = vst [vmem:[#allocation41_spill] sm:$0xff] %v12196_v44  ;;  %13430 = vst [vmem:[#allocation40_spill] sm:$0xff] %v12198_v2 }
 0x7ba   :  { %v4314_v54 = vpop.f32.mrf.mxu1  ;;  %v10058_v16 = vpop.f32.mrf.mxu0 }
 0x7bb   :  { %v12200_v6 = vadd.f32 %v4314_v54, %v4100_v15  ;;  %v12202_v12 = vadd.f32 %v10058_v16, %v10042_v22 }
 0x7bc   :  { %v4316_v61 = vpop.f32.mrf.mxu1  ;;  %v4393_v37 = vpop.f32.mrf.mxu0 }
 0x7bd   :  { %v12204_v32 = vadd.f32 %v4316_v61, %v4102_v46  ;;  %v12206_v13 = vadd.f32 %v4393_v37, %v4179_v62 }
 0x7be   :  { %v4318_v63 = vpop.f32.mrf.mxu1  ;;  %v10059_v28 = vpop.f32.mrf.mxu0 }
 0x7bf   :  { %v12208_v52 = vadd.f32 %v4318_v63, %v4104_v30  ;;  %v12210_v55 = vadd.f32 %v10059_v28, %v10043_v7 }
 0x7c0   :  { %v12212_v24 = vpop.f32.mrf.mxu1  ;;  %v12214_v45 = vpop.f32.mrf.mxu0 }
 0x7c1   :  { %13431 = vst [vmem:[#allocation16_spill] sm:$0xff] %v12212_v24  ;;  %13432 = vst [vmem:[#allocation15_spill] sm:$0xff] %v12214_v45 }
 0x7c2   :  { %v4324_v15 = vpop.f32.mrf.mxu1  ;;  %v4472_v54 = vpop.f32.mrf.mxu0 }
 0x7c3   :  { %v12216_v22 = vadd.f32 %v4324_v15, %v4110_v59  ;;  %v12220_v46 = vsel %vm11648_vm3, %v4472_v54, -1e+30 }
 0x7c4   :  { %v4326_v62 = vpop.f32.mrf.mxu1  ;;  %v10064_v16 = vpop.f32.mrf.mxu0  ;;  %v4808_v30 = vsel %vm2562_vm4, %v12220_v46, -inf }
 0x7c5   :  { %v12224_v61 = vadd.f32 %v4326_v62, %v4112_v5  ;;  %4809 = vmax.xlane.f32.xlu0 %v4808_v30 }
 0x7c6   :  { %v4328_v7 = vpop.f32.mrf.mxu1  ;;  %v4475_v37 = vpop.f32.mrf.mxu0 }
 0x7c7   :  { %v12226_v63 = vadd.f32 %v4328_v7, %v4114_v26 }
 0x7c8   :  { %v12228_v28 = vpop.f32.mrf.mxu1  ;;  %v10065_v59 = vpop.f32.mrf.mxu0 }
 0x7c9   :  { %13433 = vst [vmem:[#allocation65_spill] sm:$0xff] %v12228_v28 }
 0x7ca   :  { %v4334_v15 = vpop.f32.mrf.mxu1  ;;  %v4564_v14 = vpop.f32.mrf.mxu0 }
 0x7cb   :  { %v12230_v45 = vadd.f32 %v4334_v15, %v4120_v56  ;;  %v4802_v54 = vsel %vm11648_vm3, %v4564_v14, -1e+30 }
 0x7cc   :  { %v4336_v16 = vpop.f32.mrf.mxu1  ;;  %v10076_v21 = vpop.f32.mrf.mxu0  ;;  %v4814_v5 = vsel %vm2562_vm4, %v4802_v54, -inf }
 0x7cd   :  { %v12235_v62 = vadd.f32 %v4336_v16, %v4122_v58  ;;  %4815 = vmax.xlane.f32.xlu0 %v4814_v5 }
 0x7ce   :  { %v4338_v30 = vpop.f32.mrf.mxu1  ;;  %v4567_v26 = vpop.f32.mrf.mxu0 }
 0x7cf   :  { %v12237_v7 = vadd.f32 %v4338_v30, %v4124_v17 }
 0x7d0   :  { %v12239_v37 = vpop.f32.mrf.mxu1  ;;  %v10077_v59 = vpop.f32.mrf.mxu0 }
 0x7d1   :  { %13434 = vst [vmem:[#allocation66_spill] sm:$0xff] %v12239_v37 }
 0x7d2   :  { %v4518_v28 = vpop.f32.mrf.mxu1  ;;  %v4656_v56 = vpop.f32.mrf.mxu0 }
 0x7d3   :  { %v4801_v15 = vsel %vm11648_vm3, %v4518_v28, -1e+30  ;;  %v4804_v28 = vsel %vm11648_vm3, %v4656_v56, -1e+30 }
 0x7d4   :  { %v10070_v14 = vpop.f32.mrf.mxu1  ;;  %v10088_v11 = vpop.f32.mrf.mxu0  ;;  %v4811_v21 = vsel %vm2562_vm4, %v4801_v15, -inf }
 0x7d5   :  { %4812 = vmax.xlane.f32.xlu1 %v4811_v21 }
 0x7d6   :  { %v4521_v58 = vpop.f32.mrf.mxu1  ;;  %v4659_v16 = vpop.f32.mrf.mxu0 }
 0x7d7   :  { %v4820_v16 = vsel %vm2562_vm4, %v4804_v28, -inf }
 0x7d8   :  { %v10071_v5 = vpop.f32.mrf.mxu1  ;;  %v10089_v24 = vpop.f32.mrf.mxu0 }
 0x7da   :  { %v4610_v26 = vpop.f32.mrf.mxu1  ;;  %v4748_v17 = vpop.f32.mrf.mxu0 }
 0x7db   :  { %v4803_v30 = vsel %vm11648_vm3, %v4610_v26, -1e+30  ;;  %v4806_v24 = vsel %vm11648_vm3, %v4748_v17, -1e+30 }
 0x7dc   :  { %v10082_v59 = vpop.f32.mrf.mxu1  ;;  %v10100_v37 = vpop.f32.mrf.mxu0  ;;  %v4817_v29 = vsel %vm2562_vm4, %v4803_v30, -inf }
 0x7dd   :  { %4818 = vmax.xlane.f32.xlu0 %v4817_v29  ;;  %v4826_v59 = vsel %vm2562_vm4, %v4806_v24, -inf }
 0x7de   :  { %v4613_v11 = vpop.f32.mrf.mxu1  ;;  %v4751_v14 = vpop.f32.mrf.mxu0 }
 0x7e0   :  { %v10083_v21 = vpop.f32.mrf.mxu1  ;;  %v10101_v58 = vpop.f32.mrf.mxu0 }
 0x7e1   :  { %4821 = vmax.xlane.f32.xlu0 %v4820_v16 }
 0x7e2   :  { %v4702_v5 = vpop.f32.mrf.mxu1 }
 0x7e3   :  { %v4805_v37 = vsel %vm11648_vm3, %v4702_v5, -1e+30 }
 0x7e4   :  { %v10094_v26 = vpop.f32.mrf.mxu1  ;;  %v4823_v56 = vsel %vm2562_vm4, %v4805_v37, -inf }
 0x7e5   :  { %4827 = vmax.xlane.f32.xlu0 %v4826_v59  ;;  %4824 = vmax.xlane.f32.xlu1 %v4823_v56 }
 0x7e6   :  { %v4705_v29 = vpop.f32.mrf.mxu1 }
 0x7e8   :  { %v10095_v11 = vpop.f32.mrf.mxu1 }
 0x7ea   :  { %v4794_v14 = vpop.f32.mrf.mxu1 }
 0x7eb   :  { %v4807_v21 = vsel %vm11648_vm3, %v4794_v14, -1e+30 }
 0x7ec   :  { %v10106_v58 = vpop.f32.mrf.mxu1  ;;  %v4829_v17 = vsel %vm2562_vm4, %v4807_v21, -inf }
 0x7ed   :  { %4830 = vmax.xlane.f32.xlu1 %v4829_v17 }
 0x7ee   :  { %v4797_v16 = vpop.f32.mrf.mxu1 }
 0x7f0   :  { %v10107_v2 = vpop.f32.mrf.mxu1 }
 0x84e   :  { %v4810_v5 = vpop.xlane.xlu0 %4809 }
 0x84f   :  { %v4832_v26 = vsub.f32 %v12220_v46, %v4810_v5 }
 0x851   :  { %v4840_v8 = vmul.f32 1.442695, %v4832_v26 }
 0x853   :  { %10994 = vpow2.f32 %v4840_v8 }
 0x856   :  { %v4816_v44 = vpop.xlane.xlu0 %4815 }
 0x857   :  { %v4834_v59 = vsub.f32 %v4802_v54, %v4816_v44 }
 0x859   :  { %v4844_v56 = vmul.f32 1.442695, %v4834_v59 }
 0x85b   :  { %10996 = vpow2.f32 %v4844_v56 }
 0x85e   :  { %v4813_v29 = vpop.xlane.xlu1 %4812 }
 0x85f   :  { %v4833_v11 = vsub.f32 %v4801_v15, %v4813_v29 }
 0x860   :  { %v12260_v47 = vpop.eup %10994 }
 0x861   :  { %v4842_v14 = vmul.f32 1.442695, %v4833_v11  ;;  %v4856_v58 = vsel %vm2562_vm4, %v12260_v47, 0.0 }
 0x862   :  { %4857 = vadd.xlane.f32.xlu0 %v4856_v58 }
 0x863   :  { %10998 = vpow2.f32 %v4842_v14 }
 0x866   :  { %v4819_v2 = vpop.xlane.xlu0 %4818 }
 0x867   :  { %v4835_v17 = vsub.f32 %v4803_v30, %v4819_v2 }
 0x868   :  { %v12264_v16 = vpop.eup %10996 }
 0x869   :  { %v4846_v46 = vmul.f32 1.442695, %v4835_v17  ;;  %v4862_v8 = vsel %vm2562_vm4, %v12264_v16, 0.0 }
 0x86a   :  { %4863 = vadd.xlane.f32.xlu0 %v4862_v8  ;;  %v4822_v44 = vpop.xlane.xlu0 %4821 }
 0x86b   :  { %11000 = vpow2.f32 %v4846_v46  ;;  %v4836_v54 = vsub.f32 %v4804_v28, %v4822_v44 }
 0x86d   :  { %v4848_v15 = vmul.f32 1.442695, %v4836_v54 }
 0x86e   :  { %v4828_v5 = vpop.xlane.xlu0 %4827  ;;  %v4825_v26 = vpop.xlane.xlu1 %4824 }
 0x86f   :  { %11002 = vpow2.f32 %v4848_v15  ;;  %v4838_v59 = vsub.f32 %v4806_v24, %v4828_v5  ;;  %v4837_v56 = vsub.f32 %v4805_v37, %v4825_v26 }
 0x870   :  { %v12268_v29 = vpop.eup %10998 }
 0x871   :  { %v4852_v11 = vmul.f32 1.442695, %v4838_v59  ;;  %v4850_v30 = vmul.f32 1.442695, %v4837_v56  ;;  %v4859_v14 = vsel %vm2562_vm4, %v12268_v29, 0.0 }
 0x872   :  { %4860 = vadd.xlane.f32.xlu1 %v4859_v14 }
 0x873   :  { %11004 = vpow2.f32 %v4852_v11 }
 0x874   :  { %11006 = vpow2.f32 %v4850_v30 }
 0x876   :  { %v4831_v58 = vpop.xlane.xlu1 %4830 }
 0x877   :  { %v4839_v2 = vsub.f32 %v4807_v21, %v4831_v58 }
 0x878   :  { %v12272_v17 = vpop.eup %11000 }
 0x879   :  { %v4854_v28 = vmul.f32 1.442695, %v4839_v2  ;;  %v4865_v46 = vsel %vm2562_vm4, %v12272_v17, 0.0 }
 0x87a   :  { %4866 = vadd.xlane.f32.xlu1 %v4865_v46  ;;  %v13440_v46 = vld [vmem:[#allocation46_spill] sm:$0xff] }
 0x87b   :  { %11008 = vpow2.f32 %v4854_v28  ;;  %v13439_v28 = vld [vmem:[#allocation47_spill] sm:$0xff] }
 0x87c   :  { %v12276_v24 = vpop.eup %11002 }
 0x87d   :  { %v4868_v37 = vsel %vm2562_vm4, %v12276_v24, 0.0 }
 0x87e   :  { %4869 = vadd.xlane.f32.xlu0 %v4868_v37  ;;  %v2012_v37 = vadd.f32 %v13440_v46, %v13439_v28  ;;  %v10872_v28 = vld [vmem:[#allocation7 + $0xd8] ss:$12 sps:$4 sm:$0xff]   ;;  %v10874_v46 = vld [vmem:[#allocation7 + $0xdc] ss:$12 sps:$4 sm:$0xff]  }
 0x880   :  { %v12280_v8 = vpop.eup %11004 }
 0x881   :  { %v12282_v44 = vpop.eup %11006  ;;  %v4874_v21 = vsel %vm2562_vm4, %v12280_v8, 0.0 }
 0x882   :  { %4875 = vadd.xlane.f32.xlu0 %v4874_v21  ;;  %v4871_v54 = vsel %vm2562_vm4, %v12282_v44, 0.0 }
 0x883   :  { %4872 = vadd.xlane.f32.xlu1 %v4871_v54  ;;  %v12359_v54 = vpack.c.bf16 %v2012_v37, %v2012_v37  ;;  %v10875_v37 = vld [vmem:[#allocation7 + $0x110] ss:$12 sps:$4 sm:$0xff]  }
 0x888   :  { %v12288_v15 = vpop.eup %11008 }
 0x889   :  { %v4877_v5 = vsel %vm2562_vm4, %v12288_v15, 0.0 }
 0x88a   :  { %4878 = vadd.xlane.f32.xlu1 %v4877_v5 }
 0x898   :  { %5534 = vrot.lane.b32.xlu0 %v12013_v1, %s11220_s0 }
 0x89b   :  { %5531 = vrot.lane.b32.xlu1 %v12046_v31, %s11220_s0  ;;  %v13435_v31 = vld [vmem:[#allocation42_spill] sm:$0xff] }
 0x89c   :  { %5638 = vrot.lane.b32.xlu0 %v12042_v34, %s11220_s0 }
 0x89f   :  { %5586 = vrot.lane.b32.xlu1 %v12017_v42, %s11220_s0 }
 0x8a0   :  { %5635 = vrot.lane.b32.xlu0 %v12064_v60, %s11220_s0 }
 0x8a3   :  { %5583 = vrot.lane.b32.xlu1 %v12086_v38, %s11220_s0 }
 0x8a4   :  { %5742 = vrot.lane.b32.xlu0 %v12060_v35, %s11220_s0  ;;  %v12326_v35 = vpack.c.bf16 %v13435_v31, %v13435_v31  ;;  %v13441_v31 = vld [vmem:[#allocation48_spill] sm:$0xff] }
 0x8a6   :  { %v5000_v38 = vsel %vm2662_vm2, %v12326_v35, 0 }
 0x8a7   :  { %5690 = vrot.lane.b32.xlu1 %v12080_v41, %s11220_s0 }
 0x8a8   :  { %5739 = vrot.lane.b32.xlu0 %v12090_v19, %s11220_s0 }
 0x8ab   :  { %5687 = vrot.lane.b32.xlu1 %v12116_v27, %s11220_s0 }
 0x8ac   :  { %5846 = vrot.lane.b32.xlu0 %v12084_v20, %s11220_s0 }
 0x8af   :  { %5794 = vrot.lane.b32.xlu1 %v12110_v18, %s11220_s0  ;;  %v13436_v18 = vld [vmem:[#allocation45_spill] sm:$0xff] }
 0x8b0   :  { %5843 = vrot.lane.b32.xlu0 %v12120_v43, %s11220_s0  ;;  %v12337_v27 = vpack.c.bf16 %v13436_v18, %v13436_v18 }
 0x8b2   :  { %v5092_v59 = vsel %vm2662_vm2, %v12337_v27, 0 }
 0x8b3   :  { %5791 = vrot.lane.b32.xlu1 %v12142_v50, %s11220_s0 }
 0x8b7   :  { %5898 = vrot.lane.b32.xlu1 %v12140_v51, %s11220_s0 }
 0x8bb   :  { %5895 = vrot.lane.b32.xlu1 %v12157_v57, %s11220_s0  ;;  %v13437_v57 = vld [vmem:[#allocation44_spill] sm:$0xff] }
 0x8eb   :  { %v4858_v1 = vpop.xlane.xlu0 %4857 }
 0x8ec   :  { %11010 = vrcp.f32 %v4858_v1 }
 0x8f3   :  { %v4864_v42 = vpop.xlane.xlu0 %4863 }
 0x8f4   :  { %11012 = vrcp.f32 %v4864_v42 }
 0x8f9   :  { %v11011_v34 = vpop.eup %11010 }
 0x8fa   :  { %v4888_v60 = vmul.f32 %v11011_v34, %v12260_v47  ;;  %v13438_v47 = vld [vmem:[#allocation43_spill] sm:$0xff] }
 0x8fb   :  { %v4861_v41 = vpop.xlane.xlu1 %4860  ;;  %v2002_v26 = vadd.f32 %v13438_v47, %v13437_v57 }
 0x8fc   :  { %v4896_v20 = vpack.c.bf16 %v4888_v60, %v4888_v60  ;;  %11014 = vrcp.f32 %v4861_v41  ;;  %v12364_v60 = vpack.c.bf16 %v13441_v31, %v13441_v31 }
 0x8fd   :  { %v12348_v11 = vpack.c.bf16 %v2002_v26, %v2002_v26 }
 0x8fe   :  { %10111 = vmatmul.mubr.msk.bf16.vlgmr.msra.gmra.mxu0 %vm2562_vm4, %v4896_v20  ;;  %v5138_v20 = vsel %vm2662_vm2, %v12359_v54, 0 }
 0x8ff   :  { %10121 = vmatpush3.bf16.msra.mxu0 %v5000_v38  ;;  %10122 = vmatprep.mubr.msk.bf16.mxu0 %vm11219_vm0, %v13386_v40  ;;  %v5046_v21 = vsel %vm2662_vm2, %v12348_v11, 0  ;;  %v13442_v38 = vld [vmem:[#allocation50_spill] sm:$0xff] }
 0x900   :  { %10132 = vmatprep.subr.bf16.mxu0 %v13386_v40 }
 0x901   :  { %v11013_v19 = vpop.eup %11012 }
 0x902   :  { %v4890_v43 = vmul.f32 %v11013_v19, %v12264_v16  ;;  %v13443_v19 = vld [vmem:[#allocation49_spill] sm:$0xff] }
 0x903   :  { %v4867_v51 = vpop.xlane.xlu1 %4866  ;;  %v2022_v18 = vadd.f32 %v13443_v19, %v13442_v38 }
 0x904   :  { %v4898_v50 = vpack.c.bf16 %v4890_v43, %v4890_v43  ;;  %11016 = vrcp.f32 %v4867_v51 }
 0x906   :  { %10123 = vmatmul.mubr.msk.bf16.vlgmr.msra.gmra.mxu0 %vm2562_vm4, %v4898_v50  ;;  %v12378_v50 = vpack.c.bf16 %v2022_v18, %v2022_v18 }
 0x907   :  { %10133 = vmatpush3.bf16.msra.mxu0 %v5092_v59  ;;  %v4870_v56 = vpop.xlane.xlu0 %4869  ;;  %10134 = vmatprep.mubr.msk.bf16.mxu0 %vm11219_vm0, %v13386_v40 }
 0x908   :  { %11018 = vrcp.f32 %v4870_v56  ;;  %10144 = vmatprep.subr.bf16.mxu0 %v13386_v40  ;;  %v5230_v59 = vsel %vm2662_vm2, %v12378_v50, 0 }
 0x909   :  { %v11015_v16 = vpop.eup %11014 }
 0x90a   :  { %v4889_v30 = vmul.f32 %v11015_v16, %v12268_v29 }
 0x90b   :  { %v4876_v14 = vpop.xlane.xlu0 %4875 }
 0x90c   :  { %v4897_v58 = vpack.c.bf16 %v4889_v30, %v4889_v30  ;;  %11020 = vrcp.f32 %v4876_v14  ;;  %v4873_v2 = vpop.xlane.xlu1 %4872  ;;  %v10868_v14 = vld [vmem:[#allocation7 + $0x10c] ss:$12 sps:$4 sm:$0xff]  }
 0x90d   :  { %11022 = vrcp.f32 %v4873_v2  ;;  %v10871_v2 = vld [vmem:[#allocation7 + $0xf4] ss:$12 sps:$4 sm:$0xff]  }
 0x90e   :  { %10117 = vmatmul.mubr.msk.bf16.vlgmr.msra.gmra.mxu1 %vm2562_vm4, %v4897_v58  ;;  %v10869_v58 = vld [vmem:[#allocation7 + $0xf0] ss:$12 sps:$4 sm:$0xff]  }
 0x90f   :  { %10127 = vmatpush3.bf16.msra.mxu1 %v5046_v21  ;;  %10128 = vmatprep.mubr.msk.bf16.mxu1 %vm11219_vm0, %v13386_v40  ;;  %v10878_v21 = vld [vmem:[#allocation7 + $0xc4] ss:$12 sps:$4 sm:$0xff]   ;;  %v5535_v38 = vpop.permute.xlu0 %5534 }
 0x910   :  { %10138 = vmatprep.subr.bf16.mxu1 %v13386_v40 }
 0x911   :  { %v11017_v29 = vpop.eup %11016 }
 0x912   :  { %v4891_v5 = vmul.f32 %v11017_v29, %v12272_v17  ;;  %v10879_v29 = vld [vmem:[#allocation7 + $0xf8] ss:$12 sps:$4 sm:$0xff]  }
 0x913   :  { %v4879_v1 = vpop.xlane.xlu1 %4878 }
 0x914   :  { %v4899_v42 = vpack.c.bf16 %v4891_v5, %v4891_v5  ;;  %11024 = vrcp.f32 %v4879_v1  ;;  %v10880_v5 = vld [vmem:[#allocation7 + $0xe0] ss:$12 sps:$4 sm:$0xff]   ;;  %v10881_v1 = vld [vmem:[#allocation7 + $0xc8] ss:$12 sps:$4 sm:$0xff]  }
 0x915   :  { %v11019_v34 = vpop.eup %11018 }
 0x916   :  { %v4892_v41 = vmul.f32 %v11019_v34, %v12276_v24  ;;  %10129 = vmatmul.mubr.msk.bf16.vlgmr.msra.gmra.mxu1 %vm2562_vm4, %v4899_v42  ;;  %v5184_v24 = vsel %vm2662_vm2, %v12364_v60, 0 }
 0x917   :  { %10139 = vmatpush3.bf16.msra.mxu1 %v5138_v20  ;;  %10140 = vmatprep.mubr.msk.bf16.mxu1 %vm11219_vm0, %v13386_v40 }
 0x918   :  { %v4900_v17 = vpack.c.bf16 %v4892_v41, %v4892_v41  ;;  %10150 = vmatprep.subr.bf16.mxu1 %v13386_v40 }
 0x919   :  { %v11021_v43 = vpop.eup %11020 }
 0x91a   :  { %v11023_v51 = vpop.eup %11022  ;;  %10135 = vmatmul.mubr.msk.bf16.vlgmr.msra.gmra.mxu0 %vm2562_vm4, %v4900_v17  ;;  %v4894_v47 = vmul.f32 %v11021_v43, %v12280_v8  ;;  %v10866_v8 = vld [vmem:[#allocation7 + $0x108] ss:$12 sps:$4 sm:$0xff]   ;;  %v5639_v43 = vpop.permute.xlu0 %5638 }
 0x91b   :  { %v4893_v57 = vmul.f32 %v11023_v51, %v12282_v44  ;;  %10145 = vmatpush3.bf16.msra.mxu0 %v5184_v24  ;;  %10146 = vmatprep.mubr.msk.bf16.mxu0 %vm11219_vm0, %v13386_v40 }
 0x91c   :  { %v4902_v56 = vpack.c.bf16 %v4894_v47, %v4894_v47  ;;  %5376 = vmatprep.subr.bf16.mxu0 %v10868_v14  ;;  %v5644_v47 = vsel %vm2185_vm1, %v5639_v43, 0 }
 0x91d   :  { %v4901_v26 = vpack.c.bf16 %v4893_v57, %v4893_v57 }
 0x91f   :  { %10141 = vmatmul.mubr.msk.bf16.vlgmr.msra.gmra.mxu1 %vm2562_vm4, %v4901_v26 }
 0x920   :  { %10151 = vmatpush3.bf16.msra.mxu1 %v5230_v59  ;;  %10152 = vmatprep.mubr.msk.bf16.mxu1 %vm11219_vm0, %v13386_v40 }
 0x921   :  { %v11025_v16 = vpop.eup %11024  ;;  %10156 = vmatprep.subr.bf16.mxu1 %v10875_v37 }
 0x922   :  { %v4895_v44 = vmul.f32 %v11025_v16, %v12288_v15  ;;  %10147 = vmatmul.mubr.msk.bf16.vlgmr.msra.gmra.mxu0 %vm2562_vm4, %v4902_v56  ;;  %v10876_v15 = vld [vmem:[#allocation7 + $0xc0] ss:$12 sps:$4 sm:$0xff]  }
 0x923   :  { %5400 = vmatprep.mubr.bf16.mxu0 %v13412_v53  ;;  %5377 = vmatpush1.bf16.msra.mxu0 %v10866_v8 }
 0x924   :  { %v4903_v30 = vpack.c.bf16 %v4895_v44, %v4895_v44  ;;  %5378 = vmatprep.subr.bf16.mxu0 %v10871_v2 }
 0x927   :  { %10153 = vmatmul.mubr.msk.bf16.vlgmr.msra.gmra.mxu1 %vm2562_vm4, %v4903_v30  ;;  %5379 = vmatpush1.bf16.msra.mxu0 %v10869_v58  ;;  %v5540_v30 = vsel %vm2185_vm1, %v5535_v38, 0 }
 0x928   :  { %5380 = vmatprep.subr.bf16.mxu0 %v10874_v46  ;;  %10157 = vmatpush3.bf16.msra.mxu1 %v10875_v37 }
 0x929   :  { %10158 = vmatprep.subr.bf16.mxu1 %v10879_v29 }
 0x92b   :  { %5381 = vmatpush1.bf16.msra.mxu0 %v10872_v28  ;;  %v5532_v28 = vpop.permute.xlu1 %5531 }
 0x92c   :  { %5382 = vmatprep.subr.bf16.mxu0 %v10878_v21  ;;  %10159 = vmatpush3.bf16.msra.mxu1 %v10879_v29 }
 0x92d   :  { %10160 = vmatprep.subr.bf16.mxu1 %v10880_v5 }
 0x92f   :  { %5383 = vmatpush1.bf16.msra.mxu0 %v10876_v15 }
 0x930   :  { %10184 = vmatprep.subr.bf16.mxu0 %v13386_v40  ;;  %10161 = vmatpush3.bf16.msra.mxu1 %v10880_v5 }
 0x931   :  { %10162 = vmatprep.subr.bf16.mxu1 %v10881_v1 }
 0x934   :  { %10163 = vmatpush3.bf16.msra.mxu1 %v10881_v1  ;;  %v5587_v1 = vpop.permute.xlu1 %5586 }
 0x935   :  { %10172 = vmatprep.subr.bf16.mxu1 %v13386_v40 }
 0x9be   :  { %v4944_v42 = vpop.f32.mrf.mxu0 }
 0x9c0   :  { %v10112_v34 = vpop.f32.mrf.mxu0 }
 0x9c2   :  { %v4947_v31 = vpop.f32.mrf.mxu0 }
 0x9c3   :  { %v5636_v31 = vpop.permute.xlu0 %5635 }
 0x9c4   :  { %v10113_v41 = vpop.f32.mrf.mxu0 }
 0x9c6   :  { %v5036_v20 = vpop.f32.mrf.mxu0 }
 0x9c8   :  { %v10124_v19 = vpop.f32.mrf.mxu0 }
 0x9ca   :  { %v5039_v18 = vpop.f32.mrf.mxu0 }
 0x9cc   :  { %v10125_v17 = vpop.f32.mrf.mxu0 }
 0x9cd   :  { %v5584_v17 = vpop.permute.xlu1 %5583 }
 0x9ce   :  { %v4990_v51 = vpop.f32.mrf.mxu1 }
 0x9cf   :  { %v5272_v24 = vpack.c.bf16 %v4990_v51, %v4944_v42  ;;  %v5743_v51 = vpop.permute.xlu0 %5742 }
 0x9d0   :  { %v10118_v57 = vpop.f32.mrf.mxu1 }
 0x9d1   :  { %9404 = vmatmul.mubr.msk.bf16.vlgmr.msra.gmra.mxu0 %vm2185_vm1, %v5272_v24  ;;  %10164 = vmatprep.mubr.msk.bf16.mxu1 %vm2185_vm1, %v5272_v24 }
 0x9d2   :  { %10185 = vmatpush3.bf16.xpose.msra.mxu0 %v5644_v47  ;;  %v4993_v26 = vpop.f32.mrf.mxu1  ;;  %5410 = vmatprep.mubr.bf16.mxu0 %v13412_v53  ;;  %v5691_v47 = vpop.permute.xlu1 %5690 }
 0x9d3   :  { %10196 = vmatprep.subr.bf16.mxu0 %v13386_v40  ;;  %v5740_v26 = vpop.permute.xlu0 %5739 }
 0x9d4   :  { %v10119_v59 = vpop.f32.mrf.mxu1 }
 0x9d5   :  { %v5748_v59 = vsel %vm2185_vm1, %v5743_v51, 0 }
 0x9d6   :  { %v5082_v56 = vpop.f32.mrf.mxu1 }
 0x9d7   :  { %v5273_v16 = vpack.c.bf16 %v5082_v56, %v5036_v20  ;;  %v5592_v56 = vsel %vm2185_vm1, %v5587_v1, 0 }
 0x9d8   :  { %v10130_v44 = vpop.f32.mrf.mxu1 }
 0x9d9   :  { %9405 = vmatmul.mubr.msk.bf16.gmra.mxu0 %vm2185_vm1, %v5273_v16  ;;  %10165 = vmatmul.mubr.msk.bf16.vlgmr.msra.gmra.mxu1 %vm2185_vm1, %v5273_v16  ;;  %v5688_v16 = vpop.permute.xlu1 %5687  ;;  %v5847_v44 = vpop.permute.xlu0 %5846 }
 0x9da   :  { %10173 = vmatpush3.bf16.xpose.msra.mxu1 %v5540_v30  ;;  %v5085_v8 = vpop.f32.mrf.mxu1  ;;  %v5128_v14 = vpop.f32.mrf.mxu0  ;;  %5420 = vmatprep.mubr.bf16.mxu0 %v13412_v53  ;;  %v5852_v30 = vsel %vm2185_vm1, %v5847_v44, 0 }
 0x9db   :  { %10178 = vmatprep.subr.bf16.mxu1 %v13386_v40  ;;  %v5696_v8 = vsel %vm2185_vm1, %v5691_v47, 0 }
 0x9dc   :  { %v10131_v58 = vpop.f32.mrf.mxu1  ;;  %v10136_v2 = vpop.f32.mrf.mxu0 }
 0x9dd   :  { %v5844_v58 = vpop.permute.xlu0 %5843 }
 0x9de   :  { %v5131_v46 = vpop.f32.mrf.mxu0 }
 0x9df   :  { %v5174_v37 = vpop.f32.mrf.mxu1 }
 0x9e0   :  { %v5274_v15 = vpack.c.bf16 %v5174_v37, %v5128_v14  ;;  %v10137_v21 = vpop.f32.mrf.mxu0  ;;  %v5795_v14 = vpop.permute.xlu1 %5794 }
 0x9e1   :  { %v10142_v29 = vpop.f32.mrf.mxu1  ;;  %v4305_v21 = vadd.f32 %v12184_v36, %v12166_v23 }
 0x9e2   :  { %9406 = vmatmul.mubr.msk.bf16.gmra.mxu0 %vm2185_vm1, %v5274_v15  ;;  %10168 = vmatprep.mubr.msk.bf16.mxu1 %vm2185_vm1, %v5274_v15  ;;  %v5220_v5 = vpop.f32.mrf.mxu0 }
 0x9e3   :  { %v5177_v42 = vpop.f32.mrf.mxu1  ;;  %5430 = vmatprep.mubr.bf16.mxu0 %v13412_v53 }
 0x9e4   :  { %v10148_v34 = vpop.f32.mrf.mxu0  ;;  %v5792_v2 = vpop.permute.xlu1 %5791 }
 0x9e5   :  { %v10143_v41 = vpop.f32.mrf.mxu1  ;;  %v4309_v34 = vadd.f32 %v12192_v9, %v12170_v39 }
 0x9e6   :  { %v5223_v20 = vpop.f32.mrf.mxu0 }
 0x9e7   :  { %v5266_v38 = vpop.f32.mrf.mxu1 }
 0x9e8   :  { %v5275_v19 = vpack.c.bf16 %v5266_v38, %v5220_v5  ;;  %v10149_v18 = vpop.f32.mrf.mxu0  ;;  %v5899_v46 = vpop.permute.xlu1 %5898  ;;  %v4307_v5 = vadd.f32 %v12188_v0, %v12168_v4 }
 0x9e9   :  { %v10154_v43 = vpop.f32.mrf.mxu1  ;;  %v5904_v37 = vsel %vm2185_vm1, %v5899_v46, 0 }
 0x9ea   :  { %9407 = vmatmul.mubr.msk.bf16.gmra.mxu0 %vm2185_vm1, %v5275_v19  ;;  %10169 = vmatmul.mubr.msk.bf16.gmra.mxu1 %vm2185_vm1, %v5275_v19 }
 0x9eb   :  { %v5269_v24 = vpop.f32.mrf.mxu1  ;;  %10174 = vmatprep.mubr.msk.bf16.mxu1 %vm11219_vm0, %v13386_v40  ;;  %10186 = vmatprep.mubr.msk.bf16.mxu0 %vm11219_vm0, %v13386_v40 }
 0x9ec   :  { %v5896_v15 = vpop.permute.xlu1 %5895 }
 0x9ed   :  { %v10155_v57 = vpop.f32.mrf.mxu1 }
 0x9f2   :  { %10175 = vmatmul.mubr.msk.bf16.vlgmr.msra.gmra.mxu1 %vm2185_vm1, %v5532_v28  ;;  %10187 = vmatmul.mubr.msk.bf16.vlgmr.msra.gmra.mxu0 %vm2185_vm1, %v5636_v31  ;;  %v5800_v28 = vsel %vm2185_vm1, %v5795_v14, 0 }
 0x9f3   :  { %10179 = vmatpush3.bf16.xpose.msra.mxu1 %v5592_v56  ;;  %10197 = vmatpush3.bf16.xpose.msra.mxu0 %v5748_v59 }
 0x9f4   :  { %10180 = vmatprep.mubr.msk.bf16.mxu1 %vm11219_vm0, %v13386_v40  ;;  %10190 = vmatprep.subr.bf16.mxu1 %v13386_v40 }
 0x9f5   :  { %10198 = vmatprep.mubr.msk.bf16.mxu0 %vm11219_vm0, %v13386_v40  ;;  %10208 = vmatprep.subr.bf16.mxu0 %v13386_v40 }
 0x9fa   :  { %10181 = vmatmul.mubr.msk.bf16.vlgmr.msra.gmra.mxu1 %vm2185_vm1, %v5584_v17  ;;  %10199 = vmatmul.mubr.msk.bf16.vlgmr.msra.gmra.mxu0 %vm2185_vm1, %v5740_v26 }
 0x9fb   :  { %10191 = vmatpush3.bf16.xpose.msra.mxu1 %v5696_v8  ;;  %10209 = vmatpush3.bf16.xpose.msra.mxu0 %v5852_v30 }
 0x9fc   :  { %10192 = vmatprep.mubr.msk.bf16.mxu1 %vm11219_vm0, %v13386_v40  ;;  %10202 = vmatprep.subr.bf16.mxu1 %v13386_v40 }
 0x9fd   :  { %10210 = vmatprep.mubr.msk.bf16.mxu0 %vm11219_vm0, %v13386_v40  ;;  %10220 = vmatprep.subr.bf16.mxu0 %v13386_v40 }
 0xa02   :  { %10193 = vmatmul.mubr.msk.bf16.vlgmr.msra.gmra.mxu1 %vm2185_vm1, %v5688_v16  ;;  %10211 = vmatmul.mubr.msk.bf16.vlgmr.msra.gmra.mxu0 %vm2185_vm1, %v5844_v58 }
 0xa03   :  { %10203 = vmatpush3.bf16.xpose.msra.mxu1 %v5800_v28  ;;  %10204 = vmatprep.mubr.msk.bf16.mxu1 %vm11219_vm0, %v13386_v40 }
 0xa04   :  { %10214 = vmatprep.subr.bf16.mxu1 %v13386_v40  ;;  %10222 = vmatprep.mubr.msk.bf16.mxu0 %vm11219_vm0, %v13386_v40 }
 0xa0a   :  { %10205 = vmatmul.mubr.msk.bf16.vlgmr.msra.gmra.mxu1 %vm2185_vm1, %v5792_v2 }
 0xa0b   :  { %10215 = vmatpush3.bf16.xpose.msra.mxu1 %v5904_v37  ;;  %10216 = vmatprep.mubr.msk.bf16.mxu1 %vm11219_vm0, %v13386_v40 }
 0xa0c   :  { %10226 = vmatprep.subr.bf16.mxu1 %v13386_v40 }
 0xa12   :  { %10217 = vmatmul.mubr.msk.bf16.vlgmr.msra.gmra.mxu1 %vm2185_vm1, %v5896_v15 }
 0xa13   :  { %10228 = vmatprep.mubr.msk.bf16.mxu1 %vm11219_vm0, %v13386_v40 }
 0xa91   :  { %v5402_v29 = vpop.f32.mrf.mxu0 }
 0xa92   :  { %v12454_v1 = vadd.f32 %v5402_v29, %v4305_v21 }
 0xa93   :  { %v5404_v42 = vpop.f32.mrf.mxu0 }
 0xa94   :  { %v12458_v31 = vadd.f32 %v5404_v42, %v4307_v5 }
 0xa95   :  { %v5406_v41 = vpop.f32.mrf.mxu0 }
 0xa96   :  { %v12460_v20 = vadd.f32 %v5406_v41, %v4309_v34 }
 0xa97   :  { %v12462_v38 = vpop.f32.mrf.mxu0 }
 0xa99   :  { %v5412_v19 = vpop.f32.mrf.mxu0  ;;  %v10166_v18 = vpop.f32.mrf.mxu1 }
 0xa9a   :  { %v12465_v23 = vadd.f32 %v5412_v19, %v12200_v6  ;;  %v12468_v4 = vadd.f32 %v10166_v18, %v12186_v49 }
 0xa9b   :  { %v5414_v36 = vpop.f32.mrf.mxu0  ;;  %v5475_v0 = vpop.f32.mrf.mxu1 }
 0xa9c   :  { %v12471_v17 = vadd.f32 %v5414_v36, %v12204_v32  ;;  %v12474_v39 = vadd.f32 %v5475_v0, %v12190_v33 }
 0xa9d   :  { %v5416_v9 = vpop.f32.mrf.mxu0  ;;  %v10167_v43 = vpop.f32.mrf.mxu1 }
 0xa9e   :  { %v12477_v51 = vadd.f32 %v5416_v9, %v12208_v52  ;;  %v12480_v24 = vadd.f32 %v10167_v43, %v12194_v10 }
 0xa9f   :  { %v12482_v6 = vpop.f32.mrf.mxu0  ;;  %v12493_v59 = vpop.f32.mrf.mxu1 }
 0xaa2   :  { %v5422_v49 = vpop.f32.mrf.mxu0 }
 0xaa3   :  { %v12485_v57 = vadd.f32 %v5422_v49, %v12216_v22 }
 0xaa4   :  { %v5424_v47 = vpop.f32.mrf.mxu0 }
 0xaa5   :  { %v12488_v32 = vadd.f32 %v5424_v47, %v12224_v61 }
 0xaa6   :  { %v5426_v33 = vpop.f32.mrf.mxu0 }
 0xaa7   :  { %v12491_v26 = vadd.f32 %v5426_v33, %v12226_v63 }
 0xaa8   :  { %v12495_v52 = vpop.f32.mrf.mxu0 }
 0xaaa   :  { %v5432_v10 = vpop.f32.mrf.mxu0  ;;  %v10170_v56 = vpop.f32.mrf.mxu1 }
 0xaab   :  { %v12498_v16 = vadd.f32 %v5432_v10, %v12230_v45  ;;  %v12501_v22 = vadd.f32 %v10170_v56, %v12202_v12 }
 0xaac   :  { %v5434_v44 = vpop.f32.mrf.mxu0  ;;  %v5491_v30 = vpop.f32.mrf.mxu1 }
 0xaad   :  { %v12504_v61 = vadd.f32 %v5434_v44, %v12235_v62  ;;  %v12507_v63 = vadd.f32 %v5491_v30, %v12206_v13 }
 0xaae   :  { %v5436_v8 = vpop.f32.mrf.mxu0  ;;  %v10171_v14 = vpop.f32.mrf.mxu1 }
 0xaaf   :  { %v12510_v58 = vadd.f32 %v5436_v8, %v12237_v7  ;;  %v12513_v2 = vadd.f32 %v10171_v14, %v12210_v55 }
 0xab0   :  { %v12515_v45 = vpop.f32.mrf.mxu0  ;;  %v12517_v12 = vpop.f32.mrf.mxu1 }
 0xab1   :  { %13444 = vst [vmem:[#allocation42_spill] sm:$0xff] %v12515_v45  ;;  %13445 = vst [vmem:[#allocation45_spill] sm:$0xff] %v12517_v12 }
 0xab2   :  { %v5576_v28 = vpop.f32.mrf.mxu1  ;;  %v5680_v46 = vpop.f32.mrf.mxu0 }
 0xab3   :  { %v5946_v62 = vsel %vm11648_vm3, %v5576_v28, -1e+30  ;;  %v5948_v7 = vsel %vm11648_vm3, %v5680_v46, -1e+30 }
 0xab4   :  { %v10176_v37 = vpop.f32.mrf.mxu1  ;;  %v10188_v13 = vpop.f32.mrf.mxu0  ;;  %v5954_v15 = vsel %vm2562_vm4, %v5946_v62, -inf  ;;  %v5960_v42 = vsel %vm2562_vm4, %v5948_v7, -inf }
 0xab5   :  { %5955 = vmax.xlane.f32.xlu0 %v5954_v15 }
 0xab6   :  { %v5579_v21 = vpop.f32.mrf.mxu1  ;;  %v5683_v55 = vpop.f32.mrf.mxu0 }
 0xab8   :  { %v10177_v29 = vpop.f32.mrf.mxu1  ;;  %v10189_v5 = vpop.f32.mrf.mxu0 }
 0xab9   :  { %5961 = vmax.xlane.f32.xlu0 %v5960_v42 }
 0xaba   :  { %v5628_v34 = vpop.f32.mrf.mxu1  ;;  %v5784_v41 = vpop.f32.mrf.mxu0 }
 0xabb   :  { %v5947_v19 = vsel %vm11648_vm3, %v5628_v34, -1e+30  ;;  %v12529_v18 = vsel %vm11648_vm3, %v5784_v41, -1e+30 }
 0xabc   :  { %v10182_v36 = vpop.f32.mrf.mxu1  ;;  %v10200_v0 = vpop.f32.mrf.mxu0  ;;  %v5966_v9 = vsel %vm2562_vm4, %v12529_v18, -inf  ;;  %v5957_v43 = vsel %vm2562_vm4, %v5947_v19, -inf }
 0xabd   :  { %5967 = vmax.xlane.f32.xlu0 %v5966_v9  ;;  %5958 = vmax.xlane.f32.xlu1 %v5957_v43 }
 0xabe   :  { %v5631_v49 = vpop.f32.mrf.mxu1  ;;  %v5787_v47 = vpop.f32.mrf.mxu0 }
 0xac0   :  { %v10183_v33 = vpop.f32.mrf.mxu1  ;;  %v10201_v10 = vpop.f32.mrf.mxu0 }
 0xac2   :  { %v5732_v56 = vpop.f32.mrf.mxu1  ;;  %v5888_v44 = vpop.f32.mrf.mxu0 }
 0xac3   :  { %v12536_v30 = vsel %vm11648_vm3, %v5732_v56, -1e+30  ;;  %v12542_v46 = vsel %vm11648_vm3, %v5888_v44, -1e+30 }
 0xac4   :  { %v10194_v8 = vpop.f32.mrf.mxu1  ;;  %v10212_v14 = vpop.f32.mrf.mxu0  ;;  %v5963_v28 = vsel %vm2562_vm4, %v12536_v30, -inf  ;;  %v5972_v55 = vsel %vm2562_vm4, %v12542_v46, -inf }
 0xac5   :  { %5964 = vmax.xlane.f32.xlu0 %v5963_v28 }
 0xac6   :  { %v5735_v37 = vpop.f32.mrf.mxu1  ;;  %v5891_v13 = vpop.f32.mrf.mxu0 }
 0xac8   :  { %v10195_v15 = vpop.f32.mrf.mxu1  ;;  %v10213_v21 = vpop.f32.mrf.mxu0 }
 0xac9   :  { %5973 = vmax.xlane.f32.xlu0 %v5972_v55 }
 0xaca   :  { %v5836_v29 = vpop.f32.mrf.mxu1 }
 0xacb   :  { %v5951_v43 = vsel %vm11648_vm3, %v5836_v29, -1e+30 }
 0xacc   :  { %v10206_v5 = vpop.f32.mrf.mxu1  ;;  %v5969_v49 = vsel %vm2562_vm4, %v5951_v43, -inf }
 0xace   :  { %6100 = vrot.lane.b32.xlu1 %v12155_v3, %s11220_s0  ;;  %v5839_v42 = vpop.f32.mrf.mxu1 }
 0xad0   :  { %v10207_v34 = vpop.f32.mrf.mxu1 }
 0xad2   :  { %6149 = vrot.lane.b32.xlu1 %v12326_v35, %s11220_s0  ;;  %v5940_v41 = vpop.f32.mrf.mxu1 }
 0xad3   :  { %v5953_v3 = vsel %vm11648_vm3, %v5940_v41, -1e+30 }
 0xad4   :  { %v10218_v36 = vpop.f32.mrf.mxu1  ;;  %v5975_v47 = vsel %vm2562_vm4, %v5953_v3, -inf }
 0xad6   :  { %v5943_v0 = vpop.f32.mrf.mxu1 }
 0xad8   :  { %v10219_v9 = vpop.f32.mrf.mxu1 }
 0xadf   :  { %6051 = vrot.lane.b32.xlu0 %v12114_v25, %s11220_s0 }
 0xaf6   :  { %5970 = vmax.xlane.f32.xlu1 %v5969_v49 }
 0xafa   :  { %5976 = vmax.xlane.f32.xlu1 %v5975_v47 }
 0xb0b   :  { %6198 = vrot.lane.b32.xlu1 %v12348_v11, %s11220_s0 }
 0xb3e   :  { %v5956_v35 = vpop.xlane.xlu0 %5955 }
 0xb3f   :  { %v5978_v33 = vsub.f32 %v5946_v62, %v5956_v35 }
 0xb41   :  { %v5986_v10 = vmul.f32 1.442695, %v5978_v33 }
 0xb42   :  { %v5962_v56 = vpop.xlane.xlu0 %5961 }
 0xb43   :  { %11026 = vpow2.f32 %v5986_v10  ;;  %v5980_v25 = vsub.f32 %v5948_v7, %v5962_v56 }
 0xb45   :  { %v5990_v44 = vmul.f32 1.442695, %v5980_v25 }
 0xb46   :  { %v5959_v8 = vpop.xlane.xlu1 %5958  ;;  %v5968_v37 = vpop.xlane.xlu0 %5967 }
 0xb47   :  { %11028 = vpow2.f32 %v5990_v44  ;;  %v5979_v14 = vsub.f32 %v5947_v19, %v5959_v8  ;;  %v5982_v41 = vsub.f32 %v12529_v18, %v5968_v37 }
 0xb49   :  { %v5988_v28 = vmul.f32 1.442695, %v5979_v14  ;;  %v5994_v36 = vmul.f32 1.442695, %v5982_v41 }
 0xb4a   :  { %v6101_v13 = vpop.permute.xlu1 %6100 }
 0xb4b   :  { %v6106_v15 = vsel %vm2662_vm2, %v6101_v13, 0  ;;  %11030 = vpow2.f32 %v5988_v28 }
 0xb4c   :  { %10227 = vmatpush3.bf16.msra.mxu1 %v6106_v15  ;;  %11032 = vpow2.f32 %v5994_v36 }
 0xb4d   :  { %10238 = vmatprep.subr.bf16.mxu1 %v13386_v40 }
 0xb4e   :  { %v5965_v11 = vpop.xlane.xlu0 %5964  ;;  %v6150_v47 = vpop.permute.xlu1 %6149 }
 0xb4f   :  { %v5981_v9 = vsub.f32 %v12536_v30, %v5965_v11 }
 0xb50   :  { %v11027_v21 = vpop.eup %11026 }
 0xb51   :  { %v6002_v62 = vsel %vm2562_vm4, %v11027_v21, 0.0  ;;  %v5992_v35 = vmul.f32 1.442695, %v5981_v9 }
 0xb52   :  { %6003 = vadd.xlane.f32.xlu0 %v6002_v62  ;;  %v5974_v55 = vpop.xlane.xlu0 %5973 }
 0xb53   :  { %v5984_v0 = vsub.f32 %v12542_v46, %v5974_v55 }
 0xb54   :  { %v11029_v7 = vpop.eup %11028 }
 0xb55   :  { %v6008_v29 = vsel %vm2562_vm4, %v11029_v7, 0.0  ;;  %v5998_v49 = vmul.f32 1.442695, %v5984_v0 }
 0xb56   :  { %6009 = vadd.xlane.f32.xlu0 %v6008_v29  ;;  %v6052_v19 = vpop.permute.xlu0 %6051 }
 0xb57   :  { %v6057_v5 = vsel %vm2662_vm2, %v6052_v19, 0  ;;  %11034 = vpow2.f32 %v5998_v49 }
 0xb58   :  { %10221 = vmatpush3.bf16.msra.mxu0 %v6057_v5  ;;  %v11031_v42 = vpop.eup %11030  ;;  %11036 = vpow2.f32 %v5992_v35 }
 0xb59   :  { %10232 = vmatprep.subr.bf16.mxu0 %v13386_v40  ;;  %v6005_v34 = vsel %vm2562_vm4, %v11031_v42, 0.0  ;;  %v11033_v44 = vpop.eup %11032 }
 0xb5a   :  { %6006 = vadd.xlane.f32.xlu1 %v6005_v34  ;;  %v6014_v18 = vsel %vm2562_vm4, %v11033_v44, 0.0  ;;  %v6155_v34 = vsel %vm2662_vm2, %v6150_v47, 0 }
 0xb64   :  { %v12575_v46 = vpop.eup %11034 }
 0xb65   :  { %v12577_v30 = vpop.eup %11036  ;;  %v6020_v8 = vsel %vm2562_vm4, %v12575_v46, 0.0 }
 0xb6b   :  { %6296 = vrot.lane.b32.xlu1 %v12359_v54, %s11220_s0 }
 0xb6c   :  { %6247 = vrot.lane.b32.xlu0 %v12337_v27, %s11220_s0 }
 0xb7f   :  { %v5971_v33 = vpop.xlane.xlu1 %5970 }
 0xb80   :  { %v5983_v10 = vsub.f32 %v5951_v43, %v5971_v33  ;;  %v6011_v43 = vsel %vm2562_vm4, %v12577_v30, 0.0 }
 0xb82   :  { %v5996_v56 = vmul.f32 1.442695, %v5983_v10 }
 0xb83   :  { %v5977_v54 = vpop.xlane.xlu1 %5976 }
 0xb84   :  { %11038 = vpow2.f32 %v5996_v56  ;;  %v5985_v25 = vsub.f32 %v5953_v3, %v5977_v54 }
 0xb86   :  { %v6000_v27 = vmul.f32 1.442695, %v5985_v25 }
 0xb87   :  { %v6199_v11 = vpop.permute.xlu1 %6198 }
 0xb88   :  { %11040 = vpow2.f32 %v6000_v27  ;;  %v6204_v49 = vsel %vm2662_vm2, %v6199_v11, 0 }
 0xb8b   :  { %6015 = vadd.xlane.f32.xlu0 %v6014_v18  ;;  %v10884_v18 = vld [vmem:[#allocation7 + $0x16c] ss:$12 sps:$4 sm:$0xff]  }
 0xb8f   :  { %6021 = vadd.xlane.f32.xlu0 %v6020_v8  ;;  %6012 = vadd.xlane.f32.xlu1 %v6011_v43 }
 0xb91   :  { %v12583_v14 = vpop.eup %11038 }
 0xb92   :  { %v6017_v3 = vsel %vm2562_vm4, %v12583_v14, 0.0 }
 0xb93   :  { %6018 = vadd.xlane.f32.xlu1 %v6017_v3 }
 0xb95   :  { %v12587_v28 = vpop.eup %11040 }
 0xb96   :  { %v6023_v37 = vsel %vm2562_vm4, %v12587_v28, 0.0 }
 0xb97   :  { %6024 = vadd.xlane.f32.xlu1 %v6023_v37 }
 0xba5   :  { %6345 = vrot.lane.b32.xlu0 %v12364_v60, %s11220_s0 }
 0xba8   :  { %6394 = vrot.lane.b32.xlu1 %v12378_v50, %s11220_s0 }
 0xbdb   :  { %v6004_v13 = vpop.xlane.xlu0 %6003 }
 0xbdc   :  { %11042 = vrcp.f32 %v6004_v13 }
 0xbdf   :  { %v6010_v15 = vpop.xlane.xlu0 %6009 }
 0xbe0   :  { %11044 = vrcp.f32 %v6010_v15 }
 0xbe3   :  { %v6007_v62 = vpop.xlane.xlu1 %6006  ;;  %v6248_v41 = vpop.permute.xlu0 %6247 }
 0xbe4   :  { %11046 = vrcp.f32 %v6007_v62  ;;  %v10882_v62 = vld [vmem:[#allocation7 + $0x168] ss:$12 sps:$4 sm:$0xff]  }
 0xbe9   :  { %v11043_v55 = vpop.eup %11042 }
 0xbea   :  { %v6034_v29 = vmul.f32 %v11043_v55, %v11027_v21  ;;  %v6253_v21 = vsel %vm2662_vm2, %v6248_v41, 0  ;;  %v10888_v41 = vld [vmem:[#allocation7 + $0x138] ss:$12 sps:$4 sm:$0xff]  }
 0xbec   :  { %v6042_v19 = vpack.c.bf16 %v6034_v29, %v6034_v29 }
 0xbed   :  { %v11045_v5 = vpop.eup %11044 }
 0xbee   :  { %10223 = vmatmul.mubr.msk.bf16.vlgmr.msra.gmra.mxu0 %vm2562_vm4, %v6042_v19  ;;  %v6036_v60 = vmul.f32 %v11045_v5, %v11029_v7 }
 0xbef   :  { %10233 = vmatpush3.bf16.msra.mxu0 %v6155_v34  ;;  %10234 = vmatprep.mubr.msk.bf16.mxu0 %vm11219_vm0, %v13386_v40  ;;  %v10890_v34 = vld [vmem:[#allocation7 + $0x13c] ss:$12 sps:$4 sm:$0xff]  }
 0xbf0   :  { %10244 = vmatprep.subr.bf16.mxu0 %v13386_v40  ;;  %v6044_v0 = vpack.c.bf16 %v6036_v60, %v6036_v60 }
 0xbf1   :  { %v11047_v50 = vpop.eup %11046 }
 0xbf2   :  { %v6035_v36 = vmul.f32 %v11047_v50, %v11031_v42  ;;  %v6297_v42 = vpop.permute.xlu1 %6296 }
 0xbf3   :  { %v6302_v11 = vsel %vm2662_vm2, %v6297_v42, 0 }
 0xbf4   :  { %v6043_v9 = vpack.c.bf16 %v6035_v36, %v6035_v36 }
 0xbf6   :  { %10235 = vmatmul.mubr.msk.bf16.vlgmr.msra.gmra.mxu0 %vm2562_vm4, %v6044_v0  ;;  %10229 = vmatmul.mubr.msk.bf16.vlgmr.msra.gmra.mxu1 %vm2562_vm4, %v6043_v9  ;;  %v10891_v0 = vld [vmem:[#allocation7 + $0x120] ss:$12 sps:$4 sm:$0xff]  }
 0xbf7   :  { %10245 = vmatpush3.bf16.msra.mxu0 %v6253_v21  ;;  %10239 = vmatpush3.bf16.msra.mxu1 %v6204_v49  ;;  %v10894_v21 = vld [vmem:[#allocation7 + $0x170] ss:$12 sps:$4 sm:$0xff]   ;;  %v10895_v49 = vld [vmem:[#allocation7 + $0x158] ss:$12 sps:$4 sm:$0xff]  }
 0xbf8   :  { %10246 = vmatprep.mubr.msk.bf16.mxu0 %vm11219_vm0, %v13386_v40  ;;  %10256 = vmatprep.subr.bf16.mxu0 %v13386_v40 }
 0xbf9   :  { %10240 = vmatprep.mubr.msk.bf16.mxu1 %vm11219_vm0, %v13386_v40  ;;  %10250 = vmatprep.subr.bf16.mxu1 %v13386_v40 }
 0xc14   :  { %v6016_v7 = vpop.xlane.xlu0 %6015 }
 0xc15   :  { %11048 = vrcp.f32 %v6016_v7  ;;  %v10896_v7 = vld [vmem:[#allocation7 + $0x140] ss:$12 sps:$4 sm:$0xff]  }
 0xc18   :  { %v6022_v47 = vpop.xlane.xlu0 %6021  ;;  %v6013_v35 = vpop.xlane.xlu1 %6012 }
 0xc19   :  { %11050 = vrcp.f32 %v6022_v47 }
 0xc1a   :  { %11052 = vrcp.f32 %v6013_v35 }
 0xc1c   :  { %v6019_v33 = vpop.xlane.xlu1 %6018  ;;  %v6346_v25 = vpop.permute.xlu0 %6345 }
 0xc1d   :  { %11054 = vrcp.f32 %v6019_v33  ;;  %v6351_v3 = vsel %vm2662_vm2, %v6346_v25, 0 }
 0xc20   :  { %v6025_v54 = vpop.xlane.xlu1 %6024 }
 0xc21   :  { %11056 = vrcp.f32 %v6025_v54 }
 0xc22   :  { %v11049_v10 = vpop.eup %11048 }
 0xc23   :  { %v6038_v56 = vmul.f32 %v11049_v10, %v11033_v44  ;;  %v13446_v10 = vld [vmem:[#allocation29_spill] sm:$0xff] }
 0xc24   :  { %v6395_v19 = vpop.permute.xlu1 %6394 }
 0xc25   :  { %v6046_v27 = vpack.c.bf16 %v6038_v56, %v6038_v56  ;;  %v6400_v50 = vsel %vm2662_vm2, %v6395_v19, 0  ;;  %v12634_v56 = vpack.c.bf16 %v13446_v10, %v13446_v10  ;;  %v13449_v10 = vld [vmem:[#allocation25_spill] sm:$0xff] }
 0xc26   :  { %v11051_v8 = vpop.eup %11050 }
 0xc27   :  { %v11053_v43 = vpop.eup %11052  ;;  %10247 = vmatmul.mubr.msk.bf16.vlgmr.msra.gmra.mxu0 %vm2562_vm4, %v6046_v27  ;;  %v6040_v13 = vmul.f32 %v11051_v8, %v12575_v46  ;;  %v10885_v46 = vld [vmem:[#allocation7 + $0x150] ss:$12 sps:$4 sm:$0xff]  }
 0xc28   :  { %v6037_v37 = vmul.f32 %v11053_v43, %v12577_v30  ;;  %10257 = vmatpush3.bf16.msra.mxu0 %v6351_v3  ;;  %10258 = vmatprep.mubr.msk.bf16.mxu0 %vm11219_vm0, %v13386_v40  ;;  %v10887_v30 = vld [vmem:[#allocation7 + $0x154] ss:$12 sps:$4 sm:$0xff]   ;;  %v6820_v43 = vsel %vm2185_vm1, %v12634_v56, 0 }
 0xc29   :  { %6546 = vmatprep.subr.bf16.mxu0 %v10884_v18  ;;  %v6048_v55 = vpack.c.bf16 %v6040_v13, %v6040_v13 }
 0xc2a   :  { %v6045_v44 = vpack.c.bf16 %v6037_v37, %v6037_v37  ;;  %v11055_v15 = vpop.eup %11054 }
 0xc2b   :  { %v6039_v29 = vmul.f32 %v11055_v15, %v12583_v14  ;;  %v10893_v14 = vld [vmem:[#allocation7 + $0x124] ss:$12 sps:$4 sm:$0xff]  }
 0xc2c   :  { %10241 = vmatmul.mubr.msk.bf16.vlgmr.msra.gmra.mxu1 %vm2562_vm4, %v6045_v44 }
 0xc2d   :  { %10251 = vmatpush3.bf16.msra.mxu1 %v6302_v11  ;;  %10252 = vmatprep.mubr.msk.bf16.mxu1 %vm11219_vm0, %v13386_v40  ;;  %v6047_v5 = vpack.c.bf16 %v6039_v29, %v6039_v29 }
 0xc2e   :  { %10262 = vmatprep.subr.bf16.mxu1 %v13386_v40  ;;  %v11057_v60 = vpop.eup %11056 }
 0xc2f   :  { %10259 = vmatmul.mubr.msk.bf16.vlgmr.msra.gmra.mxu0 %vm2562_vm4, %v6048_v55  ;;  %v6041_v36 = vmul.f32 %v11057_v60, %v12587_v28  ;;  %v10897_v28 = vld [vmem:[#allocation7 + $0x128] ss:$12 sps:$4 sm:$0xff]  }
 0xc30   :  { %6547 = vmatpush1.bf16.msra.mxu0 %v10882_v62  ;;  %6570 = vmatprep.mubr.bf16.mxu0 %v13412_v53  ;;  %v13447_v62 = vld [vmem:[#allocation27_spill] sm:$0xff] }
 0xc31   :  { %6548 = vmatprep.subr.bf16.mxu0 %v10887_v30  ;;  %v6049_v9 = vpack.c.bf16 %v6041_v36, %v6041_v36  ;;  %v12644_v55 = vpack.c.bf16 %v13447_v62, %v13447_v62 }
 0xc34   :  { %10253 = vmatmul.mubr.msk.bf16.vlgmr.msra.gmra.mxu1 %vm2562_vm4, %v6047_v5  ;;  %6549 = vmatpush1.bf16.msra.mxu0 %v10885_v46 }
 0xc35   :  { %10263 = vmatpush3.bf16.msra.mxu1 %v6400_v50  ;;  %10264 = vmatprep.mubr.msk.bf16.mxu1 %vm11219_vm0, %v13386_v40 }
 0xc36   :  { %6550 = vmatprep.subr.bf16.mxu0 %v10890_v34  ;;  %10268 = vmatprep.subr.bf16.mxu1 %v10894_v21  ;;  %v6728_v34 = vsel %vm2185_vm1, %v12644_v55, 0 }
 0xc38   :  { %6551 = vmatpush1.bf16.msra.mxu0 %v10888_v41 }
 0xc39   :  { %6552 = vmatprep.subr.bf16.mxu0 %v10893_v14 }
 0xc3c   :  { %10265 = vmatmul.mubr.msk.bf16.vlgmr.msra.gmra.mxu1 %vm2562_vm4, %v6049_v9  ;;  %6553 = vmatpush1.bf16.msra.mxu0 %v10891_v0 }
 0xc3d   :  { %10296 = vmatprep.subr.bf16.mxu0 %v13386_v40  ;;  %10269 = vmatpush3.bf16.msra.mxu1 %v10894_v21 }
 0xc3e   :  { %10270 = vmatprep.subr.bf16.mxu1 %v10895_v49 }
 0xc41   :  { %10271 = vmatpush3.bf16.msra.mxu1 %v10895_v49 }
 0xc42   :  { %10272 = vmatprep.subr.bf16.mxu1 %v10896_v7 }
 0xc45   :  { %10273 = vmatpush3.bf16.msra.mxu1 %v10896_v7 }
 0xc46   :  { %10274 = vmatprep.subr.bf16.mxu1 %v10897_v28 }
 0xc49   :  { %10275 = vmatpush3.bf16.msra.mxu1 %v10897_v28 }
 0xc4a   :  { %10284 = vmatprep.subr.bf16.mxu1 %v13386_v40 }
 0xcae   :  { %v6093_v42 = vpop.f32.mrf.mxu0 }
 0xcb0   :  { %v10224_v47 = vpop.f32.mrf.mxu0 }
 0xcb2   :  { %v6096_v35 = vpop.f32.mrf.mxu0 }
 0xcb4   :  { %v10225_v33 = vpop.f32.mrf.mxu0 }
 0xcb5   :  { %v13448_v33 = vld [vmem:[#allocation28_spill] sm:$0xff] }
 0xcb6   :  { %v6191_v54 = vpop.f32.mrf.mxu0  ;;  %v6142_v25 = vpop.f32.mrf.mxu1 }
 0xcb7   :  { %v6442_v27 = vpack.c.bf16 %v6142_v25, %v6093_v42 }
 0xcb8   :  { %v10236_v18 = vpop.f32.mrf.mxu0  ;;  %v10230_v8 = vpop.f32.mrf.mxu1 }
 0xcb9   :  { %9440 = vmatmul.mubr.msk.bf16.vlgmr.msra.gmra.mxu0 %vm2185_vm1, %v6442_v27  ;;  %10276 = vmatprep.mubr.msk.bf16.mxu1 %vm2185_vm1, %v6442_v27  ;;  %v13450_v8 = vld [vmem:[#allocation32_spill] sm:$0xff] }
 0xcba   :  { %v6194_v3 = vpop.f32.mrf.mxu0  ;;  %10297 = vmatpush3.bf16.xpose.msra.mxu0 %v6820_v43  ;;  %v6145_v37 = vpop.f32.mrf.mxu1  ;;  %6580 = vmatprep.mubr.bf16.mxu0 %v13412_v53  ;;  %v12667_v43 = vpack.c.bf16 %v13450_v8, %v13450_v8 }
 0xcbb   :  { %10308 = vmatprep.subr.bf16.mxu0 %v13386_v40  ;;  %v13451_v3 = vld [vmem:[#allocation17_spill] sm:$0xff] }
 0xcbc   :  { %v10237_v13 = vpop.f32.mrf.mxu0  ;;  %v10231_v44 = vpop.f32.mrf.mxu1  ;;  %v12671_v37 = vpack.c.bf16 %v13451_v3, %v13451_v3 }
 0xcbd   :  { %v13452_v13 = vld [vmem:[#allocation19_spill] sm:$0xff] }
 0xcbe   :  { %v12675_v44 = vpack.c.bf16 %v13452_v13, %v13452_v13  ;;  %v13466_v13 = vld [vmem:[#allocation51_spill] sm:$0xff] }
 0xce7   :  { %v6289_v15 = vpop.f32.mrf.mxu0 }
 0xce9   :  { %v10248_v11 = vpop.f32.mrf.mxu0 }
 0xcea   :  { %v13454_v11 = vld [vmem:[#allocation26_spill] sm:$0xff] }
 0xceb   :  { %v6292_v30 = vpop.f32.mrf.mxu0 }
 0xcec   :  { %v6240_v29 = vpop.f32.mrf.mxu1  ;;  %v6912_v30 = vsel %vm2185_vm1, %v12667_v43, 0 }
 0xced   :  { %v6443_v46 = vpack.c.bf16 %v6240_v29, %v6191_v54  ;;  %v10249_v19 = vpop.f32.mrf.mxu0  ;;  %v1846_v54 = vadd.f32 %v13449_v10, %v13448_v33  ;;  %v13464_v10 = vld [vmem:[#allocation37_spill] sm:$0xff] }
 0xcee   :  { %v10242_v5 = vpop.f32.mrf.mxu1  ;;  %v13455_v19 = vld [vmem:[#allocation35_spill] sm:$0xff] }
 0xcef   :  { %9441 = vmatmul.mubr.msk.bf16.gmra.mxu0 %vm2185_vm1, %v6443_v46  ;;  %10277 = vmatmul.mubr.msk.bf16.vlgmr.msra.gmra.mxu1 %vm2185_vm1, %v6443_v46  ;;  %v6387_v60 = vpop.f32.mrf.mxu0  ;;  %v12663_v18 = vpack.c.bf16 %v1846_v54, %v1846_v54  ;;  %v12697_v5 = vpack.c.bf16 %v13455_v19, %v13455_v19  ;;  %v13465_v54 = vld [vmem:[#allocation38_spill] sm:$0xff] }
 0xcf0   :  { %10285 = vmatpush3.bf16.xpose.msra.mxu1 %v6728_v34  ;;  %v6243_v50 = vpop.f32.mrf.mxu1  ;;  %6590 = vmatprep.mubr.bf16.mxu0 %v13412_v53  ;;  %v13456_v34 = vld [vmem:[#allocation18_spill] sm:$0xff] }
 0xcf1   :  { %v10260_v41 = vpop.f32.mrf.mxu0  ;;  %10290 = vmatprep.subr.bf16.mxu1 %v13386_v40  ;;  %v6774_v29 = vsel %vm2185_vm1, %v12663_v18, 0  ;;  %v13457_v50 = vld [vmem:[#allocation21_spill] sm:$0xff] }
 0xcf2   :  { %v10243_v14 = vpop.f32.mrf.mxu1  ;;  %v12705_v41 = vpack.c.bf16 %v13457_v50, %v13457_v50 }
 0xcf3   :  { %v6390_v36 = vpop.f32.mrf.mxu0  ;;  %v13458_v14 = vld [vmem:[#allocation34_spill] sm:$0xff] }
 0xcf4   :  { %v6338_v0 = vpop.f32.mrf.mxu1  ;;  %v13459_v36 = vld [vmem:[#allocation31_spill] sm:$0xff] }
 0xcf5   :  { %v6444_v9 = vpack.c.bf16 %v6338_v0, %v6289_v15  ;;  %v10261_v21 = vpop.f32.mrf.mxu0  ;;  %v13453_v15 = vld [vmem:[#allocation30_spill] sm:$0xff]  ;;  %v1866_v0 = vadd.f32 %v13459_v36, %v13458_v14  ;;  %v13471_v14 = vld [vmem:[#allocation24_spill] sm:$0xff] }
 0xcf6   :  { %v10254_v49 = vpop.f32.mrf.mxu1  ;;  %v1856_v62 = vadd.f32 %v13454_v11, %v13453_v15  ;;  %v13467_v15 = vld [vmem:[#allocation53_spill] sm:$0xff]  ;;  %v12773_v36 = vpack.c.bf16 %v13471_v14, %v13471_v14 }
 0xcf7   :  { %9442 = vmatmul.mubr.msk.bf16.gmra.mxu0 %vm2185_vm1, %v6444_v9  ;;  %10280 = vmatprep.mubr.msk.bf16.mxu1 %vm2185_vm1, %v6444_v9  ;;  %v7004_v9 = vsel %vm2185_vm1, %v12697_v5, 0  ;;  %v12723_v49 = vpack.c.bf16 %v1866_v0, %v1866_v0  ;;  %v9541_v11 = vadd.f32 %v13467_v15, %v13466_v13 }
 0xcf8   :  { %v6341_v7 = vpop.f32.mrf.mxu1  ;;  %6600 = vmatprep.mubr.bf16.mxu0 %v13412_v53  ;;  %v12693_v46 = vpack.c.bf16 %v1856_v62, %v1856_v62  ;;  %v13468_v62 = vld [vmem:[#allocation22_spill] sm:$0xff] }
 0xcf9   :  { %v13460_v7 = vld [vmem:[#allocation52_spill] sm:$0xff]  ;;  %v6958_v8 = vsel %vm2185_vm1, %v12723_v49, 0 }
 0xcfa   :  { %v10255_v28 = vpop.f32.mrf.mxu1  ;;  %v6866_v21 = vsel %vm2185_vm1, %v12693_v46, 0 }
 0xcfb   :  { %v12727_v28 = vpack.c.bf16 %v13460_v7, %v13460_v7 }
 0xcfc   :  { %v6436_v42 = vpop.f32.mrf.mxu1 }
 0xcfd   :  { %v6445_v47 = vpack.c.bf16 %v6436_v42, %v6387_v60  ;;  %v12701_v60 = vpack.c.bf16 %v13456_v34, %v13456_v34  ;;  %13461 = vst [vmem:[#allocation44_spill] sm:$0xff] %v12727_v28  ;;  %v13462_v42 = vld [vmem:[#allocation20_spill] sm:$0xff] }
 0xcfe   :  { %v10266_v35 = vpop.f32.mrf.mxu1 }
 0xcff   :  { %9443 = vmatmul.mubr.msk.bf16.gmra.mxu0 %vm2185_vm1, %v6445_v47  ;;  %10281 = vmatmul.mubr.msk.bf16.gmra.mxu1 %vm2185_vm1, %v6445_v47  ;;  %v12731_v47 = vpack.c.bf16 %v13462_v42, %v13462_v42  ;;  %v13463_v35 = vld [vmem:[#allocation23_spill] sm:$0xff] }
 0xd00   :  { %v6439_v25 = vpop.f32.mrf.mxu1  ;;  %10286 = vmatprep.mubr.msk.bf16.mxu1 %vm11219_vm0, %v13386_v40  ;;  %10298 = vmatprep.mubr.msk.bf16.mxu0 %vm11219_vm0, %v13386_v40  ;;  %v12735_v33 = vpack.c.bf16 %v13463_v35, %v13463_v35 }
 0xd01   :  { %v1876_v25 = vadd.f32 %v13465_v54, %v13464_v10 }
 0xd02   :  { %v10267_v27 = vpop.f32.mrf.mxu1 }
 0xd03   :  { %v7200_v27 = vsel %vm2662_vm2, %v12727_v28, 0  ;;  %v12753_v3 = vpack.c.bf16 %v1876_v25, %v1876_v25 }
 0xd05   :  { %v7050_v34 = vsel %vm2185_vm1, %v12753_v3, 0 }
 0xd07   :  { %10287 = vmatmul.mubr.msk.bf16.vlgmr.msra.gmra.mxu1 %vm2185_vm1, %v12671_v37  ;;  %10299 = vmatmul.mubr.msk.bf16.vlgmr.msra.gmra.mxu0 %vm2185_vm1, %v12675_v44 }
 0xd08   :  { %10291 = vmatpush3.bf16.xpose.msra.mxu1 %v6774_v29  ;;  %10309 = vmatpush3.bf16.xpose.msra.mxu0 %v6912_v30  ;;  %v12759_v30 = vpack.c.bf16 %v13468_v62, %v13468_v62  ;;  %v13469_v29 = vld [vmem:[#allocation54_spill] sm:$0xff] }
 0xd09   :  { %10292 = vmatprep.mubr.msk.bf16.mxu1 %vm11219_vm0, %v13386_v40  ;;  %10302 = vmatprep.subr.bf16.mxu1 %v13386_v40  ;;  %v2127_v19 = vadd.f32 %v9541_v11, %v13469_v29 }
 0xd0a   :  { %10310 = vmatprep.mubr.msk.bf16.mxu0 %vm11219_vm0, %v13386_v40  ;;  %10320 = vmatprep.subr.bf16.mxu0 %v13386_v40 }
 0xd0b   :  { %v12769_v50 = vpack.c.bf16 %v2127_v19, %v2127_v19 }
 0xd0d   :  { %13470 = vst [vmem:[#allocation43_spill] sm:$0xff] %v12769_v50  ;;  %v7246_v0 = vsel %vm2662_vm2, %v12769_v50, 0 }
 0xd0f   :  { %10293 = vmatmul.mubr.msk.bf16.vlgmr.msra.gmra.mxu1 %vm2185_vm1, %v12701_v60  ;;  %10311 = vmatmul.mubr.msk.bf16.vlgmr.msra.gmra.mxu0 %vm2185_vm1, %v12705_v41 }
 0xd10   :  { %10303 = vmatpush3.bf16.xpose.msra.mxu1 %v6866_v21  ;;  %10321 = vmatpush3.bf16.xpose.msra.mxu0 %v7004_v9 }
 0xd11   :  { %10304 = vmatprep.mubr.msk.bf16.mxu1 %vm11219_vm0, %v13386_v40  ;;  %10314 = vmatprep.subr.bf16.mxu1 %v13386_v40 }
 0xd12   :  { %10322 = vmatprep.mubr.msk.bf16.mxu0 %vm11219_vm0, %v13386_v40  ;;  %10332 = vmatprep.subr.bf16.mxu0 %v13386_v40 }
 0xd17   :  { %10305 = vmatmul.mubr.msk.bf16.vlgmr.msra.gmra.mxu1 %vm2185_vm1, %v12731_v47  ;;  %10323 = vmatmul.mubr.msk.bf16.vlgmr.msra.gmra.mxu0 %vm2185_vm1, %v12735_v33 }
 0xd18   :  { %10315 = vmatpush3.bf16.xpose.msra.mxu1 %v6958_v8  ;;  %10333 = vmatpush3.bf16.msra.mxu0 %v7200_v27 }
 0xd19   :  { %10316 = vmatprep.mubr.msk.bf16.mxu1 %vm11219_vm0, %v13386_v40  ;;  %10326 = vmatprep.subr.bf16.mxu1 %v13386_v40 }
 0xd1a   :  { %10334 = vmatprep.mubr.msk.bf16.mxu0 %vm11219_vm0, %v13386_v40  ;;  %10344 = vmatprep.subr.bf16.mxu0 %v13386_v40 }
 0xd1f   :  { %10317 = vmatmul.mubr.msk.bf16.vlgmr.msra.gmra.mxu1 %vm2185_vm1, %v12759_v30 }
 0xd20   :  { %10327 = vmatpush3.bf16.xpose.msra.mxu1 %v7050_v34  ;;  %10328 = vmatprep.mubr.msk.bf16.mxu1 %vm11219_vm0, %v13386_v40 }
 0xd21   :  { %10338 = vmatprep.subr.bf16.mxu1 %v13386_v40 }
 0xd27   :  { %10329 = vmatmul.mubr.msk.bf16.vlgmr.msra.gmra.mxu1 %vm2185_vm1, %v12773_v36 }
 0xd28   :  { %10339 = vmatpush3.bf16.msra.mxu1 %v7246_v0  ;;  %10340 = vmatprep.mubr.msk.bf16.mxu1 %vm11219_vm0, %v13386_v40 }
 0xd29   :  { %10350 = vmatprep.subr.bf16.mxu1 %v13386_v40 }
 0xd79   :  { %v6572_v9 = vpop.f32.mrf.mxu0 }
 0xd7a   :  { %v12783_v21 = vadd.f32 %v6572_v9, %v12454_v1 }
 0xd7b   :  { %v6574_v7 = vpop.f32.mrf.mxu0 }
 0xd7c   :  { %v12786_v42 = vadd.f32 %v6574_v7, %v12458_v31 }
 0xd7d   :  { %v6576_v35 = vpop.f32.mrf.mxu0 }
 0xd7e   :  { %v12789_v10 = vadd.f32 %v6576_v35, %v12460_v20 }
 0xd7f   :  { %v12791_v54 = vpop.f32.mrf.mxu0 }
 0xdaf   :  { %v6582_v25 = vpop.f32.mrf.mxu0  ;;  %v10278_v27 = vpop.f32.mrf.mxu1 }
 0xdb0   :  { %v12794_v8 = vadd.f32 %v6582_v25, %v12465_v23  ;;  %v12797_v13 = vadd.f32 %v10278_v27, %v12468_v4 }
 0xdb1   :  { %v6584_v1 = vpop.f32.mrf.mxu0  ;;  %v6645_v15 = vpop.f32.mrf.mxu1 }
 0xdb2   :  { %v12800_v11 = vadd.f32 %v6584_v1, %v12471_v17  ;;  %v12803_v31 = vadd.f32 %v6645_v15, %v12474_v39 }
 0xdb3   :  { %v6586_v20 = vpop.f32.mrf.mxu0  ;;  %v10279_v62 = vpop.f32.mrf.mxu1 }
 0xdb4   :  { %v12806_v29 = vadd.f32 %v6586_v20, %v12477_v51  ;;  %v12809_v19 = vadd.f32 %v10279_v62, %v12480_v24 }
 0xdb5   :  { %v12811_v23 = vpop.f32.mrf.mxu0  ;;  %v12822_v9 = vpop.f32.mrf.mxu1 }
 0xdb7   :  { %v6592_v4 = vpop.f32.mrf.mxu0 }
 0xdb8   :  { %v12814_v34 = vadd.f32 %v6592_v4, %v12485_v57 }
 0xdb9   :  { %v6594_v14 = vpop.f32.mrf.mxu0 }
 0xdba   :  { %v12817_v17 = vadd.f32 %v6594_v14, %v12488_v32 }
 0xdbb   :  { %v6596_v39 = vpop.f32.mrf.mxu0 }
 0xdbc   :  { %v12820_v0 = vadd.f32 %v6596_v39, %v12491_v26 }
 0xdbd   :  { %v12824_v51 = vpop.f32.mrf.mxu0 }
 0xdbf   :  { %v6602_v24 = vpop.f32.mrf.mxu0  ;;  %v10282_v7 = vpop.f32.mrf.mxu1 }
 0xdc0   :  { %v12827_v35 = vadd.f32 %v6602_v24, %v12498_v16  ;;  %v12830_v57 = vadd.f32 %v10282_v7, %v12501_v22 }
 0xdc1   :  { %v6604_v25 = vpop.f32.mrf.mxu0  ;;  %v6661_v27 = vpop.f32.mrf.mxu1 }
 0xdc2   :  { %v12833_v32 = vadd.f32 %v6604_v25, %v12504_v61  ;;  %v12836_v26 = vadd.f32 %v6661_v27, %v12507_v63 }
 0xdc3   :  { %v6606_v1 = vpop.f32.mrf.mxu0  ;;  %v10283_v15 = vpop.f32.mrf.mxu1 }
 0xdc4   :  { %13472 = vst [vmem:[#allocation47_spill] sm:$0xff] %v12833_v32  ;;  %13473 = vst [vmem:[#allocation46_spill] sm:$0xff] %v12836_v26  ;;  %v12839_v20 = vadd.f32 %v6606_v1, %v12510_v58  ;;  %v12842_v62 = vadd.f32 %v10283_v15, %v12513_v2 }
 0xdc5   :  { %v12844_v16 = vpop.f32.mrf.mxu0  ;;  %v12846_v22 = vpop.f32.mrf.mxu1 }
 0xdc6   :  { %13474 = vst [vmem:[#allocation48_spill] sm:$0xff] %v12839_v20  ;;  %13475 = vst [vmem:[#allocation50_spill] sm:$0xff] %v12842_v62 }
 0xdc7   :  { %13476 = vst [vmem:[#allocation49_spill] sm:$0xff] %v12844_v16  ;;  %13477 = vst [vmem:[#allocation29_spill] sm:$0xff] %v12846_v22  ;;  %v6764_v4 = vpop.f32.mrf.mxu1  ;;  %v6856_v14 = vpop.f32.mrf.mxu0 }
 0xdc8   :  { %v7092_v61 = vsel %vm11648_vm3, %v6764_v4, -1e+30  ;;  %v7094_v58 = vsel %vm11648_vm3, %v6856_v14, -1e+30 }
 0xdc9   :  { %v7100_v63 = vsel %vm2562_vm4, %v7092_v61, -inf  ;;  %v10288_v39 = vpop.f32.mrf.mxu1  ;;  %v10300_v24 = vpop.f32.mrf.mxu0  ;;  %v7106_v25 = vsel %vm2562_vm4, %v7094_v58, -inf }
 0xdca   :  { %7101 = vmax.xlane.f32.xlu0 %v7100_v63 }
 0xdcb   :  { %v6767_v7 = vpop.f32.mrf.mxu1  ;;  %v6859_v2 = vpop.f32.mrf.mxu0 }
 0xdcd   :  { %v10289_v27 = vpop.f32.mrf.mxu1  ;;  %v10301_v1 = vpop.f32.mrf.mxu0 }
 0xdce   :  { %7107 = vmax.xlane.f32.xlu0 %v7106_v25 }
 0xdcf   :  { %v6810_v15 = vpop.f32.mrf.mxu1  ;;  %v6948_v28 = vpop.f32.mrf.mxu0 }
 0xdd0   :  { %v7093_v4 = vsel %vm11648_vm3, %v6810_v15, -1e+30  ;;  %v7096_v15 = vsel %vm11648_vm3, %v6948_v28, -1e+30 }
 0xdd1   :  { %v7103_v50 = vsel %vm2562_vm4, %v7093_v4, -inf  ;;  %v10294_v39 = vpop.f32.mrf.mxu1  ;;  %v10312_v24 = vpop.f32.mrf.mxu0 }
 0xdd2   :  { %7104 = vmax.xlane.f32.xlu1 %v7103_v50  ;;  %v7112_v50 = vsel %vm2562_vm4, %v7096_v15, -inf }
 0xdd3   :  { %v6813_v62 = vpop.f32.mrf.mxu1  ;;  %v6951_v14 = vpop.f32.mrf.mxu0 }
 0xdd5   :  { %v10295_v63 = vpop.f32.mrf.mxu1  ;;  %v10313_v7 = vpop.f32.mrf.mxu0 }
 0xdd7   :  { %v6902_v2 = vpop.f32.mrf.mxu1  ;;  %v7040_v20 = vpop.f32.mrf.mxu0 }
 0xdd8   :  { %v7095_v27 = vsel %vm11648_vm3, %v6902_v2, -1e+30  ;;  %v7098_v63 = vsel %vm11648_vm3, %v7040_v20, -1e+30 }
 0xdd9   :  { %v7109_v25 = vsel %vm2562_vm4, %v7095_v27, -inf  ;;  %v10306_v1 = vpop.f32.mrf.mxu1  ;;  %v10324_v22 = vpop.f32.mrf.mxu0 }
 0xdda   :  { %7110 = vmax.xlane.f32.xlu0 %v7109_v25  ;;  %v7118_v22 = vsel %vm2562_vm4, %v7098_v63, -inf }
 0xddb   :  { %v6905_v39 = vpop.f32.mrf.mxu1  ;;  %v7043_v24 = vpop.f32.mrf.mxu0 }
 0xddd   :  { %v10307_v62 = vpop.f32.mrf.mxu1  ;;  %v10325_v14 = vpop.f32.mrf.mxu0 }
 0xdde   :  { %7113 = vmax.xlane.f32.xlu0 %v7112_v50 }
 0xddf   :  { %v6994_v7 = vpop.f32.mrf.mxu1 }
 0xde0   :  { %v7097_v2 = vsel %vm11648_vm3, %v6994_v7, -1e+30 }
 0xde1   :  { %v7115_v1 = vsel %vm2562_vm4, %v7097_v2, -inf  ;;  %v10318_v28 = vpop.f32.mrf.mxu1 }
 0xde2   :  { %7119 = vmax.xlane.f32.xlu0 %v7118_v22  ;;  %7116 = vmax.xlane.f32.xlu1 %v7115_v1 }
 0xde3   :  { %v6997_v25 = vpop.f32.mrf.mxu1 }
 0xde5   :  { %v10319_v39 = vpop.f32.mrf.mxu1 }
 0xde7   :  { %v7086_v24 = vpop.f32.mrf.mxu1 }
 0xde8   :  { %v7099_v62 = vsel %vm11648_vm3, %v7086_v24, -1e+30 }
 0xde9   :  { %v7121_v20 = vsel %vm2562_vm4, %v7099_v62, -inf  ;;  %v10330_v50 = vpop.f32.mrf.mxu1 }
 0xdea   :  { %7122 = vmax.xlane.f32.xlu1 %v7121_v20 }
 0xdeb   :  { %v7089_v14 = vpop.f32.mrf.mxu1 }
 0xded   :  { %v10331_v16 = vpop.f32.mrf.mxu1 }
 0xe53   :  { %v7102_v7 = vpop.xlane.xlu0 %7101 }
 0xe54   :  { %v7124_v26 = vsub.f32 %v7092_v61, %v7102_v7 }
 0xe56   :  { %v7132_v32 = vmul.f32 1.442695, %v7124_v26 }
 0xe57   :  { %v7108_v12 = vpop.xlane.xlu0 %7107 }
 0xe58   :  { %11058 = vpow2.f32 %v7132_v32  ;;  %v7126_v28 = vsub.f32 %v7094_v58, %v7108_v12 }
 0xe5a   :  { %v7136_v22 = vmul.f32 1.442695, %v7126_v28 }
 0xe5b   :  { %v7105_v1 = vpop.xlane.xlu1 %7104 }
 0xe5c   :  { %11060 = vpow2.f32 %v7136_v22  ;;  %v7125_v25 = vsub.f32 %v7093_v4, %v7105_v1 }
 0xe5e   :  { %v7134_v39 = vmul.f32 1.442695, %v7125_v25 }
 0xe60   :  { %11062 = vpow2.f32 %v7134_v39 }
 0xe63   :  { %v7111_v48 = vpop.xlane.xlu0 %7110 }
 0xe64   :  { %v7127_v24 = vsub.f32 %v7095_v27, %v7111_v48 }
 0xe65   :  { %v12872_v45 = vpop.eup %11058 }
 0xe66   :  { %v7138_v50 = vmul.f32 1.442695, %v7127_v24  ;;  %v7148_v16 = vsel %vm2562_vm4, %v12872_v45, 0.0 }
 0xe67   :  { %7149 = vadd.xlane.f32.xlu0 %v7148_v16  ;;  %v7114_v61 = vpop.xlane.xlu0 %7113 }
 0xe68   :  { %11064 = vpow2.f32 %v7138_v50  ;;  %v7128_v26 = vsub.f32 %v7096_v15, %v7114_v61 }
 0xe69   :  { %v12876_v32 = vpop.eup %11060 }
 0xe6a   :  { %v7140_v12 = vmul.f32 1.442695, %v7128_v26  ;;  %v7154_v58 = vsel %vm2562_vm4, %v12876_v32, 0.0 }
 0xe6b   :  { %7155 = vadd.xlane.f32.xlu0 %v7154_v58  ;;  %v7120_v4 = vpop.xlane.xlu0 %7119  ;;  %v7117_v20 = vpop.xlane.xlu1 %7116  ;;  %v13481_v58 = vld [vmem:[#allocation59_spill] sm:$0xff] }
 0xe6c   :  { %11066 = vpow2.f32 %v7140_v12  ;;  %v7130_v48 = vsub.f32 %v7098_v63, %v7120_v4  ;;  %v7129_v27 = vsub.f32 %v7097_v2, %v7117_v20  ;;  %v13482_v20 = vld [vmem:[#allocation58_spill] sm:$0xff] }
 0xe6d   :  { %v12880_v14 = vpop.eup %11062 }
 0xe6e   :  { %v7144_v7 = vmul.f32 1.442695, %v7130_v48  ;;  %v7142_v28 = vmul.f32 1.442695, %v7129_v27  ;;  %v7151_v22 = vsel %vm2562_vm4, %v12880_v14, 0.0  ;;  %v12956_v48 = vpack.c.bf16 %v13482_v20, %v13482_v20 }
 0xe6f   :  { %7152 = vadd.xlane.f32.xlu1 %v7151_v22 }
 0xe70   :  { %11068 = vpow2.f32 %v7144_v7 }
 0xe71   :  { %11070 = vpow2.f32 %v7142_v28 }
 0xe73   :  { %v7123_v15 = vpop.xlane.xlu1 %7122 }
 0xe74   :  { %v7131_v1 = vsub.f32 %v7099_v62, %v7123_v15 }
 0xe75   :  { %v12884_v25 = vpop.eup %11064 }
 0xe76   :  { %v7146_v39 = vmul.f32 1.442695, %v7131_v1  ;;  %v7157_v24 = vsel %vm2562_vm4, %v12884_v25, 0.0  ;;  %v7384_v1 = vsel %vm2662_vm2, %v12956_v48, 0 }
 0xe77   :  { %7158 = vadd.xlane.f32.xlu1 %v7157_v24 }
 0xe78   :  { %11072 = vpow2.f32 %v7146_v39  ;;  %v13483_v39 = vld [vmem:[#allocation63_spill] sm:$0xff] }
 0xe79   :  { %v12888_v63 = vpop.eup %11066 }
 0xe7a   :  { %v7160_v2 = vsel %vm2562_vm4, %v12888_v63, 0.0 }
 0xe7b   :  { %7161 = vadd.xlane.f32.xlu0 %v7160_v2 }
 0xe7d   :  { %v12892_v50 = vpop.eup %11068 }
 0xe7e   :  { %v12894_v16 = vpop.eup %11070  ;;  %v7166_v62 = vsel %vm2562_vm4, %v12892_v50, 0.0 }
 0xe7f   :  { %7167 = vadd.xlane.f32.xlu0 %v7166_v62  ;;  %v7163_v61 = vsel %vm2562_vm4, %v12894_v16, 0.0 }
 0xe80   :  { %7164 = vadd.xlane.f32.xlu1 %v7163_v61 }
 0xe85   :  { %v12900_v26 = vpop.eup %11072 }
 0xe86   :  { %v7169_v12 = vsel %vm2562_vm4, %v12900_v26, 0.0 }
 0xe87   :  { %7170 = vadd.xlane.f32.xlu1 %v7169_v12 }
 0xe95   :  { %7826 = vrot.lane.b32.xlu0 %v12644_v55, %s11220_s0 }
 0xe98   :  { %7823 = vrot.lane.b32.xlu1 %v12671_v37, %s11220_s0  ;;  %v13478_v37 = vld [vmem:[#allocation55_spill] sm:$0xff] }
 0xe99   :  { %7930 = vrot.lane.b32.xlu0 %v12634_v56, %s11220_s0 }
 0xe9c   :  { %7878 = vrot.lane.b32.xlu1 %v12663_v18, %s11220_s0 }
 0xe9d   :  { %7927 = vrot.lane.b32.xlu0 %v12675_v44, %s11220_s0  ;;  %v12938_v44 = vpack.c.bf16 %v13478_v37, %v13478_v37 }
 0xea0   :  { %7875 = vrot.lane.b32.xlu1 %v12701_v60, %s11220_s0 }
 0xea1   :  { %8034 = vrot.lane.b32.xlu0 %v12667_v43, %s11220_s0 }
 0xea4   :  { %7982 = vrot.lane.b32.xlu1 %v12693_v46, %s11220_s0 }
 0xea5   :  { %8031 = vrot.lane.b32.xlu0 %v12705_v41, %s11220_s0 }
 0xea8   :  { %7979 = vrot.lane.b32.xlu1 %v12731_v47, %s11220_s0 }
 0xea9   :  { %8138 = vrot.lane.b32.xlu0 %v12697_v5, %s11220_s0 }
 0xeac   :  { %8086 = vrot.lane.b32.xlu1 %v12723_v49, %s11220_s0  ;;  %v7292_v49 = vsel %vm2662_vm2, %v12938_v44, 0 }
 0xead   :  { %8135 = vrot.lane.b32.xlu0 %v12735_v33, %s11220_s0 }
 0xeb0   :  { %8083 = vrot.lane.b32.xlu1 %v12759_v30, %s11220_s0 }
 0xeb4   :  { %8190 = vrot.lane.b32.xlu1 %v12753_v3, %s11220_s0  ;;  %v13479_v3 = vld [vmem:[#allocation56_spill] sm:$0xff] }
 0xeb5   :  { %v12950_v30 = vpack.c.bf16 %v13479_v3, %v13479_v3 }
 0xeb7   :  { %v7338_v15 = vsel %vm2662_vm2, %v12950_v30, 0 }
 0xeb8   :  { %8187 = vrot.lane.b32.xlu1 %v12773_v36, %s11220_s0  ;;  %v13480_v36 = vld [vmem:[#allocation57_spill] sm:$0xff] }
 0xeb9   :  { %v9553_v4 = vadd.f32 %v13481_v58, %v13480_v36  ;;  %v10898_v36 = vld [vmem:[#allocation7 + $0x1c8] ss:$12 sps:$4 sm:$0xff]  }
 0xebb   :  { %v2143_v24 = vadd.f32 %v9553_v4, %v13483_v39  ;;  %v10913_v39 = vld [vmem:[#allocation7 + $0x188] ss:$12 sps:$4 sm:$0xff]  }
 0xebd   :  { %v12972_v2 = vpack.c.bf16 %v2143_v24, %v2143_v24 }
 0xebf   :  { %v7430_v37 = vsel %vm2662_vm2, %v12972_v2, 0 }
 0xef0   :  { %v7150_v56 = vpop.xlane.xlu0 %7149 }
 0xef1   :  { %11074 = vrcp.f32 %v7150_v56 }
 0xef4   :  { %v7156_v55 = vpop.xlane.xlu0 %7155 }
 0xef5   :  { %11076 = vrcp.f32 %v7156_v55  ;;  %v13484_v55 = vld [vmem:[#allocation60_spill] sm:$0xff] }
 0xef8   :  { %v7153_v18 = vpop.xlane.xlu1 %7152 }
 0xef9   :  { %11078 = vrcp.f32 %v7153_v18  ;;  %v12977_v18 = vpack.c.bf16 %v13484_v55, %v13484_v55 }
 0xefe   :  { %v11075_v43 = vpop.eup %11074 }
 0xeff   :  { %v7180_v46 = vmul.f32 %v11075_v43, %v12872_v45 }
 0xf00   :  { %v7159_v5 = vpop.xlane.xlu1 %7158 }
 0xf01   :  { %v7188_v60 = vpack.c.bf16 %v7180_v46, %v7180_v46  ;;  %11080 = vrcp.f32 %v7159_v5  ;;  %v10900_v46 = vld [vmem:[#allocation7 + $0x1cc] ss:$12 sps:$4 sm:$0xff]  }
 0xf02   :  { %v11077_v41 = vpop.eup %11076 }
 0xf03   :  { %10335 = vmatmul.mubr.msk.bf16.vlgmr.msra.gmra.mxu0 %vm2562_vm4, %v7188_v60  ;;  %v7182_v33 = vmul.f32 %v11077_v41, %v12876_v32  ;;  %v13485_v41 = vld [vmem:[#allocation61_spill] sm:$0xff] }
 0xf04   :  { %10345 = vmatpush3.bf16.msra.mxu0 %v7292_v49  ;;  %v7162_v47 = vpop.xlane.xlu0 %7161  ;;  %10346 = vmatprep.mubr.msk.bf16.mxu0 %vm11219_vm0, %v13386_v40  ;;  %v12991_v49 = vpack.c.bf16 %v13485_v41, %v13485_v41 }
 0xf05   :  { %11082 = vrcp.f32 %v7162_v47  ;;  %10356 = vmatprep.subr.bf16.mxu0 %v13386_v40  ;;  %v7190_v28 = vpack.c.bf16 %v7182_v33, %v7182_v33 }
 0xf06   :  { %v11079_v45 = vpop.eup %11078  ;;  %v7522_v3 = vsel %vm2662_vm2, %v12991_v49, 0 }
 0xf07   :  { %v7181_v27 = vmul.f32 %v11079_v45, %v12880_v14 }
 0xf08   :  { %v7168_v7 = vpop.xlane.xlu0 %7167 }
 0xf09   :  { %v7189_v32 = vpack.c.bf16 %v7181_v27, %v7181_v27  ;;  %11084 = vrcp.f32 %v7168_v7  ;;  %v7165_v22 = vpop.xlane.xlu1 %7164  ;;  %v10904_v7 = vld [vmem:[#allocation7 + $0x198] ss:$12 sps:$4 sm:$0xff]  }
 0xf0a   :  { %11086 = vrcp.f32 %v7165_v22  ;;  %v10908_v22 = vld [vmem:[#allocation7 + $0x180] ss:$12 sps:$4 sm:$0xff]  }
 0xf0b   :  { %10341 = vmatmul.mubr.msk.bf16.vlgmr.msra.gmra.mxu1 %vm2562_vm4, %v7189_v32  ;;  %10347 = vmatmul.mubr.msk.bf16.vlgmr.msra.gmra.mxu0 %vm2562_vm4, %v7190_v28  ;;  %v10906_v28 = vld [vmem:[#allocation7 + $0x19c] ss:$12 sps:$4 sm:$0xff]  }
 0xf0c   :  { %10351 = vmatpush3.bf16.msra.mxu1 %v7338_v15  ;;  %10357 = vmatpush3.bf16.msra.mxu0 %v7384_v1  ;;  %v10907_v32 = vld [vmem:[#allocation7 + $0x1d0] ss:$12 sps:$4 sm:$0xff]   ;;  %v10911_v15 = vld [vmem:[#allocation7 + $0x1b8] ss:$12 sps:$4 sm:$0xff]   ;;  %v10912_v1 = vld [vmem:[#allocation7 + $0x1a0] ss:$12 sps:$4 sm:$0xff]  }
 0xf0d   :  { %10352 = vmatprep.mubr.msk.bf16.mxu1 %vm11219_vm0, %v13386_v40  ;;  %10362 = vmatprep.subr.bf16.mxu1 %v13386_v40 }
 0xf0e   :  { %v11081_v14 = vpop.eup %11080  ;;  %10358 = vmatprep.mubr.msk.bf16.mxu0 %vm11219_vm0, %v13386_v40  ;;  %10368 = vmatprep.subr.bf16.mxu0 %v13386_v40 }
 0xf0f   :  { %v7183_v62 = vmul.f32 %v11081_v14, %v12884_v25  ;;  %v7827_v14 = vpop.permute.xlu0 %7826 }
 0xf10   :  { %v7171_v61 = vpop.xlane.xlu1 %7170 }
 0xf11   :  { %v7191_v12 = vpack.c.bf16 %v7183_v62, %v7183_v62  ;;  %11088 = vrcp.f32 %v7171_v61 }
 0xf12   :  { %v11083_v56 = vpop.eup %11082 }
 0xf13   :  { %v7184_v43 = vmul.f32 %v11083_v56, %v12888_v63  ;;  %10353 = vmatmul.mubr.msk.bf16.vlgmr.msra.gmra.mxu1 %vm2562_vm4, %v7191_v12  ;;  %v7476_v63 = vsel %vm2662_vm2, %v12977_v18, 0  ;;  %v7931_v56 = vpop.permute.xlu0 %7930 }
 0xf14   :  { %10363 = vmatpush3.bf16.msra.mxu1 %v7430_v37  ;;  %10364 = vmatprep.mubr.msk.bf16.mxu1 %vm11219_vm0, %v13386_v40 }
 0xf15   :  { %v7192_v25 = vpack.c.bf16 %v7184_v43, %v7184_v43  ;;  %10374 = vmatprep.subr.bf16.mxu1 %v13386_v40 }
 0xf16   :  { %v11085_v5 = vpop.eup %11084 }
 0xf17   :  { %v11087_v60 = vpop.eup %11086  ;;  %10359 = vmatmul.mubr.msk.bf16.vlgmr.msra.gmra.mxu0 %vm2562_vm4, %v7192_v25  ;;  %v7186_v33 = vmul.f32 %v11085_v5, %v12892_v50  ;;  %v10901_v50 = vld [vmem:[#allocation7 + $0x1b0] ss:$12 sps:$4 sm:$0xff]   ;;  %v7936_v5 = vsel %vm2185_vm1, %v7931_v56, 0 }
 0xf18   :  { %v7185_v47 = vmul.f32 %v11087_v60, %v12894_v16  ;;  %10369 = vmatpush3.bf16.msra.mxu0 %v7476_v63  ;;  %10370 = vmatprep.mubr.msk.bf16.mxu0 %vm11219_vm0, %v13386_v40  ;;  %v10903_v16 = vld [vmem:[#allocation7 + $0x1b4] ss:$12 sps:$4 sm:$0xff]  }
 0xf19   :  { %7668 = vmatprep.subr.bf16.mxu0 %v10900_v46  ;;  %v7194_v58 = vpack.c.bf16 %v7186_v33, %v7186_v33 }
 0xf1a   :  { %v7193_v45 = vpack.c.bf16 %v7185_v47, %v7185_v47 }
 0xf1c   :  { %10365 = vmatmul.mubr.msk.bf16.vlgmr.msra.gmra.mxu1 %vm2562_vm4, %v7193_v45 }
 0xf1d   :  { %10375 = vmatpush3.bf16.msra.mxu1 %v7522_v3  ;;  %10376 = vmatprep.mubr.msk.bf16.mxu1 %vm11219_vm0, %v13386_v40 }
 0xf1e   :  { %v11089_v4 = vpop.eup %11088  ;;  %10380 = vmatprep.subr.bf16.mxu1 %v10907_v32 }
 0xf1f   :  { %v7187_v20 = vmul.f32 %v11089_v4, %v12900_v26  ;;  %10371 = vmatmul.mubr.msk.bf16.vlgmr.msra.gmra.mxu0 %vm2562_vm4, %v7194_v58  ;;  %v10910_v26 = vld [vmem:[#allocation7 + $0x184] ss:$12 sps:$4 sm:$0xff]  }
 0xf20   :  { %7669 = vmatpush1.bf16.msra.mxu0 %v10898_v36  ;;  %7692 = vmatprep.mubr.bf16.mxu0 %v13412_v53  ;;  %v7832_v36 = vsel %vm2185_vm1, %v7827_v14, 0 }
 0xf21   :  { %v7195_v27 = vpack.c.bf16 %v7187_v20, %v7187_v20  ;;  %7670 = vmatprep.subr.bf16.mxu0 %v10903_v16 }
 0xf24   :  { %10377 = vmatmul.mubr.msk.bf16.vlgmr.msra.gmra.mxu1 %vm2562_vm4, %v7195_v27  ;;  %7671 = vmatpush1.bf16.msra.mxu0 %v10901_v50  ;;  %v7824_v50 = vpop.permute.xlu1 %7823 }
 0xf25   :  { %7672 = vmatprep.subr.bf16.mxu0 %v10906_v28  ;;  %10381 = vmatpush3.bf16.msra.mxu1 %v10907_v32 }
 0xf26   :  { %10382 = vmatprep.subr.bf16.mxu1 %v10911_v15 }
 0xf28   :  { %7673 = vmatpush1.bf16.msra.mxu0 %v10904_v7 }
 0xf29   :  { %7674 = vmatprep.subr.bf16.mxu0 %v10910_v26  ;;  %10383 = vmatpush3.bf16.msra.mxu1 %v10911_v15  ;;  %v7879_v15 = vpop.permute.xlu1 %7878 }
 0xf2a   :  { %10384 = vmatprep.subr.bf16.mxu1 %v10912_v1 }
 0xf2c   :  { %7675 = vmatpush1.bf16.msra.mxu0 %v10908_v22 }
 0xf2d   :  { %10408 = vmatprep.subr.bf16.mxu0 %v13386_v40  ;;  %10385 = vmatpush3.bf16.msra.mxu1 %v10912_v1 }
 0xf2e   :  { %10386 = vmatprep.subr.bf16.mxu1 %v10913_v39 }
 0xf31   :  { %10387 = vmatpush3.bf16.msra.mxu1 %v10913_v39 }
 0xf32   :  { %10396 = vmatprep.subr.bf16.mxu1 %v13386_v40 }
 0xfc3   :  { %v7236_v24 = vpop.f32.mrf.mxu0 }
 0xfc5   :  { %v10336_v62 = vpop.f32.mrf.mxu0 }
 0xfc7   :  { %v7239_v61 = vpop.f32.mrf.mxu0 }
 0xfc9   :  { %v10337_v12 = vpop.f32.mrf.mxu0 }
 0xfcb   :  { %v7282_v55 = vpop.f32.mrf.mxu1  ;;  %v7328_v43 = vpop.f32.mrf.mxu0 }
 0xfcc   :  { %v7564_v37 = vpack.c.bf16 %v7282_v55, %v7236_v24  ;;  %v7928_v24 = vpop.permute.xlu0 %7927  ;;  %v7876_v55 = vpop.permute.xlu1 %7875 }
 0xfcd   :  { %v10342_v25 = vpop.f32.mrf.mxu1  ;;  %v10348_v46 = vpop.f32.mrf.mxu0 }
 0xfce   :  { %9476 = vmatmul.mubr.msk.bf16.vlgmr.msra.gmra.mxu0 %vm2185_vm1, %v7564_v37  ;;  %10388 = vmatprep.mubr.msk.bf16.mxu1 %vm2185_vm1, %v7564_v37 }
 0xfcf   :  { %10409 = vmatpush3.bf16.xpose.msra.mxu0 %v7936_v5  ;;  %v7285_v60 = vpop.f32.mrf.mxu1  ;;  %v7331_v63 = vpop.f32.mrf.mxu0  ;;  %7702 = vmatprep.mubr.bf16.mxu0 %v13412_v53 }
 0xfd0   :  { %10420 = vmatprep.subr.bf16.mxu0 %v13386_v40  ;;  %v8035_v37 = vpop.permute.xlu0 %8034  ;;  %v7983_v5 = vpop.permute.xlu1 %7982 }
 0xfd1   :  { %v10343_v41 = vpop.f32.mrf.mxu1  ;;  %v10349_v47 = vpop.f32.mrf.mxu0  ;;  %v8040_v63 = vsel %vm2185_vm1, %v8035_v37, 0 }
 0xfd2   :  { %v7884_v41 = vsel %vm2185_vm1, %v7879_v15, 0 }
 0xfd3   :  { %v7374_v33 = vpop.f32.mrf.mxu1 }
 0xfd4   :  { %v7565_v45 = vpack.c.bf16 %v7374_v33, %v7328_v43  ;;  %v8032_v60 = vpop.permute.xlu0 %8031  ;;  %v7980_v47 = vpop.permute.xlu1 %7979 }
 0xfd5   :  { %v10354_v3 = vpop.f32.mrf.mxu1 }
 0xfd6   :  { %9477 = vmatmul.mubr.msk.bf16.gmra.mxu0 %vm2185_vm1, %v7565_v45  ;;  %10389 = vmatmul.mubr.msk.bf16.vlgmr.msra.gmra.mxu1 %vm2185_vm1, %v7565_v45  ;;  %v7988_v3 = vsel %vm2185_vm1, %v7983_v5, 0 }
 0xfd7   :  { %10397 = vmatpush3.bf16.xpose.msra.mxu1 %v7832_v36  ;;  %v7377_v58 = vpop.f32.mrf.mxu1  ;;  %v7420_v16 = vpop.f32.mrf.mxu0  ;;  %7712 = vmatprep.mubr.bf16.mxu0 %v13412_v53 }
 0xfd8   :  { %10402 = vmatprep.subr.bf16.mxu1 %v13386_v40  ;;  %v8139_v33 = vpop.permute.xlu0 %8138  ;;  %v8087_v36 = vpop.permute.xlu1 %8086 }
 0xfd9   :  { %v10355_v4 = vpop.f32.mrf.mxu1  ;;  %v10360_v20 = vpop.f32.mrf.mxu0  ;;  %v8144_v45 = vsel %vm2185_vm1, %v8139_v33, 0 }
 0xfda   :  { %v8092_v4 = vsel %vm2185_vm1, %v8087_v36, 0 }
 0xfdb   :  { %v7423_v27 = vpop.f32.mrf.mxu0 }
 0xfdc   :  { %v7466_v7 = vpop.f32.mrf.mxu1  ;;  %v8136_v58 = vpop.permute.xlu0 %8135 }
 0xfdd   :  { %v7566_v28 = vpack.c.bf16 %v7466_v7, %v7420_v16  ;;  %v10361_v32 = vpop.f32.mrf.mxu0  ;;  %v8084_v16 = vpop.permute.xlu1 %8083 }
 0xfde   :  { %v10366_v22 = vpop.f32.mrf.mxu1  ;;  %v13487_v32 = vld [vmem:[#allocation41_spill] sm:$0xff] }
 0xfdf   :  { %9478 = vmatmul.mubr.msk.bf16.gmra.mxu0 %vm2185_vm1, %v7566_v28  ;;  %10392 = vmatprep.mubr.msk.bf16.mxu1 %vm2185_vm1, %v7566_v28  ;;  %v7512_v26 = vpop.f32.mrf.mxu0  ;;  %v13486_v28 = vld [vmem:[#allocation33_spill] sm:$0xff] }
 0xfe0   :  { %v7469_v1 = vpop.f32.mrf.mxu1  ;;  %7722 = vmatprep.mubr.bf16.mxu0 %v13412_v53  ;;  %v4311_v22 = vadd.f32 %v13487_v32, %v13486_v28 }
 0xfe1   :  { %v10372_v39 = vpop.f32.mrf.mxu0  ;;  %v8191_v20 = vpop.permute.xlu1 %8190 }
 0xfe2   :  { %v10367_v14 = vpop.f32.mrf.mxu1  ;;  %v5510_v1 = vadd.f32 %v12462_v38, %v4311_v22 }
 0xfe3   :  { %v7515_v62 = vpop.f32.mrf.mxu0 }
 0xfe4   :  { %v7558_v61 = vpop.f32.mrf.mxu1  ;;  %v6680_v14 = vadd.f32 %v12791_v54, %v5510_v1  ;;  %v13494_v1 = vld [vmem:[#allocation36_spill] sm:$0xff] }
 0xfe5   :  { %v7567_v12 = vpack.c.bf16 %v7558_v61, %v7512_v26  ;;  %v10373_v56 = vpop.f32.mrf.mxu0  ;;  %v8188_v27 = vpop.permute.xlu1 %8187 }
 0xfe6   :  { %v10378_v43 = vpop.f32.mrf.mxu1 }
 0xfe7   :  { %9479 = vmatmul.mubr.msk.bf16.gmra.mxu0 %vm2185_vm1, %v7567_v12  ;;  %10393 = vmatmul.mubr.msk.bf16.gmra.mxu1 %vm2185_vm1, %v7567_v12  ;;  %v13488_v43 = vld [vmem:[#allocation14_spill] sm:$0xff] }
 0xfe8   :  { %v7561_v25 = vpop.f32.mrf.mxu1  ;;  %10398 = vmatprep.mubr.msk.bf16.mxu1 %vm11219_vm0, %v13386_v40  ;;  %10410 = vmatprep.mubr.msk.bf16.mxu0 %vm11219_vm0, %v13386_v40 }
 0xfe9   :  { %v13490_v25 = vld [vmem:[#allocation39_spill] sm:$0xff] }
 0xfea   :  { %v10379_v46 = vpop.f32.mrf.mxu1 }
 0xfeb   :  { %v13491_v46 = vld [vmem:[#allocation16_spill] sm:$0xff] }
 0xfec   :  { %v4321_v38 = vadd.f32 %v13491_v46, %v13490_v25  ;;  %v13500_v25 = vld [vmem:[#allocation47_spill] sm:$0xff] }
 0xfef   :  { %10399 = vmatmul.mubr.msk.bf16.vlgmr.msra.gmra.mxu1 %vm2185_vm1, %v7824_v50  ;;  %10411 = vmatmul.mubr.msk.bf16.vlgmr.msra.gmra.mxu0 %vm2185_vm1, %v7928_v24  ;;  %v8196_v50 = vsel %vm2185_vm1, %v8191_v20, 0 }
 0xff0   :  { %10403 = vmatpush3.bf16.xpose.msra.mxu1 %v7884_v41  ;;  %10421 = vmatpush3.bf16.xpose.msra.mxu0 %v8040_v63 }
 0xff1   :  { %10404 = vmatprep.mubr.msk.bf16.mxu1 %vm11219_vm0, %v13386_v40  ;;  %10414 = vmatprep.subr.bf16.mxu1 %v13386_v40 }
 0xff2   :  { %10422 = vmatprep.mubr.msk.bf16.mxu0 %vm11219_vm0, %v13386_v40  ;;  %10432 = vmatprep.subr.bf16.mxu0 %v13386_v40 }
 0xff7   :  { %10405 = vmatmul.mubr.msk.bf16.vlgmr.msra.gmra.mxu1 %vm2185_vm1, %v7876_v55  ;;  %10423 = vmatmul.mubr.msk.bf16.vlgmr.msra.gmra.mxu0 %vm2185_vm1, %v8032_v60  ;;  %v5516_v60 = vadd.f32 %v12482_v6, %v4321_v38  ;;  %v13501_v38 = vld [vmem:[#allocation46_spill] sm:$0xff] }
 0xff8   :  { %10415 = vmatpush3.bf16.xpose.msra.mxu1 %v7988_v3  ;;  %10433 = vmatpush3.bf16.xpose.msra.mxu0 %v8144_v45 }
 0xff9   :  { %10416 = vmatprep.mubr.msk.bf16.mxu1 %vm11219_vm0, %v13386_v40  ;;  %10426 = vmatprep.subr.bf16.mxu1 %v13386_v40 }
 0xffa   :  { %10434 = vmatprep.mubr.msk.bf16.mxu0 %vm11219_vm0, %v13386_v40  ;;  %10444 = vmatprep.subr.bf16.mxu0 %v13386_v40 }
 0xfff   :  { %10417 = vmatmul.mubr.msk.bf16.vlgmr.msra.gmra.mxu1 %vm2185_vm1, %v7980_v47  ;;  %10435 = vmatmul.mubr.msk.bf16.vlgmr.msra.gmra.mxu0 %vm2185_vm1, %v8136_v58 }
0x1000   :  { %10427 = vmatpush3.bf16.xpose.msra.mxu1 %v8092_v4  ;;  %10428 = vmatprep.mubr.msk.bf16.mxu1 %vm11219_vm0, %v13386_v40  ;;  %v13493_v4 = vld [vmem:[#allocation65_spill] sm:$0xff] }
0x1001   :  { %10438 = vmatprep.subr.bf16.mxu1 %v13386_v40  ;;  %10446 = vmatprep.mubr.msk.bf16.mxu0 %vm11219_vm0, %v13386_v40 }
0x1007   :  { %10429 = vmatmul.mubr.msk.bf16.vlgmr.msra.gmra.mxu1 %vm2185_vm1, %v8084_v16  ;;  %v13492_v16 = vld [vmem:[#allocation13_spill] sm:$0xff] }
0x1008   :  { %10439 = vmatpush3.bf16.xpose.msra.mxu1 %v8196_v50  ;;  %10440 = vmatprep.mubr.msk.bf16.mxu1 %vm11219_vm0, %v13386_v40  ;;  %v4331_v20 = vadd.f32 %v13493_v4, %v13492_v16 }
0x1009   :  { %10450 = vmatprep.subr.bf16.mxu1 %v13386_v40 }
0x100f   :  { %10441 = vmatmul.mubr.msk.bf16.vlgmr.msra.gmra.mxu1 %vm2185_vm1, %v8188_v27 }
0x1010   :  { %10452 = vmatprep.mubr.msk.bf16.mxu1 %vm11219_vm0, %v13386_v40 }
0x108e   :  { %v7694_v7 = vpop.f32.mrf.mxu0 }
0x108f   :  { %v13066_v26 = vadd.f32 %v7694_v7, %v12783_v21  ;;  %v13489_v21 = vld [vmem:[#allocation40_spill] sm:$0xff] }
0x1090   :  { %v7696_v15 = vpop.f32.mrf.mxu0  ;;  %v4381_v37 = vadd.f32 %v13489_v21, %v13488_v43  ;;  %v13499_v21 = vld [vmem:[#allocation45_spill] sm:$0xff] }
0x1091   :  { %v13070_v39 = vadd.f32 %v7696_v15, %v12786_v42 }
0x1092   :  { %v7698_v24 = vpop.f32.mrf.mxu0  ;;  %v5511_v63 = vadd.f32 %v12493_v59, %v4381_v37 }
0x1093   :  { %v13074_v62 = vadd.f32 %v7698_v24, %v12789_v10 }
0x1094   :  { %v7700_v61 = vpop.f32.mrf.mxu0  ;;  %v6681_v3 = vadd.f32 %v12822_v9, %v5511_v63  ;;  %v13502_v63 = vld [vmem:[#allocation49_spill] sm:$0xff] }
0x1095   :  { %v13076_v12 = vadd.f32 %v7700_v61, %v6680_v14  ;;  %v13496_v14 = vld [vmem:[#allocation12_spill] sm:$0xff]  ;;  %v13497_v61 = vld [vmem:[#allocation66_spill] sm:$0xff] }
0x1096   :  { %v7704_v56 = vpop.f32.mrf.mxu0  ;;  %v10390_v55 = vpop.f32.mrf.mxu1 }
0x1097   :  { %v13083_v42 = vadd.f32 %v7704_v56, %v12794_v8  ;;  %v13086_v5 = vadd.f32 %v10390_v55, %v12797_v13  ;;  %v6686_v8 = vadd.f32 %v12811_v23, %v5516_v60  ;;  %v13498_v55 = vld [vmem:[#allocation42_spill] sm:$0xff] }
0x1098   :  { %v7706_v54 = vpop.f32.mrf.mxu0  ;;  %v7767_v10 = vpop.f32.mrf.mxu1 }
0x1099   :  { %v13091_v41 = vadd.f32 %v7706_v54, %v12800_v11  ;;  %v13094_v47 = vadd.f32 %v7767_v10, %v12803_v31 }
0x109a   :  { %v7708_v33 = vpop.f32.mrf.mxu0  ;;  %v10391_v45 = vpop.f32.mrf.mxu1 }
0x109b   :  { %v13099_v13 = vadd.f32 %v7708_v33, %v12806_v29  ;;  %v13102_v36 = vadd.f32 %v10391_v45, %v12809_v19  ;;  %v5522_v29 = vadd.f32 %v12495_v52, %v4331_v20  ;;  %v4341_v52 = vadd.f32 %v13497_v61, %v13496_v14  ;;  %v13503_v33 = vld [vmem:[#allocation29_spill] sm:$0xff] }
0x109c   :  { %v7710_v6 = vpop.f32.mrf.mxu0  ;;  %v7770_v59 = vpop.f32.mrf.mxu1 }
0x109d   :  { %v13104_v58 = vadd.f32 %v7710_v6, %v6686_v8  ;;  %v13106_v11 = vadd.f32 %v7770_v59, %v6681_v3  ;;  %v6692_v27 = vadd.f32 %v12824_v51, %v5522_v29  ;;  %v5528_v43 = vadd.f32 %v13498_v55, %v4341_v52  ;;  %v13505_v3 = vld [vmem:[#allocation50_spill] sm:$0xff] }
0x109f   :  { %v7714_v31 = vpop.f32.mrf.mxu0 }
0x10a0   :  { %v13111_v23 = vadd.f32 %v7714_v31, %v12814_v34  ;;  %v13495_v34 = vld [vmem:[#allocation15_spill] sm:$0xff] }
0x10a1   :  { %v7716_v9 = vpop.f32.mrf.mxu0  ;;  %v4397_v24 = vadd.f32 %v13495_v34, %v13494_v1 }
0x10a2   :  { %v13115_v50 = vadd.f32 %v7716_v9, %v12817_v17 }
0x10a3   :  { %v7718_v19 = vpop.f32.mrf.mxu0  ;;  %v5523_v37 = vadd.f32 %v13499_v21, %v4397_v24 }
0x10a4   :  { %v13119_v7 = vadd.f32 %v7718_v19, %v12820_v0 }
0x10a5   :  { %v7720_v28 = vpop.f32.mrf.mxu0  ;;  %v6693_v45 = vadd.f32 %v13503_v33, %v5523_v37 }
0x10a6   :  { %v13121_v32 = vadd.f32 %v7720_v28, %v6692_v27 }
0x10a7   :  { %v7724_v22 = vpop.f32.mrf.mxu0  ;;  %v10394_v15 = vpop.f32.mrf.mxu1 }
0x10a8   :  { %v13128_v17 = vadd.f32 %v7724_v22, %v12827_v35  ;;  %v13131_v56 = vadd.f32 %v10394_v15, %v12830_v57  ;;  %v6698_v35 = vadd.f32 %v13502_v63, %v5528_v43  ;;  %v13504_v57 = vld [vmem:[#allocation48_spill] sm:$0xff] }
0x10a9   :  { %v7726_v51 = vpop.f32.mrf.mxu0  ;;  %v7783_v0 = vpop.f32.mrf.mxu1 }
0x10aa   :  { %v13136_v46 = vadd.f32 %v7726_v51, %v13500_v25  ;;  %v13139_v54 = vadd.f32 %v7783_v0, %v13501_v38 }
0x10ab   :  { %v7728_v10 = vpop.f32.mrf.mxu0  ;;  %v10395_v60 = vpop.f32.mrf.mxu1 }
0x10ac   :  { %v13144_v8 = vadd.f32 %v7728_v10, %v13504_v57  ;;  %v13147_v6 = vadd.f32 %v10395_v60, %v13505_v3 }
0x10ad   :  { %v7730_v59 = vpop.f32.mrf.mxu0  ;;  %v7786_v31 = vpop.f32.mrf.mxu1 }
0x10ae   :  { %v13149_v16 = vadd.f32 %v7730_v59, %v6698_v35  ;;  %v13151_v4 = vadd.f32 %v7786_v31, %v6693_v45 }
0x10af   :  { %v7868_v20 = vpop.f32.mrf.mxu1  ;;  %v7972_v9 = vpop.f32.mrf.mxu0 }
0x10b0   :  { %v8238_v19 = vsel %vm11648_vm3, %v7868_v20, -1e+30  ;;  %v8240_v15 = vsel %vm11648_vm3, %v7972_v9, -1e+30 }
0x10b1   :  { %v8246_v27 = vsel %vm2562_vm4, %v8238_v19, -inf  ;;  %v10400_v28 = vpop.f32.mrf.mxu1  ;;  %v10412_v22 = vpop.f32.mrf.mxu0  ;;  %v8252_v24 = vsel %vm2562_vm4, %v8240_v15, -inf }
0x10b2   :  { %8247 = vmax.xlane.f32.xlu0 %v8246_v27 }
0x10b3   :  { %v7871_v1 = vpop.f32.mrf.mxu1  ;;  %v7975_v34 = vpop.f32.mrf.mxu0 }
0x10b5   :  { %v10401_v14 = vpop.f32.mrf.mxu1  ;;  %v10413_v61 = vpop.f32.mrf.mxu0 }
0x10b6   :  { %8253 = vmax.xlane.f32.xlu0 %v8252_v24  ;;  %v13507_v24 = vld [vmem:[#allocation43_spill] sm:$0xff] }
0x10b7   :  { %v7920_v52 = vpop.f32.mrf.mxu1  ;;  %v8076_v51 = vpop.f32.mrf.mxu0 }
0x10b8   :  { %v8239_v0 = vsel %vm11648_vm3, %v7920_v52, -1e+30  ;;  %v13163_v55 = vsel %vm11648_vm3, %v8076_v51, -1e+30 }
0x10b9   :  { %v8249_v43 = vsel %vm2562_vm4, %v8239_v0, -inf  ;;  %v8258_v21 = vsel %vm2562_vm4, %v13163_v55, -inf  ;;  %v10406_v37 = vpop.f32.mrf.mxu1  ;;  %v10424_v25 = vpop.f32.mrf.mxu0 }
0x10ba   :  { %8259 = vmax.xlane.f32.xlu0 %v8258_v21  ;;  %8250 = vmax.xlane.f32.xlu1 %v8249_v43  ;;  %v13508_v37 = vld [vmem:[#allocation44_spill] sm:$0xff] }
0x10bb   :  { %v7923_v38 = vpop.f32.mrf.mxu1  ;;  %v8079_v10 = vpop.f32.mrf.mxu0 }
0x10bd   :  { %v10407_v60 = vpop.f32.mrf.mxu1  ;;  %v10425_v63 = vpop.f32.mrf.mxu0 }
0x10bf   :  { %v8024_v35 = vpop.f32.mrf.mxu1  ;;  %v8180_v33 = vpop.f32.mrf.mxu0 }
0x10c0   :  { %v13170_v45 = vsel %vm11648_vm3, %v8024_v35, -1e+30  ;;  %v13176_v31 = vsel %vm11648_vm3, %v8180_v33, -1e+30 }
0x10c1   :  { %v8255_v57 = vsel %vm2562_vm4, %v13170_v45, -inf  ;;  %v10418_v3 = vpop.f32.mrf.mxu1  ;;  %v10436_v59 = vpop.f32.mrf.mxu0  ;;  %v8264_v27 = vsel %vm2562_vm4, %v13176_v31, -inf }
0x10c2   :  { %8256 = vmax.xlane.f32.xlu0 %v8255_v57 }
0x10c3   :  { %v8027_v20 = vpop.f32.mrf.mxu1  ;;  %v8183_v9 = vpop.f32.mrf.mxu0 }
0x10c5   :  { %v10419_v28 = vpop.f32.mrf.mxu1  ;;  %v10437_v22 = vpop.f32.mrf.mxu0 }
0x10c6   :  { %8265 = vmax.xlane.f32.xlu0 %v8264_v27 }
0x10c7   :  { %v8128_v1 = vpop.f32.mrf.mxu1 }
0x10c8   :  { %v8243_v25 = vsel %vm11648_vm3, %v8128_v1, -1e+30 }
0x10c9   :  { %v10430_v34 = vpop.f32.mrf.mxu1  ;;  %v8261_v38 = vsel %vm2562_vm4, %v8243_v25, -inf }
0x10cb   :  { %8392 = vrot.lane.b32.xlu1 %v13507_v24, %s11220_s0  ;;  %v8131_v14 = vpop.f32.mrf.mxu1 }
0x10cd   :  { %v10431_v61 = vpop.f32.mrf.mxu1 }
0x10cf   :  { %8441 = vrot.lane.b32.xlu1 %v12938_v44, %s11220_s0  ;;  %v8232_v52 = vpop.f32.mrf.mxu1 }
0x10d0   :  { %v8245_v10 = vsel %vm11648_vm3, %v8232_v52, -1e+30 }
0x10d1   :  { %v10442_v51 = vpop.f32.mrf.mxu1  ;;  %v8267_v60 = vsel %vm2562_vm4, %v8245_v10, -inf }
0x10d3   :  { %v8235_v43 = vpop.f32.mrf.mxu1 }
0x10d5   :  { %v10443_v21 = vpop.f32.mrf.mxu1 }
0x10dc   :  { %8343 = vrot.lane.b32.xlu0 %v13508_v37, %s11220_s0 }
0x10f3   :  { %8262 = vmax.xlane.f32.xlu1 %v8261_v38 }
0x10f7   :  { %8268 = vmax.xlane.f32.xlu1 %v8267_v60 }
0x1108   :  { %8490 = vrot.lane.b32.xlu1 %v12950_v30, %s11220_s0 }
0x113b   :  { %v8248_v44 = vpop.xlane.xlu0 %8247 }
0x113c   :  { %v8270_v63 = vsub.f32 %v8238_v19, %v8248_v44 }
0x113e   :  { %v8278_v35 = vmul.f32 1.442695, %v8270_v63 }
0x113f   :  { %v8254_v33 = vpop.xlane.xlu0 %8253 }
0x1140   :  { %11090 = vpow2.f32 %v8278_v35  ;;  %v8272_v57 = vsub.f32 %v8240_v15, %v8254_v33 }
0x1142   :  { %v8282_v3 = vmul.f32 1.442695, %v8272_v57 }
0x1143   :  { %v8251_v59 = vpop.xlane.xlu1 %8250  ;;  %v8260_v29 = vpop.xlane.xlu0 %8259 }
0x1144   :  { %11092 = vpow2.f32 %v8282_v3  ;;  %v8271_v20 = vsub.f32 %v8239_v0, %v8251_v59  ;;  %v8274_v52 = vsub.f32 %v13163_v55, %v8260_v29 }
0x1146   :  { %v8280_v9 = vmul.f32 1.442695, %v8271_v20  ;;  %v8286_v51 = vmul.f32 1.442695, %v8274_v52 }
0x1147   :  { %v8393_v27 = vpop.permute.xlu1 %8392 }
0x1148   :  { %v8398_v28 = vsel %vm2662_vm2, %v8393_v27, 0  ;;  %11094 = vpow2.f32 %v8280_v9 }
0x1149   :  { %10451 = vmatpush3.bf16.msra.mxu1 %v8398_v28  ;;  %11096 = vpow2.f32 %v8286_v51 }
0x114a   :  { %10462 = vmatprep.subr.bf16.mxu1 %v13386_v40 }
0x114b   :  { %v8257_v30 = vpop.xlane.xlu0 %8256  ;;  %v8442_v38 = vpop.permute.xlu1 %8441 }
0x114c   :  { %v8273_v21 = vsub.f32 %v13170_v45, %v8257_v30 }
0x114d   :  { %v11091_v22 = vpop.eup %11090 }
0x114e   :  { %v8294_v19 = vsel %vm2562_vm4, %v11091_v22, 0.0  ;;  %v8284_v60 = vmul.f32 1.442695, %v8273_v21 }
0x114f   :  { %8295 = vadd.xlane.f32.xlu0 %v8294_v19  ;;  %v8266_v1 = vpop.xlane.xlu0 %8265 }
0x1150   :  { %v8276_v43 = vsub.f32 %v13176_v31, %v8266_v1 }
0x1151   :  { %v11093_v15 = vpop.eup %11092 }
0x1152   :  { %v8300_v34 = vsel %vm2562_vm4, %v11093_v15, 0.0  ;;  %v8290_v37 = vmul.f32 1.442695, %v8276_v43 }
0x1153   :  { %8301 = vadd.xlane.f32.xlu0 %v8300_v34  ;;  %v8344_v0 = vpop.permute.xlu0 %8343 }
0x1154   :  { %v8349_v24 = vsel %vm2662_vm2, %v8344_v0, 0  ;;  %11098 = vpow2.f32 %v8290_v37 }
0x1155   :  { %10445 = vmatpush3.bf16.msra.mxu0 %v8349_v24  ;;  %v11095_v14 = vpop.eup %11094  ;;  %11100 = vpow2.f32 %v8284_v60  ;;  %v8447_v24 = vsel %vm2662_vm2, %v8442_v38, 0 }
0x1156   :  { %10456 = vmatprep.subr.bf16.mxu0 %v13386_v40  ;;  %v8297_v61 = vsel %vm2562_vm4, %v11095_v14, 0.0  ;;  %v11097_v57 = vpop.eup %11096 }
0x1157   :  { %8298 = vadd.xlane.f32.xlu1 %v8297_v61  ;;  %v8306_v55 = vsel %vm2562_vm4, %v11097_v57, 0.0 }
0x1161   :  { %v13209_v31 = vpop.eup %11098 }
0x1162   :  { %v13211_v45 = vpop.eup %11100  ;;  %v8312_v3 = vsel %vm2562_vm4, %v13209_v31, 0.0 }
0x1168   :  { %8588 = vrot.lane.b32.xlu1 %v12972_v2, %s11220_s0 }
0x1169   :  { %8539 = vrot.lane.b32.xlu0 %v12956_v48, %s11220_s0 }
0x117c   :  { %v8263_v44 = vpop.xlane.xlu1 %8262 }
0x117d   :  { %v8275_v63 = vsub.f32 %v8243_v25, %v8263_v44  ;;  %v8303_v25 = vsel %vm2562_vm4, %v13211_v45, 0.0 }
0x117f   :  { %v8288_v35 = vmul.f32 1.442695, %v8275_v63 }
0x1180   :  { %v8269_v2 = vpop.xlane.xlu1 %8268 }
0x1181   :  { %11102 = vpow2.f32 %v8288_v35  ;;  %v8277_v33 = vsub.f32 %v8245_v10, %v8269_v2 }
0x1183   :  { %v8292_v48 = vmul.f32 1.442695, %v8277_v33 }
0x1184   :  { %v8491_v28 = vpop.permute.xlu1 %8490 }
0x1185   :  { %11104 = vpow2.f32 %v8292_v48  ;;  %v8496_v21 = vsel %vm2662_vm2, %v8491_v28, 0  ;;  %v10916_v48 = vld [vmem:[#allocation7 + $0x22c] ss:$12 sps:$4 sm:$0xff]   ;;  %v10914_v28 = vld [vmem:[#allocation7 + $0x228] ss:$12 sps:$4 sm:$0xff]  }
0x1188   :  { %8307 = vadd.xlane.f32.xlu0 %v8306_v55 }
0x118c   :  { %8313 = vadd.xlane.f32.xlu0 %v8312_v3  ;;  %8304 = vadd.xlane.f32.xlu1 %v8303_v25 }
0x118e   :  { %v13217_v59 = vpop.eup %11102 }
0x118f   :  { %v8309_v10 = vsel %vm2562_vm4, %v13217_v59, 0.0 }
0x1190   :  { %8310 = vadd.xlane.f32.xlu1 %v8309_v10 }
0x1192   :  { %v13221_v20 = vpop.eup %11104 }
0x1193   :  { %v8315_v9 = vsel %vm2562_vm4, %v13221_v20, 0.0 }
0x1194   :  { %8316 = vadd.xlane.f32.xlu1 %v8315_v9 }
0x11a2   :  { %8637 = vrot.lane.b32.xlu0 %v12977_v18, %s11220_s0 }
0x11a5   :  { %8686 = vrot.lane.b32.xlu1 %v12991_v49, %s11220_s0 }
0x11d8   :  { %v8296_v29 = vpop.xlane.xlu0 %8295 }
0x11d9   :  { %11106 = vrcp.f32 %v8296_v29 }
0x11dc   :  { %v8302_v27 = vpop.xlane.xlu0 %8301 }
0x11dd   :  { %11108 = vrcp.f32 %v8302_v27 }
0x11e0   :  { %v8299_v30 = vpop.xlane.xlu1 %8298  ;;  %v8540_v61 = vpop.permute.xlu0 %8539 }
0x11e1   :  { %11110 = vrcp.f32 %v8299_v30 }
0x11e6   :  { %v11107_v19 = vpop.eup %11106 }
0x11e7   :  { %v8326_v1 = vmul.f32 %v11107_v19, %v11091_v22  ;;  %v8545_v22 = vsel %vm2662_vm2, %v8540_v61, 0 }
0x11e9   :  { %v8334_v34 = vpack.c.bf16 %v8326_v1, %v8326_v1 }
0x11ea   :  { %v11109_v0 = vpop.eup %11108 }
0x11eb   :  { %10447 = vmatmul.mubr.msk.bf16.vlgmr.msra.gmra.mxu0 %vm2562_vm4, %v8334_v34  ;;  %v8328_v18 = vmul.f32 %v11109_v0, %v11093_v15  ;;  %v10922_v0 = vld [vmem:[#allocation7 + $0x1fc] ss:$12 sps:$4 sm:$0xff]  }
0x11ec   :  { %10457 = vmatpush3.bf16.msra.mxu0 %v8447_v24  ;;  %10458 = vmatprep.mubr.msk.bf16.mxu0 %vm11219_vm0, %v13386_v40 }
0x11ed   :  { %10468 = vmatprep.subr.bf16.mxu0 %v13386_v40  ;;  %v8336_v51 = vpack.c.bf16 %v8328_v18, %v8328_v18 }
0x11ee   :  { %v11111_v49 = vpop.eup %11110 }
0x11ef   :  { %v8327_v52 = vmul.f32 %v11111_v49, %v11095_v14  ;;  %v8589_v14 = vpop.permute.xlu1 %8588  ;;  %v10920_v49 = vld [vmem:[#allocation7 + $0x1f8] ss:$12 sps:$4 sm:$0xff]  }
0x11f0   :  { %v8594_v27 = vsel %vm2662_vm2, %v8589_v14, 0 }
0x11f1   :  { %v8335_v43 = vpack.c.bf16 %v8327_v52, %v8327_v52  ;;  %v10923_v52 = vld [vmem:[#allocation7 + $0x1e0] ss:$12 sps:$4 sm:$0xff]  }
0x11f3   :  { %10459 = vmatmul.mubr.msk.bf16.vlgmr.msra.gmra.mxu0 %vm2562_vm4, %v8336_v51  ;;  %10453 = vmatmul.mubr.msk.bf16.vlgmr.msra.gmra.mxu1 %vm2562_vm4, %v8335_v43  ;;  %v10926_v43 = vld [vmem:[#allocation7 + $0x230] ss:$12 sps:$4 sm:$0xff]  }
0x11f4   :  { %10469 = vmatpush3.bf16.msra.mxu0 %v8545_v22  ;;  %10463 = vmatpush3.bf16.msra.mxu1 %v8496_v21  ;;  %v10927_v22 = vld [vmem:[#allocation7 + $0x218] ss:$12 sps:$4 sm:$0xff]   ;;  %v10928_v21 = vld [vmem:[#allocation7 + $0x200] ss:$12 sps:$4 sm:$0xff]  }
0x11f5   :  { %10470 = vmatprep.mubr.msk.bf16.mxu0 %vm11219_vm0, %v13386_v40  ;;  %10480 = vmatprep.subr.bf16.mxu0 %v13386_v40 }
0x11f6   :  { %10464 = vmatprep.mubr.msk.bf16.mxu1 %vm11219_vm0, %v13386_v40  ;;  %10474 = vmatprep.subr.bf16.mxu1 %v13386_v40 }
0x1211   :  { %v8308_v15 = vpop.xlane.xlu0 %8307 }
0x1212   :  { %11112 = vrcp.f32 %v8308_v15 }
0x1215   :  { %v8314_v37 = vpop.xlane.xlu0 %8313  ;;  %v8305_v38 = vpop.xlane.xlu1 %8304 }
0x1216   :  { %11114 = vrcp.f32 %v8314_v37 }
0x1217   :  { %11116 = vrcp.f32 %v8305_v38 }
0x1219   :  { %v8311_v60 = vpop.xlane.xlu1 %8310  ;;  %v8638_v2 = vpop.permute.xlu0 %8637 }
0x121a   :  { %11118 = vrcp.f32 %v8311_v60  ;;  %v8643_v25 = vsel %vm2662_vm2, %v8638_v2, 0 }
0x121d   :  { %v8317_v35 = vpop.xlane.xlu1 %8316 }
0x121e   :  { %11120 = vrcp.f32 %v8317_v35 }
0x121f   :  { %v11113_v44 = vpop.eup %11112 }
0x1220   :  { %v8330_v63 = vmul.f32 %v11113_v44, %v11097_v57 }
0x1221   :  { %v8687_v1 = vpop.permute.xlu1 %8686 }
0x1222   :  { %v8338_v33 = vpack.c.bf16 %v8330_v63, %v8330_v63  ;;  %v8692_v18 = vsel %vm2662_vm2, %v8687_v1, 0 }
0x1223   :  { %v11115_v55 = vpop.eup %11114 }
0x1224   :  { %v11117_v3 = vpop.eup %11116  ;;  %10471 = vmatmul.mubr.msk.bf16.vlgmr.msra.gmra.mxu0 %vm2562_vm4, %v8338_v33  ;;  %v8332_v9 = vmul.f32 %v11115_v55, %v13209_v31  ;;  %v10917_v31 = vld [vmem:[#allocation7 + $0x210] ss:$12 sps:$4 sm:$0xff]  }
0x1225   :  { %v8329_v10 = vmul.f32 %v11117_v3, %v13211_v45  ;;  %10481 = vmatpush3.bf16.msra.mxu0 %v8643_v25  ;;  %10482 = vmatprep.mubr.msk.bf16.mxu0 %vm11219_vm0, %v13386_v40  ;;  %v10919_v45 = vld [vmem:[#allocation7 + $0x214] ss:$12 sps:$4 sm:$0xff]  }
0x1226   :  { %8838 = vmatprep.subr.bf16.mxu0 %v10916_v48  ;;  %v8340_v30 = vpack.c.bf16 %v8332_v9, %v8332_v9 }
0x1227   :  { %v8337_v57 = vpack.c.bf16 %v8329_v10, %v8329_v10  ;;  %v11119_v29 = vpop.eup %11118 }
0x1228   :  { %v8331_v19 = vmul.f32 %v11119_v29, %v13217_v59  ;;  %v10925_v59 = vld [vmem:[#allocation7 + $0x1e4] ss:$12 sps:$4 sm:$0xff]  }
0x1229   :  { %10465 = vmatmul.mubr.msk.bf16.vlgmr.msra.gmra.mxu1 %vm2562_vm4, %v8337_v57 }
0x122a   :  { %10475 = vmatpush3.bf16.msra.mxu1 %v8594_v27  ;;  %10476 = vmatprep.mubr.msk.bf16.mxu1 %vm11219_vm0, %v13386_v40  ;;  %v8339_v34 = vpack.c.bf16 %v8331_v19, %v8331_v19 }
0x122b   :  { %10486 = vmatprep.subr.bf16.mxu1 %v13386_v40  ;;  %v11121_v24 = vpop.eup %11120 }
0x122c   :  { %10483 = vmatmul.mubr.msk.bf16.vlgmr.msra.gmra.mxu0 %vm2562_vm4, %v8340_v30  ;;  %v8333_v61 = vmul.f32 %v11121_v24, %v13221_v20 }
0x122d   :  { %8839 = vmatpush1.bf16.msra.mxu0 %v10914_v28  ;;  %8862 = vmatprep.mubr.bf16.mxu0 %v13412_v53 }
0x122e   :  { %8840 = vmatprep.subr.bf16.mxu0 %v10919_v45  ;;  %v8341_v51 = vpack.c.bf16 %v8333_v61, %v8333_v61 }
0x1231   :  { %10477 = vmatmul.mubr.msk.bf16.vlgmr.msra.gmra.mxu1 %vm2562_vm4, %v8339_v34  ;;  %8841 = vmatpush1.bf16.msra.mxu0 %v10917_v31 }
0x1232   :  { %10487 = vmatpush3.bf16.msra.mxu1 %v8692_v18  ;;  %10488 = vmatprep.mubr.msk.bf16.mxu1 %vm11219_vm0, %v13386_v40  ;;  %v10929_v40 = vld [vmem:[#allocation7 + $0x1e8] ss:$12 sps:$4 sm:$0xff]  }
0x1233   :  { %8842 = vmatprep.subr.bf16.mxu0 %v10922_v0  ;;  %10492 = vmatprep.subr.bf16.mxu1 %v10926_v43 }
0x1235   :  { %8843 = vmatpush1.bf16.msra.mxu0 %v10920_v49 }
0x1236   :  { %8844 = vmatprep.subr.bf16.mxu0 %v10925_v59 }
0x1239   :  { %10489 = vmatmul.mubr.msk.bf16.vlgmr.msra.gmra.mxu1 %vm2562_vm4, %v8341_v51  ;;  %8845 = vmatpush1.bf16.msra.mxu0 %v10923_v52 }
0x123a   :  { %10493 = vmatpush3.bf16.msra.mxu1 %v10926_v43 }
0x123b   :  { %10494 = vmatprep.subr.bf16.mxu1 %v10927_v22 }
0x123e   :  { %10495 = vmatpush3.bf16.msra.mxu1 %v10927_v22  ;;  %v8992_v22 = vld [vmem:[%s13344_s3] sm:$0x7]  ;;  %s11221_s3 = smov [#allocation8]  }
0x123f   :  { %10496 = vmatprep.subr.bf16.mxu1 %v10928_v21  ;;  %s9075_s10 = sshll.u32 %s11221_s3, 4  ;;  %s9076_s10 = int_to_ptr.vmem [resolvable:$true] %s9075_s10 }
0x1240   :  { %s11182_s11 = scalar_lea.vmem %s9076_s10, 3072  ;;  %p11187_p2 = scmp.lt.s32.totalorder %s9076_s10, %s9076_s10 }
0x1241   :  { %p11183_p1 = scmp.ne.s32.totalorder %s9076_s10, %s11182_s11  ;;  %p11188_p3 = scmp.lt.s32.totalorder %s11182_s11, %s11182_s11 }
0x1242   :  { %10497 = vmatpush3.bf16.msra.mxu1 %v10928_v21  ;;  %v8993_v21 = vunpack.c.l.bf16 %v8992_v22 }
0x1243   :  { %10498 = vmatprep.subr.bf16.mxu1 %v10929_v40  ;;  %p11189_p4 = por %p11188_p3, %p11187_p2 }
0x1245   :  { %p11190_p5 = pnand %p11189_p4, %p11183_p1 }
0x1246   :  { %10499 = vmatpush3.bf16.msra.mxu1 %v10929_v40  ;;  %v13509_v40 = vld [vmem:[#allocation62_spill] sm:$0xff] }
0x12ab   :  { %v8385_v20 = vpop.f32.mrf.mxu0 }
0x12ad   :  { %v10448_v15 = vpop.f32.mrf.mxu0 }
0x12ae   :  { %v9001_v15 = vsub.s32 2, %v13509_v40 }
0x12af   :  { %v8388_v14 = vpop.f32.mrf.mxu0 }
0x12b0   :  { %v9002_v14 = vrot.slane %v8993_v21, %v9001_v15 }
0x12b1   :  { %v10449_v37 = vpop.f32.mrf.mxu0 }
0x12b3   :  { %v8483_v38 = vpop.f32.mrf.mxu0  ;;  %v8434_v60 = vpop.f32.mrf.mxu1 }
0x12b4   :  { %v8734_v44 = vpack.c.bf16 %v8434_v60, %v8385_v20  ;;  %v8997_v20 = vsub.s32 0, %v13509_v40 }
0x12b5   :  { %v10460_v63 = vpop.f32.mrf.mxu0  ;;  %v10454_v35 = vpop.f32.mrf.mxu1 }
0x12b6   :  { %9512 = vmatmul.mubr.msk.bf16.vlgmr.msra.gmra.mxu0 %vm2185_vm1, %v8734_v44  ;;  %10500 = vmatprep.mubr.msk.bf16.mxu1 %vm2185_vm1, %v8734_v44  ;;  %v13283_v44 = vrot.slane %v9002_v14, %v8997_v20 }
0x12b7   :  { %v8486_v2 = vpop.f32.mrf.mxu0  ;;  %v8437_v33 = vpop.f32.mrf.mxu1  ;;  %8872 = vmatprep.mubr.bf16.mxu0 %v13412_v53 }
0x12b9   :  { %v10461_v48 = vpop.f32.mrf.mxu0  ;;  %v10455_v55 = vpop.f32.mrf.mxu1 }
0x12e4   :  { %v8581_v3 = vpop.f32.mrf.mxu0 }
0x12e6   :  { %v10472_v25 = vpop.f32.mrf.mxu0 }
0x12e8   :  { %v8584_v10 = vpop.f32.mrf.mxu0 }
0x12e9   :  { %v8532_v9 = vpop.f32.mrf.mxu1 }
0x12ea   :  { %v8735_v57 = vpack.c.bf16 %v8532_v9, %v8483_v38  ;;  %v10473_v29 = vpop.f32.mrf.mxu0  ;;  %v9005_v9 = vsub.s32 4, %v13509_v40 }
0x12eb   :  { %v10466_v27 = vpop.f32.mrf.mxu1 }
0x12ec   :  { %9513 = vmatmul.mubr.msk.bf16.gmra.mxu0 %vm2185_vm1, %v8735_v57  ;;  %10501 = vmatmul.mubr.msk.bf16.vlgmr.msra.gmra.mxu1 %vm2185_vm1, %v8735_v57  ;;  %v8679_v28 = vpop.f32.mrf.mxu0  ;;  %v9006_v57 = vrot.slane %v8993_v21, %v9005_v9 }
0x12ed   :  { %v8535_v30 = vpop.f32.mrf.mxu1  ;;  %8882 = vmatprep.mubr.bf16.mxu0 %v13412_v53 }
0x12ee   :  { %v10484_v45 = vpop.f32.mrf.mxu0 }
0x12ef   :  { %v10467_v19 = vpop.f32.mrf.mxu1 }
0x12f0   :  { %v8682_v31 = vpop.f32.mrf.mxu0 }
0x12f1   :  { %v8630_v1 = vpop.f32.mrf.mxu1 }
0x12f2   :  { %v8736_v34 = vpack.c.bf16 %v8630_v1, %v8581_v3  ;;  %v10485_v0 = vpop.f32.mrf.mxu0 }
0x12f3   :  { %v10478_v24 = vpop.f32.mrf.mxu1 }
0x12f4   :  { %9514 = vmatmul.mubr.msk.bf16.gmra.mxu0 %vm2185_vm1, %v8736_v34  ;;  %10504 = vmatprep.mubr.msk.bf16.mxu1 %vm2185_vm1, %v8736_v34 }
0x12f5   :  { %v8633_v18 = vpop.f32.mrf.mxu1  ;;  %8892 = vmatprep.mubr.bf16.mxu0 %v13412_v53  ;;  %v8998_v53 = vrot.slane %v8993_v21, %v8997_v20 }
0x12f7   :  { %v10479_v49 = vpop.f32.mrf.mxu1  ;;  %v13280_v37 = vrot.slane %v8998_v53, %v8997_v20 }
0x12f9   :  { %v8728_v59 = vpop.f32.mrf.mxu1 }
0x12fa   :  { %v8737_v61 = vpack.c.bf16 %v8728_v59, %v8679_v28 }
0x12fb   :  { %v10490_v52 = vpop.f32.mrf.mxu1 }
0x12fc   :  { %9515 = vmatmul.mubr.msk.bf16.gmra.mxu0 %vm2185_vm1, %v8737_v61  ;;  %10505 = vmatmul.mubr.msk.bf16.gmra.mxu1 %vm2185_vm1, %v8737_v61 }
0x12fd   :  { %v8731_v51 = vpop.f32.mrf.mxu1 }
0x12ff   :  { %v10491_v43 = vpop.f32.mrf.mxu1 }
0x1376   :  { %v8864_v38 = vpop.f32.mrf.mxu0 }
0x1377   :  { %v8968_v60 = vadd.f32 %v8864_v38, %v13066_v26 }
0x1378   :  { %v8866_v63 = vpop.f32.mrf.mxu0 }
0x1379   :  { %v9022_v35 = vadd.f32 %v13280_v37, %v8968_v60  ;;  %v8969_v2 = vadd.f32 %v8866_v63, %v13070_v39  ;;  %v13293_v39 = vrot.slane %v9006_v57, %v8997_v20 }
0x137a   :  { %v8868_v33 = vpop.f32.mrf.mxu0 }
0x137b   :  { %9046 = vst [vmem:[#allocation8] sm:$0xff] %v9022_v35  ;;  %v9023_v48 = vadd.f32 %v13283_v44, %v8969_v2  ;;  %v8971_v55 = vadd.f32 %v8868_v33, %v13074_v62 }
0x137c   :  { %v8870_v3 = vpop.f32.mrf.mxu0 }
0x137d   :  { %9047 = vst [vmem:[#allocation8 + $0x8] sm:$0xff] %v9023_v48  ;;  %v9025_v25 = vadd.f32 %v13280_v37, %v8971_v55  ;;  %v8972_v10 = vadd.f32 %v8870_v3, %v13076_v12 }
0x137f   :  { %9049 = vst [vmem:[#allocation8 + $0x18] sm:$0xff] %v9025_v25  ;;  %v9026_v26 = vadd.f32 %v13283_v44, %v8972_v10 }
0x1381   :  { %9050 = vst [vmem:[#allocation8 + $0x20] sm:$0xff] %v9026_v26 }
0x13ac   :  { %v8874_v29 = vpop.f32.mrf.mxu0  ;;  %v10502_v27 = vpop.f32.mrf.mxu1 }
0x13ad   :  { %v8974_v28 = vadd.f32 %v8874_v29, %v13083_v42  ;;  %v8976_v62 = vadd.f32 %v10502_v27, %v13086_v5 }
0x13ae   :  { %v8876_v30 = vpop.f32.mrf.mxu0  ;;  %v8937_v45 = vpop.f32.mrf.mxu1 }
0x13af   :  { %v9028_v19 = vadd.f32 %v13280_v37, %v8974_v28  ;;  %v9030_v12 = vadd.f32 %v13293_v39, %v8976_v62  ;;  %v8975_v31 = vadd.f32 %v8876_v30, %v13091_v41  ;;  %v8970_v1 = vadd.f32 %v8937_v45, %v13094_v47 }
0x13b0   :  { %v8878_v34 = vpop.f32.mrf.mxu0  ;;  %v10503_v0 = vpop.f32.mrf.mxu1 }
0x13b1   :  { %9052 = vst [vmem:[#allocation8 + $0x30] sm:$0xff] %v9028_v19  ;;  %9054 = vst [vmem:[#allocation8 + $0x40] sm:$0xff] %v9030_v12  ;;  %v9029_v24 = vadd.f32 %v13283_v44, %v8975_v31  ;;  %v9024_v42 = vadd.f32 %v13293_v39, %v8970_v1  ;;  %v8977_v5 = vadd.f32 %v8878_v34, %v13099_v13 }
0x13b2   :  { %v8979_v18 = vadd.f32 %v10503_v0, %v13102_v36  ;;  %v8880_v49 = vpop.f32.mrf.mxu0  ;;  %v8940_v59 = vpop.f32.mrf.mxu1 }
0x13b3   :  { %9053 = vst [vmem:[#allocation8 + $0x38] sm:$0xff] %v9029_v24  ;;  %9048 = vst [vmem:[#allocation8 + $0x10] sm:$0xff] %v9024_v42  ;;  %v9031_v41 = vadd.f32 %v13280_v37, %v8977_v5  ;;  %v8978_v61 = vadd.f32 %v8880_v49, %v13104_v58  ;;  %v8973_v52 = vadd.f32 %v8940_v59, %v13106_v11 }
0x13b4   :  { %v9033_v47 = vadd.f32 %v13293_v39, %v8979_v18  ;;  %v8884_v51 = vpop.f32.mrf.mxu0 }
0x13b5   :  { %9055 = vst [vmem:[#allocation8 + $0x48] sm:$0xff] %v9031_v41  ;;  %v9032_v43 = vadd.f32 %v13283_v44, %v8978_v61  ;;  %v9027_v13 = vadd.f32 %v13293_v39, %v8973_v52  ;;  %v8980_v36 = vadd.f32 %v8884_v51, %v13111_v23 }
0x13b6   :  { %9057 = vst [vmem:[#allocation8 + $0x58] sm:$0xff] %v9033_v47  ;;  %v8886_v22 = vpop.f32.mrf.mxu0 }
0x13b7   :  { %9056 = vst [vmem:[#allocation8 + $0x50] sm:$0xff] %v9032_v43  ;;  %9051 = vst [vmem:[#allocation8 + $0x28] sm:$0xff] %v9027_v13  ;;  %v9034_v21 = vadd.f32 %v13280_v37, %v8980_v36  ;;  %v8981_v40 = vadd.f32 %v8886_v22, %v13115_v50 }
0x13b8   :  { %v8888_v20 = vpop.f32.mrf.mxu0 }
0x13b9   :  { %9058 = vst [vmem:[#allocation8 + $0x60] sm:$0xff] %v9034_v21  ;;  %v9035_v58 = vadd.f32 %v13283_v44, %v8981_v40  ;;  %v8983_v11 = vadd.f32 %v8888_v20, %v13119_v7 }
0x13ba   :  { %v8890_v15 = vpop.f32.mrf.mxu0 }
0x13bb   :  { %9059 = vst [vmem:[#allocation8 + $0x68] sm:$0xff] %v9035_v58  ;;  %v9037_v53 = vadd.f32 %v13280_v37, %v8983_v11  ;;  %v8984_v14 = vadd.f32 %v8890_v15, %v13121_v32 }
0x13bc   :  { %v8894_v23 = vpop.f32.mrf.mxu0  ;;  %v10506_v38 = vpop.f32.mrf.mxu1 }
0x13bd   :  { %9061 = vst [vmem:[#allocation8 + $0x78] sm:$0xff] %v9037_v53  ;;  %v9038_v60 = vadd.f32 %v13283_v44, %v8984_v14  ;;  %v8986_v63 = vadd.f32 %v8894_v23, %v13128_v17  ;;  %v8988_v50 = vadd.f32 %v10506_v38, %v13131_v56 }
0x13be   :  { %v8896_v35 = vpop.f32.mrf.mxu0  ;;  %v8953_v2 = vpop.f32.mrf.mxu1 }
0x13bf   :  { %9062 = vst [vmem:[#allocation8 + $0x80] sm:$0xff] %v9038_v60  ;;  %v9040_v7 = vadd.f32 %v13280_v37, %v8986_v63  ;;  %v9042_v33 = vadd.f32 %v13293_v39, %v8988_v50  ;;  %v8987_v48 = vadd.f32 %v8896_v35, %v13136_v46  ;;  %v8982_v32 = vadd.f32 %v8953_v2, %v13139_v54 }
0x13c0   :  { %v8898_v55 = vpop.f32.mrf.mxu0  ;;  %v10507_v3 = vpop.f32.mrf.mxu1 }
0x13c1   :  { %9064 = vst [vmem:[#allocation8 + $0x90] sm:$0xff] %v9040_v7  ;;  %9066 = vst [vmem:[#allocation8 + $0xa0] sm:$0xff] %v9042_v33  ;;  %v9041_v25 = vadd.f32 %v13283_v44, %v8987_v48  ;;  %v9036_v17 = vadd.f32 %v13293_v39, %v8982_v32  ;;  %v8989_v56 = vadd.f32 %v8898_v55, %v13144_v8 }
0x13c2   :  { %v8991_v10 = vadd.f32 %v10507_v3, %v13147_v6  ;;  %v8900_v26 = vpop.f32.mrf.mxu0  ;;  %v8956_v9 = vpop.f32.mrf.mxu1 }
0x13c3   :  { %9065 = vst [vmem:[#allocation8 + $0x98] sm:$0xff] %v9041_v25  ;;  %9060 = vst [vmem:[#allocation8 + $0x70] sm:$0xff] %v9036_v17  ;;  %v9043_v46 = vadd.f32 %v13280_v37, %v8989_v56  ;;  %v8990_v57 = vadd.f32 %v8900_v26, %v13149_v16  ;;  %v8985_v29 = vadd.f32 %v8956_v9, %v13151_v4 }
0x13c4   :  { %v9045_v54 = vadd.f32 %v13293_v39, %v8991_v10 }
0x13c5   :  { %9067 = vst [vmem:[#allocation8 + $0xa8] sm:$0xff] %v9043_v46  ;;  %v9044_v8 = vadd.f32 %v13283_v44, %v8990_v57  ;;  %v9039_v6 = vadd.f32 %v13293_v39, %v8985_v29 }
0x13c6   :  { %9069 = vst [vmem:[#allocation8 + $0xb8] sm:$0xff] %v9045_v54 }
0x13c7   :  { %9068 = vst [vmem:[#allocation8 + $0xb0] sm:$0xff] %v9044_v8  ;;  %9063 = vst [vmem:[#allocation8 + $0x88] sm:$0xff] %v9039_v6 }
0x13c8   :  { %11193 = shalt.err (!%p11190_p5)
}
0x13c9   :  { %9081 = dma.vmem_to_hbm [thread:$0]  %s9076_s10, 3072, %s13345_s4, [#allocation4], %s11212_s25, %s11212_s25, %s11213_s26  }
0x13ca   :  { %11206 = dma.done.wait [#allocation4], 3072  }
0x13cb   :  { %11207 = vsyncadd [#allocation4], 4294964224 }
0x13cc   :  { %9085 = vsyncpa [#allocation3], 1 }
0x13cd   :  { %9086 = vsyncpa [#allocation6], 1 }
0x13ce   :  { %9087 = vsyncpa [#allocation4], 1 }

</bundles_post_ra>
